<compile_context>
chip_gen: v7x
topology: tpu7x:2x2x1
jax: 0.10.0
libtpu: 0.0.40
codegen_flags: <defaults>
</compile_context>

<pallas_src>
import functools
import math

import jax
import jax.numpy as jnp
from jax.experimental import pallas as pl
from jax.experimental.pallas import tpu as pltpu

LANE = 128
# Explicit scoped-VMEM request: far above our worst-case double-buffered
# working set (~4 MiB) and still safe on v7x (64 MiB physical per TensorCore).
VMEM_LIMIT_BYTES = 32 * 1024 * 1024


def _round_up(x, m):
    return (x + m - 1) // m * m


# ----------------------------- Pallas kernels ------------------------------


def matmul_bn_kernel(x_ref, w_ref, scale_ref, shift_ref, *refs, relu, has_res):
    """Tiled matmul, f32 VMEM accumulator, fused BN (+residual)(+ReLU) epilogue."""
    if has_res:
        res_ref, o_ref, acc_ref = refs
    else:
        o_ref, acc_ref = refs

    @pl.when(pl.program_id(2) == 0)
    def _init():
        acc_ref[...] = jnp.zeros_like(acc_ref)

    acc_ref[...] += jnp.dot(x_ref[...], w_ref[...],
                            preferred_element_type=jnp.float32)

    @pl.when(pl.program_id(2) == pl.num_programs(2) - 1)
    def _epilogue():
        y = acc_ref[...] * scale_ref[...] + shift_ref[...]        # f32 epilogue
        if has_res:
            y = y + res_ref[...].astype(jnp.float32)              # fused residual
        if relu:
            y = jnp.maximum(y, 0.0)
        o_ref[...] = y.astype(o_ref.dtype)


def conv3x3_s1_kernel(x_ref, w_ref, scale_ref, shift_ref, *refs,
                      oh, ow, relu, has_res):
    """Implicit-GEMM 3x3 stride-1 conv: the 9 taps are sliced from the padded
    activation tile in VMEM and accumulated on the MXU (no im2col in HBM)."""
    if has_res:
        res_ref, o_ref = refs
    else:
        (o_ref,) = refs
    # Slice/reshape in f32 (layout-trivial on (8,128) tiles); matmul in bf16.
    x = x_ref[0].astype(jnp.float32)                      # (oh+2, ow+2, cin)
    cin = x.shape[-1]
    tn = o_ref.shape[-1]
    acc = jnp.zeros((oh * ow, tn), jnp.float32)
    for ki in range(3):
        for kj in range(3):
            xs = x[ki:ki + oh, kj:kj + ow, :].reshape(oh * ow, cin)
            acc = acc + jnp.dot(xs.astype(jnp.bfloat16), w_ref[ki * 3 + kj],
                                preferred_element_type=jnp.float32)
    y = acc * scale_ref[...] + shift_ref[...]
    if has_res:
        y = y + res_ref[0].astype(jnp.float32).reshape(oh * ow, tn)
    if relu:
        y = jnp.maximum(y, 0.0)
    o_ref[0] = y.reshape(oh, ow, tn).astype(o_ref.dtype)


def maxpool3x3_s2_kernel(ee_ref, eo_ref, oe_ref, oo_ref, o_ref, *, oh, ow):
    """3x3/stride-2 max pool.  Inputs are the four row/col parity splits of the
    (-inf padded) activation, so every window tap is a contiguous slice; the
    running max is computed in a single pass."""
    m = ee_ref[0, 0:oh, 0:ow, :]
    m = jnp.maximum(m, ee_ref[0, 0:oh, 1:ow + 1, :])
    m = jnp.maximum(m, ee_ref[0, 1:oh + 1, 0:ow, :])
    m = jnp.maximum(m, ee_ref[0, 1:oh + 1, 1:ow + 1, :])
    m = jnp.maximum(m, eo_ref[0, 0:oh, 0:ow, :])
    m = jnp.maximum(m, eo_ref[0, 1:oh + 1, 0:ow, :])
    m = jnp.maximum(m, oe_ref[0, 0:oh, 0:ow, :])
    m = jnp.maximum(m, oe_ref[0, 0:oh, 1:ow + 1, :])
    m = jnp.maximum(m, oo_ref[0, 0:oh, 0:ow, :])
    o_ref[0] = m


def gap_kernel(x_ref, o_ref):
    # Global average pool over the flattened spatial axis, f32 accumulation.
    o_ref[...] = jnp.mean(x_ref[...].astype(jnp.float32), axis=1)


# ----------------------------- kernel wrappers ------------------------------


def matmul_bn_act(x, w, scale, shift, *, relu, residual=None,
                  out_dtype=jnp.float32, tm=512, tn=256, tk=512):
    """y = (x @ w) * scale + shift [+ residual] [ReLU].

    M/N/K are zero-padded up to the tile grid (lane-dense stores; also covers
    the Cin=3 stem's K=147 and the num_classes=10 FC).  Inputs are cast to
    bf16 for the MXU; accumulation and the epilogue stay f32.  Tile budget
    (<= ~4 MiB double-buffered) is sized well under v7x's 64 MiB VMEM.
    """
    M, K = x.shape
    K2, N = w.shape
    assert K == K2
    tm = min(tm, _round_up(M, 8))
    tn = min(tn, _round_up(N, LANE))
    tk = min(tk, _round_up(K, LANE))
    Mp, Np, Kp = _round_up(M, tm), _round_up(N, tn), _round_up(K, tk)

    xp = jnp.pad(x.astype(jnp.bfloat16), ((0, Mp - M), (0, Kp - K)))
    wp = jnp.pad(w.astype(jnp.bfloat16), ((0, Kp - K), (0, Np - N)))
    sp = jnp.pad(scale.reshape(1, -1).astype(jnp.float32), ((0, 0), (0, Np - N)))
    bp = jnp.pad(shift.reshape(1, -1).astype(jnp.float32), ((0, 0), (0, Np - N)))

    args = [xp, wp, sp, bp]
    in_specs = [
        pl.BlockSpec((tm, tk), lambda i, j, k: (i, k)),
        pl.BlockSpec((tk, tn), lambda i, j, k: (k, j)),
        pl.BlockSpec((1, tn), lambda i, j, k: (0, j)),    # BN scale: once per N tile
        pl.BlockSpec((1, tn), lambda i, j, k: (0, j)),    # BN shift
    ]
    if residual is not None:
        rp = jnp.pad(residual.astype(jnp.bfloat16), ((0, Mp - M), (0, Np - N)))
        args.append(rp)
        in_specs.append(pl.BlockSpec((tm, tn), lambda i, j, k: (i, j)))

    bytes_accessed = 2 * (Mp * Kp + Kp * Np) + Mp * Np * jnp.dtype(out_dtype).itemsize
    bytes_accessed += 8 * Np + (2 * Mp * Np if residual is not None else 0)

    out = pl.pallas_call(
        functools.partial(matmul_bn_kernel, relu=relu,
                          has_res=residual is not None),
        out_shape=jax.ShapeDtypeStruct((Mp, Np), out_dtype),
        grid_spec=pltpu.PrefetchScalarGridSpec(
            num_scalar_prefetch=0,
            grid=(Mp // tm, Np // tn, Kp // tk),
            in_specs=in_specs,
            out_specs=pl.BlockSpec((tm, tn), lambda i, j, k: (i, j)),
            scratch_shapes=[pltpu.VMEM((tm, tn), jnp.float32)]),
        compiler_params=pltpu.CompilerParams(
            dimension_semantics=("parallel", "parallel", "arbitrary"),
            vmem_limit_bytes=VMEM_LIMIT_BYTES),
        cost_estimate=pl.CostEstimate(flops=2 * Mp * Np * Kp, transcendentals=0,
                                      bytes_accessed=int(bytes_accessed)),
    )(*args)
    if Mp != M or Np != N:
        out = out[:M, :N]
    return out


def conv3x3_s1_implicit(x, w9, scale, shift, *, relu, residual=None):
    """Implicit-GEMM 3x3 stride-1 conv.  x: (N,H,W,Cin) bf16 (Cin lane-padded),
    w9: (9, Cin, Cout) bf16, scale/shift: (1, Cout) f32."""
    n, h, w, cin = x.shape
    cout = w9.shape[-1]
    oh, ow = h, w
    xp = jnp.pad(x, ((0, 0), (1, 1), (1, 1), (0, 0)))
    tn = LANE
    grid = (n, cout // tn)
    in_specs = [
        pl.BlockSpec((1, h + 2, w + 2, cin), lambda b, j: (b, 0, 0, 0)),
        pl.BlockSpec((9, cin, tn), lambda b, j: (0, 0, j)),
        pl.BlockSpec((1, tn), lambda b, j: (0, j)),
        pl.BlockSpec((1, tn), lambda b, j: (0, j)),
    ]
    args = [xp, w9, scale, shift]
    if residual is not None:
        in_specs.append(pl.BlockSpec((1, oh, ow, tn), lambda b, j: (b, 0, 0, j)))
        args.append(residual)

    flops = 2 * n * oh * ow * 9 * cin * cout
    bytes_accessed = 2 * (xp.size + w9.size + n * oh * ow * cout) + 8 * cout
    if residual is not None:
        bytes_accessed += 2 * n * oh * ow * cout

    return pl.pallas_call(
        functools.partial(conv3x3_s1_kernel, oh=oh, ow=ow, relu=relu,
                          has_res=residual is not None),
        out_shape=jax.ShapeDtypeStruct((n, oh, ow, cout), jnp.bfloat16),
        grid_spec=pltpu.PrefetchScalarGridSpec(
            num_scalar_prefetch=0,
            grid=grid,
            in_specs=in_specs,
            out_specs=pl.BlockSpec((1, oh, ow, tn), lambda b, j: (b, 0, 0, j))),
        compiler_params=pltpu.CompilerParams(
            dimension_semantics=("parallel", "parallel"),
            vmem_limit_bytes=VMEM_LIMIT_BYTES),
        cost_estimate=pl.CostEstimate(flops=flops, transcendentals=0,
                                      bytes_accessed=int(bytes_accessed)),
    )(*args)


def maxpool3x3_s2(x):
    n, h, w, c = x.shape
    assert h % 2 == 0 and w % 2 == 0 and c % LANE == 0
    oh, ow = h // 2, w // 2
    xp = jnp.pad(x, ((0, 0), (1, 1), (1, 1), (0, 0)), constant_values=-jnp.inf)
    # Row/col parity split (1x the data, rearranged at XLA level) so all 9
    # window taps become contiguous slices inside the kernel.
    ee = xp[:, 0::2, 0::2, :]
    eo = xp[:, 0::2, 1::2, :]
    oe = xp[:, 1::2, 0::2, :]
    oo = xp[:, 1::2, 1::2, :]                  # each (n, oh+1, ow+1, c)
    tn = LANE
    par_spec = pl.BlockSpec((1, oh + 1, ow + 1, tn), lambda b, j: (b, 0, 0, j))
    return pl.pallas_call(
        functools.partial(maxpool3x3_s2_kernel, oh=oh, ow=ow),
        out_shape=jax.ShapeDtypeStruct((n, oh, ow, c), x.dtype),
        grid_spec=pltpu.PrefetchScalarGridSpec(
            num_scalar_prefetch=0,
            grid=(n, c // tn),
            in_specs=[par_spec, par_spec, par_spec, par_spec],
            out_specs=pl.BlockSpec((1, oh, ow, tn), lambda b, j: (b, 0, 0, j))),
        compiler_params=pltpu.CompilerParams(
            dimension_semantics=("parallel", "parallel"),
            vmem_limit_bytes=VMEM_LIMIT_BYTES),
    )(ee, eo, oe, oo)


def global_avg_pool(x):
    n, h, w, c = x.shape
    xf = x.reshape(n, h * w, c)
    tn = LANE
    return pl.pallas_call(
        gap_kernel,
        out_shape=jax.ShapeDtypeStruct((n, c), jnp.float32),
        grid_spec=pltpu.PrefetchScalarGridSpec(
            num_scalar_prefetch=0,
            grid=(c // tn,),
            in_specs=[pl.BlockSpec((n, h * w, tn), lambda j: (0, 0, j))],
            out_specs=pl.BlockSpec((n, tn), lambda j: (0, j))),
        compiler_params=pltpu.CompilerParams(
            dimension_semantics=("parallel",),
            vmem_limit_bytes=VMEM_LIMIT_BYTES),
    )(xf)


# ------------------------------- JAX glue ----------------------------------


def im2col(x, kh, kw, stride, pad):
    """x: NHWC -> (N*OH*OW, kh*kw*C) patch matrix (kh,kw outer, C inner)."""
    n, h, w, c = x.shape
    xp = jnp.pad(x, ((0, 0), (pad, pad), (pad, pad), (0, 0)))
    oh = (h + 2 * pad - kh) // stride + 1
    ow = (w + 2 * pad - kw) // stride + 1
    cols = []
    for i in range(kh):
        for j in range(kw):
            cols.append(xp[:, i:i + stride * oh:stride, j:j + stride * ow:stride, :])
    patches = jnp.stack(cols, axis=3)                  # (N, OH, OW, kh*kw, C)
    return patches.reshape(n * oh * ow, kh * kw * c), oh, ow


def conv_bn_act(x, p, *, stride, pad, relu, residual=None):
    """Bias-free conv + folded BN (+fused residual) (+ReLU).  x: NHWC bf16."""
    wt = p["w"]
    kh, kw, cin, cout = wt.shape
    n, h, w, c = x.shape
    assert c == cin
    oh = (h + 2 * pad - kh) // stride + 1
    ow = (w + 2 * pad - kw) // stride + 1
    if kh == 3 and stride == 1 and pad == 1 and ow % 8 == 0:
        return conv3x3_s1_implicit(x, wt.reshape(9, cin, cout),
                                   p["scale"], p["shift"],
                                   relu=relu, residual=residual)
    if kh == 1:
        patches = x[:, ::stride, ::stride, :].reshape(n * oh * ow, cin)
    else:
        patches, oh, ow = im2col(x, kh, kw, stride, pad)
    res2d = None if residual is None else residual.reshape(n * oh * ow, cout)
    y = matmul_bn_act(patches, wt.reshape(kh * kw * cin, cout),
                      p["scale"], p["shift"],
                      relu=relu, residual=res2d, out_dtype=jnp.bfloat16)
    return y.reshape(n, oh, ow, cout)


def basic_block(x, blk, stride):
    identity = x
    out = conv_bn_act(x, blk["conv1"], stride=stride, pad=1, relu=True)
    if "down" in blk:
        identity = conv_bn_act(x, blk["down"], stride=stride, pad=0, relu=False)
    # residual add + ReLU fused into conv2's epilogue
    return conv_bn_act(out, blk["conv2"], stride=1, pad=1, relu=True,
                       residual=identity)


def resnet18_forward(prepared, x_nchw):
    x = jnp.transpose(x_nchw, (0, 2, 3, 1)).astype(jnp.bfloat16)   # NCHW -> NHWC
    x = conv_bn_act(x, prepared["conv1"], stride=2, pad=3, relu=True)
    x = maxpool3x3_s2(x)
    for li, layer in enumerate(prepared["layers"]):
        for bi, blk in enumerate(layer):
            stride = 2 if (li > 0 and bi == 0) else 1
            x = basic_block(x, blk, stride)
    feat = global_avg_pool(x)                                      # (N, 512) f32
    fc = prepared["fc"]
    logits = matmul_bn_act(feat, fc["w"], fc["scale"], fc["shift"],
                           relu=False, out_dtype=jnp.float32)
    return logits


# ----------------------------- parameter init -------------------------------


def init_params(key, num_classes):
    keys = iter(jax.random.split(key, 64))

    def conv_w(cout, cin, k):
        fan_out = cout * k * k                  # kaiming_normal(fan_out), as in resnet
        std = math.sqrt(2.0 / fan_out)
        return std * jax.random.normal(next(keys), (cout, cin, k, k), jnp.float32)

    def bn(c):
        return dict(gamma=jnp.ones((c,), jnp.float32), beta=jnp.zeros((c,), jnp.float32),
                    mean=jnp.zeros((c,), jnp.float32), var=jnp.ones((c,), jnp.float32))

    params = dict(conv1_w=conv_w(64, 3, 7), bn1=bn(64))
    layers = []
    in_c = 64
    for out_c, stride in [(64, 1), (128, 2), (256, 2), (512, 2)]:
        blocks = []
        for bi in range(2):
            s = stride if bi == 0 else 1
            blk = dict(conv1_w=conv_w(out_c, in_c, 3), bn1=bn(out_c),
                       conv2_w=conv_w(out_c, out_c, 3), bn2=bn(out_c))
            if s != 1 or in_c != out_c:
                blk["down_w"] = conv_w(out_c, in_c, 1)
                blk["down_bn"] = bn(out_c)
            blocks.append(blk)
            in_c = out_c
        layers.append(blocks)
    params["layers"] = layers
    # fc: xavier_uniform weight, zero bias (as in the PyTorch module)
    a = math.sqrt(6.0 / (512 + num_classes))
    params["fc_w"] = jax.random.uniform(next(keys), (num_classes, 512),
                                        jnp.float32, minval=-a, maxval=a)
    params["fc_b"] = jnp.zeros((num_classes,), jnp.float32)
    return params


def _fold_bn(bn, eps=1e-5):
    scale = bn["gamma"] / jnp.sqrt(bn["var"] + eps)
    shift = bn["beta"] - bn["mean"] * scale
    return scale, shift


def _prep_conv(w_oihw, bn, cin_act):
    """Fold BN, pad channels to lane-padded sizes, go OIHW->HWIO, cast bf16."""
    cout, cin, _, _ = w_oihw.shape
    cout_p = _round_up(cout, LANE)
    scale, shift = _fold_bn(bn)
    w = jnp.transpose(w_oihw, (2, 3, 1, 0))                  # (KH, KW, Cin, Cout)
    w = jnp.pad(w, ((0, 0), (0, 0), (0, cin_act - cin), (0, cout_p - cout)))
    scale = jnp.pad(scale, (0, cout_p - cout)).reshape(1, -1).astype(jnp.float32)
    shift = jnp.pad(shift, (0, cout_p - cout)).reshape(1, -1).astype(jnp.float32)
    return dict(w=w.astype(jnp.bfloat16), scale=scale, shift=shift)


def prepare_params(params):
    prepared = dict(conv1=_prep_conv(params["conv1_w"], params["bn1"], cin_act=3))
    layers = []
    in_c_act = LANE                      # conv1 output channels, lane-padded 64 -> 128
    for layer in params["layers"]:
        blocks = []
        for blk in layer:
            out_c_act = _round_up(blk["conv1_w"].shape[0], LANE)
            p = dict(conv1=_prep_conv(blk["conv1_w"], blk["bn1"], in_c_act),
                     conv2=_prep_conv(blk["conv2_w"], blk["bn2"], out_c_act))
            if "down_w" in blk:
                p["down"] = _prep_conv(blk["down_w"], blk["down_bn"], in_c_act)
            blocks.append(p)
            in_c_act = out_c_act
        layers.append(blocks)
    prepared["layers"] = layers
    nc = params["fc_w"].shape[0]
    prepared["fc"] = dict(w=params["fc_w"].T.astype(jnp.bfloat16),   # (512, nc)
                          scale=jnp.ones((1, nc), jnp.float32),
                          shift=params["fc_b"].reshape(1, -1).astype(jnp.float32))
    return prepared


# ---------------------------------- main -------------------------------------

if __name__ == "__main__":
    num_classes = 10
    key = jax.random.PRNGKey(0)
    pkey, xkey = jax.random.split(key)
    params = init_params(pkey, num_classes)
    prepared = prepare_params(params)
    # ResNet18 requires 3 input channels; 32x32 spatial keeps shapes small.
    x = jax.random.normal(xkey, (2, 3, 32, 32), jnp.float32)

    fwd = jax.jit(resnet18_forward)
    logits = fwd(prepared, x)
    jax.block_until_ready(logits)
    assert logits.shape == (2, num_classes) and logits.dtype == jnp.float32
    print("KERNEL_OK")
</pallas_src>

<mosaic_0001>
module attributes {stable_mosaic.version = 11 : i64} {
  func.func @matmul_bn_kernel(%arg0: i32, %arg1: i32, %arg2: i32, %arg3: memref<512x256xbf16, #tpu.memory_space<vmem>>, %arg4: memref<256x128xbf16, #tpu.memory_space<vmem>>, %arg5: memref<1x128xf32, #tpu.memory_space<vmem>>, %arg6: memref<1x128xf32, #tpu.memory_space<vmem>>, %arg7: memref<512x128xbf16, #tpu.memory_space<vmem>>, %arg8: memref<512x128xf32, #tpu.memory_space<vmem>>) attributes {dimension_semantics = [#tpu.dimension_semantics<parallel>, #tpu.dimension_semantics<parallel>, #tpu.dimension_semantics<arbitrary>], iteration_bounds = array<i64: 1, 1, 1>, scalar_prefetch = 0 : i64, scratch_operands = 1 : i64, tpu.core_type = #tpu.core_type<tc>, window_params = [{transform_indices = @transform_0, window_bounds = array<i64: 512, 256>}, {transform_indices = @transform_1, window_bounds = array<i64: 256, 128>}, {transform_indices = @transform_2, window_bounds = array<i64: 1, 128>}, {transform_indices = @transform_3, window_bounds = array<i64: 1, 128>}, {transform_indices = @transform_4, window_bounds = array<i64: 512, 128>}]} {
    %c0_i32 = arith.constant 0 : i32
    %0 = arith.cmpi eq, %arg2, %c0_i32 : i32
    %1 = arith.extui %0 : i1 to i32
    %c0_i32_0 = arith.constant 0 : i32
    %2 = arith.cmpi ne, %1, %c0_i32_0 : i32
    scf.if %2 {
      %cst_10 = arith.constant 0.000000e+00 : f32
      %12 = vector.broadcast %cst_10 : f32 to vector<512x128xf32>
      %c0_11 = arith.constant 0 : index
      %c0_12 = arith.constant 0 : index
      %13 = vector.load %arg8[%c0_11, %c0_12] : memref<512x128xf32, #tpu.memory_space<vmem>>, vector<512x128xf32>
      tpu.vector_store %arg8[%c0_11, %c0_12], %12 {strides = array<i32>} : memref<512x128xf32, #tpu.memory_space<vmem>>, vector<512x128xf32>,
    } else {
    }
    %c0 = arith.constant 0 : index
    %c0_1 = arith.constant 0 : index
    %3 = vector.load %arg8[%c0, %c0_1] : memref<512x128xf32, #tpu.memory_space<vmem>>, vector<512x128xf32>
    %c0_2 = arith.constant 0 : index
    %c0_3 = arith.constant 0 : index
    %4 = vector.load %arg3[%c0_2, %c0_3] : memref<512x256xbf16, #tpu.memory_space<vmem>>, vector<512x256xbf16>
    %c0_4 = arith.constant 0 : index
    %c0_5 = arith.constant 0 : index
    %5 = vector.load %arg4[%c0_4, %c0_5] : memref<256x128xbf16, #tpu.memory_space<vmem>>, vector<256x128xbf16>
    %cst = arith.constant dense<0.000000e+00> : vector<512x128xf32>
    %6 = tpu.matmul %4, %5, %cst {dimension_numbers = #tpu.dot_dimension_numbers<[1], [0], [0], [1], [0, 0, 1, 1], [], []>} : vector<512x256xbf16>, vector<256x128xbf16>, vector<512x128xf32> -> vector<512x128xf32>
    %7 = arith.addf %3, %6 : vector<512x128xf32>
    %c0_6 = arith.constant 0 : index
    %c0_7 = arith.constant 0 : index
    %8 = vector.load %arg8[%c0_6, %c0_7] : memref<512x128xf32, #tpu.memory_space<vmem>>, vector<512x128xf32>
    tpu.vector_store %arg8[%c0_6, %c0_7], %7 {strides = array<i32>} : memref<512x128xf32, #tpu.memory_space<vmem>>, vector<512x128xf32>,
    %c0_i32_8 = arith.constant 0 : i32
    %9 = arith.cmpi eq, %arg2, %c0_i32_8 : i32
    %10 = arith.extui %9 : i1 to i32
    %c0_i32_9 = arith.constant 0 : i32
    %11 = arith.cmpi ne, %10, %c0_i32_9 : i32
    scf.if %11 {
      %c0_10 = arith.constant 0 : index
      %c0_11 = arith.constant 0 : index
      %12 = vector.load %arg8[%c0_10, %c0_11] : memref<512x128xf32, #tpu.memory_space<vmem>>, vector<512x128xf32>
      %c0_12 = arith.constant 0 : index
      %c0_13 = arith.constant 0 : index
      %13 = vector.load %arg5[%c0_12, %c0_13] : memref<1x128xf32, #tpu.memory_space<vmem>>, vector<1x128xf32>
      %14 = vector.broadcast %13 : vector<1x128xf32> to vector<512x128xf32>
      %15 = arith.mulf %12, %14 : vector<512x128xf32>
      %c0_14 = arith.constant 0 : index
      %c0_15 = arith.constant 0 : index
      %16 = vector.load %arg6[%c0_14, %c0_15] : memref<1x128xf32, #tpu.memory_space<vmem>>, vector<1x128xf32>
      %17 = vector.broadcast %16 : vector<1x128xf32> to vector<512x128xf32>
      %18 = arith.addf %15, %17 : vector<512x128xf32>
      %cst_16 = arith.constant 0.000000e+00 : f32
      %19 = vector.broadcast %cst_16 : f32 to vector<512x128xf32>
      %20 = arith.maximumf %18, %19 : vector<512x128xf32>
      %21 = arith.truncf %20 : vector<512x128xf32> to vector<512x128xbf16>
      %c0_17 = arith.constant 0 : index
      %c0_18 = arith.constant 0 : index
      %22 = vector.load %arg7[%c0_17, %c0_18] : memref<512x128xbf16, #tpu.memory_space<vmem>>, vector<512x128xbf16>
      tpu.vector_store %arg7[%c0_17, %c0_18], %21 {strides = array<i32>} : memref<512x128xbf16, #tpu.memory_space<vmem>>, vector<512x128xbf16>,
    } else {
    }
    return
  }
  func.func @transform_0(%arg0: i32, %arg1: i32, %arg2: i32) -> (i32, i32) {
    %c0_i32 = arith.constant 0 : i32
    return %arg0, %arg2 : i32, i32
  }
  func.func @transform_1(%arg0: i32, %arg1: i32, %arg2: i32) -> (i32, i32) {
    %c0_i32 = arith.constant 0 : i32
    return %arg2, %arg1 : i32, i32
  }
  func.func @transform_2(%arg0: i32, %arg1: i32, %arg2: i32) -> (i32, i32) {
    %c0_i32 = arith.constant 0 : i32
    %c0_i32_0 = arith.constant 0 : i32
    return %c0_i32, %arg1 : i32, i32
  }
  func.func @transform_3(%arg0: i32, %arg1: i32, %arg2: i32) -> (i32, i32) {
    %c0_i32 = arith.constant 0 : i32
    %c0_i32_0 = arith.constant 0 : i32
    return %c0_i32, %arg1 : i32, i32
  }
  func.func @transform_4(%arg0: i32, %arg1: i32, %arg2: i32) -> (i32, i32) {
    %c0_i32 = arith.constant 0 : i32
    return %arg0, %arg1 : i32, i32
  }
}

module attributes {stable_mosaic.version = 11 : i64} {
  func.func @maxpool3x3_s2_kernel(%arg0: i32, %arg1: i32, %arg2: memref<1x9x9x128xbf16, #tpu.memory_space<vmem>>, %arg3: memref<1x9x9x128xbf16, #tpu.memory_space<vmem>>, %arg4: memref<1x9x9x128xbf16, #tpu.memory_space<vmem>>, %arg5: memref<1x9x9x128xbf16, #tpu.memory_space<vmem>>, %arg6: memref<1x8x8x128xbf16, #tpu.memory_space<vmem>>) attributes {dimension_semantics = [#tpu.dimension_semantics<parallel>, #tpu.dimension_semantics<parallel>], iteration_bounds = array<i64: 2, 1>, scalar_prefetch = 0 : i64, scratch_operands = 0 : i64, tpu.core_type = #tpu.core_type<tc>, window_params = [{transform_indices = @transform_0, window_bounds = array<i64: 1, 9, 9, 128>}, {transform_indices = @transform_1, window_bounds = array<i64: 1, 9, 9, 128>}, {transform_indices = @transform_2, window_bounds = array<i64: 1, 9, 9, 128>}, {transform_indices = @transform_3, window_bounds = array<i64: 1, 9, 9, 128>}, {transform_indices = @transform_4, window_bounds = array<i64: 1, 8, 8, 128>}]} {
    %c0 = arith.constant 0 : index
    %c0_0 = arith.constant 0 : index
    %c0_1 = arith.constant 0 : index
    %c0_2 = arith.constant 0 : index
    %0 = vector.load %arg2[%c0, %c0_0, %c0_1, %c0_2] : memref<1x9x9x128xbf16, #tpu.memory_space<vmem>>, vector<1x8x8x128xbf16>
    %1 = vector.shape_cast %0 : vector<1x8x8x128xbf16> to vector<8x8x128xbf16>
    %c0_3 = arith.constant 0 : index
    %c0_4 = arith.constant 0 : index
    %c1 = arith.constant 1 : index
    %c0_5 = arith.constant 0 : index
    %2 = vector.load %arg2[%c0_3, %c0_4, %c1, %c0_5] : memref<1x9x9x128xbf16, #tpu.memory_space<vmem>>, vector<1x8x8x128xbf16>
    %3 = vector.shape_cast %2 : vector<1x8x8x128xbf16> to vector<8x8x128xbf16>
    %4 = arith.maximumf %1, %3 : vector<8x8x128xbf16>
    %c0_6 = arith.constant 0 : index
    %c1_7 = arith.constant 1 : index
    %c0_8 = arith.constant 0 : index
    %c0_9 = arith.constant 0 : index
    %5 = vector.load %arg2[%c0_6, %c1_7, %c0_8, %c0_9] : memref<1x9x9x128xbf16, #tpu.memory_space<vmem>>, vector<1x8x8x128xbf16>
    %6 = vector.shape_cast %5 : vector<1x8x8x128xbf16> to vector<8x8x128xbf16>
    %7 = arith.maximumf %4, %6 : vector<8x8x128xbf16>
    %c0_10 = arith.constant 0 : index
    %c1_11 = arith.constant 1 : index
    %c1_12 = arith.constant 1 : index
    %c0_13 = arith.constant 0 : index
    %8 = vector.load %arg2[%c0_10, %c1_11, %c1_12, %c0_13] : memref<1x9x9x128xbf16, #tpu.memory_space<vmem>>, vector<1x8x8x128xbf16>
    %9 = vector.shape_cast %8 : vector<1x8x8x128xbf16> to vector<8x8x128xbf16>
    %10 = arith.maximumf %7, %9 : vector<8x8x128xbf16>
    %c0_14 = arith.constant 0 : index
    %c0_15 = arith.constant 0 : index
    %c0_16 = arith.constant 0 : index
    %c0_17 = arith.constant 0 : index
    %11 = vector.load %arg3[%c0_14, %c0_15, %c0_16, %c0_17] : memref<1x9x9x128xbf16, #tpu.memory_space<vmem>>, vector<1x8x8x128xbf16>
    %12 = vector.shape_cast %11 : vector<1x8x8x128xbf16> to vector<8x8x128xbf16>
    %13 = arith.maximumf %10, %12 : vector<8x8x128xbf16>
    %c0_18 = arith.constant 0 : index
    %c1_19 = arith.constant 1 : index
    %c0_20 = arith.constant 0 : index
    %c0_21 = arith.constant 0 : index
    %14 = vector.load %arg3[%c0_18, %c1_19, %c0_20, %c0_21] : memref<1x9x9x128xbf16, #tpu.memory_space<vmem>>, vector<1x8x8x128xbf16>
    %15 = vector.shape_cast %14 : vector<1x8x8x128xbf16> to vector<8x8x128xbf16>
    %16 = arith.maximumf %13, %15 : vector<8x8x128xbf16>
    %c0_22 = arith.constant 0 : index
    %c0_23 = arith.constant 0 : index
    %c0_24 = arith.constant 0 : index
    %c0_25 = arith.constant 0 : index
    %17 = vector.load %arg4[%c0_22, %c0_23, %c0_24, %c0_25] : memref<1x9x9x128xbf16, #tpu.memory_space<vmem>>, vector<1x8x8x128xbf16>
    %18 = vector.shape_cast %17 : vector<1x8x8x128xbf16> to vector<8x8x128xbf16>
    %19 = arith.maximumf %16, %18 : vector<8x8x128xbf16>
    %c0_26 = arith.constant 0 : index
    %c0_27 = arith.constant 0 : index
    %c1_28 = arith.constant 1 : index
    %c0_29 = arith.constant 0 : index
    %20 = vector.load %arg4[%c0_26, %c0_27, %c1_28, %c0_29] : memref<1x9x9x128xbf16, #tpu.memory_space<vmem>>, vector<1x8x8x128xbf16>
    %21 = vector.shape_cast %20 : vector<1x8x8x128xbf16> to vector<8x8x128xbf16>
    %22 = arith.maximumf %19, %21 : vector<8x8x128xbf16>
    %c0_30 = arith.constant 0 : index
    %c0_31 = arith.constant 0 : index
    %c0_32 = arith.constant 0 : index
    %c0_33 = arith.constant 0 : index
    %23 = vector.load %arg5[%c0_30, %c0_31, %c0_32, %c0_33] : memref<1x9x9x128xbf16, #tpu.memory_space<vmem>>, vector<1x8x8x128xbf16>
    %24 = vector.shape_cast %23 : vector<1x8x8x128xbf16> to vector<8x8x128xbf16>
    %25 = arith.maximumf %22, %24 : vector<8x8x128xbf16>
    %c0_34 = arith.constant 0 : index
    %c0_35 = arith.constant 0 : index
    %c0_36 = arith.constant 0 : index
    %c0_37 = arith.constant 0 : index
    %26 = vector.load %arg6[%c0_34, %c0_35, %c0_36, %c0_37] : memref<1x8x8x128xbf16, #tpu.memory_space<vmem>>, vector<1x8x8x128xbf16>
    %27 = vector.shape_cast %26 : vector<1x8x8x128xbf16> to vector<8x8x128xbf16>
    %28 = vector.shape_cast %25 : vector<8x8x128xbf16> to vector<1x8x8x128xbf16>
    tpu.vector_store %arg6[%c0_34, %c0_35, %c0_36, %c0_37], %28 {strides = array<i32>} : memref<1x8x8x128xbf16, #tpu.memory_space<vmem>>, vector<1x8x8x128xbf16>,
    return
  }
  func.func @transform_0(%arg0: i32, %arg1: i32) -> (i32, i32, i32, i32) {
    %c0_i32 = arith.constant 0 : i32
    %c0_i32_0 = arith.constant 0 : i32
    %c0_i32_1 = arith.constant 0 : i32
    return %arg0, %c0_i32, %c0_i32_0, %arg1 : i32, i32, i32, i32
  }
  func.func @transform_1(%arg0: i32, %arg1: i32) -> (i32, i32, i32, i32) {
    %c0_i32 = arith.constant 0 : i32
    %c0_i32_0 = arith.constant 0 : i32
    %c0_i32_1 = arith.constant 0 : i32
    return %arg0, %c0_i32, %c0_i32_0, %arg1 : i32, i32, i32, i32
  }
  func.func @transform_2(%arg0: i32, %arg1: i32) -> (i32, i32, i32, i32) {
    %c0_i32 = arith.constant 0 : i32
    %c0_i32_0 = arith.constant 0 : i32
    %c0_i32_1 = arith.constant 0 : i32
    return %arg0, %c0_i32, %c0_i32_0, %arg1 : i32, i32, i32, i32
  }
  func.func @transform_3(%arg0: i32, %arg1: i32) -> (i32, i32, i32, i32) {
    %c0_i32 = arith.constant 0 : i32
    %c0_i32_0 = arith.constant 0 : i32
    %c0_i32_1 = arith.constant 0 : i32
    return %arg0, %c0_i32, %c0_i32_0, %arg1 : i32, i32, i32, i32
  }
  func.func @transform_4(%arg0: i32, %arg1: i32) -> (i32, i32, i32, i32) {
    %c0_i32 = arith.constant 0 : i32
    %c0_i32_0 = arith.constant 0 : i32
    %c0_i32_1 = arith.constant 0 : i32
    return %arg0, %c0_i32, %c0_i32_0, %arg1 : i32, i32, i32, i32
  }
}

module attributes {stable_mosaic.version = 11 : i64} {
  func.func @conv3x3_s1_kernel(%arg0: i32, %arg1: i32, %arg2: memref<1x10x10x128xbf16, #tpu.memory_space<vmem>>, %arg3: memref<9x128x128xbf16, #tpu.memory_space<vmem>>, %arg4: memref<1x128xf32, #tpu.memory_space<vmem>>, %arg5: memref<1x128xf32, #tpu.memory_space<vmem>>, %arg6: memref<1x8x8x128xbf16, #tpu.memory_space<vmem>>) attributes {dimension_semantics = [#tpu.dimension_semantics<parallel>, #tpu.dimension_semantics<parallel>], iteration_bounds = array<i64: 2, 1>, scalar_prefetch = 0 : i64, scratch_operands = 0 : i64, tpu.core_type = #tpu.core_type<tc>, window_params = [{transform_indices = @transform_0, window_bounds = array<i64: 1, 10, 10, 128>}, {transform_indices = @transform_1, window_bounds = array<i64: 9, 128, 128>}, {transform_indices = @transform_2, window_bounds = array<i64: 1, 128>}, {transform_indices = @transform_3, window_bounds = array<i64: 1, 128>}, {transform_indices = @transform_4, window_bounds = array<i64: 1, 8, 8, 128>}]} {
    %c0 = arith.constant 0 : index
    %c0_0 = arith.constant 0 : index
    %c0_1 = arith.constant 0 : index
    %c0_2 = arith.constant 0 : index
    %0 = vector.load %arg2[%c0, %c0_0, %c0_1, %c0_2] : memref<1x10x10x128xbf16, #tpu.memory_space<vmem>>, vector<1x10x10x128xbf16>
    %1 = vector.shape_cast %0 : vector<1x10x10x128xbf16> to vector<10x10x128xbf16>
    %2 = arith.extf %1 : vector<10x10x128xbf16> to vector<10x10x128xf32>
    %cst = arith.constant 0.000000e+00 : f32
    %3 = vector.broadcast %cst : f32 to vector<64x128xf32>
    %4 = vector.extract_strided_slice %2 {offsets = [0, 0, 0], sizes = [8, 8, 128], strides = [1, 1, 1]} : vector<10x10x128xf32> to vector<8x8x128xf32>
    %5 = vector.shape_cast %4 : vector<8x8x128xf32> to vector<64x128xf32>
    %6 = arith.truncf %5 : vector<64x128xf32> to vector<64x128xbf16>
    %c0_3 = arith.constant 0 : index
    %c0_4 = arith.constant 0 : index
    %c0_5 = arith.constant 0 : index
    %7 = vector.load %arg3[%c0_3, %c0_4, %c0_5] : memref<9x128x128xbf16, #tpu.memory_space<vmem>>, vector<1x128x128xbf16>
    %8 = vector.shape_cast %7 : vector<1x128x128xbf16> to vector<128x128xbf16>
    %cst_6 = arith.constant dense<0.000000e+00> : vector<64x128xf32>
    %9 = tpu.matmul %6, %8, %cst_6 {dimension_numbers = #tpu.dot_dimension_numbers<[1], [0], [0], [1], [0, 0, 1, 1], [], []>} : vector<64x128xbf16>, vector<128x128xbf16>, vector<64x128xf32> -> vector<64x128xf32>
    %10 = arith.addf %3, %9 : vector<64x128xf32>
    %11 = vector.extract_strided_slice %2 {offsets = [0, 1, 0], sizes = [8, 8, 128], strides = [1, 1, 1]} : vector<10x10x128xf32> to vector<8x8x128xf32>
    %12 = vector.shape_cast %11 : vector<8x8x128xf32> to vector<64x128xf32>
    %13 = arith.truncf %12 : vector<64x128xf32> to vector<64x128xbf16>
    %c1 = arith.constant 1 : index
    %c0_7 = arith.constant 0 : index
    %c0_8 = arith.constant 0 : index
    %14 = vector.load %arg3[%c1, %c0_7, %c0_8] : memref<9x128x128xbf16, #tpu.memory_space<vmem>>, vector<1x128x128xbf16>
    %15 = vector.shape_cast %14 : vector<1x128x128xbf16> to vector<128x128xbf16>
    %cst_9 = arith.constant dense<0.000000e+00> : vector<64x128xf32>
    %16 = tpu.matmul %13, %15, %cst_9 {dimension_numbers = #tpu.dot_dimension_numbers<[1], [0], [0], [1], [0, 0, 1, 1], [], []>} : vector<64x128xbf16>, vector<128x128xbf16>, vector<64x128xf32> -> vector<64x128xf32>
    %17 = arith.addf %10, %16 : vector<64x128xf32>
    %18 = vector.extract_strided_slice %2 {offsets = [0, 2, 0], sizes = [8, 8, 128], strides = [1, 1, 1]} : vector<10x10x128xf32> to vector<8x8x128xf32>
    %19 = vector.shape_cast %18 : vector<8x8x128xf32> to vector<64x128xf32>
    %20 = arith.truncf %19 : vector<64x128xf32> to vector<64x128xbf16>
    %c2 = arith.constant 2 : index
    %c0_10 = arith.constant 0 : index
    %c0_11 = arith.constant 0 : index
    %21 = vector.load %arg3[%c2, %c0_10, %c0_11] : memref<9x128x128xbf16, #tpu.memory_space<vmem>>, vector<1x128x128xbf16>
    %22 = vector.shape_cast %21 : vector<1x128x128xbf16> to vector<128x128xbf16>
    %cst_12 = arith.constant dense<0.000000e+00> : vector<64x128xf32>
    %23 = tpu.matmul %20, %22, %cst_12 {dimension_numbers = #tpu.dot_dimension_numbers<[1], [0], [0], [1], [0, 0, 1, 1], [], []>} : vector<64x128xbf16>, vector<128x128xbf16>, vector<64x128xf32> -> vector<64x128xf32>
    %24 = arith.addf %17, %23 : vector<64x128xf32>
    %25 = vector.extract_strided_slice %2 {offsets = [1, 0, 0], sizes = [8, 8, 128], strides = [1, 1, 1]} : vector<10x10x128xf32> to vector<8x8x128xf32>
    %26 = vector.shape_cast %25 : vector<8x8x128xf32> to vector<64x128xf32>
    %27 = arith.truncf %26 : vector<64x128xf32> to vector<64x128xbf16>
    %c3 = arith.constant 3 : index
    %c0_13 = arith.constant 0 : index
    %c0_14 = arith.constant 0 : index
    %28 = vector.load %arg3[%c3, %c0_13, %c0_14] : memref<9x128x128xbf16, #tpu.memory_space<vmem>>, vector<1x128x128xbf16>
    %29 = vector.shape_cast %28 : vector<1x128x128xbf16> to vector<128x128xbf16>
    %cst_15 = arith.constant dense<0.000000e+00> : vector<64x128xf32>
    %30 = tpu.matmul %27, %29, %cst_15 {dimension_numbers = #tpu.dot_dimension_numbers<[1], [0], [0], [1], [0, 0, 1, 1], [], []>} : vector<64x128xbf16>, vector<128x128xbf16>, vector<64x128xf32> -> vector<64x128xf32>
    %31 = arith.addf %24, %30 : vector<64x128xf32>
    %32 = vector.extract_strided_slice %2 {offsets = [1, 1, 0], sizes = [8, 8, 128], strides = [1, 1, 1]} : vector<10x10x128xf32> to vector<8x8x128xf32>
    %33 = vector.shape_cast %32 : vector<8x8x128xf32> to vector<64x128xf32>
    %34 = arith.truncf %33 : vector<64x128xf32> to vector<64x128xbf16>
    %c4 = arith.constant 4 : index
    %c0_16 = arith.constant 0 : index
    %c0_17 = arith.constant 0 : index
    %35 = vector.load %arg3[%c4, %c0_16, %c0_17] : memref<9x128x128xbf16, #tpu.memory_space<vmem>>, vector<1x128x128xbf16>
    %36 = vector.shape_cast %35 : vector<1x128x128xbf16> to vector<128x128xbf16>
    %cst_18 = arith.constant dense<0.000000e+00> : vector<64x128xf32>
    %37 = tpu.matmul %34, %36, %cst_18 {dimension_numbers = #tpu.dot_dimension_numbers<[1], [0], [0], [1], [0, 0, 1, 1], [], []>} : vector<64x128xbf16>, vector<128x128xbf16>, vector<64x128xf32> -> vector<64x128xf32>
    %38 = arith.addf %31, %37 : vector<64x128xf32>
    %39 = vector.extract_strided_slice %2 {offsets = [1, 2, 0], sizes = [8, 8, 128], strides = [1, 1, 1]} : vector<10x10x128xf32> to vector<8x8x128xf32>
    %40 = vector.shape_cast %39 : vector<8x8x128xf32> to vector<64x128xf32>
    %41 = arith.truncf %40 : vector<64x128xf32> to vector<64x128xbf16>
    %c5 = arith.constant 5 : index
    %c0_19 = arith.constant 0 : index
    %c0_20 = arith.constant 0 : index
    %42 = vector.load %arg3[%c5, %c0_19, %c0_20] : memref<9x128x128xbf16, #tpu.memory_space<vmem>>, vector<1x128x128xbf16>
    %43 = vector.shape_cast %42 : vector<1x128x128xbf16> to vector<128x128xbf16>
    %cst_21 = arith.constant dense<0.000000e+00> : vector<64x128xf32>
    %44 = tpu.matmul %41, %43, %cst_21 {dimension_numbers = #tpu.dot_dimension_numbers<[1], [0], [0], [1], [0, 0, 1, 1], [], []>} : vector<64x128xbf16>, vector<128x128xbf16>, vector<64x128xf32> -> vector<64x128xf32>
    %45 = arith.addf %38, %44 : vector<64x128xf32>
    %46 = vector.extract_strided_slice %2 {offsets = [2, 0, 0], sizes = [8, 8, 128], strides = [1, 1, 1]} : vector<10x10x128xf32> to vector<8x8x128xf32>
    %47 = vector.shape_cast %46 : vector<8x8x128xf32> to vector<64x128xf32>
    %48 = arith.truncf %47 : vector<64x128xf32> to vector<64x128xbf16>
    %c6 = arith.constant 6 : index
    %c0_22 = arith.constant 0 : index
    %c0_23 = arith.constant 0 : index
    %49 = vector.load %arg3[%c6, %c0_22, %c0_23] : memref<9x128x128xbf16, #tpu.memory_space<vmem>>, vector<1x128x128xbf16>
    %50 = vector.shape_cast %49 : vector<1x128x128xbf16> to vector<128x128xbf16>
    %cst_24 = arith.constant dense<0.000000e+00> : vector<64x128xf32>
    %51 = tpu.matmul %48, %50, %cst_24 {dimension_numbers = #tpu.dot_dimension_numbers<[1], [0], [0], [1], [0, 0, 1, 1], [], []>} : vector<64x128xbf16>, vector<128x128xbf16>, vector<64x128xf32> -> vector<64x128xf32>
    %52 = arith.addf %45, %51 : vector<64x128xf32>
    %53 = vector.extract_strided_slice %2 {offsets = [2, 1, 0], sizes = [8, 8, 128], strides = [1, 1, 1]} : vector<10x10x128xf32> to vector<8x8x128xf32>
    %54 = vector.shape_cast %53 : vector<8x8x128xf32> to vector<64x128xf32>
    %55 = arith.truncf %54 : vector<64x128xf32> to vector<64x128xbf16>
    %c7 = arith.constant 7 : index
    %c0_25 = arith.constant 0 : index
    %c0_26 = arith.constant 0 : index
    %56 = vector.load %arg3[%c7, %c0_25, %c0_26] : memref<9x128x128xbf16, #tpu.memory_space<vmem>>, vector<1x128x128xbf16>
    %57 = vector.shape_cast %56 : vector<1x128x128xbf16> to vector<128x128xbf16>
    %cst_27 = arith.constant dense<0.000000e+00> : vector<64x128xf32>
    %58 = tpu.matmul %55, %57, %cst_27 {dimension_numbers = #tpu.dot_dimension_numbers<[1], [0], [0], [1], [0, 0, 1, 1], [], []>} : vector<64x128xbf16>, vector<128x128xbf16>, vector<64x128xf32> -> vector<64x128xf32>
    %59 = arith.addf %52, %58 : vector<64x128xf32>
    %60 = vector.extract_strided_slice %2 {offsets = [2, 2, 0], sizes = [8, 8, 128], strides = [1, 1, 1]} : vector<10x10x128xf32> to vector<8x8x128xf32>
    %61 = vector.shape_cast %60 : vector<8x8x128xf32> to vector<64x128xf32>
    %62 = arith.truncf %61 : vector<64x128xf32> to vector<64x128xbf16>
    %c8 = arith.constant 8 : index
    %c0_28 = arith.constant 0 : index
    %c0_29 = arith.constant 0 : index
    %63 = vector.load %arg3[%c8, %c0_28, %c0_29] : memref<9x128x128xbf16, #tpu.memory_space<vmem>>, vector<1x128x128xbf16>
    %64 = vector.shape_cast %63 : vector<1x128x128xbf16> to vector<128x128xbf16>
    %cst_30 = arith.constant dense<0.000000e+00> : vector<64x128xf32>
    %65 = tpu.matmul %62, %64, %cst_30 {dimension_numbers = #tpu.dot_dimension_numbers<[1], [0], [0], [1], [0, 0, 1, 1], [], []>} : vector<64x128xbf16>, vector<128x128xbf16>, vector<64x128xf32> -> vector<64x128xf32>
    %66 = arith.addf %59, %65 : vector<64x128xf32>
    %c0_31 = arith.constant 0 : index
    %c0_32 = arith.constant 0 : index
    %67 = vector.load %arg4[%c0_31, %c0_32] : memref<1x128xf32, #tpu.memory_space<vmem>>, vector<1x128xf32>
    %68 = vector.broadcast %67 : vector<1x128xf32> to vector<64x128xf32>
    %69 = arith.mulf %66, %68 : vector<64x128xf32>
    %c0_33 = arith.constant 0 : index
    %c0_34 = arith.constant 0 : index
    %70 = vector.load %arg5[%c0_33, %c0_34] : memref<1x128xf32, #tpu.memory_space<vmem>>, vector<1x128xf32>
    %71 = vector.broadcast %70 : vector<1x128xf32> to vector<64x128xf32>
    %72 = arith.addf %69, %71 : vector<64x128xf32>
    %cst_35 = arith.constant 0.000000e+00 : f32
    %73 = vector.broadcast %cst_35 : f32 to vector<64x128xf32>
    %74 = arith.maximumf %72, %73 : vector<64x128xf32>
    %75 = vector.shape_cast %74 : vector<64x128xf32> to vector<8x8x128xf32>
    %76 = arith.truncf %75 : vector<8x8x128xf32> to vector<8x8x128xbf16>
    %c0_36 = arith.constant 0 : index
    %c0_37 = arith.constant 0 : index
    %c0_38 = arith.constant 0 : index
    %c0_39 = arith.constant 0 : index
    %77 = vector.load %arg6[%c0_36, %c0_37, %c0_38, %c0_39] : memref<1x8x8x128xbf16, #tpu.memory_space<vmem>>, vector<1x8x8x128xbf16>
    %78 = vector.shape_cast %77 : vector<1x8x8x128xbf16> to vector<8x8x128xbf16>
    %79 = vector.shape_cast %76 : vector<8x8x128xbf16> to vector<1x8x8x128xbf16>
    tpu.vector_store %arg6[%c0_36, %c0_37, %c0_38, %c0_39], %79 {strides = array<i32>} : memref<1x8x8x128xbf16, #tpu.memory_space<vmem>>, vector<1x8x8x128xbf16>,
    return
  }
  func.func @transform_0(%arg0: i32, %arg1: i32) -> (i32, i32, i32, i32) {
    %c0_i32 = arith.constant 0 : i32
    %c0_i32_0 = arith.constant 0 : i32
    %c0_i32_1 = arith.constant 0 : i32
    %c0_i32_2 = arith.constant 0 : i32
    return %arg0, %c0_i32, %c0_i32_0, %c0_i32_1 : i32, i32, i32, i32
  }
  func.func @transform_1(%arg0: i32, %arg1: i32) -> (i32, i32, i32) {
    %c0_i32 = arith.constant 0 : i32
    %c0_i32_0 = arith.constant 0 : i32
    %c0_i32_1 = arith.constant 0 : i32
    return %c0_i32, %c0_i32_0, %arg1 : i32, i32, i32
  }
  func.func @transform_2(%arg0: i32, %arg1: i32) -> (i32, i32) {
    %c0_i32 = arith.constant 0 : i32
    %c0_i32_0 = arith.constant 0 : i32
    return %c0_i32, %arg1 : i32, i32
  }
  func.func @transform_3(%arg0: i32, %arg1: i32) -> (i32, i32) {
    %c0_i32 = arith.constant 0 : i32
    %c0_i32_0 = arith.constant 0 : i32
    return %c0_i32, %arg1 : i32, i32
  }
  func.func @transform_4(%arg0: i32, %arg1: i32) -> (i32, i32, i32, i32) {
    %c0_i32 = arith.constant 0 : i32
    %c0_i32_0 = arith.constant 0 : i32
    %c0_i32_1 = arith.constant 0 : i32
    return %arg0, %c0_i32, %c0_i32_0, %arg1 : i32, i32, i32, i32
  }
}

module attributes {stable_mosaic.version = 11 : i64} {
  func.func @conv3x3_s1_kernel(%arg0: i32, %arg1: i32, %arg2: memref<1x10x10x128xbf16, #tpu.memory_space<vmem>>, %arg3: memref<9x128x128xbf16, #tpu.memory_space<vmem>>, %arg4: memref<1x128xf32, #tpu.memory_space<vmem>>, %arg5: memref<1x128xf32, #tpu.memory_space<vmem>>, %arg6: memref<1x8x8x128xbf16, #tpu.memory_space<vmem>>, %arg7: memref<1x8x8x128xbf16, #tpu.memory_space<vmem>>) attributes {dimension_semantics = [#tpu.dimension_semantics<parallel>, #tpu.dimension_semantics<parallel>], iteration_bounds = array<i64: 2, 1>, scalar_prefetch = 0 : i64, scratch_operands = 0 : i64, tpu.core_type = #tpu.core_type<tc>, window_params = [{transform_indices = @transform_0, window_bounds = array<i64: 1, 10, 10, 128>}, {transform_indices = @transform_1, window_bounds = array<i64: 9, 128, 128>}, {transform_indices = @transform_2, window_bounds = array<i64: 1, 128>}, {transform_indices = @transform_3, window_bounds = array<i64: 1, 128>}, {transform_indices = @transform_4, window_bounds = array<i64: 1, 8, 8, 128>}, {transform_indices = @transform_5, window_bounds = array<i64: 1, 8, 8, 128>}]} {
    %c0 = arith.constant 0 : index
    %c0_0 = arith.constant 0 : index
    %c0_1 = arith.constant 0 : index
    %c0_2 = arith.constant 0 : index
    %0 = vector.load %arg2[%c0, %c0_0, %c0_1, %c0_2] : memref<1x10x10x128xbf16, #tpu.memory_space<vmem>>, vector<1x10x10x128xbf16>
    %1 = vector.shape_cast %0 : vector<1x10x10x128xbf16> to vector<10x10x128xbf16>
    %2 = arith.extf %1 : vector<10x10x128xbf16> to vector<10x10x128xf32>
    %cst = arith.constant 0.000000e+00 : f32
    %3 = vector.broadcast %cst : f32 to vector<64x128xf32>
    %4 = vector.extract_strided_slice %2 {offsets = [0, 0, 0], sizes = [8, 8, 128], strides = [1, 1, 1]} : vector<10x10x128xf32> to vector<8x8x128xf32>
    %5 = vector.shape_cast %4 : vector<8x8x128xf32> to vector<64x128xf32>
    %6 = arith.truncf %5 : vector<64x128xf32> to vector<64x128xbf16>
    %c0_3 = arith.constant 0 : index
    %c0_4 = arith.constant 0 : index
    %c0_5 = arith.constant 0 : index
    %7 = vector.load %arg3[%c0_3, %c0_4, %c0_5] : memref<9x128x128xbf16, #tpu.memory_space<vmem>>, vector<1x128x128xbf16>
    %8 = vector.shape_cast %7 : vector<1x128x128xbf16> to vector<128x128xbf16>
    %cst_6 = arith.constant dense<0.000000e+00> : vector<64x128xf32>
    %9 = tpu.matmul %6, %8, %cst_6 {dimension_numbers = #tpu.dot_dimension_numbers<[1], [0], [0], [1], [0, 0, 1, 1], [], []>} : vector<64x128xbf16>, vector<128x128xbf16>, vector<64x128xf32> -> vector<64x128xf32>
    %10 = arith.addf %3, %9 : vector<64x128xf32>
    %11 = vector.extract_strided_slice %2 {offsets = [0, 1, 0], sizes = [8, 8, 128], strides = [1, 1, 1]} : vector<10x10x128xf32> to vector<8x8x128xf32>
    %12 = vector.shape_cast %11 : vector<8x8x128xf32> to vector<64x128xf32>
    %13 = arith.truncf %12 : vector<64x128xf32> to vector<64x128xbf16>
    %c1 = arith.constant 1 : index
    %c0_7 = arith.constant 0 : index
    %c0_8 = arith.constant 0 : index
    %14 = vector.load %arg3[%c1, %c0_7, %c0_8] : memref<9x128x128xbf16, #tpu.memory_space<vmem>>, vector<1x128x128xbf16>
    %15 = vector.shape_cast %14 : vector<1x128x128xbf16> to vector<128x128xbf16>
    %cst_9 = arith.constant dense<0.000000e+00> : vector<64x128xf32>
    %16 = tpu.matmul %13, %15, %cst_9 {dimension_numbers = #tpu.dot_dimension_numbers<[1], [0], [0], [1], [0, 0, 1, 1], [], []>} : vector<64x128xbf16>, vector<128x128xbf16>, vector<64x128xf32> -> vector<64x128xf32>
    %17 = arith.addf %10, %16 : vector<64x128xf32>
    %18 = vector.extract_strided_slice %2 {offsets = [0, 2, 0], sizes = [8, 8, 128], strides = [1, 1, 1]} : vector<10x10x128xf32> to vector<8x8x128xf32>
    %19 = vector.shape_cast %18 : vector<8x8x128xf32> to vector<64x128xf32>
    %20 = arith.truncf %19 : vector<64x128xf32> to vector<64x128xbf16>
    %c2 = arith.constant 2 : index
    %c0_10 = arith.constant 0 : index
    %c0_11 = arith.constant 0 : index
    %21 = vector.load %arg3[%c2, %c0_10, %c0_11] : memref<9x128x128xbf16, #tpu.memory_space<vmem>>, vector<1x128x128xbf16>
    %22 = vector.shape_cast %21 : vector<1x128x128xbf16> to vector<128x128xbf16>
    %cst_12 = arith.constant dense<0.000000e+00> : vector<64x128xf32>
    %23 = tpu.matmul %20, %22, %cst_12 {dimension_numbers = #tpu.dot_dimension_numbers<[1], [0], [0], [1], [0, 0, 1, 1], [], []>} : vector<64x128xbf16>, vector<128x128xbf16>, vector<64x128xf32> -> vector<64x128xf32>
    %24 = arith.addf %17, %23 : vector<64x128xf32>
    %25 = vector.extract_strided_slice %2 {offsets = [1, 0, 0], sizes = [8, 8, 128], strides = [1, 1, 1]} : vector<10x10x128xf32> to vector<8x8x128xf32>
    %26 = vector.shape_cast %25 : vector<8x8x128xf32> to vector<64x128xf32>
    %27 = arith.truncf %26 : vector<64x128xf32> to vector<64x128xbf16>
    %c3 = arith.constant 3 : index
    %c0_13 = arith.constant 0 : index
    %c0_14 = arith.constant 0 : index
    %28 = vector.load %arg3[%c3, %c0_13, %c0_14] : memref<9x128x128xbf16, #tpu.memory_space<vmem>>, vector<1x128x128xbf16>
    %29 = vector.shape_cast %28 : vector<1x128x128xbf16> to vector<128x128xbf16>
    %cst_15 = arith.constant dense<0.000000e+00> : vector<64x128xf32>
    %30 = tpu.matmul %27, %29, %cst_15 {dimension_numbers = #tpu.dot_dimension_numbers<[1], [0], [0], [1], [0, 0, 1, 1], [], []>} : vector<64x128xbf16>, vector<128x128xbf16>, vector<64x128xf32> -> vector<64x128xf32>
    %31 = arith.addf %24, %30 : vector<64x128xf32>
    %32 = vector.extract_strided_slice %2 {offsets = [1, 1, 0], sizes = [8, 8, 128], strides = [1, 1, 1]} : vector<10x10x128xf32> to vector<8x8x128xf32>
    %33 = vector.shape_cast %32 : vector<8x8x128xf32> to vector<64x128xf32>
    %34 = arith.truncf %33 : vector<64x128xf32> to vector<64x128xbf16>
    %c4 = arith.constant 4 : index
    %c0_16 = arith.constant 0 : index
    %c0_17 = arith.constant 0 : index
    %35 = vector.load %arg3[%c4, %c0_16, %c0_17] : memref<9x128x128xbf16, #tpu.memory_space<vmem>>, vector<1x128x128xbf16>
    %36 = vector.shape_cast %35 : vector<1x128x128xbf16> to vector<128x128xbf16>
    %cst_18 = arith.constant dense<0.000000e+00> : vector<64x128xf32>
    %37 = tpu.matmul %34, %36, %cst_18 {dimension_numbers = #tpu.dot_dimension_numbers<[1], [0], [0], [1], [0, 0, 1, 1], [], []>} : vector<64x128xbf16>, vector<128x128xbf16>, vector<64x128xf32> -> vector<64x128xf32>
    %38 = arith.addf %31, %37 : vector<64x128xf32>
    %39 = vector.extract_strided_slice %2 {offsets = [1, 2, 0], sizes = [8, 8, 128], strides = [1, 1, 1]} : vector<10x10x128xf32> to vector<8x8x128xf32>
    %40 = vector.shape_cast %39 : vector<8x8x128xf32> to vector<64x128xf32>
    %41 = arith.truncf %40 : vector<64x128xf32> to vector<64x128xbf16>
    %c5 = arith.constant 5 : index
    %c0_19 = arith.constant 0 : index
    %c0_20 = arith.constant 0 : index
    %42 = vector.load %arg3[%c5, %c0_19, %c0_20] : memref<9x128x128xbf16, #tpu.memory_space<vmem>>, vector<1x128x128xbf16>
    %43 = vector.shape_cast %42 : vector<1x128x128xbf16> to vector<128x128xbf16>
    %cst_21 = arith.constant dense<0.000000e+00> : vector<64x128xf32>
    %44 = tpu.matmul %41, %43, %cst_21 {dimension_numbers = #tpu.dot_dimension_numbers<[1], [0], [0], [1], [0, 0, 1, 1], [], []>} : vector<64x128xbf16>, vector<128x128xbf16>, vector<64x128xf32> -> vector<64x128xf32>
    %45 = arith.addf %38, %44 : vector<64x128xf32>
    %46 = vector.extract_strided_slice %2 {offsets = [2, 0, 0], sizes = [8, 8, 128], strides = [1, 1, 1]} : vector<10x10x128xf32> to vector<8x8x128xf32>
    %47 = vector.shape_cast %46 : vector<8x8x128xf32> to vector<64x128xf32>
    %48 = arith.truncf %47 : vector<64x128xf32> to vector<64x128xbf16>
    %c6 = arith.constant 6 : index
    %c0_22 = arith.constant 0 : index
    %c0_23 = arith.constant 0 : index
    %49 = vector.load %arg3[%c6, %c0_22, %c0_23] : memref<9x128x128xbf16, #tpu.memory_space<vmem>>, vector<1x128x128xbf16>
    %50 = vector.shape_cast %49 : vector<1x128x128xbf16> to vector<128x128xbf16>
    %cst_24 = arith.constant dense<0.000000e+00> : vector<64x128xf32>
    %51 = tpu.matmul %48, %50, %cst_24 {dimension_numbers = #tpu.dot_dimension_numbers<[1], [0], [0], [1], [0, 0, 1, 1], [], []>} : vector<64x128xbf16>, vector<128x128xbf16>, vector<64x128xf32> -> vector<64x128xf32>
    %52 = arith.addf %45, %51 : vector<64x128xf32>
    %53 = vector.extract_strided_slice %2 {offsets = [2, 1, 0], sizes = [8, 8, 128], strides = [1, 1, 1]} : vector<10x10x128xf32> to vector<8x8x128xf32>
    %54 = vector.shape_cast %53 : vector<8x8x128xf32> to vector<64x128xf32>
    %55 = arith.truncf %54 : vector<64x128xf32> to vector<64x128xbf16>
    %c7 = arith.constant 7 : index
    %c0_25 = arith.constant 0 : index
    %c0_26 = arith.constant 0 : index
    %56 = vector.load %arg3[%c7, %c0_25, %c0_26] : memref<9x128x128xbf16, #tpu.memory_space<vmem>>, vector<1x128x128xbf16>
    %57 = vector.shape_cast %56 : vector<1x128x128xbf16> to vector<128x128xbf16>
    %cst_27 = arith.constant dense<0.000000e+00> : vector<64x128xf32>
    %58 = tpu.matmul %55, %57, %cst_27 {dimension_numbers = #tpu.dot_dimension_numbers<[1], [0], [0], [1], [0, 0, 1, 1], [], []>} : vector<64x128xbf16>, vector<128x128xbf16>, vector<64x128xf32> -> vector<64x128xf32>
    %59 = arith.addf %52, %58 : vector<64x128xf32>
    %60 = vector.extract_strided_slice %2 {offsets = [2, 2, 0], sizes = [8, 8, 128], strides = [1, 1, 1]} : vector<10x10x128xf32> to vector<8x8x128xf32>
    %61 = vector.shape_cast %60 : vector<8x8x128xf32> to vector<64x128xf32>
    %62 = arith.truncf %61 : vector<64x128xf32> to vector<64x128xbf16>
    %c8 = arith.constant 8 : index
    %c0_28 = arith.constant 0 : index
    %c0_29 = arith.constant 0 : index
    %63 = vector.load %arg3[%c8, %c0_28, %c0_29] : memref<9x128x128xbf16, #tpu.memory_space<vmem>>, vector<1x128x128xbf16>
    %64 = vector.shape_cast %63 : vector<1x128x128xbf16> to vector<128x128xbf16>
    %cst_30 = arith.constant dense<0.000000e+00> : vector<64x128xf32>
    %65 = tpu.matmul %62, %64, %cst_30 {dimension_numbers = #tpu.dot_dimension_numbers<[1], [0], [0], [1], [0, 0, 1, 1], [], []>} : vector<64x128xbf16>, vector<128x128xbf16>, vector<64x128xf32> -> vector<64x128xf32>
    %66 = arith.addf %59, %65 : vector<64x128xf32>
    %c0_31 = arith.constant 0 : index
    %c0_32 = arith.constant 0 : index
    %67 = vector.load %arg4[%c0_31, %c0_32] : memref<1x128xf32, #tpu.memory_space<vmem>>, vector<1x128xf32>
    %68 = vector.broadcast %67 : vector<1x128xf32> to vector<64x128xf32>
    %69 = arith.mulf %66, %68 : vector<64x128xf32>
    %c0_33 = arith.constant 0 : index
    %c0_34 = arith.constant 0 : index
    %70 = vector.load %arg5[%c0_33, %c0_34] : memref<1x128xf32, #tpu.memory_space<vmem>>, vector<1x128xf32>
    %71 = vector.broadcast %70 : vector<1x128xf32> to vector<64x128xf32>
    %72 = arith.addf %69, %71 : vector<64x128xf32>
    %c0_35 = arith.constant 0 : index
    %c0_36 = arith.constant 0 : index
    %c0_37 = arith.constant 0 : index
    %c0_38 = arith.constant 0 : index
    %73 = vector.load %arg6[%c0_35, %c0_36, %c0_37, %c0_38] : memref<1x8x8x128xbf16, #tpu.memory_space<vmem>>, vector<1x8x8x128xbf16>
    %74 = vector.shape_cast %73 : vector<1x8x8x128xbf16> to vector<8x8x128xbf16>
    %75 = arith.extf %74 : vector<8x8x128xbf16> to vector<8x8x128xf32>
    %76 = vector.shape_cast %75 : vector<8x8x128xf32> to vector<64x128xf32>
    %77 = arith.addf %72, %76 : vector<64x128xf32>
    %cst_39 = arith.constant 0.000000e+00 : f32
    %78 = vector.broadcast %cst_39 : f32 to vector<64x128xf32>
    %79 = arith.maximumf %77, %78 : vector<64x128xf32>
    %80 = vector.shape_cast %79 : vector<64x128xf32> to vector<8x8x128xf32>
    %81 = arith.truncf %80 : vector<8x8x128xf32> to vector<8x8x128xbf16>
    %c0_40 = arith.constant 0 : index
    %c0_41 = arith.constant 0 : index
    %c0_42 = arith.constant 0 : index
    %c0_43 = arith.constant 0 : index
    %82 = vector.load %arg7[%c0_40, %c0_41, %c0_42, %c0_43] : memref<1x8x8x128xbf16, #tpu.memory_space<vmem>>, vector<1x8x8x128xbf16>
    %83 = vector.shape_cast %82 : vector<1x8x8x128xbf16> to vector<8x8x128xbf16>
    %84 = vector.shape_cast %81 : vector<8x8x128xbf16> to vector<1x8x8x128xbf16>
    tpu.vector_store %arg7[%c0_40, %c0_41, %c0_42, %c0_43], %84 {strides = array<i32>} : memref<1x8x8x128xbf16, #tpu.memory_space<vmem>>, vector<1x8x8x128xbf16>,
    return
  }
  func.func @transform_0(%arg0: i32, %arg1: i32) -> (i32, i32, i32, i32) {
    %c0_i32 = arith.constant 0 : i32
    %c0_i32_0 = arith.constant 0 : i32
    %c0_i32_1 = arith.constant 0 : i32
    %c0_i32_2 = arith.constant 0 : i32
    return %arg0, %c0_i32, %c0_i32_0, %c0_i32_1 : i32, i32, i32, i32
  }
  func.func @transform_1(%arg0: i32, %arg1: i32) -> (i32, i32, i32) {
    %c0_i32 = arith.constant 0 : i32
    %c0_i32_0 = arith.constant 0 : i32
    %c0_i32_1 = arith.constant 0 : i32
    return %c0_i32, %c0_i32_0, %arg1 : i32, i32, i32
  }
  func.func @transform_2(%arg0: i32, %arg1: i32) -> (i32, i32) {
    %c0_i32 = arith.constant 0 : i32
    %c0_i32_0 = arith.constant 0 : i32
    return %c0_i32, %arg1 : i32, i32
  }
  func.func @transform_3(%arg0: i32, %arg1: i32) -> (i32, i32) {
    %c0_i32 = arith.constant 0 : i32
    %c0_i32_0 = arith.constant 0 : i32
    return %c0_i32, %arg1 : i32, i32
  }
  func.func @transform_4(%arg0: i32, %arg1: i32) -> (i32, i32, i32, i32) {
    %c0_i32 = arith.constant 0 : i32
    %c0_i32_0 = arith.constant 0 : i32
    %c0_i32_1 = arith.constant 0 : i32
    return %arg0, %c0_i32, %c0_i32_0, %arg1 : i32, i32, i32, i32
  }
  func.func @transform_5(%arg0: i32, %arg1: i32) -> (i32, i32, i32, i32) {
    %c0_i32 = arith.constant 0 : i32
    %c0_i32_0 = arith.constant 0 : i32
    %c0_i32_1 = arith.constant 0 : i32
    return %arg0, %c0_i32, %c0_i32_0, %arg1 : i32, i32, i32, i32
  }
}

module attributes {stable_mosaic.version = 11 : i64} {
  func.func @matmul_bn_kernel(%arg0: i32, %arg1: i32, %arg2: i32, %arg3: memref<32x512xbf16, #tpu.memory_space<vmem>>, %arg4: memref<512x128xbf16, #tpu.memory_space<vmem>>, %arg5: memref<1x128xf32, #tpu.memory_space<vmem>>, %arg6: memref<1x128xf32, #tpu.memory_space<vmem>>, %arg7: memref<32x128xbf16, #tpu.memory_space<vmem>>, %arg8: memref<32x128xf32, #tpu.memory_space<vmem>>) attributes {dimension_semantics = [#tpu.dimension_semantics<parallel>, #tpu.dimension_semantics<parallel>, #tpu.dimension_semantics<arbitrary>], iteration_bounds = array<i64: 1, 1, 3>, scalar_prefetch = 0 : i64, scratch_operands = 1 : i64, tpu.core_type = #tpu.core_type<tc>, window_params = [{transform_indices = @transform_0, window_bounds = array<i64: 32, 512>}, {transform_indices = @transform_1, window_bounds = array<i64: 512, 128>}, {transform_indices = @transform_2, window_bounds = array<i64: 1, 128>}, {transform_indices = @transform_3, window_bounds = array<i64: 1, 128>}, {transform_indices = @transform_4, window_bounds = array<i64: 32, 128>}]} {
    %c0_i32 = arith.constant 0 : i32
    %0 = arith.cmpi eq, %arg2, %c0_i32 : i32
    %1 = arith.extui %0 : i1 to i32
    %c0_i32_0 = arith.constant 0 : i32
    %2 = arith.cmpi ne, %1, %c0_i32_0 : i32
    scf.if %2 {
      %cst_9 = arith.constant 0.000000e+00 : f32
      %12 = vector.broadcast %cst_9 : f32 to vector<32x128xf32>
      %c0_10 = arith.constant 0 : index
      %c0_11 = arith.constant 0 : index
      %13 = vector.load %arg8[%c0_10, %c0_11] : memref<32x128xf32, #tpu.memory_space<vmem>>, vector<32x128xf32>
      tpu.vector_store %arg8[%c0_10, %c0_11], %12 {strides = array<i32>} : memref<32x128xf32, #tpu.memory_space<vmem>>, vector<32x128xf32>,
    } else {
    }
    %c0 = arith.constant 0 : index
    %c0_1 = arith.constant 0 : index
    %3 = vector.load %arg8[%c0, %c0_1] : memref<32x128xf32, #tpu.memory_space<vmem>>, vector<32x128xf32>
    %c0_2 = arith.constant 0 : index
    %c0_3 = arith.constant 0 : index
    %4 = vector.load %arg3[%c0_2, %c0_3] : memref<32x512xbf16, #tpu.memory_space<vmem>>, vector<32x512xbf16>
    %c0_4 = arith.constant 0 : index
    %c0_5 = arith.constant 0 : index
    %5 = vector.load %arg4[%c0_4, %c0_5] : memref<512x128xbf16, #tpu.memory_space<vmem>>, vector<512x128xbf16>
    %cst = arith.constant dense<0.000000e+00> : vector<32x128xf32>
    %6 = tpu.matmul %4, %5, %cst {dimension_numbers = #tpu.dot_dimension_numbers<[1], [0], [0], [1], [0, 0, 1, 1], [], []>} : vector<32x512xbf16>, vector<512x128xbf16>, vector<32x128xf32> -> vector<32x128xf32>
    %7 = arith.addf %3, %6 : vector<32x128xf32>
    %c0_6 = arith.constant 0 : index
    %c0_7 = arith.constant 0 : index
    %8 = vector.load %arg8[%c0_6, %c0_7] : memref<32x128xf32, #tpu.memory_space<vmem>>, vector<32x128xf32>
    tpu.vector_store %arg8[%c0_6, %c0_7], %7 {strides = array<i32>} : memref<32x128xf32, #tpu.memory_space<vmem>>, vector<32x128xf32>,
    %c2_i32 = arith.constant 2 : i32
    %9 = arith.cmpi eq, %arg2, %c2_i32 : i32
    %10 = arith.extui %9 : i1 to i32
    %c0_i32_8 = arith.constant 0 : i32
    %11 = arith.cmpi ne, %10, %c0_i32_8 : i32
    scf.if %11 {
      %c0_9 = arith.constant 0 : index
      %c0_10 = arith.constant 0 : index
      %12 = vector.load %arg8[%c0_9, %c0_10] : memref<32x128xf32, #tpu.memory_space<vmem>>, vector<32x128xf32>
      %c0_11 = arith.constant 0 : index
      %c0_12 = arith.constant 0 : index
      %13 = vector.load %arg5[%c0_11, %c0_12] : memref<1x128xf32, #tpu.memory_space<vmem>>, vector<1x128xf32>
      %14 = vector.broadcast %13 : vector<1x128xf32> to vector<32x128xf32>
      %15 = arith.mulf %12, %14 : vector<32x128xf32>
      %c0_13 = arith.constant 0 : index
      %c0_14 = arith.constant 0 : index
      %16 = vector.load %arg6[%c0_13, %c0_14] : memref<1x128xf32, #tpu.memory_space<vmem>>, vector<1x128xf32>
      %17 = vector.broadcast %16 : vector<1x128xf32> to vector<32x128xf32>
      %18 = arith.addf %15, %17 : vector<32x128xf32>
      %cst_15 = arith.constant 0.000000e+00 : f32
      %19 = vector.broadcast %cst_15 : f32 to vector<32x128xf32>
      %20 = arith.maximumf %18, %19 : vector<32x128xf32>
      %21 = arith.truncf %20 : vector<32x128xf32> to vector<32x128xbf16>
      %c0_16 = arith.constant 0 : index
      %c0_17 = arith.constant 0 : index
      %22 = vector.load %arg7[%c0_16, %c0_17] : memref<32x128xbf16, #tpu.memory_space<vmem>>, vector<32x128xbf16>
      tpu.vector_store %arg7[%c0_16, %c0_17], %21 {strides = array<i32>} : memref<32x128xbf16, #tpu.memory_space<vmem>>, vector<32x128xbf16>,
    } else {
    }
    return
  }
  func.func @transform_0(%arg0: i32, %arg1: i32, %arg2: i32) -> (i32, i32) {
    %c0_i32 = arith.constant 0 : i32
    return %arg0, %arg2 : i32, i32
  }
  func.func @transform_1(%arg0: i32, %arg1: i32, %arg2: i32) -> (i32, i32) {
    %c0_i32 = arith.constant 0 : i32
    return %arg2, %arg1 : i32, i32
  }
  func.func @transform_2(%arg0: i32, %arg1: i32, %arg2: i32) -> (i32, i32) {
    %c0_i32 = arith.constant 0 : i32
    %c0_i32_0 = arith.constant 0 : i32
    return %c0_i32, %arg1 : i32, i32
  }
  func.func @transform_3(%arg0: i32, %arg1: i32, %arg2: i32) -> (i32, i32) {
    %c0_i32 = arith.constant 0 : i32
    %c0_i32_0 = arith.constant 0 : i32
    return %c0_i32, %arg1 : i32, i32
  }
  func.func @transform_4(%arg0: i32, %arg1: i32, %arg2: i32) -> (i32, i32) {
    %c0_i32 = arith.constant 0 : i32
    return %arg0, %arg1 : i32, i32
  }
}

module attributes {stable_mosaic.version = 11 : i64} {
  func.func @matmul_bn_kernel(%arg0: i32, %arg1: i32, %arg2: i32, %arg3: memref<32x128xbf16, #tpu.memory_space<vmem>>, %arg4: memref<128x128xbf16, #tpu.memory_space<vmem>>, %arg5: memref<1x128xf32, #tpu.memory_space<vmem>>, %arg6: memref<1x128xf32, #tpu.memory_space<vmem>>, %arg7: memref<32x128xbf16, #tpu.memory_space<vmem>>, %arg8: memref<32x128xf32, #tpu.memory_space<vmem>>) attributes {dimension_semantics = [#tpu.dimension_semantics<parallel>, #tpu.dimension_semantics<parallel>, #tpu.dimension_semantics<arbitrary>], iteration_bounds = array<i64: 1, 1, 1>, scalar_prefetch = 0 : i64, scratch_operands = 1 : i64, tpu.core_type = #tpu.core_type<tc>, window_params = [{transform_indices = @transform_0, window_bounds = array<i64: 32, 128>}, {transform_indices = @transform_1, window_bounds = array<i64: 128, 128>}, {transform_indices = @transform_2, window_bounds = array<i64: 1, 128>}, {transform_indices = @transform_3, window_bounds = array<i64: 1, 128>}, {transform_indices = @transform_4, window_bounds = array<i64: 32, 128>}]} {
    %c0_i32 = arith.constant 0 : i32
    %0 = arith.cmpi eq, %arg2, %c0_i32 : i32
    %1 = arith.extui %0 : i1 to i32
    %c0_i32_0 = arith.constant 0 : i32
    %2 = arith.cmpi ne, %1, %c0_i32_0 : i32
    scf.if %2 {
      %cst_10 = arith.constant 0.000000e+00 : f32
      %12 = vector.broadcast %cst_10 : f32 to vector<32x128xf32>
      %c0_11 = arith.constant 0 : index
      %c0_12 = arith.constant 0 : index
      %13 = vector.load %arg8[%c0_11, %c0_12] : memref<32x128xf32, #tpu.memory_space<vmem>>, vector<32x128xf32>
      tpu.vector_store %arg8[%c0_11, %c0_12], %12 {strides = array<i32>} : memref<32x128xf32, #tpu.memory_space<vmem>>, vector<32x128xf32>,
    } else {
    }
    %c0 = arith.constant 0 : index
    %c0_1 = arith.constant 0 : index
    %3 = vector.load %arg8[%c0, %c0_1] : memref<32x128xf32, #tpu.memory_space<vmem>>, vector<32x128xf32>
    %c0_2 = arith.constant 0 : index
    %c0_3 = arith.constant 0 : index
    %4 = vector.load %arg3[%c0_2, %c0_3] : memref<32x128xbf16, #tpu.memory_space<vmem>>, vector<32x128xbf16>
    %c0_4 = arith.constant 0 : index
    %c0_5 = arith.constant 0 : index
    %5 = vector.load %arg4[%c0_4, %c0_5] : memref<128x128xbf16, #tpu.memory_space<vmem>>, vector<128x128xbf16>
    %cst = arith.constant dense<0.000000e+00> : vector<32x128xf32>
    %6 = tpu.matmul %4, %5, %cst {dimension_numbers = #tpu.dot_dimension_numbers<[1], [0], [0], [1], [0, 0, 1, 1], [], []>} : vector<32x128xbf16>, vector<128x128xbf16>, vector<32x128xf32> -> vector<32x128xf32>
    %7 = arith.addf %3, %6 : vector<32x128xf32>
    %c0_6 = arith.constant 0 : index
    %c0_7 = arith.constant 0 : index
    %8 = vector.load %arg8[%c0_6, %c0_7] : memref<32x128xf32, #tpu.memory_space<vmem>>, vector<32x128xf32>
    tpu.vector_store %arg8[%c0_6, %c0_7], %7 {strides = array<i32>} : memref<32x128xf32, #tpu.memory_space<vmem>>, vector<32x128xf32>,
    %c0_i32_8 = arith.constant 0 : i32
    %9 = arith.cmpi eq, %arg2, %c0_i32_8 : i32
    %10 = arith.extui %9 : i1 to i32
    %c0_i32_9 = arith.constant 0 : i32
    %11 = arith.cmpi ne, %10, %c0_i32_9 : i32
    scf.if %11 {
      %c0_10 = arith.constant 0 : index
      %c0_11 = arith.constant 0 : index
      %12 = vector.load %arg8[%c0_10, %c0_11] : memref<32x128xf32, #tpu.memory_space<vmem>>, vector<32x128xf32>
      %c0_12 = arith.constant 0 : index
      %c0_13 = arith.constant 0 : index
      %13 = vector.load %arg5[%c0_12, %c0_13] : memref<1x128xf32, #tpu.memory_space<vmem>>, vector<1x128xf32>
      %14 = vector.broadcast %13 : vector<1x128xf32> to vector<32x128xf32>
      %15 = arith.mulf %12, %14 : vector<32x128xf32>
      %c0_14 = arith.constant 0 : index
      %c0_15 = arith.constant 0 : index
      %16 = vector.load %arg6[%c0_14, %c0_15] : memref<1x128xf32, #tpu.memory_space<vmem>>, vector<1x128xf32>
      %17 = vector.broadcast %16 : vector<1x128xf32> to vector<32x128xf32>
      %18 = arith.addf %15, %17 : vector<32x128xf32>
      %19 = arith.truncf %18 : vector<32x128xf32> to vector<32x128xbf16>
      %c0_16 = arith.constant 0 : index
      %c0_17 = arith.constant 0 : index
      %20 = vector.load %arg7[%c0_16, %c0_17] : memref<32x128xbf16, #tpu.memory_space<vmem>>, vector<32x128xbf16>
      tpu.vector_store %arg7[%c0_16, %c0_17], %19 {strides = array<i32>} : memref<32x128xbf16, #tpu.memory_space<vmem>>, vector<32x128xbf16>,
    } else {
    }
    return
  }
  func.func @transform_0(%arg0: i32, %arg1: i32, %arg2: i32) -> (i32, i32) {
    %c0_i32 = arith.constant 0 : i32
    return %arg0, %arg2 : i32, i32
  }
  func.func @transform_1(%arg0: i32, %arg1: i32, %arg2: i32) -> (i32, i32) {
    %c0_i32 = arith.constant 0 : i32
    return %arg2, %arg1 : i32, i32
  }
  func.func @transform_2(%arg0: i32, %arg1: i32, %arg2: i32) -> (i32, i32) {
    %c0_i32 = arith.constant 0 : i32
    %c0_i32_0 = arith.constant 0 : i32
    return %c0_i32, %arg1 : i32, i32
  }
  func.func @transform_3(%arg0: i32, %arg1: i32, %arg2: i32) -> (i32, i32) {
    %c0_i32 = arith.constant 0 : i32
    %c0_i32_0 = arith.constant 0 : i32
    return %c0_i32, %arg1 : i32, i32
  }
  func.func @transform_4(%arg0: i32, %arg1: i32, %arg2: i32) -> (i32, i32) {
    %c0_i32 = arith.constant 0 : i32
    return %arg0, %arg1 : i32, i32
  }
}

module attributes {stable_mosaic.version = 11 : i64} {
  func.func @matmul_bn_kernel(%arg0: i32, %arg1: i32, %arg2: i32, %arg3: memref<32x512xbf16, #tpu.memory_space<vmem>>, %arg4: memref<512x128xbf16, #tpu.memory_space<vmem>>, %arg5: memref<1x128xf32, #tpu.memory_space<vmem>>, %arg6: memref<1x128xf32, #tpu.memory_space<vmem>>, %arg7: memref<32x128xbf16, #tpu.memory_space<vmem>>, %arg8: memref<32x128xbf16, #tpu.memory_space<vmem>>, %arg9: memref<32x128xf32, #tpu.memory_space<vmem>>) attributes {dimension_semantics = [#tpu.dimension_semantics<parallel>, #tpu.dimension_semantics<parallel>, #tpu.dimension_semantics<arbitrary>], iteration_bounds = array<i64: 1, 1, 3>, scalar_prefetch = 0 : i64, scratch_operands = 1 : i64, tpu.core_type = #tpu.core_type<tc>, window_params = [{transform_indices = @transform_0, window_bounds = array<i64: 32, 512>}, {transform_indices = @transform_1, window_bounds = array<i64: 512, 128>}, {transform_indices = @transform_2, window_bounds = array<i64: 1, 128>}, {transform_indices = @transform_3, window_bounds = array<i64: 1, 128>}, {transform_indices = @transform_4, window_bounds = array<i64: 32, 128>}, {transform_indices = @transform_5, window_bounds = array<i64: 32, 128>}]} {
    %c0_i32 = arith.constant 0 : i32
    %0 = arith.cmpi eq, %arg2, %c0_i32 : i32
    %1 = arith.extui %0 : i1 to i32
    %c0_i32_0 = arith.constant 0 : i32
    %2 = arith.cmpi ne, %1, %c0_i32_0 : i32
    scf.if %2 {
      %cst_9 = arith.constant 0.000000e+00 : f32
      %12 = vector.broadcast %cst_9 : f32 to vector<32x128xf32>
      %c0_10 = arith.constant 0 : index
      %c0_11 = arith.constant 0 : index
      %13 = vector.load %arg9[%c0_10, %c0_11] : memref<32x128xf32, #tpu.memory_space<vmem>>, vector<32x128xf32>
      tpu.vector_store %arg9[%c0_10, %c0_11], %12 {strides = array<i32>} : memref<32x128xf32, #tpu.memory_space<vmem>>, vector<32x128xf32>,
    } else {
    }
    %c0 = arith.constant 0 : index
    %c0_1 = arith.constant 0 : index
    %3 = vector.load %arg9[%c0, %c0_1] : memref<32x128xf32, #tpu.memory_space<vmem>>, vector<32x128xf32>
    %c0_2 = arith.constant 0 : index
    %c0_3 = arith.constant 0 : index
    %4 = vector.load %arg3[%c0_2, %c0_3] : memref<32x512xbf16, #tpu.memory_space<vmem>>, vector<32x512xbf16>
    %c0_4 = arith.constant 0 : index
    %c0_5 = arith.constant 0 : index
    %5 = vector.load %arg4[%c0_4, %c0_5] : memref<512x128xbf16, #tpu.memory_space<vmem>>, vector<512x128xbf16>
    %cst = arith.constant dense<0.000000e+00> : vector<32x128xf32>
    %6 = tpu.matmul %4, %5, %cst {dimension_numbers = #tpu.dot_dimension_numbers<[1], [0], [0], [1], [0, 0, 1, 1], [], []>} : vector<32x512xbf16>, vector<512x128xbf16>, vector<32x128xf32> -> vector<32x128xf32>
    %7 = arith.addf %3, %6 : vector<32x128xf32>
    %c0_6 = arith.constant 0 : index
    %c0_7 = arith.constant 0 : index
    %8 = vector.load %arg9[%c0_6, %c0_7] : memref<32x128xf32, #tpu.memory_space<vmem>>, vector<32x128xf32>
    tpu.vector_store %arg9[%c0_6, %c0_7], %7 {strides = array<i32>} : memref<32x128xf32, #tpu.memory_space<vmem>>, vector<32x128xf32>,
    %c2_i32 = arith.constant 2 : i32
    %9 = arith.cmpi eq, %arg2, %c2_i32 : i32
    %10 = arith.extui %9 : i1 to i32
    %c0_i32_8 = arith.constant 0 : i32
    %11 = arith.cmpi ne, %10, %c0_i32_8 : i32
    scf.if %11 {
      %c0_9 = arith.constant 0 : index
      %c0_10 = arith.constant 0 : index
      %12 = vector.load %arg9[%c0_9, %c0_10] : memref<32x128xf32, #tpu.memory_space<vmem>>, vector<32x128xf32>
      %c0_11 = arith.constant 0 : index
      %c0_12 = arith.constant 0 : index
      %13 = vector.load %arg5[%c0_11, %c0_12] : memref<1x128xf32, #tpu.memory_space<vmem>>, vector<1x128xf32>
      %14 = vector.broadcast %13 : vector<1x128xf32> to vector<32x128xf32>
      %15 = arith.mulf %12, %14 : vector<32x128xf32>
      %c0_13 = arith.constant 0 : index
      %c0_14 = arith.constant 0 : index
      %16 = vector.load %arg6[%c0_13, %c0_14] : memref<1x128xf32, #tpu.memory_space<vmem>>, vector<1x128xf32>
      %17 = vector.broadcast %16 : vector<1x128xf32> to vector<32x128xf32>
      %18 = arith.addf %15, %17 : vector<32x128xf32>
      %c0_15 = arith.constant 0 : index
      %c0_16 = arith.constant 0 : index
      %19 = vector.load %arg7[%c0_15, %c0_16] : memref<32x128xbf16, #tpu.memory_space<vmem>>, vector<32x128xbf16>
      %20 = arith.extf %19 : vector<32x128xbf16> to vector<32x128xf32>
      %21 = arith.addf %18, %20 : vector<32x128xf32>
      %cst_17 = arith.constant 0.000000e+00 : f32
      %22 = vector.broadcast %cst_17 : f32 to vector<32x128xf32>
      %23 = arith.maximumf %21, %22 : vector<32x128xf32>
      %24 = arith.truncf %23 : vector<32x128xf32> to vector<32x128xbf16>
      %c0_18 = arith.constant 0 : index
      %c0_19 = arith.constant 0 : index
      %25 = vector.load %arg8[%c0_18, %c0_19] : memref<32x128xbf16, #tpu.memory_space<vmem>>, vector<32x128xbf16>
      tpu.vector_store %arg8[%c0_18, %c0_19], %24 {strides = array<i32>} : memref<32x128xbf16, #tpu.memory_space<vmem>>, vector<32x128xbf16>,
    } else {
    }
    return
  }
  func.func @transform_0(%arg0: i32, %arg1: i32, %arg2: i32) -> (i32, i32) {
    %c0_i32 = arith.constant 0 : i32
    return %arg0, %arg2 : i32, i32
  }
  func.func @transform_1(%arg0: i32, %arg1: i32, %arg2: i32) -> (i32, i32) {
    %c0_i32 = arith.constant 0 : i32
    return %arg2, %arg1 : i32, i32
  }
  func.func @transform_2(%arg0: i32, %arg1: i32, %arg2: i32) -> (i32, i32) {
    %c0_i32 = arith.constant 0 : i32
    %c0_i32_0 = arith.constant 0 : i32
    return %c0_i32, %arg1 : i32, i32
  }
  func.func @transform_3(%arg0: i32, %arg1: i32, %arg2: i32) -> (i32, i32) {
    %c0_i32 = arith.constant 0 : i32
    %c0_i32_0 = arith.constant 0 : i32
    return %c0_i32, %arg1 : i32, i32
  }
  func.func @transform_4(%arg0: i32, %arg1: i32, %arg2: i32) -> (i32, i32) {
    %c0_i32 = arith.constant 0 : i32
    return %arg0, %arg1 : i32, i32
  }
  func.func @transform_5(%arg0: i32, %arg1: i32, %arg2: i32) -> (i32, i32) {
    %c0_i32 = arith.constant 0 : i32
    return %arg0, %arg1 : i32, i32
  }
}

module attributes {stable_mosaic.version = 11 : i64} {
  func.func @matmul_bn_kernel(%arg0: i32, %arg1: i32, %arg2: i32, %arg3: memref<8x512xbf16, #tpu.memory_space<vmem>>, %arg4: memref<512x256xbf16, #tpu.memory_space<vmem>>, %arg5: memref<1x256xf32, #tpu.memory_space<vmem>>, %arg6: memref<1x256xf32, #tpu.memory_space<vmem>>, %arg7: memref<8x256xbf16, #tpu.memory_space<vmem>>, %arg8: memref<8x256xf32, #tpu.memory_space<vmem>>) attributes {dimension_semantics = [#tpu.dimension_semantics<parallel>, #tpu.dimension_semantics<parallel>, #tpu.dimension_semantics<arbitrary>], iteration_bounds = array<i64: 1, 1, 3>, scalar_prefetch = 0 : i64, scratch_operands = 1 : i64, tpu.core_type = #tpu.core_type<tc>, window_params = [{transform_indices = @transform_0, window_bounds = array<i64: 8, 512>}, {transform_indices = @transform_1, window_bounds = array<i64: 512, 256>}, {transform_indices = @transform_2, window_bounds = array<i64: 1, 256>}, {transform_indices = @transform_3, window_bounds = array<i64: 1, 256>}, {transform_indices = @transform_4, window_bounds = array<i64: 8, 256>}]} {
    %c0_i32 = arith.constant 0 : i32
    %0 = arith.cmpi eq, %arg2, %c0_i32 : i32
    %1 = arith.extui %0 : i1 to i32
    %c0_i32_0 = arith.constant 0 : i32
    %2 = arith.cmpi ne, %1, %c0_i32_0 : i32
    scf.if %2 {
      %cst_9 = arith.constant 0.000000e+00 : f32
      %12 = vector.broadcast %cst_9 : f32 to vector<8x256xf32>
      %c0_10 = arith.constant 0 : index
      %c0_11 = arith.constant 0 : index
      %13 = vector.load %arg8[%c0_10, %c0_11] : memref<8x256xf32, #tpu.memory_space<vmem>>, vector<8x256xf32>
      tpu.vector_store %arg8[%c0_10, %c0_11], %12 {strides = array<i32>} : memref<8x256xf32, #tpu.memory_space<vmem>>, vector<8x256xf32>,
    } else {
    }
    %c0 = arith.constant 0 : index
    %c0_1 = arith.constant 0 : index
    %3 = vector.load %arg8[%c0, %c0_1] : memref<8x256xf32, #tpu.memory_space<vmem>>, vector<8x256xf32>
    %c0_2 = arith.constant 0 : index
    %c0_3 = arith.constant 0 : index
    %4 = vector.load %arg3[%c0_2, %c0_3] : memref<8x512xbf16, #tpu.memory_space<vmem>>, vector<8x512xbf16>
    %c0_4 = arith.constant 0 : index
    %c0_5 = arith.constant 0 : index
    %5 = vector.load %arg4[%c0_4, %c0_5] : memref<512x256xbf16, #tpu.memory_space<vmem>>, vector<512x256xbf16>
    %cst = arith.constant dense<0.000000e+00> : vector<8x256xf32>
    %6 = tpu.matmul %4, %5, %cst {dimension_numbers = #tpu.dot_dimension_numbers<[1], [0], [0], [1], [0, 0, 1, 1], [], []>} : vector<8x512xbf16>, vector<512x256xbf16>, vector<8x256xf32> -> vector<8x256xf32>
    %7 = arith.addf %3, %6 : vector<8x256xf32>
    %c0_6 = arith.constant 0 : index
    %c0_7 = arith.constant 0 : index
    %8 = vector.load %arg8[%c0_6, %c0_7] : memref<8x256xf32, #tpu.memory_space<vmem>>, vector<8x256xf32>
    tpu.vector_store %arg8[%c0_6, %c0_7], %7 {strides = array<i32>} : memref<8x256xf32, #tpu.memory_space<vmem>>, vector<8x256xf32>,
    %c2_i32 = arith.constant 2 : i32
    %9 = arith.cmpi eq, %arg2, %c2_i32 : i32
    %10 = arith.extui %9 : i1 to i32
    %c0_i32_8 = arith.constant 0 : i32
    %11 = arith.cmpi ne, %10, %c0_i32_8 : i32
    scf.if %11 {
      %c0_9 = arith.constant 0 : index
      %c0_10 = arith.constant 0 : index
      %12 = vector.load %arg8[%c0_9, %c0_10] : memref<8x256xf32, #tpu.memory_space<vmem>>, vector<8x256xf32>
      %c0_11 = arith.constant 0 : index
      %c0_12 = arith.constant 0 : index
      %13 = vector.load %arg5[%c0_11, %c0_12] : memref<1x256xf32, #tpu.memory_space<vmem>>, vector<1x256xf32>
      %14 = vector.broadcast %13 : vector<1x256xf32> to vector<8x256xf32>
      %15 = arith.mulf %12, %14 : vector<8x256xf32>
      %c0_13 = arith.constant 0 : index
      %c0_14 = arith.constant 0 : index
      %16 = vector.load %arg6[%c0_13, %c0_14] : memref<1x256xf32, #tpu.memory_space<vmem>>, vector<1x256xf32>
      %17 = vector.broadcast %16 : vector<1x256xf32> to vector<8x256xf32>
      %18 = arith.addf %15, %17 : vector<8x256xf32>
      %cst_15 = arith.constant 0.000000e+00 : f32
      %19 = vector.broadcast %cst_15 : f32 to vector<8x256xf32>
      %20 = arith.maximumf %18, %19 : vector<8x256xf32>
      %21 = arith.truncf %20 : vector<8x256xf32> to vector<8x256xbf16>
      %c0_16 = arith.constant 0 : index
      %c0_17 = arith.constant 0 : index
      %22 = vector.load %arg7[%c0_16, %c0_17] : memref<8x256xbf16, #tpu.memory_space<vmem>>, vector<8x256xbf16>
      tpu.vector_store %arg7[%c0_16, %c0_17], %21 {strides = array<i32>} : memref<8x256xbf16, #tpu.memory_space<vmem>>, vector<8x256xbf16>,
    } else {
    }
    return
  }
  func.func @transform_0(%arg0: i32, %arg1: i32, %arg2: i32) -> (i32, i32) {
    %c0_i32 = arith.constant 0 : i32
    return %arg0, %arg2 : i32, i32
  }
  func.func @transform_1(%arg0: i32, %arg1: i32, %arg2: i32) -> (i32, i32) {
    %c0_i32 = arith.constant 0 : i32
    return %arg2, %arg1 : i32, i32
  }
  func.func @transform_2(%arg0: i32, %arg1: i32, %arg2: i32) -> (i32, i32) {
    %c0_i32 = arith.constant 0 : i32
    %c0_i32_0 = arith.constant 0 : i32
    return %c0_i32, %arg1 : i32, i32
  }
  func.func @transform_3(%arg0: i32, %arg1: i32, %arg2: i32) -> (i32, i32) {
    %c0_i32 = arith.constant 0 : i32
    %c0_i32_0 = arith.constant 0 : i32
    return %c0_i32, %arg1 : i32, i32
  }
  func.func @transform_4(%arg0: i32, %arg1: i32, %arg2: i32) -> (i32, i32) {
    %c0_i32 = arith.constant 0 : i32
    return %arg0, %arg1 : i32, i32
  }
}

module attributes {stable_mosaic.version = 11 : i64} {
  func.func @matmul_bn_kernel(%arg0: i32, %arg1: i32, %arg2: i32, %arg3: memref<8x128xbf16, #tpu.memory_space<vmem>>, %arg4: memref<128x256xbf16, #tpu.memory_space<vmem>>, %arg5: memref<1x256xf32, #tpu.memory_space<vmem>>, %arg6: memref<1x256xf32, #tpu.memory_space<vmem>>, %arg7: memref<8x256xbf16, #tpu.memory_space<vmem>>, %arg8: memref<8x256xf32, #tpu.memory_space<vmem>>) attributes {dimension_semantics = [#tpu.dimension_semantics<parallel>, #tpu.dimension_semantics<parallel>, #tpu.dimension_semantics<arbitrary>], iteration_bounds = array<i64: 1, 1, 1>, scalar_prefetch = 0 : i64, scratch_operands = 1 : i64, tpu.core_type = #tpu.core_type<tc>, window_params = [{transform_indices = @transform_0, window_bounds = array<i64: 8, 128>}, {transform_indices = @transform_1, window_bounds = array<i64: 128, 256>}, {transform_indices = @transform_2, window_bounds = array<i64: 1, 256>}, {transform_indices = @transform_3, window_bounds = array<i64: 1, 256>}, {transform_indices = @transform_4, window_bounds = array<i64: 8, 256>}]} {
    %c0_i32 = arith.constant 0 : i32
    %0 = arith.cmpi eq, %arg2, %c0_i32 : i32
    %1 = arith.extui %0 : i1 to i32
    %c0_i32_0 = arith.constant 0 : i32
    %2 = arith.cmpi ne, %1, %c0_i32_0 : i32
    scf.if %2 {
      %cst_10 = arith.constant 0.000000e+00 : f32
      %12 = vector.broadcast %cst_10 : f32 to vector<8x256xf32>
      %c0_11 = arith.constant 0 : index
      %c0_12 = arith.constant 0 : index
      %13 = vector.load %arg8[%c0_11, %c0_12] : memref<8x256xf32, #tpu.memory_space<vmem>>, vector<8x256xf32>
      tpu.vector_store %arg8[%c0_11, %c0_12], %12 {strides = array<i32>} : memref<8x256xf32, #tpu.memory_space<vmem>>, vector<8x256xf32>,
    } else {
    }
    %c0 = arith.constant 0 : index
    %c0_1 = arith.constant 0 : index
    %3 = vector.load %arg8[%c0, %c0_1] : memref<8x256xf32, #tpu.memory_space<vmem>>, vector<8x256xf32>
    %c0_2 = arith.constant 0 : index
    %c0_3 = arith.constant 0 : index
    %4 = vector.load %arg3[%c0_2, %c0_3] : memref<8x128xbf16, #tpu.memory_space<vmem>>, vector<8x128xbf16>
    %c0_4 = arith.constant 0 : index
    %c0_5 = arith.constant 0 : index
    %5 = vector.load %arg4[%c0_4, %c0_5] : memref<128x256xbf16, #tpu.memory_space<vmem>>, vector<128x256xbf16>
    %cst = arith.constant dense<0.000000e+00> : vector<8x256xf32>
    %6 = tpu.matmul %4, %5, %cst {dimension_numbers = #tpu.dot_dimension_numbers<[1], [0], [0], [1], [0, 0, 1, 1], [], []>} : vector<8x128xbf16>, vector<128x256xbf16>, vector<8x256xf32> -> vector<8x256xf32>
    %7 = arith.addf %3, %6 : vector<8x256xf32>
    %c0_6 = arith.constant 0 : index
    %c0_7 = arith.constant 0 : index
    %8 = vector.load %arg8[%c0_6, %c0_7] : memref<8x256xf32, #tpu.memory_space<vmem>>, vector<8x256xf32>
    tpu.vector_store %arg8[%c0_6, %c0_7], %7 {strides = array<i32>} : memref<8x256xf32, #tpu.memory_space<vmem>>, vector<8x256xf32>,
    %c0_i32_8 = arith.constant 0 : i32
    %9 = arith.cmpi eq, %arg2, %c0_i32_8 : i32
    %10 = arith.extui %9 : i1 to i32
    %c0_i32_9 = arith.constant 0 : i32
    %11 = arith.cmpi ne, %10, %c0_i32_9 : i32
    scf.if %11 {
      %c0_10 = arith.constant 0 : index
      %c0_11 = arith.constant 0 : index
      %12 = vector.load %arg8[%c0_10, %c0_11] : memref<8x256xf32, #tpu.memory_space<vmem>>, vector<8x256xf32>
      %c0_12 = arith.constant 0 : index
      %c0_13 = arith.constant 0 : index
      %13 = vector.load %arg5[%c0_12, %c0_13] : memref<1x256xf32, #tpu.memory_space<vmem>>, vector<1x256xf32>
      %14 = vector.broadcast %13 : vector<1x256xf32> to vector<8x256xf32>
      %15 = arith.mulf %12, %14 : vector<8x256xf32>
      %c0_14 = arith.constant 0 : index
      %c0_15 = arith.constant 0 : index
      %16 = vector.load %arg6[%c0_14, %c0_15] : memref<1x256xf32, #tpu.memory_space<vmem>>, vector<1x256xf32>
      %17 = vector.broadcast %16 : vector<1x256xf32> to vector<8x256xf32>
      %18 = arith.addf %15, %17 : vector<8x256xf32>
      %19 = arith.truncf %18 : vector<8x256xf32> to vector<8x256xbf16>
      %c0_16 = arith.constant 0 : index
      %c0_17 = arith.constant 0 : index
      %20 = vector.load %arg7[%c0_16, %c0_17] : memref<8x256xbf16, #tpu.memory_space<vmem>>, vector<8x256xbf16>
      tpu.vector_store %arg7[%c0_16, %c0_17], %19 {strides = array<i32>} : memref<8x256xbf16, #tpu.memory_space<vmem>>, vector<8x256xbf16>,
    } else {
    }
    return
  }
  func.func @transform_0(%arg0: i32, %arg1: i32, %arg2: i32) -> (i32, i32) {
    %c0_i32 = arith.constant 0 : i32
    return %arg0, %arg2 : i32, i32
  }
  func.func @transform_1(%arg0: i32, %arg1: i32, %arg2: i32) -> (i32, i32) {
    %c0_i32 = arith.constant 0 : i32
    return %arg2, %arg1 : i32, i32
  }
  func.func @transform_2(%arg0: i32, %arg1: i32, %arg2: i32) -> (i32, i32) {
    %c0_i32 = arith.constant 0 : i32
    %c0_i32_0 = arith.constant 0 : i32
    return %c0_i32, %arg1 : i32, i32
  }
  func.func @transform_3(%arg0: i32, %arg1: i32, %arg2: i32) -> (i32, i32) {
    %c0_i32 = arith.constant 0 : i32
    %c0_i32_0 = arith.constant 0 : i32
    return %c0_i32, %arg1 : i32, i32
  }
  func.func @transform_4(%arg0: i32, %arg1: i32, %arg2: i32) -> (i32, i32) {
    %c0_i32 = arith.constant 0 : i32
    return %arg0, %arg1 : i32, i32
  }
}

module attributes {stable_mosaic.version = 11 : i64} {
  func.func @matmul_bn_kernel(%arg0: i32, %arg1: i32, %arg2: i32, %arg3: memref<8x512xbf16, #tpu.memory_space<vmem>>, %arg4: memref<512x256xbf16, #tpu.memory_space<vmem>>, %arg5: memref<1x256xf32, #tpu.memory_space<vmem>>, %arg6: memref<1x256xf32, #tpu.memory_space<vmem>>, %arg7: memref<8x256xbf16, #tpu.memory_space<vmem>>, %arg8: memref<8x256xbf16, #tpu.memory_space<vmem>>, %arg9: memref<8x256xf32, #tpu.memory_space<vmem>>) attributes {dimension_semantics = [#tpu.dimension_semantics<parallel>, #tpu.dimension_semantics<parallel>, #tpu.dimension_semantics<arbitrary>], iteration_bounds = array<i64: 1, 1, 5>, scalar_prefetch = 0 : i64, scratch_operands = 1 : i64, tpu.core_type = #tpu.core_type<tc>, window_params = [{transform_indices = @transform_0, window_bounds = array<i64: 8, 512>}, {transform_indices = @transform_1, window_bounds = array<i64: 512, 256>}, {transform_indices = @transform_2, window_bounds = array<i64: 1, 256>}, {transform_indices = @transform_3, window_bounds = array<i64: 1, 256>}, {transform_indices = @transform_4, window_bounds = array<i64: 8, 256>}, {transform_indices = @transform_5, window_bounds = array<i64: 8, 256>}]} {
    %c0_i32 = arith.constant 0 : i32
    %0 = arith.cmpi eq, %arg2, %c0_i32 : i32
    %1 = arith.extui %0 : i1 to i32
    %c0_i32_0 = arith.constant 0 : i32
    %2 = arith.cmpi ne, %1, %c0_i32_0 : i32
    scf.if %2 {
      %cst_9 = arith.constant 0.000000e+00 : f32
      %12 = vector.broadcast %cst_9 : f32 to vector<8x256xf32>
      %c0_10 = arith.constant 0 : index
      %c0_11 = arith.constant 0 : index
      %13 = vector.load %arg9[%c0_10, %c0_11] : memref<8x256xf32, #tpu.memory_space<vmem>>, vector<8x256xf32>
      tpu.vector_store %arg9[%c0_10, %c0_11], %12 {strides = array<i32>} : memref<8x256xf32, #tpu.memory_space<vmem>>, vector<8x256xf32>,
    } else {
    }
    %c0 = arith.constant 0 : index
    %c0_1 = arith.constant 0 : index
    %3 = vector.load %arg9[%c0, %c0_1] : memref<8x256xf32, #tpu.memory_space<vmem>>, vector<8x256xf32>
    %c0_2 = arith.constant 0 : index
    %c0_3 = arith.constant 0 : index
    %4 = vector.load %arg3[%c0_2, %c0_3] : memref<8x512xbf16, #tpu.memory_space<vmem>>, vector<8x512xbf16>
    %c0_4 = arith.constant 0 : index
    %c0_5 = arith.constant 0 : index
    %5 = vector.load %arg4[%c0_4, %c0_5] : memref<512x256xbf16, #tpu.memory_space<vmem>>, vector<512x256xbf16>
    %cst = arith.constant dense<0.000000e+00> : vector<8x256xf32>
    %6 = tpu.matmul %4, %5, %cst {dimension_numbers = #tpu.dot_dimension_numbers<[1], [0], [0], [1], [0, 0, 1, 1], [], []>} : vector<8x512xbf16>, vector<512x256xbf16>, vector<8x256xf32> -> vector<8x256xf32>
    %7 = arith.addf %3, %6 : vector<8x256xf32>
    %c0_6 = arith.constant 0 : index
    %c0_7 = arith.constant 0 : index
    %8 = vector.load %arg9[%c0_6, %c0_7] : memref<8x256xf32, #tpu.memory_space<vmem>>, vector<8x256xf32>
    tpu.vector_store %arg9[%c0_6, %c0_7], %7 {strides = array<i32>} : memref<8x256xf32, #tpu.memory_space<vmem>>, vector<8x256xf32>,
    %c4_i32 = arith.constant 4 : i32
    %9 = arith.cmpi eq, %arg2, %c4_i32 : i32
    %10 = arith.extui %9 : i1 to i32
    %c0_i32_8 = arith.constant 0 : i32
    %11 = arith.cmpi ne, %10, %c0_i32_8 : i32
    scf.if %11 {
      %c0_9 = arith.constant 0 : index
      %c0_10 = arith.constant 0 : index
      %12 = vector.load %arg9[%c0_9, %c0_10] : memref<8x256xf32, #tpu.memory_space<vmem>>, vector<8x256xf32>
      %c0_11 = arith.constant 0 : index
      %c0_12 = arith.constant 0 : index
      %13 = vector.load %arg5[%c0_11, %c0_12] : memref<1x256xf32, #tpu.memory_space<vmem>>, vector<1x256xf32>
      %14 = vector.broadcast %13 : vector<1x256xf32> to vector<8x256xf32>
      %15 = arith.mulf %12, %14 : vector<8x256xf32>
      %c0_13 = arith.constant 0 : index
      %c0_14 = arith.constant 0 : index
      %16 = vector.load %arg6[%c0_13, %c0_14] : memref<1x256xf32, #tpu.memory_space<vmem>>, vector<1x256xf32>
      %17 = vector.broadcast %16 : vector<1x256xf32> to vector<8x256xf32>
      %18 = arith.addf %15, %17 : vector<8x256xf32>
      %c0_15 = arith.constant 0 : index
      %c0_16 = arith.constant 0 : index
      %19 = vector.load %arg7[%c0_15, %c0_16] : memref<8x256xbf16, #tpu.memory_space<vmem>>, vector<8x256xbf16>
      %20 = arith.extf %19 : vector<8x256xbf16> to vector<8x256xf32>
      %21 = arith.addf %18, %20 : vector<8x256xf32>
      %cst_17 = arith.constant 0.000000e+00 : f32
      %22 = vector.broadcast %cst_17 : f32 to vector<8x256xf32>
      %23 = arith.maximumf %21, %22 : vector<8x256xf32>
      %24 = arith.truncf %23 : vector<8x256xf32> to vector<8x256xbf16>
      %c0_18 = arith.constant 0 : index
      %c0_19 = arith.constant 0 : index
      %25 = vector.load %arg8[%c0_18, %c0_19] : memref<8x256xbf16, #tpu.memory_space<vmem>>, vector<8x256xbf16>
      tpu.vector_store %arg8[%c0_18, %c0_19], %24 {strides = array<i32>} : memref<8x256xbf16, #tpu.memory_space<vmem>>, vector<8x256xbf16>,
    } else {
    }
    return
  }
  func.func @transform_0(%arg0: i32, %arg1: i32, %arg2: i32) -> (i32, i32) {
    %c0_i32 = arith.constant 0 : i32
    return %arg0, %arg2 : i32, i32
  }
  func.func @transform_1(%arg0: i32, %arg1: i32, %arg2: i32) -> (i32, i32) {
    %c0_i32 = arith.constant 0 : i32
    return %arg2, %arg1 : i32, i32
  }
  func.func @transform_2(%arg0: i32, %arg1: i32, %arg2: i32) -> (i32, i32) {
    %c0_i32 = arith.constant 0 : i32
    %c0_i32_0 = arith.constant 0 : i32
    return %c0_i32, %arg1 : i32, i32
  }
  func.func @transform_3(%arg0: i32, %arg1: i32, %arg2: i32) -> (i32, i32) {
    %c0_i32 = arith.constant 0 : i32
    %c0_i32_0 = arith.constant 0 : i32
    return %c0_i32, %arg1 : i32, i32
  }
  func.func @transform_4(%arg0: i32, %arg1: i32, %arg2: i32) -> (i32, i32) {
    %c0_i32 = arith.constant 0 : i32
    return %arg0, %arg1 : i32, i32
  }
  func.func @transform_5(%arg0: i32, %arg1: i32, %arg2: i32) -> (i32, i32) {
    %c0_i32 = arith.constant 0 : i32
    return %arg0, %arg1 : i32, i32
  }
}

module attributes {stable_mosaic.version = 11 : i64} {
  func.func @matmul_bn_kernel(%arg0: i32, %arg1: i32, %arg2: i32, %arg3: memref<8x512xbf16, #tpu.memory_space<vmem>>, %arg4: memref<512x256xbf16, #tpu.memory_space<vmem>>, %arg5: memref<1x256xf32, #tpu.memory_space<vmem>>, %arg6: memref<1x256xf32, #tpu.memory_space<vmem>>, %arg7: memref<8x256xbf16, #tpu.memory_space<vmem>>, %arg8: memref<8x256xf32, #tpu.memory_space<vmem>>) attributes {dimension_semantics = [#tpu.dimension_semantics<parallel>, #tpu.dimension_semantics<parallel>, #tpu.dimension_semantics<arbitrary>], iteration_bounds = array<i64: 1, 1, 5>, scalar_prefetch = 0 : i64, scratch_operands = 1 : i64, tpu.core_type = #tpu.core_type<tc>, window_params = [{transform_indices = @transform_0, window_bounds = array<i64: 8, 512>}, {transform_indices = @transform_1, window_bounds = array<i64: 512, 256>}, {transform_indices = @transform_2, window_bounds = array<i64: 1, 256>}, {transform_indices = @transform_3, window_bounds = array<i64: 1, 256>}, {transform_indices = @transform_4, window_bounds = array<i64: 8, 256>}]} {
    %c0_i32 = arith.constant 0 : i32
    %0 = arith.cmpi eq, %arg2, %c0_i32 : i32
    %1 = arith.extui %0 : i1 to i32
    %c0_i32_0 = arith.constant 0 : i32
    %2 = arith.cmpi ne, %1, %c0_i32_0 : i32
    scf.if %2 {
      %cst_9 = arith.constant 0.000000e+00 : f32
      %12 = vector.broadcast %cst_9 : f32 to vector<8x256xf32>
      %c0_10 = arith.constant 0 : index
      %c0_11 = arith.constant 0 : index
      %13 = vector.load %arg8[%c0_10, %c0_11] : memref<8x256xf32, #tpu.memory_space<vmem>>, vector<8x256xf32>
      tpu.vector_store %arg8[%c0_10, %c0_11], %12 {strides = array<i32>} : memref<8x256xf32, #tpu.memory_space<vmem>>, vector<8x256xf32>,
    } else {
    }
    %c0 = arith.constant 0 : index
    %c0_1 = arith.constant 0 : index
    %3 = vector.load %arg8[%c0, %c0_1] : memref<8x256xf32, #tpu.memory_space<vmem>>, vector<8x256xf32>
    %c0_2 = arith.constant 0 : index
    %c0_3 = arith.constant 0 : index
    %4 = vector.load %arg3[%c0_2, %c0_3] : memref<8x512xbf16, #tpu.memory_space<vmem>>, vector<8x512xbf16>
    %c0_4 = arith.constant 0 : index
    %c0_5 = arith.constant 0 : index
    %5 = vector.load %arg4[%c0_4, %c0_5] : memref<512x256xbf16, #tpu.memory_space<vmem>>, vector<512x256xbf16>
    %cst = arith.constant dense<0.000000e+00> : vector<8x256xf32>
    %6 = tpu.matmul %4, %5, %cst {dimension_numbers = #tpu.dot_dimension_numbers<[1], [0], [0], [1], [0, 0, 1, 1], [], []>} : vector<8x512xbf16>, vector<512x256xbf16>, vector<8x256xf32> -> vector<8x256xf32>
    %7 = arith.addf %3, %6 : vector<8x256xf32>
    %c0_6 = arith.constant 0 : index
    %c0_7 = arith.constant 0 : index
    %8 = vector.load %arg8[%c0_6, %c0_7] : memref<8x256xf32, #tpu.memory_space<vmem>>, vector<8x256xf32>
    tpu.vector_store %arg8[%c0_6, %c0_7], %7 {strides = array<i32>} : memref<8x256xf32, #tpu.memory_space<vmem>>, vector<8x256xf32>,
    %c4_i32 = arith.constant 4 : i32
    %9 = arith.cmpi eq, %arg2, %c4_i32 : i32
    %10 = arith.extui %9 : i1 to i32
    %c0_i32_8 = arith.constant 0 : i32
    %11 = arith.cmpi ne, %10, %c0_i32_8 : i32
    scf.if %11 {
      %c0_9 = arith.constant 0 : index
      %c0_10 = arith.constant 0 : index
      %12 = vector.load %arg8[%c0_9, %c0_10] : memref<8x256xf32, #tpu.memory_space<vmem>>, vector<8x256xf32>
      %c0_11 = arith.constant 0 : index
      %c0_12 = arith.constant 0 : index
      %13 = vector.load %arg5[%c0_11, %c0_12] : memref<1x256xf32, #tpu.memory_space<vmem>>, vector<1x256xf32>
      %14 = vector.broadcast %13 : vector<1x256xf32> to vector<8x256xf32>
      %15 = arith.mulf %12, %14 : vector<8x256xf32>
      %c0_13 = arith.constant 0 : index
      %c0_14 = arith.constant 0 : index
      %16 = vector.load %arg6[%c0_13, %c0_14] : memref<1x256xf32, #tpu.memory_space<vmem>>, vector<1x256xf32>
      %17 = vector.broadcast %16 : vector<1x256xf32> to vector<8x256xf32>
      %18 = arith.addf %15, %17 : vector<8x256xf32>
      %cst_15 = arith.constant 0.000000e+00 : f32
      %19 = vector.broadcast %cst_15 : f32 to vector<8x256xf32>
      %20 = arith.maximumf %18, %19 : vector<8x256xf32>
      %21 = arith.truncf %20 : vector<8x256xf32> to vector<8x256xbf16>
      %c0_16 = arith.constant 0 : index
      %c0_17 = arith.constant 0 : index
      %22 = vector.load %arg7[%c0_16, %c0_17] : memref<8x256xbf16, #tpu.memory_space<vmem>>, vector<8x256xbf16>
      tpu.vector_store %arg7[%c0_16, %c0_17], %21 {strides = array<i32>} : memref<8x256xbf16, #tpu.memory_space<vmem>>, vector<8x256xbf16>,
    } else {
    }
    return
  }
  func.func @transform_0(%arg0: i32, %arg1: i32, %arg2: i32) -> (i32, i32) {
    %c0_i32 = arith.constant 0 : i32
    return %arg0, %arg2 : i32, i32
  }
  func.func @transform_1(%arg0: i32, %arg1: i32, %arg2: i32) -> (i32, i32) {
    %c0_i32 = arith.constant 0 : i32
    return %arg2, %arg1 : i32, i32
  }
  func.func @transform_2(%arg0: i32, %arg1: i32, %arg2: i32) -> (i32, i32) {
    %c0_i32 = arith.constant 0 : i32
    %c0_i32_0 = arith.constant 0 : i32
    return %c0_i32, %arg1 : i32, i32
  }
  func.func @transform_3(%arg0: i32, %arg1: i32, %arg2: i32) -> (i32, i32) {
    %c0_i32 = arith.constant 0 : i32
    %c0_i32_0 = arith.constant 0 : i32
    return %c0_i32, %arg1 : i32, i32
  }
  func.func @transform_4(%arg0: i32, %arg1: i32, %arg2: i32) -> (i32, i32) {
    %c0_i32 = arith.constant 0 : i32
    return %arg0, %arg1 : i32, i32
  }
}

module attributes {stable_mosaic.version = 11 : i64} {
  func.func @matmul_bn_kernel(%arg0: i32, %arg1: i32, %arg2: i32, %arg3: memref<8x512xbf16, #tpu.memory_space<vmem>>, %arg4: memref<512x256xbf16, #tpu.memory_space<vmem>>, %arg5: memref<1x256xf32, #tpu.memory_space<vmem>>, %arg6: memref<1x256xf32, #tpu.memory_space<vmem>>, %arg7: memref<8x256xbf16, #tpu.memory_space<vmem>>, %arg8: memref<8x256xf32, #tpu.memory_space<vmem>>) attributes {dimension_semantics = [#tpu.dimension_semantics<parallel>, #tpu.dimension_semantics<parallel>, #tpu.dimension_semantics<arbitrary>], iteration_bounds = array<i64: 1, 2, 5>, scalar_prefetch = 0 : i64, scratch_operands = 1 : i64, tpu.core_type = #tpu.core_type<tc>, window_params = [{transform_indices = @transform_0, window_bounds = array<i64: 8, 512>}, {transform_indices = @transform_1, window_bounds = array<i64: 512, 256>}, {transform_indices = @transform_2, window_bounds = array<i64: 1, 256>}, {transform_indices = @transform_3, window_bounds = array<i64: 1, 256>}, {transform_indices = @transform_4, window_bounds = array<i64: 8, 256>}]} {
    %c0_i32 = arith.constant 0 : i32
    %0 = arith.cmpi eq, %arg2, %c0_i32 : i32
    %1 = arith.extui %0 : i1 to i32
    %c0_i32_0 = arith.constant 0 : i32
    %2 = arith.cmpi ne, %1, %c0_i32_0 : i32
    scf.if %2 {
      %cst_9 = arith.constant 0.000000e+00 : f32
      %12 = vector.broadcast %cst_9 : f32 to vector<8x256xf32>
      %c0_10 = arith.constant 0 : index
      %c0_11 = arith.constant 0 : index
      %13 = vector.load %arg8[%c0_10, %c0_11] : memref<8x256xf32, #tpu.memory_space<vmem>>, vector<8x256xf32>
      tpu.vector_store %arg8[%c0_10, %c0_11], %12 {strides = array<i32>} : memref<8x256xf32, #tpu.memory_space<vmem>>, vector<8x256xf32>,
    } else {
    }
    %c0 = arith.constant 0 : index
    %c0_1 = arith.constant 0 : index
    %3 = vector.load %arg8[%c0, %c0_1] : memref<8x256xf32, #tpu.memory_space<vmem>>, vector<8x256xf32>
    %c0_2 = arith.constant 0 : index
    %c0_3 = arith.constant 0 : index
    %4 = vector.load %arg3[%c0_2, %c0_3] : memref<8x512xbf16, #tpu.memory_space<vmem>>, vector<8x512xbf16>
    %c0_4 = arith.constant 0 : index
    %c0_5 = arith.constant 0 : index
    %5 = vector.load %arg4[%c0_4, %c0_5] : memref<512x256xbf16, #tpu.memory_space<vmem>>, vector<512x256xbf16>
    %cst = arith.constant dense<0.000000e+00> : vector<8x256xf32>
    %6 = tpu.matmul %4, %5, %cst {dimension_numbers = #tpu.dot_dimension_numbers<[1], [0], [0], [1], [0, 0, 1, 1], [], []>} : vector<8x512xbf16>, vector<512x256xbf16>, vector<8x256xf32> -> vector<8x256xf32>
    %7 = arith.addf %3, %6 : vector<8x256xf32>
    %c0_6 = arith.constant 0 : index
    %c0_7 = arith.constant 0 : index
    %8 = vector.load %arg8[%c0_6, %c0_7] : memref<8x256xf32, #tpu.memory_space<vmem>>, vector<8x256xf32>
    tpu.vector_store %arg8[%c0_6, %c0_7], %7 {strides = array<i32>} : memref<8x256xf32, #tpu.memory_space<vmem>>, vector<8x256xf32>,
    %c4_i32 = arith.constant 4 : i32
    %9 = arith.cmpi eq, %arg2, %c4_i32 : i32
    %10 = arith.extui %9 : i1 to i32
    %c0_i32_8 = arith.constant 0 : i32
    %11 = arith.cmpi ne, %10, %c0_i32_8 : i32
    scf.if %11 {
      %c0_9 = arith.constant 0 : index
      %c0_10 = arith.constant 0 : index
      %12 = vector.load %arg8[%c0_9, %c0_10] : memref<8x256xf32, #tpu.memory_space<vmem>>, vector<8x256xf32>
      %c0_11 = arith.constant 0 : index
      %c0_12 = arith.constant 0 : index
      %13 = vector.load %arg5[%c0_11, %c0_12] : memref<1x256xf32, #tpu.memory_space<vmem>>, vector<1x256xf32>
      %14 = vector.broadcast %13 : vector<1x256xf32> to vector<8x256xf32>
      %15 = arith.mulf %12, %14 : vector<8x256xf32>
      %c0_13 = arith.constant 0 : index
      %c0_14 = arith.constant 0 : index
      %16 = vector.load %arg6[%c0_13, %c0_14] : memref<1x256xf32, #tpu.memory_space<vmem>>, vector<1x256xf32>
      %17 = vector.broadcast %16 : vector<1x256xf32> to vector<8x256xf32>
      %18 = arith.addf %15, %17 : vector<8x256xf32>
      %cst_15 = arith.constant 0.000000e+00 : f32
      %19 = vector.broadcast %cst_15 : f32 to vector<8x256xf32>
      %20 = arith.maximumf %18, %19 : vector<8x256xf32>
      %21 = arith.truncf %20 : vector<8x256xf32> to vector<8x256xbf16>
      %c0_16 = arith.constant 0 : index
      %c0_17 = arith.constant 0 : index
      %22 = vector.load %arg7[%c0_16, %c0_17] : memref<8x256xbf16, #tpu.memory_space<vmem>>, vector<8x256xbf16>
      tpu.vector_store %arg7[%c0_16, %c0_17], %21 {strides = array<i32>} : memref<8x256xbf16, #tpu.memory_space<vmem>>, vector<8x256xbf16>,
    } else {
    }
    return
  }
  func.func @transform_0(%arg0: i32, %arg1: i32, %arg2: i32) -> (i32, i32) {
    %c0_i32 = arith.constant 0 : i32
    return %arg0, %arg2 : i32, i32
  }
  func.func @transform_1(%arg0: i32, %arg1: i32, %arg2: i32) -> (i32, i32) {
    %c0_i32 = arith.constant 0 : i32
    return %arg2, %arg1 : i32, i32
  }
  func.func @transform_2(%arg0: i32, %arg1: i32, %arg2: i32) -> (i32, i32) {
    %c0_i32 = arith.constant 0 : i32
    %c0_i32_0 = arith.constant 0 : i32
    return %c0_i32, %arg1 : i32, i32
  }
  func.func @transform_3(%arg0: i32, %arg1: i32, %arg2: i32) -> (i32, i32) {
    %c0_i32 = arith.constant 0 : i32
    %c0_i32_0 = arith.constant 0 : i32
    return %c0_i32, %arg1 : i32, i32
  }
  func.func @transform_4(%arg0: i32, %arg1: i32, %arg2: i32) -> (i32, i32) {
    %c0_i32 = arith.constant 0 : i32
    return %arg0, %arg1 : i32, i32
  }
}

module attributes {stable_mosaic.version = 11 : i64} {
  func.func @matmul_bn_kernel(%arg0: i32, %arg1: i32, %arg2: i32, %arg3: memref<8x256xbf16, #tpu.memory_space<vmem>>, %arg4: memref<256x256xbf16, #tpu.memory_space<vmem>>, %arg5: memref<1x256xf32, #tpu.memory_space<vmem>>, %arg6: memref<1x256xf32, #tpu.memory_space<vmem>>, %arg7: memref<8x256xbf16, #tpu.memory_space<vmem>>, %arg8: memref<8x256xf32, #tpu.memory_space<vmem>>) attributes {dimension_semantics = [#tpu.dimension_semantics<parallel>, #tpu.dimension_semantics<parallel>, #tpu.dimension_semantics<arbitrary>], iteration_bounds = array<i64: 1, 2, 1>, scalar_prefetch = 0 : i64, scratch_operands = 1 : i64, tpu.core_type = #tpu.core_type<tc>, window_params = [{transform_indices = @transform_0, window_bounds = array<i64: 8, 256>}, {transform_indices = @transform_1, window_bounds = array<i64: 256, 256>}, {transform_indices = @transform_2, window_bounds = array<i64: 1, 256>}, {transform_indices = @transform_3, window_bounds = array<i64: 1, 256>}, {transform_indices = @transform_4, window_bounds = array<i64: 8, 256>}]} {
    %c0_i32 = arith.constant 0 : i32
    %0 = arith.cmpi eq, %arg2, %c0_i32 : i32
    %1 = arith.extui %0 : i1 to i32
    %c0_i32_0 = arith.constant 0 : i32
    %2 = arith.cmpi ne, %1, %c0_i32_0 : i32
    scf.if %2 {
      %cst_10 = arith.constant 0.000000e+00 : f32
      %12 = vector.broadcast %cst_10 : f32 to vector<8x256xf32>
      %c0_11 = arith.constant 0 : index
      %c0_12 = arith.constant 0 : index
      %13 = vector.load %arg8[%c0_11, %c0_12] : memref<8x256xf32, #tpu.memory_space<vmem>>, vector<8x256xf32>
      tpu.vector_store %arg8[%c0_11, %c0_12], %12 {strides = array<i32>} : memref<8x256xf32, #tpu.memory_space<vmem>>, vector<8x256xf32>,
    } else {
    }
    %c0 = arith.constant 0 : index
    %c0_1 = arith.constant 0 : index
    %3 = vector.load %arg8[%c0, %c0_1] : memref<8x256xf32, #tpu.memory_space<vmem>>, vector<8x256xf32>
    %c0_2 = arith.constant 0 : index
    %c0_3 = arith.constant 0 : index
    %4 = vector.load %arg3[%c0_2, %c0_3] : memref<8x256xbf16, #tpu.memory_space<vmem>>, vector<8x256xbf16>
    %c0_4 = arith.constant 0 : index
    %c0_5 = arith.constant 0 : index
    %5 = vector.load %arg4[%c0_4, %c0_5] : memref<256x256xbf16, #tpu.memory_space<vmem>>, vector<256x256xbf16>
    %cst = arith.constant dense<0.000000e+00> : vector<8x256xf32>
    %6 = tpu.matmul %4, %5, %cst {dimension_numbers = #tpu.dot_dimension_numbers<[1], [0], [0], [1], [0, 0, 1, 1], [], []>} : vector<8x256xbf16>, vector<256x256xbf16>, vector<8x256xf32> -> vector<8x256xf32>
    %7 = arith.addf %3, %6 : vector<8x256xf32>
    %c0_6 = arith.constant 0 : index
    %c0_7 = arith.constant 0 : index
    %8 = vector.load %arg8[%c0_6, %c0_7] : memref<8x256xf32, #tpu.memory_space<vmem>>, vector<8x256xf32>
    tpu.vector_store %arg8[%c0_6, %c0_7], %7 {strides = array<i32>} : memref<8x256xf32, #tpu.memory_space<vmem>>, vector<8x256xf32>,
    %c0_i32_8 = arith.constant 0 : i32
    %9 = arith.cmpi eq, %arg2, %c0_i32_8 : i32
    %10 = arith.extui %9 : i1 to i32
    %c0_i32_9 = arith.constant 0 : i32
    %11 = arith.cmpi ne, %10, %c0_i32_9 : i32
    scf.if %11 {
      %c0_10 = arith.constant 0 : index
      %c0_11 = arith.constant 0 : index
      %12 = vector.load %arg8[%c0_10, %c0_11] : memref<8x256xf32, #tpu.memory_space<vmem>>, vector<8x256xf32>
      %c0_12 = arith.constant 0 : index
      %c0_13 = arith.constant 0 : index
      %13 = vector.load %arg5[%c0_12, %c0_13] : memref<1x256xf32, #tpu.memory_space<vmem>>, vector<1x256xf32>
      %14 = vector.broadcast %13 : vector<1x256xf32> to vector<8x256xf32>
      %15 = arith.mulf %12, %14 : vector<8x256xf32>
      %c0_14 = arith.constant 0 : index
      %c0_15 = arith.constant 0 : index
      %16 = vector.load %arg6[%c0_14, %c0_15] : memref<1x256xf32, #tpu.memory_space<vmem>>, vector<1x256xf32>
      %17 = vector.broadcast %16 : vector<1x256xf32> to vector<8x256xf32>
      %18 = arith.addf %15, %17 : vector<8x256xf32>
      %19 = arith.truncf %18 : vector<8x256xf32> to vector<8x256xbf16>
      %c0_16 = arith.constant 0 : index
      %c0_17 = arith.constant 0 : index
      %20 = vector.load %arg7[%c0_16, %c0_17] : memref<8x256xbf16, #tpu.memory_space<vmem>>, vector<8x256xbf16>
      tpu.vector_store %arg7[%c0_16, %c0_17], %19 {strides = array<i32>} : memref<8x256xbf16, #tpu.memory_space<vmem>>, vector<8x256xbf16>,
    } else {
    }
    return
  }
  func.func @transform_0(%arg0: i32, %arg1: i32, %arg2: i32) -> (i32, i32) {
    %c0_i32 = arith.constant 0 : i32
    return %arg0, %arg2 : i32, i32
  }
  func.func @transform_1(%arg0: i32, %arg1: i32, %arg2: i32) -> (i32, i32) {
    %c0_i32 = arith.constant 0 : i32
    return %arg2, %arg1 : i32, i32
  }
  func.func @transform_2(%arg0: i32, %arg1: i32, %arg2: i32) -> (i32, i32) {
    %c0_i32 = arith.constant 0 : i32
    %c0_i32_0 = arith.constant 0 : i32
    return %c0_i32, %arg1 : i32, i32
  }
  func.func @transform_3(%arg0: i32, %arg1: i32, %arg2: i32) -> (i32, i32) {
    %c0_i32 = arith.constant 0 : i32
    %c0_i32_0 = arith.constant 0 : i32
    return %c0_i32, %arg1 : i32, i32
  }
  func.func @transform_4(%arg0: i32, %arg1: i32, %arg2: i32) -> (i32, i32) {
    %c0_i32 = arith.constant 0 : i32
    return %arg0, %arg1 : i32, i32
  }
}

module attributes {stable_mosaic.version = 11 : i64} {
  func.func @matmul_bn_kernel(%arg0: i32, %arg1: i32, %arg2: i32, %arg3: memref<8x512xbf16, #tpu.memory_space<vmem>>, %arg4: memref<512x256xbf16, #tpu.memory_space<vmem>>, %arg5: memref<1x256xf32, #tpu.memory_space<vmem>>, %arg6: memref<1x256xf32, #tpu.memory_space<vmem>>, %arg7: memref<8x256xbf16, #tpu.memory_space<vmem>>, %arg8: memref<8x256xbf16, #tpu.memory_space<vmem>>, %arg9: memref<8x256xf32, #tpu.memory_space<vmem>>) attributes {dimension_semantics = [#tpu.dimension_semantics<parallel>, #tpu.dimension_semantics<parallel>, #tpu.dimension_semantics<arbitrary>], iteration_bounds = array<i64: 1, 2, 9>, scalar_prefetch = 0 : i64, scratch_operands = 1 : i64, tpu.core_type = #tpu.core_type<tc>, window_params = [{transform_indices = @transform_0, window_bounds = array<i64: 8, 512>}, {transform_indices = @transform_1, window_bounds = array<i64: 512, 256>}, {transform_indices = @transform_2, window_bounds = array<i64: 1, 256>}, {transform_indices = @transform_3, window_bounds = array<i64: 1, 256>}, {transform_indices = @transform_4, window_bounds = array<i64: 8, 256>}, {transform_indices = @transform_5, window_bounds = array<i64: 8, 256>}]} {
    %c0_i32 = arith.constant 0 : i32
    %0 = arith.cmpi eq, %arg2, %c0_i32 : i32
    %1 = arith.extui %0 : i1 to i32
    %c0_i32_0 = arith.constant 0 : i32
    %2 = arith.cmpi ne, %1, %c0_i32_0 : i32
    scf.if %2 {
      %cst_9 = arith.constant 0.000000e+00 : f32
      %12 = vector.broadcast %cst_9 : f32 to vector<8x256xf32>
      %c0_10 = arith.constant 0 : index
      %c0_11 = arith.constant 0 : index
      %13 = vector.load %arg9[%c0_10, %c0_11] : memref<8x256xf32, #tpu.memory_space<vmem>>, vector<8x256xf32>
      tpu.vector_store %arg9[%c0_10, %c0_11], %12 {strides = array<i32>} : memref<8x256xf32, #tpu.memory_space<vmem>>, vector<8x256xf32>,
    } else {
    }
    %c0 = arith.constant 0 : index
    %c0_1 = arith.constant 0 : index
    %3 = vector.load %arg9[%c0, %c0_1] : memref<8x256xf32, #tpu.memory_space<vmem>>, vector<8x256xf32>
    %c0_2 = arith.constant 0 : index
    %c0_3 = arith.constant 0 : index
    %4 = vector.load %arg3[%c0_2, %c0_3] : memref<8x512xbf16, #tpu.memory_space<vmem>>, vector<8x512xbf16>
    %c0_4 = arith.constant 0 : index
    %c0_5 = arith.constant 0 : index
    %5 = vector.load %arg4[%c0_4, %c0_5] : memref<512x256xbf16, #tpu.memory_space<vmem>>, vector<512x256xbf16>
    %cst = arith.constant dense<0.000000e+00> : vector<8x256xf32>
    %6 = tpu.matmul %4, %5, %cst {dimension_numbers = #tpu.dot_dimension_numbers<[1], [0], [0], [1], [0, 0, 1, 1], [], []>} : vector<8x512xbf16>, vector<512x256xbf16>, vector<8x256xf32> -> vector<8x256xf32>
    %7 = arith.addf %3, %6 : vector<8x256xf32>
    %c0_6 = arith.constant 0 : index
    %c0_7 = arith.constant 0 : index
    %8 = vector.load %arg9[%c0_6, %c0_7] : memref<8x256xf32, #tpu.memory_space<vmem>>, vector<8x256xf32>
    tpu.vector_store %arg9[%c0_6, %c0_7], %7 {strides = array<i32>} : memref<8x256xf32, #tpu.memory_space<vmem>>, vector<8x256xf32>,
    %c8_i32 = arith.constant 8 : i32
    %9 = arith.cmpi eq, %arg2, %c8_i32 : i32
    %10 = arith.extui %9 : i1 to i32
    %c0_i32_8 = arith.constant 0 : i32
    %11 = arith.cmpi ne, %10, %c0_i32_8 : i32
    scf.if %11 {
      %c0_9 = arith.constant 0 : index
      %c0_10 = arith.constant 0 : index
      %12 = vector.load %arg9[%c0_9, %c0_10] : memref<8x256xf32, #tpu.memory_space<vmem>>, vector<8x256xf32>
      %c0_11 = arith.constant 0 : index
      %c0_12 = arith.constant 0 : index
      %13 = vector.load %arg5[%c0_11, %c0_12] : memref<1x256xf32, #tpu.memory_space<vmem>>, vector<1x256xf32>
      %14 = vector.broadcast %13 : vector<1x256xf32> to vector<8x256xf32>
      %15 = arith.mulf %12, %14 : vector<8x256xf32>
      %c0_13 = arith.constant 0 : index
      %c0_14 = arith.constant 0 : index
      %16 = vector.load %arg6[%c0_13, %c0_14] : memref<1x256xf32, #tpu.memory_space<vmem>>, vector<1x256xf32>
      %17 = vector.broadcast %16 : vector<1x256xf32> to vector<8x256xf32>
      %18 = arith.addf %15, %17 : vector<8x256xf32>
      %c0_15 = arith.constant 0 : index
      %c0_16 = arith.constant 0 : index
      %19 = vector.load %arg7[%c0_15, %c0_16] : memref<8x256xbf16, #tpu.memory_space<vmem>>, vector<8x256xbf16>
      %20 = arith.extf %19 : vector<8x256xbf16> to vector<8x256xf32>
      %21 = arith.addf %18, %20 : vector<8x256xf32>
      %cst_17 = arith.constant 0.000000e+00 : f32
      %22 = vector.broadcast %cst_17 : f32 to vector<8x256xf32>
      %23 = arith.maximumf %21, %22 : vector<8x256xf32>
      %24 = arith.truncf %23 : vector<8x256xf32> to vector<8x256xbf16>
      %c0_18 = arith.constant 0 : index
      %c0_19 = arith.constant 0 : index
      %25 = vector.load %arg8[%c0_18, %c0_19] : memref<8x256xbf16, #tpu.memory_space<vmem>>, vector<8x256xbf16>
      tpu.vector_store %arg8[%c0_18, %c0_19], %24 {strides = array<i32>} : memref<8x256xbf16, #tpu.memory_space<vmem>>, vector<8x256xbf16>,
    } else {
    }
    return
  }
  func.func @transform_0(%arg0: i32, %arg1: i32, %arg2: i32) -> (i32, i32) {
    %c0_i32 = arith.constant 0 : i32
    return %arg0, %arg2 : i32, i32
  }
  func.func @transform_1(%arg0: i32, %arg1: i32, %arg2: i32) -> (i32, i32) {
    %c0_i32 = arith.constant 0 : i32
    return %arg2, %arg1 : i32, i32
  }
  func.func @transform_2(%arg0: i32, %arg1: i32, %arg2: i32) -> (i32, i32) {
    %c0_i32 = arith.constant 0 : i32
    %c0_i32_0 = arith.constant 0 : i32
    return %c0_i32, %arg1 : i32, i32
  }
  func.func @transform_3(%arg0: i32, %arg1: i32, %arg2: i32) -> (i32, i32) {
    %c0_i32 = arith.constant 0 : i32
    %c0_i32_0 = arith.constant 0 : i32
    return %c0_i32, %arg1 : i32, i32
  }
  func.func @transform_4(%arg0: i32, %arg1: i32, %arg2: i32) -> (i32, i32) {
    %c0_i32 = arith.constant 0 : i32
    return %arg0, %arg1 : i32, i32
  }
  func.func @transform_5(%arg0: i32, %arg1: i32, %arg2: i32) -> (i32, i32) {
    %c0_i32 = arith.constant 0 : i32
    return %arg0, %arg1 : i32, i32
  }
}

module attributes {stable_mosaic.version = 11 : i64} {
  func.func @matmul_bn_kernel(%arg0: i32, %arg1: i32, %arg2: i32, %arg3: memref<8x512xbf16, #tpu.memory_space<vmem>>, %arg4: memref<512x256xbf16, #tpu.memory_space<vmem>>, %arg5: memref<1x256xf32, #tpu.memory_space<vmem>>, %arg6: memref<1x256xf32, #tpu.memory_space<vmem>>, %arg7: memref<8x256xbf16, #tpu.memory_space<vmem>>, %arg8: memref<8x256xf32, #tpu.memory_space<vmem>>) attributes {dimension_semantics = [#tpu.dimension_semantics<parallel>, #tpu.dimension_semantics<parallel>, #tpu.dimension_semantics<arbitrary>], iteration_bounds = array<i64: 1, 2, 9>, scalar_prefetch = 0 : i64, scratch_operands = 1 : i64, tpu.core_type = #tpu.core_type<tc>, window_params = [{transform_indices = @transform_0, window_bounds = array<i64: 8, 512>}, {transform_indices = @transform_1, window_bounds = array<i64: 512, 256>}, {transform_indices = @transform_2, window_bounds = array<i64: 1, 256>}, {transform_indices = @transform_3, window_bounds = array<i64: 1, 256>}, {transform_indices = @transform_4, window_bounds = array<i64: 8, 256>}]} {
    %c0_i32 = arith.constant 0 : i32
    %0 = arith.cmpi eq, %arg2, %c0_i32 : i32
    %1 = arith.extui %0 : i1 to i32
    %c0_i32_0 = arith.constant 0 : i32
    %2 = arith.cmpi ne, %1, %c0_i32_0 : i32
    scf.if %2 {
      %cst_9 = arith.constant 0.000000e+00 : f32
      %12 = vector.broadcast %cst_9 : f32 to vector<8x256xf32>
      %c0_10 = arith.constant 0 : index
      %c0_11 = arith.constant 0 : index
      %13 = vector.load %arg8[%c0_10, %c0_11] : memref<8x256xf32, #tpu.memory_space<vmem>>, vector<8x256xf32>
      tpu.vector_store %arg8[%c0_10, %c0_11], %12 {strides = array<i32>} : memref<8x256xf32, #tpu.memory_space<vmem>>, vector<8x256xf32>,
    } else {
    }
    %c0 = arith.constant 0 : index
    %c0_1 = arith.constant 0 : index
    %3 = vector.load %arg8[%c0, %c0_1] : memref<8x256xf32, #tpu.memory_space<vmem>>, vector<8x256xf32>
    %c0_2 = arith.constant 0 : index
    %c0_3 = arith.constant 0 : index
    %4 = vector.load %arg3[%c0_2, %c0_3] : memref<8x512xbf16, #tpu.memory_space<vmem>>, vector<8x512xbf16>
    %c0_4 = arith.constant 0 : index
    %c0_5 = arith.constant 0 : index
    %5 = vector.load %arg4[%c0_4, %c0_5] : memref<512x256xbf16, #tpu.memory_space<vmem>>, vector<512x256xbf16>
    %cst = arith.constant dense<0.000000e+00> : vector<8x256xf32>
    %6 = tpu.matmul %4, %5, %cst {dimension_numbers = #tpu.dot_dimension_numbers<[1], [0], [0], [1], [0, 0, 1, 1], [], []>} : vector<8x512xbf16>, vector<512x256xbf16>, vector<8x256xf32> -> vector<8x256xf32>
    %7 = arith.addf %3, %6 : vector<8x256xf32>
    %c0_6 = arith.constant 0 : index
    %c0_7 = arith.constant 0 : index
    %8 = vector.load %arg8[%c0_6, %c0_7] : memref<8x256xf32, #tpu.memory_space<vmem>>, vector<8x256xf32>
    tpu.vector_store %arg8[%c0_6, %c0_7], %7 {strides = array<i32>} : memref<8x256xf32, #tpu.memory_space<vmem>>, vector<8x256xf32>,
    %c8_i32 = arith.constant 8 : i32
    %9 = arith.cmpi eq, %arg2, %c8_i32 : i32
    %10 = arith.extui %9 : i1 to i32
    %c0_i32_8 = arith.constant 0 : i32
    %11 = arith.cmpi ne, %10, %c0_i32_8 : i32
    scf.if %11 {
      %c0_9 = arith.constant 0 : index
      %c0_10 = arith.constant 0 : index
      %12 = vector.load %arg8[%c0_9, %c0_10] : memref<8x256xf32, #tpu.memory_space<vmem>>, vector<8x256xf32>
      %c0_11 = arith.constant 0 : index
      %c0_12 = arith.constant 0 : index
      %13 = vector.load %arg5[%c0_11, %c0_12] : memref<1x256xf32, #tpu.memory_space<vmem>>, vector<1x256xf32>
      %14 = vector.broadcast %13 : vector<1x256xf32> to vector<8x256xf32>
      %15 = arith.mulf %12, %14 : vector<8x256xf32>
      %c0_13 = arith.constant 0 : index
      %c0_14 = arith.constant 0 : index
      %16 = vector.load %arg6[%c0_13, %c0_14] : memref<1x256xf32, #tpu.memory_space<vmem>>, vector<1x256xf32>
      %17 = vector.broadcast %16 : vector<1x256xf32> to vector<8x256xf32>
      %18 = arith.addf %15, %17 : vector<8x256xf32>
      %cst_15 = arith.constant 0.000000e+00 : f32
      %19 = vector.broadcast %cst_15 : f32 to vector<8x256xf32>
      %20 = arith.maximumf %18, %19 : vector<8x256xf32>
      %21 = arith.truncf %20 : vector<8x256xf32> to vector<8x256xbf16>
      %c0_16 = arith.constant 0 : index
      %c0_17 = arith.constant 0 : index
      %22 = vector.load %arg7[%c0_16, %c0_17] : memref<8x256xbf16, #tpu.memory_space<vmem>>, vector<8x256xbf16>
      tpu.vector_store %arg7[%c0_16, %c0_17], %21 {strides = array<i32>} : memref<8x256xbf16, #tpu.memory_space<vmem>>, vector<8x256xbf16>,
    } else {
    }
    return
  }
  func.func @transform_0(%arg0: i32, %arg1: i32, %arg2: i32) -> (i32, i32) {
    %c0_i32 = arith.constant 0 : i32
    return %arg0, %arg2 : i32, i32
  }
  func.func @transform_1(%arg0: i32, %arg1: i32, %arg2: i32) -> (i32, i32) {
    %c0_i32 = arith.constant 0 : i32
    return %arg2, %arg1 : i32, i32
  }
  func.func @transform_2(%arg0: i32, %arg1: i32, %arg2: i32) -> (i32, i32) {
    %c0_i32 = arith.constant 0 : i32
    %c0_i32_0 = arith.constant 0 : i32
    return %c0_i32, %arg1 : i32, i32
  }
  func.func @transform_3(%arg0: i32, %arg1: i32, %arg2: i32) -> (i32, i32) {
    %c0_i32 = arith.constant 0 : i32
    %c0_i32_0 = arith.constant 0 : i32
    return %c0_i32, %arg1 : i32, i32
  }
  func.func @transform_4(%arg0: i32, %arg1: i32, %arg2: i32) -> (i32, i32) {
    %c0_i32 = arith.constant 0 : i32
    return %arg0, %arg1 : i32, i32
  }
}

module attributes {stable_mosaic.version = 11 : i64} {
  func.func @gap_kernel(%arg0: i32, %arg1: memref<2x1x128xbf16, #tpu.memory_space<vmem>>, %arg2: memref<2x128xf32, #tpu.memory_space<vmem>>) attributes {dimension_semantics = [#tpu.dimension_semantics<parallel>], iteration_bounds = array<i64: 4>, scalar_prefetch = 0 : i64, scratch_operands = 0 : i64, tpu.core_type = #tpu.core_type<tc>, window_params = [{transform_indices = @transform_0, window_bounds = array<i64: 2, 1, 128>}, {transform_indices = @transform_1, window_bounds = array<i64: 2, 128>}]} {
    %c0 = arith.constant 0 : index
    %c0_0 = arith.constant 0 : index
    %c0_1 = arith.constant 0 : index
    %0 = vector.load %arg1[%c0, %c0_0, %c0_1] : memref<2x1x128xbf16, #tpu.memory_space<vmem>>, vector<2x1x128xbf16>
    %1 = arith.extf %0 : vector<2x1x128xbf16> to vector<2x1x128xf32>
    %cst = arith.constant dense<0.000000e+00> : vector<2x128xf32>
    %2 = vector.multi_reduction <add>, %1, %cst [1] : vector<2x1x128xf32> to vector<2x128xf32>
    %cst_2 = arith.constant 1.000000e+00 : f32
    %3 = vector.broadcast %cst_2 : f32 to vector<2x128xf32>
    %4 = arith.divf %2, %3 : vector<2x128xf32>
    %c0_3 = arith.constant 0 : index
    %c0_4 = arith.constant 0 : index
    %5 = vector.load %arg2[%c0_3, %c0_4] : memref<2x128xf32, #tpu.memory_space<vmem>>, vector<2x128xf32>
    tpu.vector_store %arg2[%c0_3, %c0_4], %4 {strides = array<i32>} : memref<2x128xf32, #tpu.memory_space<vmem>>, vector<2x128xf32>,
    return
  }
  func.func @transform_0(%arg0: i32) -> (i32, i32, i32) {
    %c0_i32 = arith.constant 0 : i32
    %c0_i32_0 = arith.constant 0 : i32
    %c0_i32_1 = arith.constant 0 : i32
    return %c0_i32, %c0_i32_0, %arg0 : i32, i32, i32
  }
  func.func @transform_1(%arg0: i32) -> (i32, i32) {
    %c0_i32 = arith.constant 0 : i32
    %c0_i32_0 = arith.constant 0 : i32
    return %c0_i32, %arg0 : i32, i32
  }
}

module attributes {stable_mosaic.version = 11 : i64} {
  func.func @matmul_bn_kernel(%arg0: i32, %arg1: i32, %arg2: i32, %arg3: memref<8x512xbf16, #tpu.memory_space<vmem>>, %arg4: memref<512x128xbf16, #tpu.memory_space<vmem>>, %arg5: memref<1x128xf32, #tpu.memory_space<vmem>>, %arg6: memref<1x128xf32, #tpu.memory_space<vmem>>, %arg7: memref<8x128xf32, #tpu.memory_space<vmem>>, %arg8: memref<8x128xf32, #tpu.memory_space<vmem>>) attributes {dimension_semantics = [#tpu.dimension_semantics<parallel>, #tpu.dimension_semantics<parallel>, #tpu.dimension_semantics<arbitrary>], iteration_bounds = array<i64: 1, 1, 1>, scalar_prefetch = 0 : i64, scratch_operands = 1 : i64, tpu.core_type = #tpu.core_type<tc>, window_params = [{transform_indices = @transform_0, window_bounds = array<i64: 8, 512>}, {transform_indices = @transform_1, window_bounds = array<i64: 512, 128>}, {transform_indices = @transform_2, window_bounds = array<i64: 1, 128>}, {transform_indices = @transform_3, window_bounds = array<i64: 1, 128>}, {transform_indices = @transform_4, window_bounds = array<i64: 8, 128>}]} {
    %c0_i32 = arith.constant 0 : i32
    %0 = arith.cmpi eq, %arg2, %c0_i32 : i32
    %1 = arith.extui %0 : i1 to i32
    %c0_i32_0 = arith.constant 0 : i32
    %2 = arith.cmpi ne, %1, %c0_i32_0 : i32
    scf.if %2 {
      %cst_10 = arith.constant 0.000000e+00 : f32
      %12 = vector.broadcast %cst_10 : f32 to vector<8x128xf32>
      %c0_11 = arith.constant 0 : index
      %c0_12 = arith.constant 0 : index
      %13 = vector.load %arg8[%c0_11, %c0_12] : memref<8x128xf32, #tpu.memory_space<vmem>>, vector<8x128xf32>
      tpu.vector_store %arg8[%c0_11, %c0_12], %12 {strides = array<i32>} : memref<8x128xf32, #tpu.memory_space<vmem>>, vector<8x128xf32>,
    } else {
    }
    %c0 = arith.constant 0 : index
    %c0_1 = arith.constant 0 : index
    %3 = vector.load %arg8[%c0, %c0_1] : memref<8x128xf32, #tpu.memory_space<vmem>>, vector<8x128xf32>
    %c0_2 = arith.constant 0 : index
    %c0_3 = arith.constant 0 : index
    %4 = vector.load %arg3[%c0_2, %c0_3] : memref<8x512xbf16, #tpu.memory_space<vmem>>, vector<8x512xbf16>
    %c0_4 = arith.constant 0 : index
    %c0_5 = arith.constant 0 : index
    %5 = vector.load %arg4[%c0_4, %c0_5] : memref<512x128xbf16, #tpu.memory_space<vmem>>, vector<512x128xbf16>
    %cst = arith.constant dense<0.000000e+00> : vector<8x128xf32>
    %6 = tpu.matmul %4, %5, %cst {dimension_numbers = #tpu.dot_dimension_numbers<[1], [0], [0], [1], [0, 0, 1, 1], [], []>} : vector<8x512xbf16>, vector<512x128xbf16>, vector<8x128xf32> -> vector<8x128xf32>
    %7 = arith.addf %3, %6 : vector<8x128xf32>
    %c0_6 = arith.constant 0 : index
    %c0_7 = arith.constant 0 : index
    %8 = vector.load %arg8[%c0_6, %c0_7] : memref<8x128xf32, #tpu.memory_space<vmem>>, vector<8x128xf32>
    tpu.vector_store %arg8[%c0_6, %c0_7], %7 {strides = array<i32>} : memref<8x128xf32, #tpu.memory_space<vmem>>, vector<8x128xf32>,
    %c0_i32_8 = arith.constant 0 : i32
    %9 = arith.cmpi eq, %arg2, %c0_i32_8 : i32
    %10 = arith.extui %9 : i1 to i32
    %c0_i32_9 = arith.constant 0 : i32
    %11 = arith.cmpi ne, %10, %c0_i32_9 : i32
    scf.if %11 {
      %c0_10 = arith.constant 0 : index
      %c0_11 = arith.constant 0 : index
      %12 = vector.load %arg8[%c0_10, %c0_11] : memref<8x128xf32, #tpu.memory_space<vmem>>, vector<8x128xf32>
      %c0_12 = arith.constant 0 : index
      %c0_13 = arith.constant 0 : index
      %13 = vector.load %arg5[%c0_12, %c0_13] : memref<1x128xf32, #tpu.memory_space<vmem>>, vector<1x128xf32>
      %14 = vector.broadcast %13 : vector<1x128xf32> to vector<8x128xf32>
      %15 = arith.mulf %12, %14 : vector<8x128xf32>
      %c0_14 = arith.constant 0 : index
      %c0_15 = arith.constant 0 : index
      %16 = vector.load %arg6[%c0_14, %c0_15] : memref<1x128xf32, #tpu.memory_space<vmem>>, vector<1x128xf32>
      %17 = vector.broadcast %16 : vector<1x128xf32> to vector<8x128xf32>
      %18 = arith.addf %15, %17 : vector<8x128xf32>
      %c0_16 = arith.constant 0 : index
      %c0_17 = arith.constant 0 : index
      %19 = vector.load %arg7[%c0_16, %c0_17] : memref<8x128xf32, #tpu.memory_space<vmem>>, vector<8x128xf32>
      tpu.vector_store %arg7[%c0_16, %c0_17], %18 {strides = array<i32>} : memref<8x128xf32, #tpu.memory_space<vmem>>, vector<8x128xf32>,
    } else {
    }
    return
  }
  func.func @transform_0(%arg0: i32, %arg1: i32, %arg2: i32) -> (i32, i32) {
    %c0_i32 = arith.constant 0 : i32
    return %arg0, %arg2 : i32, i32
  }
  func.func @transform_1(%arg0: i32, %arg1: i32, %arg2: i32) -> (i32, i32) {
    %c0_i32 = arith.constant 0 : i32
    return %arg2, %arg1 : i32, i32
  }
  func.func @transform_2(%arg0: i32, %arg1: i32, %arg2: i32) -> (i32, i32) {
    %c0_i32 = arith.constant 0 : i32
    %c0_i32_0 = arith.constant 0 : i32
    return %c0_i32, %arg1 : i32, i32
  }
  func.func @transform_3(%arg0: i32, %arg1: i32, %arg2: i32) -> (i32, i32) {
    %c0_i32 = arith.constant 0 : i32
    %c0_i32_0 = arith.constant 0 : i32
    return %c0_i32, %arg1 : i32, i32
  }
  func.func @transform_4(%arg0: i32, %arg1: i32, %arg2: i32) -> (i32, i32) {
    %c0_i32 = arith.constant 0 : i32
    return %arg0, %arg1 : i32, i32
  }
}

</mosaic_0001>

<bundles_post_ra>
// kernel: resnet18_forward.24
= control target key start
LH: loop header
LB: loop body
LE: loop exit
PB: predicated region body
PF: predicated region fallthrough
CT: control target
= control target key end

     0   :  { %s1107_s15 = smov 0   ;;  %s1109_s16 = smov 0   ;;  %s1508_s0 = inlined_call_operand.vmem [shape: bf16[2,9,9,128], index: 0, kind: input, shape index: {}]   ;;  %s1509_s1 = inlined_call_operand.vmem [shape: bf16[2,9,9,128], index: 1, kind: input, shape index: {}]   ;;  %s1510_s2 = inlined_call_operand.vmem [shape: bf16[2,9,9,128], index: 2, kind: input, shape index: {}]   ;;  %s1511_s3 = inlined_call_operand.vmem [shape: bf16[2,9,9,128], index: 3, kind: input, shape index: {}]   ;;  %s1512_s4 = inlined_call_operand.vmem [shape: bf16[2,8,8,128], index: 4, kind: output, shape index: {}]  }
   0x1   :  { %s1111_s17 = smov 0  }
   0x2 LB: > { %s26_s18 = sadd.s32 1, %s1076_s16  ;;  %p972_p0 = scmp.ge.s32.totalorder %s1080_s17, 1  ;;  %s1080_s17 = sphi %s1111_s17, %s14_s17   ;;  %s1076_s16 = sphi %s1109_s16, %s1516_s16   ;;  %s1072_s15 = sphi %s1107_s15, %s1515_s15  }
   0x3   : > { %p28_p1 = scmp.ge.s32.totalorder %s26_s18, 2  ;;  %p226_p2 = scmp.lt.s32.totalorder %s1080_s17, 3 }
   0x5   : > { %s1518_s18 = smov (%p28_p1, %s26_s18), 0  ;;  %p227_p3 = pnand %p972_p0, %p226_p2 }
   0x6   : > { %p282_p4 = scmp.lt.s32.totalorder (!%p227_p3), %s1072_s15, 1  ;;  %vm338_vm0 = vsmask.f32 (!%p227_p3), 3328  ;;  %vm339_vm1 = vsmask.f32 (!%p227_p3), 7440 }
   0x7   : > { %230 = sbr.rel (%p227_p3) target bundleno = 98 (0x62), region = 36  ;;  %vm1168_vm2 = vmor (!%p227_p3), %vm338_vm0, %vm339_vm1 }
   0xe   : > { %s1520_s15 = smov (!%p282_p4, %s1072_s15), 1 }
   0xf   : > { %s1128_s19 = smul.u32 72, %s1520_s15  ;;  %s1005_s6 = sshll.u32 %s1520_s15, 5 }
  0x10   : > { %s321_s9 = scalar_lea.vmem %s1512_s4, %s1005_s6 }
  0x11   : > { %s1134_s22 = scalar_lea.vmem %s1508_s0, %s1128_s19  ;;  %s1292_s25 = scalar_lea.vmem %s1509_s1, %s1128_s19 }
  0x12   : > { %v1137_v0 = vld [vmem:[%s1134_s22] sm:$0xf]  ;;  %v1140_v1 = vld [vmem:[%s1134_s22 + $0x8] sm:$0xf]  ;;  %v330_v2 = vld [vmem:[%s1134_s22 + $0x4] sm:$0x1]  ;;  %s1335_s28 = scalar_lea.vmem %s1510_s2, %s1128_s19  ;;  %s1443_s5 = scalar_lea.vmem %s1511_s3, %s1128_s19 }
  0x13   : > { %v1144_v3 = vld [vmem:[%s1134_s22 + $0x10] sm:$0xf]  ;;  %v331_v4 = vld [vmem:[%s1134_s22 + $0xc] sm:$0x1]  ;;  %v1148_v5 = vld [vmem:[%s1134_s22 + $0x18] sm:$0xf] }
  0x14   : > { %v1151_v6 = vld [vmem:[%s1134_s22 + $0x20] sm:$0xf]  ;;  %v342_v7 = vshrl.u32 %v1137_v0, 16  ;;  %v345_v8 = vshll.u32 %v1137_v0, 16  ;;  %v351_v9 = vshll.u32 %v330_v2, 16  ;;  %v356_v10 = vshrl.u32 %v1140_v1, 16 }
  0x15   : > { %v332_v11 = vld [vmem:[%s1134_s22 + $0x14] sm:$0x1]  ;;  %v359_v12 = vshll.u32 %v1140_v1, 16  ;;  %v365_v13 = vshll.u32 %v331_v4, 16  ;;  %v370_v14 = vshrl.u32 %v1144_v3, 16  ;;  %v373_v15 = vshll.u32 %v1144_v3, 16 }
  0x16   : > { %v333_v16 = vld [vmem:[%s1134_s22 + $0x1c] sm:$0x1]  ;;  %v344_v17 = vrot.slane %v342_v7, 4  ;;  %v347_v18 = vrot.slane %v345_v8, 5  ;;  %v353_v19 = vrot.slane %v351_v9, 5  ;;  %v358_v20 = vrot.slane %v356_v10, 4 }
  0x17   : > { %v361_v21 = vrot.slane %v359_v12, 5  ;;  %v1161_v22 = vrot.slane %v365_v13, 5  ;;  %v372_v23 = vrot.slane %v370_v14, 4  ;;  %v375_v24 = vrot.slane %v373_v15, 5  ;;  %v334_v29 = vld [vmem:[%s1134_s22 + $0x24] sm:$0x1] }
  0x18   : > { %v348_v25 = vor.u32 %v347_v18, %v344_v17  ;;  %v379_v26 = vshll.u32 %v332_v11, 16  ;;  %v384_v27 = vshrl.u32 %v1148_v5, 16  ;;  %v387_v28 = vshll.u32 %v1148_v5, 16  ;;  %v327_v35 = vld [vmem:[%s1134_s22 + $0x28] sm:$0xf] }
  0x19   : > { %v362_v31 = vor.u32 %v361_v21, %v358_v20  ;;  %v376_v32 = vor.u32 %v375_v24, %v372_v23  ;;  %v393_v33 = vshll.u32 %v333_v16, 16  ;;  %v398_v34 = vshrl.u32 %v1151_v6, 16  ;;  %v335_v40 = vld [vmem:[%s1134_s22 + $0x2c] sm:$0x1]  ;;  %v328_v45 = vld [vmem:[%s1134_s22 + $0x30] sm:$0xf] }
  0x1a   : > { %v349_v36 = vrot.slane %v348_v25, 4  ;;  %v381_v37 = vrot.slane %v379_v26, 5  ;;  %v386_v38 = vrot.slane %v384_v27, 4  ;;  %v389_v39 = vrot.slane %v387_v28, 5  ;;  %v336_v50 = vld [vmem:[%s1134_s22 + $0x34] sm:$0x1] }
  0x1b   : > { %v363_v41 = vrot.slane %v362_v31, 4  ;;  %v377_v42 = vrot.slane %v376_v32, 4  ;;  %v395_v43 = vrot.slane %v393_v33, 5  ;;  %v400_v44 = vrot.slane %v398_v34, 4  ;;  %v1186_v55 = vld [vmem:[%s1134_s22 + $0x38] sm:$0xf] }
  0x1c   : > { %v354_v46 = vsel %vm1168_vm2, %v349_v36, %v353_v19  ;;  %v390_v47 = vor.u32 %v389_v39, %v386_v38  ;;  %v401_v48 = vshll.u32 %v1151_v6, 16  ;;  %v407_v49 = vshll.u32 %v334_v29, 16  ;;  %v337_v60 = vld [vmem:[%s1134_s22 + $0x3c] sm:$0x1]  ;;  %v1210_v29 = vld [vmem:[%s1134_s22 + $0x8] sm:$0xf] }
  0x1d   : > { %v368_v51 = vsel %vm1168_vm2, %v363_v41, %v1161_v22  ;;  %v382_v52 = vsel %vm1168_vm2, %v377_v42, %v381_v37  ;;  %v412_v53 = vshrl.u32 %v327_v35, 16  ;;  %v415_v54 = vshll.u32 %v327_v35, 16  ;;  %v1213_v31 = vld [vmem:[%s1134_s22 + $0x10] sm:$0xf]  ;;  %v1221_v34 = vld [vmem:[%s1134_s22 + $0x18] sm:$0xf] }
  0x1e   : > { %v391_v56 = vrot.slane %v390_v47, 4  ;;  %v403_v57 = vrot.slane %v401_v48, 5  ;;  %v409_v58 = vrot.slane %v407_v49, 5  ;;  %v421_v59 = vshll.u32 %v335_v40, 16  ;;  %v1224_v36 = vld [vmem:[%s1134_s22 + $0x20] sm:$0xf] }
  0x1f   : > { %v414_v61 = vrot.slane %v412_v53, 4  ;;  %v417_v62 = vrot.slane %v415_v54, 5  ;;  %v426_v63 = vshrl.u32 %v328_v45, 16  ;;  %v429_v2 = vshll.u32 %v328_v45, 16  ;;  %v1232_v38 = vld [vmem:[%s1134_s22 + $0x28] sm:$0xf] }
  0x20   : > { %v396_v4 = vsel %vm1168_vm2, %v391_v56, %v395_v43  ;;  %v404_v7 = vor.u32 %v403_v57, %v400_v44  ;;  %v423_v8 = vrot.slane %v421_v59, 5  ;;  %v435_v9 = vshll.u32 %v336_v50, 16  ;;  %v1235_v39 = vld [vmem:[%s1134_s22 + $0x30] sm:$0xf]  ;;  %v988_v41 = vld [vmem:[%s1134_s22 + $0x14] sm:$0x1] }
  0x21   : > { %v418_v10 = vor.u32 %v417_v62, %v414_v61  ;;  %v428_v11 = vrot.slane %v426_v63, 4  ;;  %v431_v12 = vrot.slane %v429_v2, 5  ;;  %v440_v13 = vshrl.u32 %v1186_v55, 16  ;;  %v1251_v47 = vld [vmem:[%s1134_s22 + $0x38] sm:$0xf] }
  0x22   : > { %v405_v14 = vrot.slane %v404_v7, 4  ;;  %v437_v15 = vrot.slane %v435_v9, 5  ;;  %v443_v16 = vshll.u32 %v1186_v55, 16  ;;  %v449_v17 = vshll.u32 %v337_v60, 16  ;;  %v989_v53 = vld [vmem:[%s1134_s22 + $0x1c] sm:$0x1] }
  0x23   : > { %v419_v18 = vrot.slane %v418_v10, 4  ;;  %v432_v19 = vor.u32 %v431_v12, %v428_v11  ;;  %v442_v20 = vrot.slane %v440_v13, 4  ;;  %v1194_v21 = vmax.bf16 %v354_v46, %v1137_v0  ;;  %v990_v62 = vld [vmem:[%s1134_s22 + $0x24] sm:$0x1] }
  0x24   : > { %v410_v22 = vsel %vm1168_vm2, %v405_v14, %v409_v58  ;;  %v445_v23 = vrot.slane %v443_v16, 5  ;;  %v451_v24 = vrot.slane %v449_v17, 5  ;;  %v1199_v25 = vmax.bf16 %v368_v51, %v1140_v1  ;;  %v1266_v58 = vld [vmem:[%s1134_s22 + $0x40] sm:$0xf] }
  0x25   : > { %v424_v26 = vsel %vm1168_vm2, %v419_v18, %v423_v8  ;;  %v433_v27 = vrot.slane %v432_v19, 4  ;;  %v1204_v28 = vmax.bf16 %v382_v52, %v1144_v3  ;;  %v1207_v0 = vmax.bf16 %v396_v4, %v1148_v5  ;;  %v987_v5 = vld [vmem:[%s1134_s22 + $0xc] sm:$0x1] }
  0x26   : > { %v446_v32 = vor.u32 %v445_v23, %v442_v20  ;;  %v1216_v1 = vmax.bf16 %v410_v22, %v1151_v6  ;;  %v1218_v33 = vmax.bf16 %v424_v26, %v327_v35  ;;  %v478_v3 = vmax.bf16 %v1210_v29, %v1194_v21  ;;  %v992_v26 = vld [vmem:[%s1134_s22 + $0x34] sm:$0x1] }
  0x27   : > { %v438_v37 = vsel %vm1168_vm2, %v433_v27, %v437_v15  ;;  %v479_v6 = vmax.bf16 %v1213_v31, %v1199_v25  ;;  %v480_v35 = vmax.bf16 %v1221_v34, %v1204_v28  ;;  %v481_v40 = vmax.bf16 %v1224_v36, %v1207_v0  ;;  %v991_v15 = vld [vmem:[%s1134_s22 + $0x2c] sm:$0x1] }
  0x28   : > { %v447_v42 = vrot.slane %v446_v32, 4  ;;  %v1244_v43 = vmax.bf16 %v438_v37, %v328_v45  ;;  %v482_v44 = vmax.bf16 %v1232_v38, %v1216_v1  ;;  %v483_v46 = vmax.bf16 %v1235_v39, %v1218_v33  ;;  %v628_v33 = vld [vmem:[%s1292_s25 + $0x30] sm:$0xf] }
  0x29   : > { %v495_v48 = vshrl.u32 %v1210_v29, 16  ;;  %v498_v49 = vshll.u32 %v1210_v29, 16  ;;  %v504_v50 = vshll.u32 %v987_v5, 16  ;;  %v509_v51 = vshrl.u32 %v1213_v31, 16  ;;  %v625_v29 = vld [vmem:[%s1292_s25 + $0x18] sm:$0xf] }
  0x2a   : > { %v452_v45 = vsel %vm1168_vm2, %v447_v42, %v451_v24  ;;  %v484_v52 = vmax.bf16 %v1251_v47, %v1244_v43  ;;  %v512_v54 = vshll.u32 %v1213_v31, 16  ;;  %v518_v56 = vshll.u32 %v988_v41, 16  ;;  %v627_v31 = vld [vmem:[%s1292_s25 + $0x28] sm:$0xf] }
  0x2b   : > { %v1263_v57 = vmax.bf16 %v452_v45, %v1186_v55  ;;  %v497_v59 = vrot.slane %v495_v48, 4  ;;  %v500_v60 = vrot.slane %v498_v49, 5  ;;  %v506_v61 = vrot.slane %v504_v50, 5 }
  0x2c   : > { %v511_v63 = vrot.slane %v509_v51, 4  ;;  %v514_v2 = vrot.slane %v512_v54, 5  ;;  %v1269_v4 = vrot.slane %v518_v56, 5  ;;  %v523_v7 = vshrl.u32 %v1221_v34, 16  ;;  %v993_v54 = vld [vmem:[%s1134_s22 + $0x3c] sm:$0x1] }
  0x2d   : > { %v485_v8 = vmax.bf16 %v1266_v58, %v1263_v57  ;;  %v501_v9 = vor.u32 %v500_v60, %v497_v59  ;;  %v526_v55 = vshll.u32 %v1221_v34, 16  ;;  %v532_v10 = vshll.u32 %v989_v53, 16 }
  0x2e   : > { %v515_v11 = vor.u32 %v514_v2, %v511_v63  ;;  %v525_v12 = vrot.slane %v523_v7, 4  ;;  %v537_v13 = vshrl.u32 %v1224_v36, 16  ;;  %v540_v14 = vshll.u32 %v1224_v36, 16  ;;  %v997_v36 = vld [vmem:[%s1292_s25 + $0x18] sm:$0xf] }
  0x2f   : > { %v502_v16 = vrot.slane %v501_v9, 4  ;;  %v528_v17 = vrot.slane %v526_v55, 5  ;;  %v534_v18 = vrot.slane %v532_v10, 5  ;;  %v546_v19 = vshll.u32 %v990_v62, 16  ;;  %v994_v62 = vld [vmem:[%s1134_s22 + $0x44] sm:$0x1] }
  0x30   : > { %v516_v20 = vrot.slane %v515_v11, 4  ;;  %v539_v22 = vrot.slane %v537_v13, 4  ;;  %v542_v23 = vrot.slane %v540_v14, 5  ;;  %v551_v24 = vshrl.u32 %v1232_v38, 16 }
  0x31   : > { %v507_v27 = vsel %vm1168_vm2, %v502_v16, %v506_v61  ;;  %v529_v32 = vor.u32 %v528_v17, %v525_v12  ;;  %v548_v5 = vrot.slane %v546_v19, 5  ;;  %v554_v37 = vshll.u32 %v1232_v38, 16  ;;  %v622_v16 = vld [vmem:[%s1292_s25] sm:$0xf] }
  0x32   : > { %v521_v41 = vsel %vm1168_vm2, %v516_v20, %v1269_v4  ;;  %v543_v42 = vor.u32 %v542_v23, %v539_v22  ;;  %v553_v48 = vrot.slane %v551_v24, 4  ;;  %v560_v49 = vshll.u32 %v991_v15, 16  ;;  %v623_v22 = vld [vmem:[%s1292_s25 + $0x8] sm:$0xf]  ;;  %v998_v38 = vld [vmem:[%s1292_s25 + $0x20] sm:$0xf] }
  0x33   : > { %v530_v50 = vrot.slane %v529_v32, 4  ;;  %v556_v51 = vrot.slane %v554_v37, 5  ;;  %v565_v45 = vshrl.u32 %v1235_v39, 16  ;;  %v568_v53 = vshll.u32 %v1235_v39, 16  ;;  %v629_v39 = vld [vmem:[%s1292_s25 + $0x38] sm:$0xf] }
  0x34   : > { %v544_v56 = vrot.slane %v543_v42, 4  ;;  %v562_v59 = vrot.slane %v560_v49, 5  ;;  %v574_v60 = vshll.u32 %v992_v26, 16  ;;  %v579_v61 = vshrl.u32 %v1251_v47, 16 }
  0x35   : > { %v535_v63 = vsel %vm1168_vm2, %v530_v50, %v534_v18  ;;  %v557_v2 = vor.u32 %v556_v51, %v553_v48  ;;  %v567_v4 = vrot.slane %v565_v45, 4  ;;  %v570_v7 = vrot.slane %v568_v53, 5  ;;  %v999_v45 = vld [vmem:[%s1292_s25 + $0x28] sm:$0xf]  ;;  %v1000_v53 = vld [vmem:[%s1292_s25 + $0x30] sm:$0xf] }
  0x36   : > { %v549_v9 = vsel %vm1168_vm2, %v544_v56, %v548_v5  ;;  %v576_v55 = vrot.slane %v574_v60, 5  ;;  %v581_v10 = vrot.slane %v579_v61, 4  ;;  %v582_v11 = vshll.u32 %v1251_v47, 16  ;;  %v624_v5 = vld [vmem:[%s1292_s25 + $0x10] sm:$0xf] }
  0x37   : > { %v558_v12 = vrot.slane %v557_v2, 4  ;;  %v571_v13 = vor.u32 %v570_v7, %v567_v4  ;;  %v588_v14 = vshll.u32 %v993_v54, 16  ;;  %v593_v15 = vshrl.u32 %v1266_v58, 16  ;;  %v1001_v61 = vld [vmem:[%s1292_s25 + $0x38] sm:$0xf] }
  0x38   : > { %v584_v17 = vrot.slane %v582_v11, 5  ;;  %v596_v18 = vshll.u32 %v1266_v58, 16  ;;  %v602_v19 = vshll.u32 %v994_v62, 16  ;;  %v614_v20 = vmax.bf16 %v507_v27, %v478_v3  ;;  %v626_v3 = vld [vmem:[%s1292_s25 + $0x20] sm:$0xf] }
  0x39   : > { %v563_v23 = vsel %vm1168_vm2, %v558_v12, %v562_v59  ;;  %v572_v24 = vrot.slane %v571_v13, 4  ;;  %v590_v26 = vrot.slane %v588_v14, 5  ;;  %v595_v32 = vrot.slane %v593_v15, 4  ;;  %v1361_v4 = vld [vmem:[%s1335_s28] sm:$0xf] }
  0x3a   : > { %v585_v37 = vor.u32 %v584_v17, %v581_v10  ;;  %v598_v42 = vrot.slane %v596_v18, 5  ;;  %v604_v48 = vrot.slane %v602_v19, 5  ;;  %v615_v21 = vmax.bf16 %v521_v41, %v479_v6  ;;  %v995_v6 = vld [vmem:[%s1292_s25 + $0x8] sm:$0xf]  ;;  %v996_v41 = vld [vmem:[%s1292_s25 + $0x10] sm:$0xf] }
  0x3b   : > { %v577_v27 = vsel %vm1168_vm2, %v572_v24, %v576_v55  ;;  %v616_v49 = vmax.bf16 %v535_v63, %v480_v35  ;;  %v617_v50 = vmax.bf16 %v549_v9, %v481_v40  ;;  %v618_v25 = vmax.bf16 %v563_v23, %v482_v44  ;;  %v1364_v7 = vld [vmem:[%s1335_s28 + $0x8] sm:$0xf]  ;;  %v1376_v55 = vld [vmem:[%s1335_s28 + $0x18] sm:$0xf]  ;;  %v671_v11 = vld [vmem:[%s1335_s28 + $0x4] sm:$0x1] }
  0x3c   : > { %v586_v28 = vrot.slane %v585_v37, 4  ;;  %v599_v34 = vor.u32 %v598_v42, %v595_v32  ;;  %v619_v0 = vmax.bf16 %v577_v27, %v483_v46  ;;  %v630_v1 = vmax.bf16 %v622_v16, %v614_v20  ;;  %v1385_v14 = vld [vmem:[%s1335_s28 + $0x20] sm:$0xf]  ;;  %v1388_v15 = vld [vmem:[%s1335_s28 + $0x28] sm:$0xf] }
  0x3d   : > { %v631_v35 = vmax.bf16 %v623_v22, %v615_v21  ;;  %v632_v40 = vmax.bf16 %v624_v5, %v616_v49  ;;  %v633_v44 = vmax.bf16 %v625_v29, %v617_v50  ;;  %v634_v51 = vmax.bf16 %v626_v3, %v618_v25  ;;  %v672_v18 = vld [vmem:[%s1335_s28 + $0xc] sm:$0x1]  ;;  %v1002_v19 = vld [vmem:[%s1292_s25 + $0x40] sm:$0xf]  ;;  %v1406_v24 = vld [vmem:[%s1335_s28 + $0x30] sm:$0xf] }
  0x3e   : > { %v591_v54 = vsel %vm1168_vm2, %v586_v28, %v590_v26  ;;  %v600_v56 = vrot.slane %v599_v34, 4  ;;  %v635_v46 = vmax.bf16 %v627_v31, %v619_v0  ;;  %v1348_v59 = vmax.bf16 %v995_v6, %v630_v1  ;;  %v673_v5 = vld [vmem:[%s1335_s28 + $0x14] sm:$0x1]  ;;  %v1415_v3 = vld [vmem:[%s1335_s28 + $0x38] sm:$0xf] }
  0x3f   : > { %v620_v60 = vmax.bf16 %v591_v54, %v484_v52  ;;  %v1354_v62 = vmax.bf16 %v996_v41, %v631_v35  ;;  %v1356_v63 = vmax.bf16 %v997_v36, %v632_v40  ;;  %v1358_v2 = vmax.bf16 %v998_v38, %v633_v44  ;;  %v1373_v52 = vld [vmem:[%s1335_s28 + $0x10] sm:$0xf]  ;;  %v674_v25 = vld [vmem:[%s1335_s28 + $0x1c] sm:$0x1] }
  0x40   : > { %v605_v9 = vsel %vm1168_vm2, %v600_v56, %v604_v48  ;;  %v1368_v43 = vmax.bf16 %v999_v45, %v634_v51  ;;  %v1370_v47 = vmax.bf16 %v1000_v53, %v635_v46  ;;  %v663_v10 = vmax.bf16 %v1361_v4, %v1348_v59  ;;  %v675_v51 = vld [vmem:[%s1335_s28 + $0x24] sm:$0x1] }
  0x41   : > { %v621_v12 = vmax.bf16 %v605_v9, %v485_v8  ;;  %v636_v13 = vmax.bf16 %v628_v33, %v620_v60  ;;  %v664_v16 = vmax.bf16 %v1364_v7, %v1354_v62  ;;  %v665_v17 = vmax.bf16 %v1373_v52, %v1356_v63 }
  0x42   : > { %v666_v20 = vmax.bf16 %v1376_v55, %v1358_v2  ;;  %v667_v57 = vmax.bf16 %v1385_v14, %v1368_v43  ;;  %v668_v58 = vmax.bf16 %v1388_v15, %v1370_v47  ;;  %v680_v8 = vshrl.u32 %v1361_v4, 16 }
  0x43   : > { %v637_v22 = vmax.bf16 %v629_v39, %v621_v12  ;;  %v1403_v23 = vmax.bf16 %v1001_v61, %v636_v13  ;;  %v683_v26 = vshll.u32 %v1361_v4, 16  ;;  %v689_v32 = vshll.u32 %v671_v11, 16  ;;  %v676_v61 = vld [vmem:[%s1335_s28 + $0x2c] sm:$0x1] }
  0x44   : > { %v682_v37 = vrot.slane %v680_v8, 4  ;;  %v694_v42 = vshrl.u32 %v1364_v7, 16  ;;  %v697_v48 = vshll.u32 %v1364_v7, 16  ;;  %v703_v21 = vshll.u32 %v672_v18, 16  ;;  %v812_v7 = vld [vmem:[%s1443_s5 + $0x28] sm:$0xf] }
  0x45   : > { %v1412_v29 = vmax.bf16 %v1002_v19, %v637_v22  ;;  %v669_v27 = vmax.bf16 %v1406_v24, %v1403_v23  ;;  %v685_v49 = vrot.slane %v683_v26, 5  ;;  %v691_v50 = vrot.slane %v689_v32, 5 }
  0x46   : > { %v696_v31 = vrot.slane %v694_v42, 4  ;;  %v699_v6 = vrot.slane %v697_v48, 5  ;;  %v1420_v41 = vrot.slane %v703_v21, 5  ;;  %v708_v28 = vshrl.u32 %v1373_v52, 16  ;;  %v677_v42 = vld [vmem:[%s1335_s28 + $0x34] sm:$0x1] }
  0x47   : > { %v670_v34 = vmax.bf16 %v1415_v3, %v1412_v29  ;;  %v686_v0 = vor.u32 %v685_v49, %v682_v37  ;;  %v711_v1 = vshll.u32 %v1373_v52, 16  ;;  %v717_v36 = vshll.u32 %v673_v5, 16 }
  0x48   : > { %v700_v38 = vor.u32 %v699_v6, %v696_v31  ;;  %v710_v35 = vrot.slane %v708_v28, 4  ;;  %v722_v40 = vshrl.u32 %v1376_v55, 16  ;;  %v725_v44 = vshll.u32 %v1376_v55, 16  ;;  %v813_v55 = vld [vmem:[%s1443_s5 + $0x30] sm:$0xf] }
  0x49   : > { %v687_v45 = vrot.slane %v686_v0, 4  ;;  %v713_v53 = vrot.slane %v711_v1, 5  ;;  %v719_v54 = vrot.slane %v717_v36, 5  ;;  %v731_v56 = vshll.u32 %v674_v25, 16  ;;  %v678_v25 = vld [vmem:[%s1335_s28 + $0x3c] sm:$0x1] }
  0x4a   : > { %v701_v33 = vrot.slane %v700_v38, 4  ;;  %v724_v39 = vrot.slane %v722_v40, 4  ;;  %v727_v46 = vrot.slane %v725_v44, 5  ;;  %v736_v60 = vshrl.u32 %v1385_v14, 16 }
  0x4b   : > { %v692_v9 = vsel %vm1168_vm2, %v687_v45, %v691_v50  ;;  %v714_v11 = vor.u32 %v713_v53, %v710_v35  ;;  %v733_v12 = vrot.slane %v731_v56, 5  ;;  %v739_v13 = vshll.u32 %v1385_v14, 16  ;;  %v807_v45 = vld [vmem:[%s1443_s5] sm:$0xf] }
  0x4c   : > { %v706_v18 = vsel %vm1168_vm2, %v701_v33, %v1420_v41  ;;  %v728_v19 = vor.u32 %v727_v46, %v724_v39  ;;  %v738_v8 = vrot.slane %v736_v60, 4  ;;  %v745_v22 = vshll.u32 %v675_v51, 16  ;;  %v808_v39 = vld [vmem:[%s1443_s5 + $0x8] sm:$0xf] }
  0x4d   : > { %v715_v26 = vrot.slane %v714_v11, 4  ;;  %v741_v32 = vrot.slane %v739_v13, 5  ;;  %v750_v5 = vshrl.u32 %v1388_v15, 16  ;;  %v753_v37 = vshll.u32 %v1388_v15, 16 }
  0x4e   : > { %v729_v48 = vrot.slane %v728_v19, 4  ;;  %v747_v21 = vrot.slane %v745_v22, 5  ;;  %v759_v49 = vshll.u32 %v676_v61, 16  ;;  %v764_v50 = vshrl.u32 %v1406_v24, 16 }
  0x4f   : > { %v720_v31 = vsel %vm1168_vm2, %v715_v26, %v719_v54  ;;  %v742_v6 = vor.u32 %v741_v32, %v738_v8  ;;  %v752_v41 = vrot.slane %v750_v5, 4  ;;  %v755_v28 = vrot.slane %v753_v37, 5  ;;  %v810_v26 = vld [vmem:[%s1443_s5 + $0x18] sm:$0xf]  ;;  %v811_v32 = vld [vmem:[%s1443_s5 + $0x20] sm:$0xf] }
  0x50   : > { %v734_v0 = vsel %vm1168_vm2, %v729_v48, %v733_v12  ;;  %v761_v1 = vrot.slane %v759_v49, 5  ;;  %v766_v36 = vrot.slane %v764_v50, 4  ;;  %v767_v38 = vshll.u32 %v1406_v24, 16  ;;  %v809_v12 = vld [vmem:[%s1443_s5 + $0x10] sm:$0xf] }
  0x51   : > { %v743_v35 = vrot.slane %v742_v6, 4  ;;  %v756_v40 = vor.u32 %v755_v28, %v752_v41  ;;  %v773_v44 = vshll.u32 %v677_v42, 16  ;;  %v778_v51 = vshrl.u32 %v1415_v3, 16 }
  0x52   : > { %v769_v53 = vrot.slane %v767_v38, 5  ;;  %v781_v54 = vshll.u32 %v1415_v3, 16  ;;  %v787_v56 = vshll.u32 %v678_v25, 16  ;;  %v799_v33 = vmax.bf16 %v692_v9, %v663_v10 }
  0x53   : > { %v748_v46 = vsel %vm1168_vm2, %v743_v35, %v747_v21  ;;  %v757_v60 = vrot.slane %v756_v40, 4  ;;  %v775_v61 = vrot.slane %v773_v44, 5  ;;  %v780_v11 = vrot.slane %v778_v51, 4 }
  0x54   : > { %v770_v13 = vor.u32 %v769_v53, %v766_v36  ;;  %v783_v19 = vrot.slane %v781_v54, 5  ;;  %v789_v8 = vrot.slane %v787_v56, 5  ;;  %v800_v22 = vmax.bf16 %v706_v18, %v664_v16 }
  0x55   : > { %v762_v59 = vsel %vm1168_vm2, %v757_v60, %v761_v1  ;;  %v801_v4 = vmax.bf16 %v720_v31, %v665_v17  ;;  %v802_v10 = vmax.bf16 %v734_v0, %v666_v20  ;;  %v803_v62 = vmax.bf16 %v748_v46, %v667_v57 }
  0x56   : > { %v771_v16 = vrot.slane %v770_v13, 4  ;;  %v784_v9 = vor.u32 %v783_v19, %v780_v11  ;;  %v804_v18 = vmax.bf16 %v762_v59, %v668_v58  ;;  %v815_v5 = vmax.bf16 %v807_v45, %v799_v33  ;;  %v814_v58 = vld [vmem:[%s1443_s5 + $0x38] sm:$0xf] }
  0x57   : > { %v816_v63 = vmax.bf16 %v808_v39, %v800_v22  ;;  %v817_v52 = vmax.bf16 %v809_v12, %v801_v4  ;;  %v818_v17 = vmax.bf16 %v810_v26, %v802_v10  ;;  %v819_v37 = vmax.bf16 %v811_v32, %v803_v62 }
  0x58   : > { %v776_v2 = vsel %vm1168_vm2, %v771_v16, %v775_v61  ;;  %v785_v43 = vrot.slane %v784_v9, 4  ;;  %v820_v14 = vmax.bf16 %v812_v7, %v804_v18 }
  0x59   : > { %v805_v47 = vmax.bf16 %v776_v2, %v669_v27  ;;  %v1026_v15 = vcombine.low %v815_v5, %v816_v63  ;;  %v1027_v20 = vcombine.low %v817_v52, %v818_v17 }
  0x5a   : > { %v790_v57 = vsel %vm1168_vm2, %v785_v43, %v789_v8  ;;  %v1029_v42 = vcombine.low %v819_v37, %v820_v14 }
  0x5b   : > { %v806_v48 = vmax.bf16 %v790_v57, %v670_v34  ;;  %v821_v21 = vmax.bf16 %v813_v55, %v805_v47  ;;  %1010 = vst [vmem:[%s321_s9] sm:$0xff] %v1026_v15   ;;  %1028 = vst [vmem:[%s321_s9 + $0x8] sm:$0xff] %v1027_v20  }
  0x5c   : > { %1030 = vst [vmem:[%s321_s9 + $0x10] sm:$0xff] %v1029_v42  }
  0x5d   : > { %v822_v49 = vmax.bf16 %v814_v58, %v806_v48 }
  0x5f   : > { %v1031_v50 = vcombine.low %v821_v21, %v822_v49 }
  0x61   : > { %1032 = vst [vmem:[%s321_s9 + $0x18] sm:$0xff] %v1031_v50  }
  0x62 PF: > { %s14_s17 = sadd.s32 1, %s1080_s17   ;;  %s1515_s15 = smov %s1076_s16 }
  0x63   : > { %p11_p5 = scmp.ge.s32.totalorder %s14_s17, 4   ;;  %s1516_s16 = smov %s1518_s18 }
  0x65   :  { %13 = sbr.rel (!%p11_p5) target bundleno = 2 (0x2), region = 77 }

// kernel: resnet18_forward.23
= control target key start
LH: loop header
LB: loop body
LE: loop exit
PB: predicated region body
PF: predicated region fallthrough
CT: control target
= control target key end

     0   :  { %v2222_v0 = vmov 0   ;;  %s2754_s1 = inlined_call_operand.vmem [shape: bf16[256,128], index: 1, kind: input, shape index: {}]   ;;  %s2755_s0 = inlined_call_operand.vmem [shape: bf16[512,256], index: 0, kind: input, shape index: {}]   ;;  %s2756_s2 = inlined_call_operand.vmem [shape: f32[1,128], index: 2, kind: input, shape index: {}]   ;;  %s2757_s3 = inlined_call_operand.vmem [shape: f32[1,128], index: 3, kind: input, shape index: {}]   ;;  %s2758_s4 = inlined_call_operand.vmem [shape: bf16[512,128], index: 4, kind: output, shape index: {}]  }
   0x1   :  { %662 = vmatprep.subr.bf16.mxu0 %v2222_v0  ;;  %2077 = vmatprep.subr.bf16.mxu1 %v2222_v0  ;;  %v2110_v1 = vld [vmem:[%s2754_s1] sm:$0xff]   ;;  %v2111_v2 = vld [vmem:[%s2754_s1 + $0x8] sm:$0xff]   ;;  %v2112_v3 = vld [vmem:[%s2754_s1 + $0x10] sm:$0xff]  }
   0x2   :  { %663 = vmatpush1.bf16.msra.mxu0 %v2110_v1  ;;  %2093 = vmatpush1.bf16.msra.mxu1 %v2110_v1  ;;  %v2113_v4 = vld [vmem:[%s2754_s1 + $0x18] sm:$0xff]   ;;  %v2114_v5 = vld [vmem:[%s2754_s1 + $0x20] sm:$0xff]   ;;  %v2115_v7 = vld [vmem:[%s2754_s1 + $0x28] sm:$0xff]  }
   0x3   :  { %664 = vmatprep.subr.bf16.mxu0 %v2222_v0  ;;  %2078 = vmatprep.subr.bf16.mxu1 %v2222_v0  ;;  %v2128_v6 = vld [vmem:[%s2755_s0 + $0x4] ss:$8 sps:$4 sm:$0xff]   ;;  %v2116_v9 = vld [vmem:[%s2754_s1 + $0x30] sm:$0xff]   ;;  %v2117_v10 = vld [vmem:[%s2754_s1 + $0x38] sm:$0xff]  }
   0x4   :  { %v2131_v8 = vld [vmem:[%s2755_s0 + $0x104] ss:$8 sps:$4 sm:$0xff]   ;;  %694 = vmatprep.mubr.bf16.mxu0 %v2128_v6  ;;  %v2120_v13 = vld [vmem:[%s2754_s1 + $0x50] sm:$0xff]   ;;  %v2121_v14 = vld [vmem:[%s2754_s1 + $0x58] sm:$0xff]  }
   0x5   :  { %822 = vmatprep.mubr.bf16.mxu1 %v2131_v8  ;;  %v2118_v11 = vld [vmem:[%s2754_s1 + $0x40] sm:$0xff]   ;;  %v2119_v12 = vld [vmem:[%s2754_s1 + $0x48] sm:$0xff]   ;;  %v2124_v17 = vld [vmem:[%s2754_s1 + $0x70] sm:$0xff]  }
   0x6   :  { %665 = vmatpush1.bf16.msra.mxu0 %v2111_v2  ;;  %2094 = vmatpush1.bf16.msra.mxu1 %v2111_v2  ;;  %v2122_v15 = vld [vmem:[%s2754_s1 + $0x60] sm:$0xff]   ;;  %v2123_v16 = vld [vmem:[%s2754_s1 + $0x68] sm:$0xff]   ;;  %v2125_v18 = vld [vmem:[%s2754_s1 + $0x78] sm:$0xff]  }
   0x7   :  { %666 = vmatprep.subr.bf16.mxu0 %v2222_v0  ;;  %2079 = vmatprep.subr.bf16.mxu1 %v2222_v0  ;;  %v2126_v19 = vld [vmem:[%s2755_s0] ss:$8 sps:$4 sm:$0xff]   ;;  %v2132_v21 = vld [vmem:[%s2755_s0 + $0x14] ss:$8 sps:$4 sm:$0xff]   ;;  %v2136_v23 = vld [vmem:[%s2755_s0 + $0x10] ss:$8 sps:$4 sm:$0xff]  }
   0x8   :  { %v2129_v20 = vld [vmem:[%s2755_s0 + $0x100] ss:$8 sps:$4 sm:$0xff]   ;;  %v2134_v22 = vld [vmem:[%s2755_s0 + $0x114] ss:$8 sps:$4 sm:$0xff]   ;;  %v2137_v24 = vld [vmem:[%s2755_s0 + $0x110] ss:$8 sps:$4 sm:$0xff]  }
   0x9   :  { %v2138_v25 = vld [vmem:[%s2755_s0 + $0x24] ss:$8 sps:$4 sm:$0xff]   ;;  %v2142_v27 = vld [vmem:[%s2755_s0 + $0x20] ss:$8 sps:$4 sm:$0xff]   ;;  %v2144_v29 = vld [vmem:[%s2755_s0 + $0x34] ss:$8 sps:$4 sm:$0xff]  }
   0xa   :  { %667 = vmatpush1.bf16.msra.mxu0 %v2112_v3  ;;  %2095 = vmatpush1.bf16.msra.mxu1 %v2112_v3  ;;  %v2140_v26 = vld [vmem:[%s2755_s0 + $0x124] ss:$8 sps:$4 sm:$0xff]   ;;  %v2143_v28 = vld [vmem:[%s2755_s0 + $0x120] ss:$8 sps:$4 sm:$0xff]   ;;  %v2146_v30 = vld [vmem:[%s2755_s0 + $0x134] ss:$8 sps:$4 sm:$0xff]  }
   0xb   :  { %668 = vmatprep.subr.bf16.mxu0 %v2222_v0  ;;  %2080 = vmatprep.subr.bf16.mxu1 %v2222_v0  ;;  %v2148_v31 = vld [vmem:[%s2755_s0 + $0x30] ss:$8 sps:$4 sm:$0xff]   ;;  %v2150_v33 = vld [vmem:[%s2755_s0 + $0x44] ss:$8 sps:$4 sm:$0xff]   ;;  %v2154_v35 = vld [vmem:[%s2755_s0 + $0x40] ss:$8 sps:$4 sm:$0xff]  }
   0xc   :  { %v2149_v32 = vld [vmem:[%s2755_s0 + $0x130] ss:$8 sps:$4 sm:$0xff]   ;;  %v2152_v34 = vld [vmem:[%s2755_s0 + $0x144] ss:$8 sps:$4 sm:$0xff]   ;;  %v2155_v36 = vld [vmem:[%s2755_s0 + $0x140] ss:$8 sps:$4 sm:$0xff]  }
   0xd   :  { %v2156_v37 = vld [vmem:[%s2755_s0 + $0x54] ss:$8 sps:$4 sm:$0xff]   ;;  %v2160_v39 = vld [vmem:[%s2755_s0 + $0x50] ss:$8 sps:$4 sm:$0xff]   ;;  %v2162_v41 = vld [vmem:[%s2755_s0 + $0x64] ss:$8 sps:$4 sm:$0xff]  }
   0xe   :  { %669 = vmatpush1.bf16.msra.mxu0 %v2113_v4  ;;  %2096 = vmatpush1.bf16.msra.mxu1 %v2113_v4  ;;  %v2158_v38 = vld [vmem:[%s2755_s0 + $0x154] ss:$8 sps:$4 sm:$0xff]   ;;  %v2161_v40 = vld [vmem:[%s2755_s0 + $0x150] ss:$8 sps:$4 sm:$0xff]   ;;  %v2164_v42 = vld [vmem:[%s2755_s0 + $0x164] ss:$8 sps:$4 sm:$0xff]  }
   0xf   :  { %670 = vmatprep.subr.bf16.mxu0 %v2222_v0  ;;  %2081 = vmatprep.subr.bf16.mxu1 %v2222_v0  ;;  %v2166_v43 = vld [vmem:[%s2755_s0 + $0x60] ss:$8 sps:$4 sm:$0xff]   ;;  %v2168_v45 = vld [vmem:[%s2755_s0 + $0x74] ss:$8 sps:$4 sm:$0xff]   ;;  %v2172_v47 = vld [vmem:[%s2755_s0 + $0x70] ss:$8 sps:$4 sm:$0xff]  }
  0x10   :  { %v2167_v44 = vld [vmem:[%s2755_s0 + $0x160] ss:$8 sps:$4 sm:$0xff]   ;;  %v2170_v46 = vld [vmem:[%s2755_s0 + $0x174] ss:$8 sps:$4 sm:$0xff]   ;;  %v2173_v48 = vld [vmem:[%s2755_s0 + $0x170] ss:$8 sps:$4 sm:$0xff]  }
  0x11   :  { %v2174_v49 = vld [vmem:[%s2755_s0 + $0x84] ss:$8 sps:$4 sm:$0xff]   ;;  %v2178_v51 = vld [vmem:[%s2755_s0 + $0x80] ss:$8 sps:$4 sm:$0xff]   ;;  %v2180_v53 = vld [vmem:[%s2755_s0 + $0x94] ss:$8 sps:$4 sm:$0xff]  }
  0x12   :  { %671 = vmatpush1.bf16.msra.mxu0 %v2114_v5  ;;  %2097 = vmatpush1.bf16.msra.mxu1 %v2114_v5  ;;  %v2176_v50 = vld [vmem:[%s2755_s0 + $0x184] ss:$8 sps:$4 sm:$0xff]   ;;  %v2179_v52 = vld [vmem:[%s2755_s0 + $0x180] ss:$8 sps:$4 sm:$0xff]   ;;  %v2182_v54 = vld [vmem:[%s2755_s0 + $0x194] ss:$8 sps:$4 sm:$0xff]  }
  0x13   :  { %672 = vmatprep.subr.bf16.mxu0 %v2222_v0  ;;  %2082 = vmatprep.subr.bf16.mxu1 %v2222_v0  ;;  %v2184_v55 = vld [vmem:[%s2755_s0 + $0x90] ss:$8 sps:$4 sm:$0xff]   ;;  %v2186_v57 = vld [vmem:[%s2755_s0 + $0xa4] ss:$8 sps:$4 sm:$0xff]   ;;  %v2190_v59 = vld [vmem:[%s2755_s0 + $0xa0] ss:$8 sps:$4 sm:$0xff]  }
  0x14   :  { %v2185_v56 = vld [vmem:[%s2755_s0 + $0x190] ss:$8 sps:$4 sm:$0xff]   ;;  %v2188_v58 = vld [vmem:[%s2755_s0 + $0x1a4] ss:$8 sps:$4 sm:$0xff]   ;;  %v2191_v60 = vld [vmem:[%s2755_s0 + $0x1a0] ss:$8 sps:$4 sm:$0xff]  }
  0x15   :  { %v2192_v61 = vld [vmem:[%s2755_s0 + $0xb4] ss:$8 sps:$4 sm:$0xff]   ;;  %v2196_v63 = vld [vmem:[%s2755_s0 + $0xb0] ss:$8 sps:$4 sm:$0xff]   ;;  %v2198_v1 = vld [vmem:[%s2755_s0 + $0xc4] ss:$8 sps:$4 sm:$0xff]  }
  0x16   :  { %673 = vmatpush1.bf16.msra.mxu0 %v2115_v7  ;;  %2098 = vmatpush1.bf16.msra.mxu1 %v2115_v7  ;;  %v2194_v62 = vld [vmem:[%s2755_s0 + $0x1b4] ss:$8 sps:$4 sm:$0xff]   ;;  %v2200_v2 = vld [vmem:[%s2755_s0 + $0x1c4] ss:$8 sps:$4 sm:$0xff]   ;;  %v2202_v3 = vld [vmem:[%s2755_s0 + $0xc0] ss:$8 sps:$4 sm:$0xff]  }
  0x17   :  { %674 = vmatprep.subr.bf16.mxu0 %v2222_v0  ;;  %2083 = vmatprep.subr.bf16.mxu1 %v2222_v0  ;;  %v2203_v4 = vld [vmem:[%s2755_s0 + $0x1c0] ss:$8 sps:$4 sm:$0xff]   ;;  %v2204_v5 = vld [vmem:[%s2755_s0 + $0xd4] ss:$8 sps:$4 sm:$0xff]   ;;  %v2208_v7 = vld [vmem:[%s2755_s0 + $0xd0] ss:$8 sps:$4 sm:$0xff]  }
  0x18   :  { %v2206_v6 = vld [vmem:[%s2755_s0 + $0x1d4] ss:$8 sps:$4 sm:$0xff]   ;;  %v2209_v8 = vld [vmem:[%s2755_s0 + $0x1d0] ss:$8 sps:$4 sm:$0xff]  }
  0x1a   :  { %675 = vmatpush1.bf16.msra.mxu0 %v2116_v9  ;;  %2099 = vmatpush1.bf16.msra.mxu1 %v2116_v9  ;;  %v2210_v9 = vld [vmem:[%s2755_s0 + $0xe4] ss:$8 sps:$4 sm:$0xff]  }
  0x1b   :  { %676 = vmatprep.subr.bf16.mxu0 %v2222_v0  ;;  %2084 = vmatprep.subr.bf16.mxu1 %v2222_v0 }
  0x1e   :  { %677 = vmatpush1.bf16.msra.mxu0 %v2117_v10  ;;  %2100 = vmatpush1.bf16.msra.mxu1 %v2117_v10  ;;  %v2212_v10 = vld [vmem:[%s2755_s0 + $0x1e4] ss:$8 sps:$4 sm:$0xff]  }
  0x1f   :  { %678 = vmatprep.subr.bf16.mxu0 %v2222_v0  ;;  %2085 = vmatprep.subr.bf16.mxu1 %v2222_v0 }
  0x22   :  { %679 = vmatpush1.bf16.msra.mxu0 %v2118_v11  ;;  %2101 = vmatpush1.bf16.msra.mxu1 %v2118_v11  ;;  %v2214_v11 = vld [vmem:[%s2755_s0 + $0xe0] ss:$8 sps:$4 sm:$0xff]  }
  0x23   :  { %680 = vmatprep.subr.bf16.mxu0 %v2222_v0  ;;  %2086 = vmatprep.subr.bf16.mxu1 %v2222_v0 }
  0x26   :  { %681 = vmatpush1.bf16.msra.mxu0 %v2119_v12  ;;  %2102 = vmatpush1.bf16.msra.mxu1 %v2119_v12  ;;  %v2215_v12 = vld [vmem:[%s2755_s0 + $0x1e0] ss:$8 sps:$4 sm:$0xff]  }
  0x27   :  { %682 = vmatprep.subr.bf16.mxu0 %v2222_v0  ;;  %2087 = vmatprep.subr.bf16.mxu1 %v2222_v0 }
  0x2a   :  { %683 = vmatpush1.bf16.msra.mxu0 %v2120_v13  ;;  %2103 = vmatpush1.bf16.msra.mxu1 %v2120_v13  ;;  %v2216_v13 = vld [vmem:[%s2755_s0 + $0xf4] ss:$8 sps:$4 sm:$0xff]  }
  0x2b   :  { %684 = vmatprep.subr.bf16.mxu0 %v2222_v0  ;;  %2088 = vmatprep.subr.bf16.mxu1 %v2222_v0 }
  0x2e   :  { %685 = vmatpush1.bf16.msra.mxu0 %v2121_v14  ;;  %2104 = vmatpush1.bf16.msra.mxu1 %v2121_v14  ;;  %v2218_v14 = vld [vmem:[%s2755_s0 + $0x1f4] ss:$8 sps:$4 sm:$0xff]  }
  0x2f   :  { %686 = vmatprep.subr.bf16.mxu0 %v2222_v0  ;;  %2089 = vmatprep.subr.bf16.mxu1 %v2222_v0 }
  0x32   :  { %687 = vmatpush1.bf16.msra.mxu0 %v2122_v15  ;;  %2105 = vmatpush1.bf16.msra.mxu1 %v2122_v15  ;;  %v2220_v15 = vld [vmem:[%s2755_s0 + $0xf0] ss:$8 sps:$4 sm:$0xff]  }
  0x33   :  { %688 = vmatprep.subr.bf16.mxu0 %v2222_v0  ;;  %2090 = vmatprep.subr.bf16.mxu1 %v2222_v0 }
  0x36   :  { %689 = vmatpush1.bf16.msra.mxu0 %v2123_v16  ;;  %2106 = vmatpush1.bf16.msra.mxu1 %v2123_v16  ;;  %v2221_v16 = vld [vmem:[%s2755_s0 + $0x1f0] ss:$8 sps:$4 sm:$0xff]  }
  0x37   :  { %690 = vmatprep.subr.bf16.mxu0 %v2222_v0  ;;  %2091 = vmatprep.subr.bf16.mxu1 %v2222_v0 }
  0x3a   :  { %691 = vmatpush1.bf16.msra.mxu0 %v2124_v17  ;;  %2107 = vmatpush1.bf16.msra.mxu1 %v2124_v17  ;;  %v2523_v17 = vld [vmem:[%s2756_s2] ss:$0 sm:$0xff] }
  0x3b   :  { %692 = vmatprep.subr.bf16.mxu0 %v2222_v0  ;;  %2092 = vmatprep.subr.bf16.mxu1 %v2222_v0  ;;  %v2197_v0 = vld [vmem:[%s2755_s0 + $0x1b0] ss:$8 sps:$4 sm:$0xff]  }
  0x3e   :  { %693 = vmatpush1.bf16.msra.mxu0 %v2125_v18  ;;  %2108 = vmatpush1.bf16.msra.mxu1 %v2125_v18 }
  0x41   :  { %695 = vmatmul.mubr.bf16.vlgmr.msra.gmra.mrb[0].mxu0 %v2126_v19  ;;  %823 = vmatmul.mubr.bf16.vlgmr.msra.gmra.mrb[0].mxu1 %v2129_v20  ;;  %v2528_v19 = vld [vmem:[%s2757_s3] ss:$0 sm:$0xff] }
  0x42   :  { %702 = vmatprep.mubr.bf16.mxu0 %v2132_v21  ;;  %830 = vmatprep.mubr.bf16.mxu1 %v2134_v22 }
  0x49   :  { %703 = vmatmul.mubr.bf16.gmra.mrb[4].mxu0 %v2136_v23  ;;  %831 = vmatmul.mubr.bf16.gmra.mrb[4].mxu1 %v2137_v24 }
  0x4a   :  { %710 = vmatprep.mubr.bf16.mxu0 %v2138_v25  ;;  %838 = vmatprep.mubr.bf16.mxu1 %v2140_v26 }
  0x51   :  { %711 = vmatmul.mubr.bf16.gmra.mrb[8].mxu0 %v2142_v27  ;;  %839 = vmatmul.mubr.bf16.gmra.mrb[8].mxu1 %v2143_v28 }
  0x52   :  { %718 = vmatprep.mubr.bf16.mxu0 %v2144_v29  ;;  %846 = vmatprep.mubr.bf16.mxu1 %v2146_v30 }
  0x59   :  { %719 = vmatmul.mubr.bf16.gmra.mrb[12].mxu0 %v2148_v31  ;;  %847 = vmatmul.mubr.bf16.gmra.mrb[12].mxu1 %v2149_v32 }
  0x5a   :  { %726 = vmatprep.mubr.bf16.mxu0 %v2150_v33  ;;  %854 = vmatprep.mubr.bf16.mxu1 %v2152_v34 }
  0x61   :  { %727 = vmatmul.mubr.bf16.gmra.mrb[16].mxu0 %v2154_v35  ;;  %855 = vmatmul.mubr.bf16.gmra.mrb[16].mxu1 %v2155_v36 }
  0x62   :  { %734 = vmatprep.mubr.bf16.mxu0 %v2156_v37  ;;  %862 = vmatprep.mubr.bf16.mxu1 %v2158_v38 }
  0x69   :  { %735 = vmatmul.mubr.bf16.gmra.mrb[20].mxu0 %v2160_v39  ;;  %863 = vmatmul.mubr.bf16.gmra.mrb[20].mxu1 %v2161_v40 }
  0x6a   :  { %742 = vmatprep.mubr.bf16.mxu0 %v2162_v41  ;;  %870 = vmatprep.mubr.bf16.mxu1 %v2164_v42 }
  0x71   :  { %743 = vmatmul.mubr.bf16.gmra.mrb[24].mxu0 %v2166_v43  ;;  %871 = vmatmul.mubr.bf16.gmra.mrb[24].mxu1 %v2167_v44 }
  0x72   :  { %750 = vmatprep.mubr.bf16.mxu0 %v2168_v45  ;;  %878 = vmatprep.mubr.bf16.mxu1 %v2170_v46 }
  0x79   :  { %751 = vmatmul.mubr.bf16.gmra.mrb[28].mxu0 %v2172_v47  ;;  %879 = vmatmul.mubr.bf16.gmra.mrb[28].mxu1 %v2173_v48 }
  0x7a   :  { %758 = vmatprep.mubr.bf16.mxu0 %v2174_v49  ;;  %886 = vmatprep.mubr.bf16.mxu1 %v2176_v50 }
  0x81   :  { %759 = vmatmul.mubr.bf16.gmra.mrb[32].mxu0 %v2178_v51  ;;  %887 = vmatmul.mubr.bf16.gmra.mrb[32].mxu1 %v2179_v52 }
  0x82   :  { %766 = vmatprep.mubr.bf16.mxu0 %v2180_v53  ;;  %894 = vmatprep.mubr.bf16.mxu1 %v2182_v54 }
  0x89   :  { %767 = vmatmul.mubr.bf16.gmra.mrb[36].mxu0 %v2184_v55  ;;  %895 = vmatmul.mubr.bf16.gmra.mrb[36].mxu1 %v2185_v56 }
  0x8a   :  { %774 = vmatprep.mubr.bf16.mxu0 %v2186_v57  ;;  %902 = vmatprep.mubr.bf16.mxu1 %v2188_v58 }
  0x91   :  { %775 = vmatmul.mubr.bf16.gmra.mrb[40].mxu0 %v2190_v59  ;;  %903 = vmatmul.mubr.bf16.gmra.mrb[40].mxu1 %v2191_v60 }
  0x92   :  { %782 = vmatprep.mubr.bf16.mxu0 %v2192_v61  ;;  %910 = vmatprep.mubr.bf16.mxu1 %v2194_v62 }
  0x99   :  { %783 = vmatmul.mubr.bf16.gmra.mrb[44].mxu0 %v2196_v63  ;;  %911 = vmatmul.mubr.bf16.gmra.mrb[44].mxu1 %v2197_v0 }
  0x9a   :  { %790 = vmatprep.mubr.bf16.mxu0 %v2198_v1  ;;  %918 = vmatprep.mubr.bf16.mxu1 %v2200_v2 }
  0xa1   :  { %791 = vmatmul.mubr.bf16.gmra.mrb[48].mxu0 %v2202_v3  ;;  %919 = vmatmul.mubr.bf16.gmra.mrb[48].mxu1 %v2203_v4 }
  0xa2   :  { %798 = vmatprep.mubr.bf16.mxu0 %v2204_v5  ;;  %926 = vmatprep.mubr.bf16.mxu1 %v2206_v6 }
  0xa9   :  { %799 = vmatmul.mubr.bf16.gmra.mrb[52].mxu0 %v2208_v7  ;;  %927 = vmatmul.mubr.bf16.gmra.mrb[52].mxu1 %v2209_v8 }
  0xaa   :  { %806 = vmatprep.mubr.bf16.mxu0 %v2210_v9  ;;  %934 = vmatprep.mubr.bf16.mxu1 %v2212_v10 }
  0xb1   :  { %807 = vmatmul.mubr.bf16.gmra.mrb[56].mxu0 %v2214_v11  ;;  %935 = vmatmul.mubr.bf16.gmra.mrb[56].mxu1 %v2215_v12 }
  0xb2   :  { %814 = vmatprep.mubr.bf16.mxu0 %v2216_v13  ;;  %942 = vmatprep.mubr.bf16.mxu1 %v2218_v14 }
  0xb9   :  { %815 = vmatmul.mubr.bf16.gmra.mrb[60].mxu0 %v2220_v15  ;;  %943 = vmatmul.mubr.bf16.gmra.mrb[60].mxu1 %v2221_v16 }
 0x114   :  { %v696_v18 = vpop.f32.mrb[0].mxu0  ;;  %v824_v20 = vpop.f32.mrb[0].mxu1 }
 0x115   :  { %v1153_v21 = vmul.f32 %v2523_v17, %v696_v18  ;;  %v1185_v22 = vmul.f32 %v2523_v17, %v824_v20  ;;  %v698_v23 = vpop.f32.mrb[1].mxu0  ;;  %v826_v24 = vpop.f32.mrb[1].mxu1 }
 0x116   :  { %v699_v25 = vpop.f32.mrb[2].mxu0  ;;  %v827_v26 = vpop.f32.mrb[2].mxu1 }
 0x117   :  { %v1224_v27 = vadd.f32 %v2528_v19, %v1153_v21  ;;  %v1256_v28 = vadd.f32 %v2528_v19, %v1185_v22  ;;  %v1154_v29 = vmul.f32 %v2523_v17, %v699_v25  ;;  %v1186_v30 = vmul.f32 %v2523_v17, %v827_v26  ;;  %v701_v31 = vpop.f32.mrb[3].mxu0  ;;  %v829_v32 = vpop.f32.mrb[3].mxu1 }
 0x119   :  { %v1225_v33 = vadd.f32 %v2528_v19, %v1154_v29  ;;  %v1257_v34 = vadd.f32 %v2528_v19, %v1186_v30  ;;  %v1288_v35 = vmax.f32 %v1224_v27, 0.0  ;;  %v1320_v36 = vmax.f32 %v1256_v28, 0.0 }
 0x11b   :  { %v1289_v37 = vmax.f32 %v1225_v33, 0.0  ;;  %v1321_v38 = vmax.f32 %v1257_v34, 0.0 }
 0x11c   :  { %v704_v39 = vpop.f32.mrb[4].mxu0  ;;  %v832_v40 = vpop.f32.mrb[4].mxu1 }
 0x11d   :  { %v1889_v41 = vpack.c.bf16 %v1289_v37, %v1288_v35  ;;  %v1969_v42 = vpack.c.bf16 %v1321_v38, %v1320_v36  ;;  %v1155_v43 = vmul.f32 %v2523_v17, %v704_v39  ;;  %v1187_v44 = vmul.f32 %v2523_v17, %v832_v40  ;;  %v706_v45 = vpop.f32.mrb[5].mxu0  ;;  %v834_v46 = vpop.f32.mrb[5].mxu1 }
 0x11e   :  { %v707_v47 = vpop.f32.mrb[6].mxu0  ;;  %v835_v48 = vpop.f32.mrb[6].mxu1 }
 0x11f   :  { %1890 = vst [vmem:[%s2758_s4] sm:$0xff] %v1889_v41   ;;  %2061 = vst [vmem:[%s2758_s4 + $0x80] sm:$0xff] %v1969_v42   ;;  %v1226_v49 = vadd.f32 %v2528_v19, %v1155_v43  ;;  %v1258_v50 = vadd.f32 %v2528_v19, %v1187_v44  ;;  %v1156_v51 = vmul.f32 %v2523_v17, %v707_v47  ;;  %v709_v53 = vpop.f32.mrb[7].mxu0  ;;  %v837_v54 = vpop.f32.mrb[7].mxu1 }
 0x120   :  { %v1188_v52 = vmul.f32 %v2523_v17, %v835_v48 }
 0x121   :  { %v1227_v55 = vadd.f32 %v2528_v19, %v1156_v51  ;;  %v1290_v57 = vmax.f32 %v1226_v49, 0.0  ;;  %v1322_v58 = vmax.f32 %v1258_v50, 0.0 }
 0x122   :  { %v1259_v56 = vadd.f32 %v2528_v19, %v1188_v52 }
 0x123   :  { %v1291_v59 = vmax.f32 %v1227_v55, 0.0 }
 0x124   :  { %v1323_v60 = vmax.f32 %v1259_v56, 0.0  ;;  %v712_v61 = vpop.f32.mrb[8].mxu0  ;;  %v840_v62 = vpop.f32.mrb[8].mxu1 }
 0x125   :  { %v1894_v63 = vpack.c.bf16 %v1291_v59, %v1290_v57  ;;  %v1157_v1 = vmul.f32 %v2523_v17, %v712_v61  ;;  %v1189_v2 = vmul.f32 %v2523_v17, %v840_v62  ;;  %v714_v3 = vpop.f32.mrb[9].mxu0  ;;  %v842_v4 = vpop.f32.mrb[9].mxu1 }
 0x126   :  { %v1974_v0 = vpack.c.bf16 %v1323_v60, %v1322_v58  ;;  %v715_v5 = vpop.f32.mrb[10].mxu0  ;;  %v843_v6 = vpop.f32.mrb[10].mxu1 }
 0x127   :  { %2046 = vst [vmem:[%s2758_s4 + $0x8] sm:$0xff] %v1894_v63   ;;  %v1228_v7 = vadd.f32 %v2528_v19, %v1157_v1  ;;  %v1260_v8 = vadd.f32 %v2528_v19, %v1189_v2  ;;  %v1158_v9 = vmul.f32 %v2523_v17, %v715_v5  ;;  %v1190_v10 = vmul.f32 %v2523_v17, %v843_v6  ;;  %v717_v11 = vpop.f32.mrb[11].mxu0  ;;  %v845_v12 = vpop.f32.mrb[11].mxu1 }
 0x128   :  { %2062 = vst [vmem:[%s2758_s4 + $0x88] sm:$0xff] %v1974_v0  }
 0x129   :  { %v1229_v13 = vadd.f32 %v2528_v19, %v1158_v9  ;;  %v1261_v14 = vadd.f32 %v2528_v19, %v1190_v10  ;;  %v1292_v15 = vmax.f32 %v1228_v7, 0.0  ;;  %v1324_v16 = vmax.f32 %v1260_v8, 0.0 }
 0x12b   :  { %v1293_v18 = vmax.f32 %v1229_v13, 0.0  ;;  %v1325_v20 = vmax.f32 %v1261_v14, 0.0 }
 0x12c   :  { %v720_v21 = vpop.f32.mrb[12].mxu0  ;;  %v848_v22 = vpop.f32.mrb[12].mxu1 }
 0x12d   :  { %v1899_v23 = vpack.c.bf16 %v1293_v18, %v1292_v15  ;;  %v1979_v24 = vpack.c.bf16 %v1325_v20, %v1324_v16  ;;  %v1159_v25 = vmul.f32 %v2523_v17, %v720_v21  ;;  %v1191_v26 = vmul.f32 %v2523_v17, %v848_v22  ;;  %v722_v27 = vpop.f32.mrb[13].mxu0  ;;  %v850_v28 = vpop.f32.mrb[13].mxu1 }
 0x12e   :  { %v723_v29 = vpop.f32.mrb[14].mxu0  ;;  %v851_v30 = vpop.f32.mrb[14].mxu1 }
 0x12f   :  { %2047 = vst [vmem:[%s2758_s4 + $0x10] sm:$0xff] %v1899_v23   ;;  %2063 = vst [vmem:[%s2758_s4 + $0x90] sm:$0xff] %v1979_v24   ;;  %v1230_v31 = vadd.f32 %v2528_v19, %v1159_v25  ;;  %v1262_v32 = vadd.f32 %v2528_v19, %v1191_v26  ;;  %v1160_v33 = vmul.f32 %v2523_v17, %v723_v29  ;;  %v725_v35 = vpop.f32.mrb[15].mxu0  ;;  %v853_v36 = vpop.f32.mrb[15].mxu1 }
 0x130   :  { %v1192_v34 = vmul.f32 %v2523_v17, %v851_v30 }
 0x131   :  { %v1231_v37 = vadd.f32 %v2528_v19, %v1160_v33  ;;  %v1294_v39 = vmax.f32 %v1230_v31, 0.0  ;;  %v1326_v40 = vmax.f32 %v1262_v32, 0.0 }
 0x132   :  { %v1263_v38 = vadd.f32 %v2528_v19, %v1192_v34 }
 0x133   :  { %v1295_v41 = vmax.f32 %v1231_v37, 0.0 }
 0x134   :  { %v1327_v42 = vmax.f32 %v1263_v38, 0.0  ;;  %v728_v43 = vpop.f32.mrb[16].mxu0  ;;  %v856_v44 = vpop.f32.mrb[16].mxu1 }
 0x135   :  { %v1904_v45 = vpack.c.bf16 %v1295_v41, %v1294_v39  ;;  %v1161_v47 = vmul.f32 %v2523_v17, %v728_v43  ;;  %v1193_v48 = vmul.f32 %v2523_v17, %v856_v44  ;;  %v730_v49 = vpop.f32.mrb[17].mxu0  ;;  %v858_v50 = vpop.f32.mrb[17].mxu1 }
 0x136   :  { %v1984_v46 = vpack.c.bf16 %v1327_v42, %v1326_v40  ;;  %v731_v51 = vpop.f32.mrb[18].mxu0  ;;  %v859_v52 = vpop.f32.mrb[18].mxu1 }
 0x137   :  { %2048 = vst [vmem:[%s2758_s4 + $0x18] sm:$0xff] %v1904_v45   ;;  %v1232_v53 = vadd.f32 %v2528_v19, %v1161_v47  ;;  %v1264_v54 = vadd.f32 %v2528_v19, %v1193_v48  ;;  %v1162_v55 = vmul.f32 %v2523_v17, %v731_v51  ;;  %v1194_v56 = vmul.f32 %v2523_v17, %v859_v52  ;;  %v733_v57 = vpop.f32.mrb[19].mxu0  ;;  %v861_v58 = vpop.f32.mrb[19].mxu1 }
 0x138   :  { %2064 = vst [vmem:[%s2758_s4 + $0x98] sm:$0xff] %v1984_v46  }
 0x139   :  { %v1233_v59 = vadd.f32 %v2528_v19, %v1162_v55  ;;  %v1265_v60 = vadd.f32 %v2528_v19, %v1194_v56  ;;  %v1296_v61 = vmax.f32 %v1232_v53, 0.0  ;;  %v1328_v62 = vmax.f32 %v1264_v54, 0.0 }
 0x13b   :  { %v1297_v63 = vmax.f32 %v1233_v59, 0.0  ;;  %v1329_v0 = vmax.f32 %v1265_v60, 0.0 }
 0x13c   :  { %v736_v1 = vpop.f32.mrb[20].mxu0  ;;  %v864_v2 = vpop.f32.mrb[20].mxu1 }
 0x13d   :  { %v1909_v3 = vpack.c.bf16 %v1297_v63, %v1296_v61  ;;  %v1989_v4 = vpack.c.bf16 %v1329_v0, %v1328_v62  ;;  %v1163_v5 = vmul.f32 %v2523_v17, %v736_v1  ;;  %v1195_v6 = vmul.f32 %v2523_v17, %v864_v2  ;;  %v738_v7 = vpop.f32.mrb[21].mxu0  ;;  %v866_v8 = vpop.f32.mrb[21].mxu1 }
 0x13e   :  { %v739_v9 = vpop.f32.mrb[22].mxu0  ;;  %v867_v10 = vpop.f32.mrb[22].mxu1 }
 0x13f   :  { %2049 = vst [vmem:[%s2758_s4 + $0x20] sm:$0xff] %v1909_v3   ;;  %2065 = vst [vmem:[%s2758_s4 + $0xa0] sm:$0xff] %v1989_v4   ;;  %v1234_v11 = vadd.f32 %v2528_v19, %v1163_v5  ;;  %v1266_v12 = vadd.f32 %v2528_v19, %v1195_v6  ;;  %v1164_v13 = vmul.f32 %v2523_v17, %v739_v9  ;;  %v741_v15 = vpop.f32.mrb[23].mxu0  ;;  %v869_v16 = vpop.f32.mrb[23].mxu1 }
 0x140   :  { %v1196_v14 = vmul.f32 %v2523_v17, %v867_v10 }
 0x141   :  { %v1235_v18 = vadd.f32 %v2528_v19, %v1164_v13  ;;  %v1298_v21 = vmax.f32 %v1234_v11, 0.0  ;;  %v1330_v22 = vmax.f32 %v1266_v12, 0.0 }
 0x142   :  { %v1267_v20 = vadd.f32 %v2528_v19, %v1196_v14 }
 0x143   :  { %v1299_v23 = vmax.f32 %v1235_v18, 0.0 }
 0x144   :  { %v1331_v24 = vmax.f32 %v1267_v20, 0.0  ;;  %v744_v25 = vpop.f32.mrb[24].mxu0  ;;  %v872_v26 = vpop.f32.mrb[24].mxu1 }
 0x145   :  { %v1914_v27 = vpack.c.bf16 %v1299_v23, %v1298_v21  ;;  %v1165_v29 = vmul.f32 %v2523_v17, %v744_v25  ;;  %v1197_v30 = vmul.f32 %v2523_v17, %v872_v26  ;;  %v746_v31 = vpop.f32.mrb[25].mxu0  ;;  %v874_v32 = vpop.f32.mrb[25].mxu1 }
 0x146   :  { %v1994_v28 = vpack.c.bf16 %v1331_v24, %v1330_v22  ;;  %v747_v33 = vpop.f32.mrb[26].mxu0  ;;  %v875_v34 = vpop.f32.mrb[26].mxu1 }
 0x147   :  { %2050 = vst [vmem:[%s2758_s4 + $0x28] sm:$0xff] %v1914_v27   ;;  %v1236_v35 = vadd.f32 %v2528_v19, %v1165_v29  ;;  %v1268_v36 = vadd.f32 %v2528_v19, %v1197_v30  ;;  %v1166_v37 = vmul.f32 %v2523_v17, %v747_v33  ;;  %v1198_v38 = vmul.f32 %v2523_v17, %v875_v34  ;;  %v749_v39 = vpop.f32.mrb[27].mxu0  ;;  %v877_v40 = vpop.f32.mrb[27].mxu1 }
 0x148   :  { %2066 = vst [vmem:[%s2758_s4 + $0xa8] sm:$0xff] %v1994_v28  }
 0x149   :  { %v1237_v41 = vadd.f32 %v2528_v19, %v1166_v37  ;;  %v1269_v42 = vadd.f32 %v2528_v19, %v1198_v38  ;;  %v1300_v43 = vmax.f32 %v1236_v35, 0.0  ;;  %v1332_v44 = vmax.f32 %v1268_v36, 0.0 }
 0x14b   :  { %v1301_v45 = vmax.f32 %v1237_v41, 0.0  ;;  %v1333_v46 = vmax.f32 %v1269_v42, 0.0 }
 0x14c   :  { %v752_v47 = vpop.f32.mrb[28].mxu0  ;;  %v880_v48 = vpop.f32.mrb[28].mxu1 }
 0x14d   :  { %v1919_v49 = vpack.c.bf16 %v1301_v45, %v1300_v43  ;;  %v1999_v50 = vpack.c.bf16 %v1333_v46, %v1332_v44  ;;  %v1167_v51 = vmul.f32 %v2523_v17, %v752_v47  ;;  %v1199_v52 = vmul.f32 %v2523_v17, %v880_v48  ;;  %v754_v53 = vpop.f32.mrb[29].mxu0  ;;  %v882_v54 = vpop.f32.mrb[29].mxu1 }
 0x14e   :  { %v755_v55 = vpop.f32.mrb[30].mxu0  ;;  %v883_v56 = vpop.f32.mrb[30].mxu1 }
 0x14f   :  { %2051 = vst [vmem:[%s2758_s4 + $0x30] sm:$0xff] %v1919_v49   ;;  %2067 = vst [vmem:[%s2758_s4 + $0xb0] sm:$0xff] %v1999_v50   ;;  %v1238_v57 = vadd.f32 %v2528_v19, %v1167_v51  ;;  %v1270_v58 = vadd.f32 %v2528_v19, %v1199_v52  ;;  %v1168_v59 = vmul.f32 %v2523_v17, %v755_v55  ;;  %v757_v61 = vpop.f32.mrb[31].mxu0  ;;  %v885_v62 = vpop.f32.mrb[31].mxu1 }
 0x150   :  { %v1200_v60 = vmul.f32 %v2523_v17, %v883_v56 }
 0x151   :  { %v1239_v63 = vadd.f32 %v2528_v19, %v1168_v59  ;;  %v1302_v1 = vmax.f32 %v1238_v57, 0.0  ;;  %v1334_v2 = vmax.f32 %v1270_v58, 0.0 }
 0x152   :  { %v1271_v0 = vadd.f32 %v2528_v19, %v1200_v60 }
 0x153   :  { %v1303_v3 = vmax.f32 %v1239_v63, 0.0 }
 0x154   :  { %v1335_v4 = vmax.f32 %v1271_v0, 0.0  ;;  %v760_v5 = vpop.f32.mrb[32].mxu0  ;;  %v888_v6 = vpop.f32.mrb[32].mxu1 }
 0x155   :  { %v1924_v7 = vpack.c.bf16 %v1303_v3, %v1302_v1  ;;  %v1169_v9 = vmul.f32 %v2523_v17, %v760_v5  ;;  %v1201_v10 = vmul.f32 %v2523_v17, %v888_v6  ;;  %v762_v11 = vpop.f32.mrb[33].mxu0  ;;  %v890_v12 = vpop.f32.mrb[33].mxu1 }
 0x156   :  { %v2004_v8 = vpack.c.bf16 %v1335_v4, %v1334_v2  ;;  %v763_v13 = vpop.f32.mrb[34].mxu0  ;;  %v891_v14 = vpop.f32.mrb[34].mxu1 }
 0x157   :  { %2052 = vst [vmem:[%s2758_s4 + $0x38] sm:$0xff] %v1924_v7   ;;  %v1240_v15 = vadd.f32 %v2528_v19, %v1169_v9  ;;  %v1272_v16 = vadd.f32 %v2528_v19, %v1201_v10  ;;  %v1170_v18 = vmul.f32 %v2523_v17, %v763_v13  ;;  %v1202_v20 = vmul.f32 %v2523_v17, %v891_v14  ;;  %v765_v21 = vpop.f32.mrb[35].mxu0  ;;  %v893_v22 = vpop.f32.mrb[35].mxu1 }
 0x158   :  { %2068 = vst [vmem:[%s2758_s4 + $0xb8] sm:$0xff] %v2004_v8  }
 0x159   :  { %v1241_v23 = vadd.f32 %v2528_v19, %v1170_v18  ;;  %v1273_v24 = vadd.f32 %v2528_v19, %v1202_v20  ;;  %v1304_v25 = vmax.f32 %v1240_v15, 0.0  ;;  %v1336_v26 = vmax.f32 %v1272_v16, 0.0 }
 0x15b   :  { %v1305_v27 = vmax.f32 %v1241_v23, 0.0  ;;  %v1337_v28 = vmax.f32 %v1273_v24, 0.0 }
 0x15c   :  { %v768_v29 = vpop.f32.mrb[36].mxu0  ;;  %v896_v30 = vpop.f32.mrb[36].mxu1 }
 0x15d   :  { %v1929_v31 = vpack.c.bf16 %v1305_v27, %v1304_v25  ;;  %v2009_v32 = vpack.c.bf16 %v1337_v28, %v1336_v26  ;;  %v1171_v33 = vmul.f32 %v2523_v17, %v768_v29  ;;  %v1203_v34 = vmul.f32 %v2523_v17, %v896_v30  ;;  %v770_v35 = vpop.f32.mrb[37].mxu0  ;;  %v898_v36 = vpop.f32.mrb[37].mxu1 }
 0x15e   :  { %v771_v37 = vpop.f32.mrb[38].mxu0  ;;  %v899_v38 = vpop.f32.mrb[38].mxu1 }
 0x15f   :  { %2053 = vst [vmem:[%s2758_s4 + $0x40] sm:$0xff] %v1929_v31   ;;  %2069 = vst [vmem:[%s2758_s4 + $0xc0] sm:$0xff] %v2009_v32   ;;  %v1242_v39 = vadd.f32 %v2528_v19, %v1171_v33  ;;  %v1274_v40 = vadd.f32 %v2528_v19, %v1203_v34  ;;  %v1172_v41 = vmul.f32 %v2523_v17, %v771_v37  ;;  %v773_v43 = vpop.f32.mrb[39].mxu0  ;;  %v901_v44 = vpop.f32.mrb[39].mxu1 }
 0x160   :  { %v1204_v42 = vmul.f32 %v2523_v17, %v899_v38 }
 0x161   :  { %v1243_v45 = vadd.f32 %v2528_v19, %v1172_v41  ;;  %v1306_v47 = vmax.f32 %v1242_v39, 0.0  ;;  %v1338_v48 = vmax.f32 %v1274_v40, 0.0 }
 0x162   :  { %v1275_v46 = vadd.f32 %v2528_v19, %v1204_v42 }
 0x163   :  { %v1307_v49 = vmax.f32 %v1243_v45, 0.0 }
 0x164   :  { %v1339_v50 = vmax.f32 %v1275_v46, 0.0  ;;  %v776_v51 = vpop.f32.mrb[40].mxu0  ;;  %v904_v52 = vpop.f32.mrb[40].mxu1 }
 0x165   :  { %v1934_v53 = vpack.c.bf16 %v1307_v49, %v1306_v47  ;;  %v1173_v55 = vmul.f32 %v2523_v17, %v776_v51  ;;  %v1205_v56 = vmul.f32 %v2523_v17, %v904_v52  ;;  %v778_v57 = vpop.f32.mrb[41].mxu0  ;;  %v906_v58 = vpop.f32.mrb[41].mxu1 }
 0x166   :  { %v2014_v54 = vpack.c.bf16 %v1339_v50, %v1338_v48  ;;  %v779_v59 = vpop.f32.mrb[42].mxu0  ;;  %v907_v60 = vpop.f32.mrb[42].mxu1 }
 0x167   :  { %2054 = vst [vmem:[%s2758_s4 + $0x48] sm:$0xff] %v1934_v53   ;;  %v1244_v61 = vadd.f32 %v2528_v19, %v1173_v55  ;;  %v1276_v62 = vadd.f32 %v2528_v19, %v1205_v56  ;;  %v1174_v63 = vmul.f32 %v2523_v17, %v779_v59  ;;  %v1206_v0 = vmul.f32 %v2523_v17, %v907_v60  ;;  %v781_v1 = vpop.f32.mrb[43].mxu0  ;;  %v909_v2 = vpop.f32.mrb[43].mxu1 }
 0x168   :  { %2070 = vst [vmem:[%s2758_s4 + $0xc8] sm:$0xff] %v2014_v54  }
 0x169   :  { %v1245_v3 = vadd.f32 %v2528_v19, %v1174_v63  ;;  %v1277_v4 = vadd.f32 %v2528_v19, %v1206_v0  ;;  %v1308_v5 = vmax.f32 %v1244_v61, 0.0  ;;  %v1340_v6 = vmax.f32 %v1276_v62, 0.0 }
 0x16b   :  { %v1309_v7 = vmax.f32 %v1245_v3, 0.0  ;;  %v1341_v8 = vmax.f32 %v1277_v4, 0.0 }
 0x16c   :  { %v784_v9 = vpop.f32.mrb[44].mxu0  ;;  %v912_v10 = vpop.f32.mrb[44].mxu1 }
 0x16d   :  { %v1939_v11 = vpack.c.bf16 %v1309_v7, %v1308_v5  ;;  %v2019_v12 = vpack.c.bf16 %v1341_v8, %v1340_v6  ;;  %v1175_v13 = vmul.f32 %v2523_v17, %v784_v9  ;;  %v1207_v14 = vmul.f32 %v2523_v17, %v912_v10  ;;  %v786_v15 = vpop.f32.mrb[45].mxu0  ;;  %v914_v16 = vpop.f32.mrb[45].mxu1 }
 0x16e   :  { %v787_v18 = vpop.f32.mrb[46].mxu0  ;;  %v915_v20 = vpop.f32.mrb[46].mxu1 }
 0x16f   :  { %2055 = vst [vmem:[%s2758_s4 + $0x50] sm:$0xff] %v1939_v11   ;;  %2071 = vst [vmem:[%s2758_s4 + $0xd0] sm:$0xff] %v2019_v12   ;;  %v1246_v21 = vadd.f32 %v2528_v19, %v1175_v13  ;;  %v1278_v22 = vadd.f32 %v2528_v19, %v1207_v14  ;;  %v1176_v23 = vmul.f32 %v2523_v17, %v787_v18  ;;  %v789_v25 = vpop.f32.mrb[47].mxu0  ;;  %v917_v26 = vpop.f32.mrb[47].mxu1 }
 0x170   :  { %v1208_v24 = vmul.f32 %v2523_v17, %v915_v20 }
 0x171   :  { %v1247_v27 = vadd.f32 %v2528_v19, %v1176_v23  ;;  %v1310_v29 = vmax.f32 %v1246_v21, 0.0  ;;  %v1342_v30 = vmax.f32 %v1278_v22, 0.0 }
 0x172   :  { %v1279_v28 = vadd.f32 %v2528_v19, %v1208_v24 }
 0x173   :  { %v1311_v31 = vmax.f32 %v1247_v27, 0.0 }
 0x174   :  { %v1343_v32 = vmax.f32 %v1279_v28, 0.0  ;;  %v792_v33 = vpop.f32.mrb[48].mxu0  ;;  %v920_v34 = vpop.f32.mrb[48].mxu1 }
 0x175   :  { %v1944_v35 = vpack.c.bf16 %v1311_v31, %v1310_v29  ;;  %v1177_v37 = vmul.f32 %v2523_v17, %v792_v33  ;;  %v1209_v38 = vmul.f32 %v2523_v17, %v920_v34  ;;  %v794_v39 = vpop.f32.mrb[49].mxu0  ;;  %v922_v40 = vpop.f32.mrb[49].mxu1 }
 0x176   :  { %v2024_v36 = vpack.c.bf16 %v1343_v32, %v1342_v30  ;;  %v795_v41 = vpop.f32.mrb[50].mxu0  ;;  %v923_v42 = vpop.f32.mrb[50].mxu1 }
 0x177   :  { %2056 = vst [vmem:[%s2758_s4 + $0x58] sm:$0xff] %v1944_v35   ;;  %v1248_v43 = vadd.f32 %v2528_v19, %v1177_v37  ;;  %v1280_v44 = vadd.f32 %v2528_v19, %v1209_v38  ;;  %v1178_v45 = vmul.f32 %v2523_v17, %v795_v41  ;;  %v1210_v46 = vmul.f32 %v2523_v17, %v923_v42  ;;  %v797_v47 = vpop.f32.mrb[51].mxu0  ;;  %v925_v48 = vpop.f32.mrb[51].mxu1 }
 0x178   :  { %2072 = vst [vmem:[%s2758_s4 + $0xd8] sm:$0xff] %v2024_v36  }
 0x179   :  { %v1249_v49 = vadd.f32 %v2528_v19, %v1178_v45  ;;  %v1281_v50 = vadd.f32 %v2528_v19, %v1210_v46  ;;  %v1312_v51 = vmax.f32 %v1248_v43, 0.0  ;;  %v1344_v52 = vmax.f32 %v1280_v44, 0.0 }
 0x17b   :  { %v1313_v53 = vmax.f32 %v1249_v49, 0.0  ;;  %v1345_v54 = vmax.f32 %v1281_v50, 0.0 }
 0x17c   :  { %v800_v55 = vpop.f32.mrb[52].mxu0  ;;  %v928_v56 = vpop.f32.mrb[52].mxu1 }
 0x17d   :  { %v1949_v57 = vpack.c.bf16 %v1313_v53, %v1312_v51  ;;  %v2029_v58 = vpack.c.bf16 %v1345_v54, %v1344_v52  ;;  %v1179_v59 = vmul.f32 %v2523_v17, %v800_v55  ;;  %v1211_v60 = vmul.f32 %v2523_v17, %v928_v56  ;;  %v802_v61 = vpop.f32.mrb[53].mxu0  ;;  %v930_v62 = vpop.f32.mrb[53].mxu1 }
 0x17e   :  { %v803_v63 = vpop.f32.mrb[54].mxu0  ;;  %v931_v0 = vpop.f32.mrb[54].mxu1 }
 0x17f   :  { %2057 = vst [vmem:[%s2758_s4 + $0x60] sm:$0xff] %v1949_v57   ;;  %2073 = vst [vmem:[%s2758_s4 + $0xe0] sm:$0xff] %v2029_v58   ;;  %v1250_v1 = vadd.f32 %v2528_v19, %v1179_v59  ;;  %v1282_v2 = vadd.f32 %v2528_v19, %v1211_v60  ;;  %v1180_v3 = vmul.f32 %v2523_v17, %v803_v63  ;;  %v805_v5 = vpop.f32.mrb[55].mxu0  ;;  %v933_v6 = vpop.f32.mrb[55].mxu1 }
 0x180   :  { %v1212_v4 = vmul.f32 %v2523_v17, %v931_v0 }
 0x181   :  { %v1251_v7 = vadd.f32 %v2528_v19, %v1180_v3  ;;  %v1314_v9 = vmax.f32 %v1250_v1, 0.0  ;;  %v1346_v10 = vmax.f32 %v1282_v2, 0.0 }
 0x182   :  { %v1283_v8 = vadd.f32 %v2528_v19, %v1212_v4 }
 0x183   :  { %v1315_v11 = vmax.f32 %v1251_v7, 0.0 }
 0x184   :  { %v1347_v12 = vmax.f32 %v1283_v8, 0.0  ;;  %v808_v13 = vpop.f32.mrb[56].mxu0  ;;  %v936_v14 = vpop.f32.mrb[56].mxu1 }
 0x185   :  { %v1954_v15 = vpack.c.bf16 %v1315_v11, %v1314_v9  ;;  %v1181_v18 = vmul.f32 %v2523_v17, %v808_v13  ;;  %v1213_v20 = vmul.f32 %v2523_v17, %v936_v14  ;;  %v810_v21 = vpop.f32.mrb[57].mxu0  ;;  %v938_v22 = vpop.f32.mrb[57].mxu1 }
 0x186   :  { %v2034_v16 = vpack.c.bf16 %v1347_v12, %v1346_v10  ;;  %v811_v23 = vpop.f32.mrb[58].mxu0  ;;  %v939_v24 = vpop.f32.mrb[58].mxu1 }
 0x187   :  { %2058 = vst [vmem:[%s2758_s4 + $0x68] sm:$0xff] %v1954_v15   ;;  %v1252_v25 = vadd.f32 %v2528_v19, %v1181_v18  ;;  %v1284_v26 = vadd.f32 %v2528_v19, %v1213_v20  ;;  %v1182_v27 = vmul.f32 %v2523_v17, %v811_v23  ;;  %v1214_v28 = vmul.f32 %v2523_v17, %v939_v24  ;;  %v813_v29 = vpop.f32.mrb[59].mxu0  ;;  %v941_v30 = vpop.f32.mrb[59].mxu1 }
 0x188   :  { %2074 = vst [vmem:[%s2758_s4 + $0xe8] sm:$0xff] %v2034_v16  }
 0x189   :  { %v1253_v31 = vadd.f32 %v2528_v19, %v1182_v27  ;;  %v1285_v32 = vadd.f32 %v2528_v19, %v1214_v28  ;;  %v1316_v33 = vmax.f32 %v1252_v25, 0.0  ;;  %v1348_v34 = vmax.f32 %v1284_v26, 0.0 }
 0x18b   :  { %v1317_v35 = vmax.f32 %v1253_v31, 0.0  ;;  %v1349_v36 = vmax.f32 %v1285_v32, 0.0 }
 0x18c   :  { %v816_v37 = vpop.f32.mrb[60].mxu0  ;;  %v944_v38 = vpop.f32.mrb[60].mxu1 }
 0x18d   :  { %v1959_v39 = vpack.c.bf16 %v1317_v35, %v1316_v33  ;;  %v2039_v40 = vpack.c.bf16 %v1349_v36, %v1348_v34  ;;  %v1183_v41 = vmul.f32 %v2523_v17, %v816_v37  ;;  %v1215_v42 = vmul.f32 %v2523_v17, %v944_v38  ;;  %v818_v43 = vpop.f32.mrb[61].mxu0  ;;  %v946_v44 = vpop.f32.mrb[61].mxu1 }
 0x18e   :  { %v819_v45 = vpop.f32.mrb[62].mxu0  ;;  %v947_v46 = vpop.f32.mrb[62].mxu1 }
 0x18f   :  { %2059 = vst [vmem:[%s2758_s4 + $0x70] sm:$0xff] %v1959_v39   ;;  %2075 = vst [vmem:[%s2758_s4 + $0xf0] sm:$0xff] %v2039_v40   ;;  %v1254_v47 = vadd.f32 %v2528_v19, %v1183_v41  ;;  %v1286_v48 = vadd.f32 %v2528_v19, %v1215_v42  ;;  %v1184_v49 = vmul.f32 %v2523_v17, %v819_v45  ;;  %v821_v51 = vpop.f32.mrb[63].mxu0  ;;  %v949_v52 = vpop.f32.mrb[63].mxu1 }
 0x190   :  { %v1216_v50 = vmul.f32 %v2523_v17, %v947_v46 }
 0x191   :  { %v1255_v53 = vadd.f32 %v2528_v19, %v1184_v49  ;;  %v1318_v55 = vmax.f32 %v1254_v47, 0.0  ;;  %v1350_v56 = vmax.f32 %v1286_v48, 0.0 }
 0x192   :  { %v1287_v54 = vadd.f32 %v2528_v19, %v1216_v50 }
 0x193   :  { %v1319_v57 = vmax.f32 %v1255_v53, 0.0 }
 0x194   :  { %v1351_v58 = vmax.f32 %v1287_v54, 0.0 }
 0x195   :  { %v1964_v59 = vpack.c.bf16 %v1319_v57, %v1318_v55 }
 0x196   :  { %v2044_v60 = vpack.c.bf16 %v1351_v58, %v1350_v56 }
 0x197   :  { %2060 = vst [vmem:[%s2758_s4 + $0x78] sm:$0xff] %v1964_v59  }
 0x198   :  { %2076 = vst [vmem:[%s2758_s4 + $0xf8] sm:$0xff] %v2044_v60  }

// kernel: resnet18_forward.25
= control target key start
LH: loop header
LB: loop body
LE: loop exit
PB: predicated region body
PF: predicated region fallthrough
CT: control target
= control target key end

     0   :  { %s2636_s15 = smov 0   ;;  %s2638_s16 = smov 0   ;;  %s3179_s0 = inlined_call_operand.vmem [shape: bf16[2,10,10,128], index: 0, kind: input, shape index: {}]   ;;  %s3180_s1 = inlined_call_operand.vmem [shape: bf16[9,128,128], index: 1, kind: input, shape index: {}]   ;;  %s3181_s2 = inlined_call_operand.vmem [shape: f32[1,128], index: 2, kind: input, shape index: {}]   ;;  %s3182_s3 = inlined_call_operand.vmem [shape: f32[1,128], index: 3, kind: input, shape index: {}]   ;;  %s3183_s4 = inlined_call_operand.vmem [shape: bf16[2,8,8,128], index: 4, kind: output, shape index: {}]  }
   0x1   :  { %s2640_s17 = smov 0  }
   0x2 LB: > { %s26_s18 = sadd.s32 1, %s2605_s16  ;;  %p1836_p0 = scmp.ge.s32.totalorder %s2609_s17, 1  ;;  %s2609_s17 = sphi %s2640_s17, %s14_s17   ;;  %s2605_s16 = sphi %s2638_s16, %s3185_s16   ;;  %s2601_s15 = sphi %s2636_s15, %s3184_s15  }
   0x3   : > { %p28_p1 = scmp.ge.s32.totalorder %s26_s18, 2  ;;  %p201_p2 = scmp.lt.s32.totalorder %s2609_s17, 3 }
   0x5   : > { %s3187_s18 = smov (%p28_p1, %s26_s18), 0  ;;  %p202_p3 = pnand %p1836_p0, %p201_p2 }
   0x6   : > { %v2506_v0 = vld [vmem:[%s3180_s1 + $0x40] sm:$0xff] (!%p202_p3)   ;;  %p240_p4 = scmp.lt.s32.totalorder (!%p202_p3), %s2601_s15, 1  ;;  %v2508_v2 = vld [vmem:[%s3180_s1 + $0x48] sm:$0xff] (!%p202_p3)   ;;  %v2510_v4 = vld [vmem:[%s3180_s1 + $0x50] sm:$0xff] (!%p202_p3)   ;;  %vm340_vm0 = vcmask (!%p202_p3), 1046528   ;;  %vm620_vm1 = vcmask (!%p202_p3), 1045504  }
   0x7   : > { %205 = sbr.rel (%p202_p3) target bundleno = 394 (0x18a), region = 36  ;;  %v2507_v1 = vld [vmem:[%s3180_s1 + $0x100] sm:$0xff] (!%p202_p3)   ;;  %2185 = vmatprep.subr.bf16.mxu1 (!%p202_p3), %v2506_v0  ;;  %v2509_v3 = vld [vmem:[%s3180_s1 + $0x108] sm:$0xff] (!%p202_p3)   ;;  %v2511_v5 = vld [vmem:[%s3180_s1 + $0x110] sm:$0xff] (!%p202_p3)  }
   0x8   : > { %2281 = vmatprep.subr.bf16.mxu0 (!%p202_p3), %v2507_v1  ;;  %2186 = vmatpush3.bf16.msra.mxu1 (!%p202_p3), %v2506_v0  ;;  %v2512_v6 = vld [vmem:[%s3180_s1 + $0x58] sm:$0xff] (!%p202_p3)   ;;  %v2514_v8 = vld [vmem:[%s3180_s1 + $0x60] sm:$0xff] (!%p202_p3)   ;;  %v2516_v10 = vld [vmem:[%s3180_s1 + $0x68] sm:$0xff] (!%p202_p3)  }
   0x9   : > { %2282 = vmatpush3.bf16.msra.mxu0 (!%p202_p3), %v2507_v1  ;;  %2187 = vmatprep.subr.bf16.mxu1 (!%p202_p3), %v2508_v2  ;;  %v2513_v7 = vld [vmem:[%s3180_s1 + $0x118] sm:$0xff] (!%p202_p3)   ;;  %v2515_v9 = vld [vmem:[%s3180_s1 + $0x120] sm:$0xff] (!%p202_p3)   ;;  %v2517_v11 = vld [vmem:[%s3180_s1 + $0x128] sm:$0xff] (!%p202_p3)  }
   0xa   : > { %2283 = vmatprep.subr.bf16.mxu0 (!%p202_p3), %v2509_v3  ;;  %v2518_v27 = vld [vmem:[%s3180_s1 + $0x70] sm:$0xff] (!%p202_p3)   ;;  %v2520_v47 = vld [vmem:[%s3180_s1 + $0x78] sm:$0xff] (!%p202_p3)   ;;  %v2522_v54 = vld [vmem:[%s3180_s1] sm:$0xff] (!%p202_p3)  }
   0xb   : > { %v2519_v32 = vld [vmem:[%s3180_s1 + $0x130] sm:$0xff] (!%p202_p3)   ;;  %v2521_v50 = vld [vmem:[%s3180_s1 + $0x138] sm:$0xff] (!%p202_p3)   ;;  %v2523_v56 = vld [vmem:[%s3180_s1 + $0x140] sm:$0xff] (!%p202_p3)  }
   0xc   : > { %2188 = vmatpush3.bf16.msra.mxu1 (!%p202_p3), %v2508_v2  ;;  %v2524_v58 = vld [vmem:[%s3180_s1 + $0x8] sm:$0xff] (!%p202_p3)  }
   0xd   : > { %2284 = vmatpush3.bf16.msra.mxu0 (!%p202_p3), %v2509_v3  ;;  %2189 = vmatprep.subr.bf16.mxu1 (!%p202_p3), %v2510_v4  ;;  %v2525_v60 = vld [vmem:[%s3180_s1 + $0x148] sm:$0xff] (!%p202_p3)  }
   0xe   : > { %s3189_s15 = smov (!%p240_p4, %s2601_s15), 1  ;;  %2285 = vmatprep.subr.bf16.mxu0 %v2511_v5 }
   0xf   : > { %s2481_s9 = smul.u32 80, %s3189_s15  ;;  %s2053_s19 = sshll.u32 %s3189_s15, 5 }
  0x10   : > { %2190 = vmatpush3.bf16.msra.mxu1 %v2510_v4  ;;  %s262_s22 = scalar_lea.vmem %s3183_s4, %s2053_s19 }
  0x11   : > { %2286 = vmatpush3.bf16.msra.mxu0 %v2511_v5  ;;  %2191 = vmatprep.subr.bf16.mxu1 %v2512_v6  ;;  %s2690_s20 = scalar_lea.vmem %s3179_s0, %s2481_s9 }
  0x12   : > { %2287 = vmatprep.subr.bf16.mxu0 %v2513_v7  ;;  %v2699_v12 = vld [vmem:[%s2690_s20] sm:$0xf]  ;;  %v2702_v13 = vld [vmem:[%s2690_s20 + $0x4] sm:$0x1]  ;;  %v2705_v14 = vld [vmem:[%s2690_s20 + $0x8] sm:$0xf] }
  0x13   : > { %v2708_v15 = vld [vmem:[%s2690_s20 + $0xc] sm:$0x1]  ;;  %v284_v16 = vunpack.c.l.bf16 %v2699_v12  ;;  %v285_v17 = vunpack.c.l.bf16 %v2702_v13  ;;  %v286_v18 = vunpack.c.l.bf16 %v2705_v14  ;;  %v2715_v20 = vld [vmem:[%s2690_s20 + $0x10] sm:$0xf]  ;;  %v2718_v21 = vld [vmem:[%s2690_s20 + $0x14] sm:$0x1] }
  0x14   : > { %2192 = vmatpush3.bf16.msra.mxu1 %v2512_v6  ;;  %v287_v19 = vunpack.c.l.bf16 %v2708_v15  ;;  %v2727_v25 = vld [vmem:[%s2690_s20 + $0x18] sm:$0xf]  ;;  %v288_v26 = vunpack.c.l.bf16 %v2715_v20  ;;  %v2736_v29 = vld [vmem:[%s2690_s20 + $0x1c] sm:$0x1]  ;;  %v289_v30 = vunpack.c.l.bf16 %v2718_v21  ;;  %v2748_v36 = vld [vmem:[%s2690_s20 + $0x20] sm:$0xf]  ;;  %v1900_v37 = vcombine.low %v2705_v14, %v2715_v20 }
  0x15   : > { %2288 = vmatpush3.bf16.msra.mxu0 %v2513_v7  ;;  %2193 = vmatprep.subr.bf16.mxu1 %v2514_v8  ;;  %v341_v22 = vrot.slane %v284_v16, 1  ;;  %v342_v23 = vrot.slane %v285_v17, 1  ;;  %v344_v24 = vrot.slane %v286_v18, 1  ;;  %v290_v31 = vunpack.c.l.bf16 %v2727_v25  ;;  %v2758_v41 = vld [vmem:[%s2690_s20 + $0x24] sm:$0x1]  ;;  %v2526_v7 = vld [vmem:[%s3180_s1 + $0x10] sm:$0xff]  }
  0x16   : > { %2289 = vmatprep.subr.bf16.mxu0 %v2515_v9  ;;  %v345_v28 = vrot.slane %v287_v19, 1  ;;  %v291_v34 = vunpack.c.l.bf16 %v2736_v29  ;;  %v347_v35 = vrot.slane %v288_v26, 1  ;;  %v348_v39 = vrot.slane %v289_v30, 1  ;;  %v2794_v61 = vld [vmem:[%s2690_s20 + $0x28] sm:$0xf] }
  0x17   : > { %v343_v33 = vsel %vm340_vm0, %v341_v22, %v342_v23  ;;  %v350_v40 = vrot.slane %v290_v31, 1  ;;  %v292_v42 = vunpack.c.l.bf16 %v2748_v36  ;;  %v293_v45 = vunpack.c.l.bf16 %v2758_v41  ;;  %v2797_v62 = vld [vmem:[%s2690_s20 + $0x2c] sm:$0x1]  ;;  %v2802_v1 = vld [vmem:[%s2690_s20 + $0x30] sm:$0xf] }
  0x18   : > { %2194 = vmatpush3.bf16.msra.mxu1 %v2514_v8  ;;  %v346_v38 = vsel %vm340_vm0, %v344_v24, %v345_v28  ;;  %v351_v44 = vrot.slane %v291_v34, 1  ;;  %v1901_v46 = vcombine.low %v2727_v25, %v2748_v36  ;;  %v349_v48 = vsel %vm340_vm0, %v347_v35, %v348_v39  ;;  %v2810_v4 = vld [vmem:[%s2690_s20 + $0x34] sm:$0x1]  ;;  %v2835_v23 = vld [vmem:[%s2690_s20 + $0x40] sm:$0xf] }
  0x19   : > { %2290 = vmatpush3.bf16.msra.mxu0 %v2515_v9  ;;  %2195 = vmatprep.subr.bf16.mxu1 %v2516_v10  ;;  %v373_v43 = vpack.c.bf16 %v346_v38, %v343_v33  ;;  %v353_v49 = vrot.slane %v292_v42, 1  ;;  %v943_v51 = vpack.c.bf16 %v349_v48, %v346_v38  ;;  %v354_v52 = vrot.slane %v293_v45, 1  ;;  %v2847_v33 = vld [vmem:[%s2690_s20 + $0x44] sm:$0x1] }
  0x1a   : > { %2291 = vmatprep.subr.bf16.mxu0 %v2517_v11  ;;  %v352_v53 = vsel %vm340_vm0, %v350_v40, %v351_v44  ;;  %v294_v63 = vunpack.c.l.bf16 %v2794_v61  ;;  %v295_v0 = vunpack.c.l.bf16 %v2797_v62  ;;  %v624_v2 = vrot.slane %v286_v18, 2  ;;  %v2539_v62 = vld [vmem:[%s3180_s1 + $0x80] sm:$0xff]  }
  0x1b   : > { %2201 = vmatprep.mubr.bf16.mxu1 %v373_v43  ;;  %2297 = vmatprep.mubr.bf16.mxu0 %v943_v51  ;;  %v355_v55 = vsel %vm340_vm0, %v353_v49, %v354_v52  ;;  %v2785_v57 = vpack.c.bf16 %v352_v53, %v349_v48  ;;  %v625_v3 = vrot.slane %v287_v19, 2  ;;  %v296_v5 = vunpack.c.l.bf16 %v2802_v1  ;;  %v2831_v19 = vld [vmem:[%s2690_s20 + $0x3c] sm:$0x1] }
  0x1c   : > { %2196 = vmatpush3.bf16.msra.mxu1 %v2516_v10  ;;  %v944_v59 = vpack.c.bf16 %v355_v55, %v352_v53  ;;  %v1902_v6 = vcombine.low %v2794_v61, %v2802_v1  ;;  %v356_v8 = vrot.slane %v294_v63, 1  ;;  %v357_v9 = vrot.slane %v295_v0, 1  ;;  %v2529_v52 = vld [vmem:[%s3180_s1 + $0x158] sm:$0xff]  }
  0x1d   : > { %2292 = vmatpush3.bf16.msra.mxu0 %v2517_v11  ;;  %2197 = vmatprep.subr.bf16.mxu1 %v2518_v27  ;;  %v297_v10 = vunpack.c.l.bf16 %v2810_v4  ;;  %v2824_v11 = vld [vmem:[%s2690_s20 + $0x38] sm:$0xf]  ;;  %v627_v15 = vrot.slane %v288_v26, 2  ;;  %v359_v18 = vrot.slane %v296_v5, 1  ;;  %v628_v24 = vrot.slane %v289_v30, 2  ;;  %v2542_v4 = vld [vmem:[%s3180_s1 + $0x88] sm:$0xff]  }
  0x1e   : > { %2293 = vmatprep.subr.bf16.mxu0 %v2519_v32  ;;  %v298_v22 = vunpack.c.l.bf16 %v2824_v11  ;;  %v358_v26 = vsel %vm340_vm0, %v356_v8, %v357_v9  ;;  %v300_v35 = vunpack.c.l.bf16 %v2835_v23  ;;  %v301_v30 = vunpack.c.l.bf16 %v2847_v33  ;;  %v2534_v8 = vld [vmem:[%s3180_s1 + $0x30] sm:$0xff]  }
  0x1f   : > { %v360_v28 = vrot.slane %v297_v10, 1  ;;  %v2850_v38 = vpack.c.bf16 %v358_v26, %v355_v55  ;;  %v1903_v44 = vcombine.low %v2824_v11, %v2835_v23  ;;  %v2871_v51 = vsel %vm620_vm1, %v627_v15, %v628_v24  ;;  %v2535_v9 = vld [vmem:[%s3180_s1 + $0x170] sm:$0xff]  }
  0x20   : > { %2198 = vmatpush3.bf16.msra.mxu1 %v2518_v27  ;;  %v2527_v27 = vld [vmem:[%s3180_s1 + $0x150] sm:$0xff]   ;;  %v362_v21 = vrot.slane %v298_v22, 1  ;;  %v939_v43 = vrot.slane %v300_v35, 1  ;;  %v940_v49 = vrot.slane %v301_v30, 1  ;;  %v630_v15 = vrot.slane %v290_v31, 2  ;;  %v2537_v31 = vld [vmem:[%s3180_s1 + $0x178] sm:$0xff]  }
  0x21   : > { %2294 = vmatpush3.bf16.msra.mxu0 %v2519_v32  ;;  %2199 = vmatprep.subr.bf16.mxu1 %v2520_v47  ;;  %v299_v32 = vunpack.c.l.bf16 %v2831_v19  ;;  %v361_v39 = vsel %vm340_vm0, %v359_v18, %v360_v28  ;;  %v631_v18 = vrot.slane %v291_v34, 2  ;;  %v633_v24 = vrot.slane %v292_v42, 2 }
  0x22   : > { %2295 = vmatprep.subr.bf16.mxu0 %v2521_v50  ;;  %v945_v48 = vpack.c.bf16 %v361_v39, %v358_v26  ;;  %v2881_v55 = vsel %vm340_vm0, %v939_v43, %v940_v49  ;;  %v2536_v26 = vld [vmem:[%s3180_s1 + $0x38] sm:$0xff]   ;;  %v636_v29 = vrot.slane %v294_v63, 2  ;;  %v637_v34 = vrot.slane %v295_v0, 2  ;;  %v2540_v63 = vld [vmem:[%s3180_s1 + $0x180] sm:$0xff]  }
  0x23   : > { %v363_v40 = vrot.slane %v299_v32, 1  ;;  %v2926_v41 = vsel %vm620_vm1, %v630_v15, %v631_v18  ;;  %v640_v28 = vrot.slane %v297_v10, 2  ;;  %v1085_v43 = vrot.slane %v300_v35, 2  ;;  %v2544_v35 = vld [vmem:[%s3180_s1 + $0x90] sm:$0xff]   ;;  %v2549_v15 = vld [vmem:[%s3180_s1 + $0x1a0] sm:$0xff]  }
  0x24   : > { %2200 = vmatpush3.bf16.msra.mxu1 %v2520_v47  ;;  %v2528_v47 = vld [vmem:[%s3180_s1 + $0x18] sm:$0xff]   ;;  %v2949_v10 = vsel %vm620_vm1, %v636_v29, %v637_v34  ;;  %v622_v33 = vrot.slane %v285_v17, 2  ;;  %v2551_v34 = vld [vmem:[%s3180_s1 + $0x1a8] sm:$0xff]  }
  0x25   : > { %2296 = vmatpush3.bf16.msra.mxu0 %v2521_v50  ;;  %2209 = vmatprep.subr.bf16.mxu1 %v2522_v54  ;;  %v2868_v50 = vsel %vm620_vm1, %v624_v2, %v625_v3  ;;  %v364_v53 = vsel %vm340_vm0, %v362_v21, %v363_v40  ;;  %v2531_v2 = vld [vmem:[%s3180_s1 + $0x160] sm:$0xff]   ;;  %v2532_v3 = vld [vmem:[%s3180_s1 + $0x28] sm:$0xff]   ;;  %v643_v40 = vrot.slane %v299_v32, 2  ;;  %v621_v32 = vrot.slane %v284_v16, 2 }
  0x26   : > { %2305 = vmatprep.subr.bf16.mxu0 %v2523_v56  ;;  %v2995_v16 = vcombine.low %v2802_v1, %v2824_v11  ;;  %v2586_v1 = vld [vmem:[%s3180_s1 + $0x238] sm:$0xff]  }
  0x27   : > { %2202 = vmatmul.mubr.bf16.vlgmr.msra.gmra.mrb[0].mxu1 %v2785_v57  ;;  %v623_v17 = vsel %vm620_vm1, %v621_v32, %v622_v33  ;;  %v2577_v32 = vld [vmem:[%s3180_s1 + $0x200] sm:$0xff]   ;;  %v2578_v33 = vld [vmem:[%s3180_s1 + $0x208] sm:$0xff]  }
  0x28   : > { %2210 = vmatpush3.bf16.msra.mxu1 %v2522_v54  ;;  %2298 = vmatmul.mubr.bf16.vlgmr.msra.gmra.mrb[0].mxu0 %v944_v59  ;;  %v2878_v54 = vpack.c.bf16 %v364_v53, %v361_v39  ;;  %v1089_v59 = vpack.c.bf16 %v2871_v51, %v2868_v50  ;;  %v642_v39 = vrot.slane %v298_v22, 2  ;;  %v2967_v22 = vcombine.low %v2748_v36, %v2794_v61  ;;  %v2583_v36 = vld [vmem:[%s3180_s1 + $0x220] sm:$0xff]   ;;  %v2585_v61 = vld [vmem:[%s3180_s1 + $0x230] sm:$0xff]  }
  0x29   : > { %2306 = vmatpush3.bf16.msra.mxu0 %v2523_v56  ;;  %2211 = vmatprep.subr.bf16.mxu1 %v2524_v58  ;;  %v1840_v56 = vcombine.low %v2699_v12, %v2705_v14  ;;  %v2545_v12 = vld [vmem:[%s3180_s1 + $0x190] sm:$0xff]  }
  0x2a   : > { %2307 = vmatprep.subr.bf16.mxu0 %v2525_v60  ;;  %2205 = vmatprep.mubr.bf16.mxu1 %v2850_v38  ;;  %v2570_v14 = vld [vmem:[%s3180_s1 + $0xf0] sm:$0xff]  }
  0x2b   : > { %2301 = vmatprep.mubr.bf16.mxu0 %v945_v48  ;;  %v2543_v48 = vld [vmem:[%s3180_s1 + $0x188] sm:$0xff]  }
  0x2c   : > { %2212 = vmatpush3.bf16.msra.mxu1 %v2524_v58  ;;  %v946_v58 = vpack.c.bf16 %v2881_v55, %v364_v53 }
  0x2d   : > { %2308 = vmatpush3.bf16.msra.mxu0 %v2525_v60  ;;  %2213 = vmatprep.subr.bf16.mxu1 %v2526_v7  ;;  %v2530_v60 = vld [vmem:[%s3180_s1 + $0x20] sm:$0xff]  }
  0x2e   : > { %2309 = vmatprep.subr.bf16.mxu0 %v2527_v27 }
  0x2f   : > { %2206 = vmatmul.mubr.bf16.gmra.mrb[4].mxu1 %v2878_v54 }
  0x30   : > { %2214 = vmatpush3.bf16.msra.mxu1 %v2526_v7  ;;  %2302 = vmatmul.mubr.bf16.gmra.mrb[4].mxu0 %v946_v58  ;;  %v2533_v7 = vld [vmem:[%s3180_s1 + $0x168] sm:$0xff]   ;;  %v2546_v58 = vld [vmem:[%s3180_s1 + $0x98] sm:$0xff]  }
  0x31   : > { %2310 = vmatpush3.bf16.msra.mxu0 %v2527_v27  ;;  %2215 = vmatprep.subr.bf16.mxu1 %v2528_v47  ;;  %v634_v27 = vrot.slane %v293_v45, 2  ;;  %v639_v45 = vrot.slane %v296_v5, 2  ;;  %v1841_v5 = vcombine.low %v2715_v20, %v2727_v25  ;;  %v2572_v20 = vld [vmem:[%s3180_s1 + $0x1f0] sm:$0xff]   ;;  %v2582_v25 = vld [vmem:[%s3180_s1 + $0x218] sm:$0xff]  }
  0x32   : > { %2311 = vmatprep.subr.bf16.mxu0 %v2529_v52  ;;  %2225 = vmatprep.mubr.bf16.mxu1 %v1840_v56 }
  0x33   : > { %2321 = vmatprep.mubr.bf16.mxu0 %v1089_v59  ;;  %v2929_v42 = vsel %vm620_vm1, %v633_v24, %v634_v27  ;;  %v2952_v21 = vsel %vm620_vm1, %v639_v45, %v640_v28  ;;  %v2547_v59 = vld [vmem:[%s3180_s1 + $0x198] sm:$0xff]   ;;  %v2553_v45 = vld [vmem:[%s3180_s1 + $0xb0] sm:$0xff]  }
  0x34   : > { %2216 = vmatpush3.bf16.msra.mxu1 %v2528_v47  ;;  %v1090_v0 = vpack.c.bf16 %v2929_v42, %v2926_v41  ;;  %v1086_v47 = vrot.slane %v301_v30, 2  ;;  %v1091_v19 = vpack.c.bf16 %v2952_v21, %v2949_v10  ;;  %v2979_v30 = vsel %vm620_vm1, %v642_v39, %v643_v40  ;;  %v2554_v28 = vld [vmem:[%s3180_s1 + $0x1b0] sm:$0xff]   ;;  %v2560_v39 = vld [vmem:[%s3180_s1 + $0xc8] sm:$0xff]  }
  0x35   : > { %2312 = vmatpush3.bf16.msra.mxu0 %v2529_v52  ;;  %2217 = vmatprep.subr.bf16.mxu1 %v2530_v60  ;;  %v2985_v52 = vld [vmem:[%s2690_s20 + $0x48] sm:$0xf] }
  0x36   : > { %2313 = vmatprep.subr.bf16.mxu0 %v2531_v2  ;;  %v2982_v49 = vsel %vm620_vm1, %v1085_v43, %v1086_v47  ;;  %v1976_v13 = vcombine.low %v2835_v23, %v2985_v52  ;;  %v302_v56 = vunpack.c.l.bf16 %v2985_v52  ;;  %v2561_v40 = vld [vmem:[%s3180_s1 + $0x1c8] sm:$0xff]   ;;  %v3062_v43 = vpack.c.bf16 %v2949_v10, %v2929_v42  ;;  %v2564_v10 = vld [vmem:[%s3180_s1 + $0xd8] sm:$0xff]  }
  0x37   : > { %v1092_v53 = vpack.c.bf16 %v2982_v49, %v2979_v30  ;;  %v3076_v42 = vpack.c.bf16 %v2979_v30, %v2952_v21  ;;  %v2565_v47 = vld [vmem:[%s3180_s1 + $0x1d8] sm:$0xff]   ;;  %v2566_v21 = vld [vmem:[%s3180_s1 + $0xe0] sm:$0xff]  }
  0x38   : > { %2218 = vmatpush3.bf16.msra.mxu1 %v2530_v60  ;;  %v653_v60 = vpack.c.bf16 %v2868_v50, %v623_v17 }
  0x39   : > { %2314 = vmatpush3.bf16.msra.mxu0 %v2531_v2  ;;  %2219 = vmatprep.subr.bf16.mxu1 %v2532_v3  ;;  %v283_v2 = vld [vmem:[%s2690_s20 + $0x4c] sm:$0x1] }
  0x3a   : > { %2315 = vmatprep.subr.bf16.mxu0 %v2533_v7 }
  0x3c   : > { %2220 = vmatpush3.bf16.msra.mxu1 %v2532_v3  ;;  %v1372_v3 = vrot.slane %v302_v56, 1 }
  0x3d   : > { %2316 = vmatpush3.bf16.msra.mxu0 %v2533_v7  ;;  %2221 = vmatprep.subr.bf16.mxu1 %v2534_v8  ;;  %v1515_v7 = vrot.slane %v302_v56, 2 }
  0x3e   : > { %2317 = vmatprep.subr.bf16.mxu0 %v2535_v9 }
  0x40   : > { %2222 = vmatpush3.bf16.msra.mxu1 %v2534_v8  ;;  %v303_v8 = vunpack.c.l.bf16 %v283_v2 }
  0x41   : > { %2318 = vmatpush3.bf16.msra.mxu0 %v2535_v9  ;;  %2223 = vmatprep.subr.bf16.mxu1 %v2536_v26  ;;  %v2548_v9 = vld [vmem:[%s3180_s1 + $0xa0] sm:$0xff]  }
  0x42   : > { %2319 = vmatprep.subr.bf16.mxu0 %v2537_v31  ;;  %v1373_v50 = vrot.slane %v303_v8, 1  ;;  %v1516_v18 = vrot.slane %v303_v8, 2  ;;  %v2050_v8 = vld [vmem:[%s3182_s3] ss:$0 sm:$0xff] }
  0x44   : > { %2224 = vmatpush3.bf16.msra.mxu1 %v2536_v26  ;;  %v3017_v24 = vsel %vm340_vm0, %v1372_v3, %v1373_v50  ;;  %v3020_v27 = vsel %vm620_vm1, %v1515_v7, %v1516_v18  ;;  %v2550_v26 = vld [vmem:[%s3180_s1 + $0xa8] sm:$0xff]  }
  0x45   : > { %2320 = vmatpush3.bf16.msra.mxu0 %v2537_v31  ;;  %2233 = vmatprep.subr.bf16.mxu1 %v2539_v62  ;;  %v1376_v31 = vpack.c.bf16 %v3017_v24, %v2881_v55  ;;  %v1519_v29 = vpack.c.bf16 %v3020_v27, %v2982_v49  ;;  %v2049_v49 = vld [vmem:[%s3181_s2] ss:$0 sm:$0xff] }
  0x46   : > { %2329 = vmatprep.subr.bf16.mxu0 %v2540_v63 }
  0x47   : > { %2226 = vmatmul.mubr.bf16.vlgmr.msra.gmra.mrb[0].mxu1 %v1841_v5 }
  0x48   : > { %2234 = vmatpush3.bf16.msra.mxu1 %v2539_v62  ;;  %2322 = vmatmul.mubr.bf16.vlgmr.msra.gmra.mrb[0].mxu0 %v1090_v0  ;;  %v2556_v62 = vld [vmem:[%s3180_s1 + $0xb8] sm:$0xff]   ;;  %v2558_v0 = vld [vmem:[%s3180_s1 + $0xc0] sm:$0xff]  }
  0x49   : > { %2330 = vmatpush3.bf16.msra.mxu0 %v2540_v63  ;;  %2235 = vmatprep.subr.bf16.mxu1 %v2542_v4  ;;  %v2557_v63 = vld [vmem:[%s3180_s1 + $0x1b8] sm:$0xff]  }
  0x4a   : > { %2331 = vmatprep.subr.bf16.mxu0 %v2543_v48  ;;  %2229 = vmatprep.mubr.bf16.mxu1 %v2967_v22 }
  0x4b   : > { %2325 = vmatprep.mubr.bf16.mxu0 %v1091_v19  ;;  %v2569_v19 = vld [vmem:[%s3180_s1 + $0x1e8] sm:$0xff]  }
  0x4c   : > { %2236 = vmatpush3.bf16.msra.mxu1 %v2542_v4  ;;  %v3052_v4 = vpack.c.bf16 %v2926_v41, %v2871_v51  ;;  %v2562_v51 = vld [vmem:[%s3180_s1 + $0xd0] sm:$0xff]  }
  0x4d   : > { %2332 = vmatpush3.bf16.msra.mxu0 %v2543_v48  ;;  %2237 = vmatprep.subr.bf16.mxu1 %v2544_v35  ;;  %v2563_v41 = vld [vmem:[%s3180_s1 + $0x1d0] sm:$0xff]   ;;  %v2567_v48 = vld [vmem:[%s3180_s1 + $0x1e0] sm:$0xff]  }
  0x4e   : > { %2333 = vmatprep.subr.bf16.mxu0 %v2545_v12 }
  0x4f   : > { %2230 = vmatmul.mubr.bf16.gmra.mrb[4].mxu1 %v2995_v16 }
  0x50   : > { %2238 = vmatpush3.bf16.msra.mxu1 %v2544_v35  ;;  %2326 = vmatmul.mubr.bf16.gmra.mrb[4].mxu0 %v1092_v53  ;;  %v2581_v35 = vld [vmem:[%s3180_s1 + $0x210] sm:$0xff]  }
  0x51   : > { %2334 = vmatpush3.bf16.msra.mxu0 %v2545_v12  ;;  %2239 = vmatprep.subr.bf16.mxu1 %v2546_v58 }
  0x52   : > { %2335 = vmatprep.subr.bf16.mxu0 %v2547_v59  ;;  %2249 = vmatprep.mubr.bf16.mxu1 %v653_v60 }
  0x53   : > { %2345 = vmatprep.mubr.bf16.mxu0 %v1841_v5  ;;  %v2559_v5 = vld [vmem:[%s3180_s1 + $0x1c0] sm:$0xff]  }
  0x54   : > { %2240 = vmatpush3.bf16.msra.mxu1 %v2546_v58 }
  0x55   : > { %2336 = vmatpush3.bf16.msra.mxu0 %v2547_v59  ;;  %2241 = vmatprep.subr.bf16.mxu1 %v2548_v9 }
  0x56   : > { %2337 = vmatprep.subr.bf16.mxu0 %v2549_v15 }
  0x58   : > { %2242 = vmatpush3.bf16.msra.mxu1 %v2548_v9 }
  0x59   : > { %2338 = vmatpush3.bf16.msra.mxu0 %v2549_v15  ;;  %2243 = vmatprep.subr.bf16.mxu1 %v2550_v26 }
  0x5a   : > { %2339 = vmatprep.subr.bf16.mxu0 %v2551_v34 }
  0x5c   : > { %2244 = vmatpush3.bf16.msra.mxu1 %v2550_v26 }
  0x5d   : > { %2340 = vmatpush3.bf16.msra.mxu0 %v2551_v34  ;;  %2245 = vmatprep.subr.bf16.mxu1 %v2553_v45 }
  0x5e   : > { %2341 = vmatprep.subr.bf16.mxu0 %v2554_v28 }
  0x60   : > { %2246 = vmatpush3.bf16.msra.mxu1 %v2553_v45 }
  0x61   : > { %2342 = vmatpush3.bf16.msra.mxu0 %v2554_v28  ;;  %2247 = vmatprep.subr.bf16.mxu1 %v2556_v62 }
  0x62   : > { %2343 = vmatprep.subr.bf16.mxu0 %v2557_v63 }
  0x64   : > { %2248 = vmatpush3.bf16.msra.mxu1 %v2556_v62 }
  0x65   : > { %2344 = vmatpush3.bf16.msra.mxu0 %v2557_v63  ;;  %2257 = vmatprep.subr.bf16.mxu1 %v2558_v0 }
  0x66   : > { %2353 = vmatprep.subr.bf16.mxu0 %v2559_v5 }
  0x67   : > { %2250 = vmatmul.mubr.bf16.vlgmr.msra.gmra.mrb[0].mxu1 %v3052_v4 }
  0x68   : > { %2258 = vmatpush3.bf16.msra.mxu1 %v2558_v0  ;;  %2346 = vmatmul.mubr.bf16.vlgmr.msra.gmra.mrb[0].mxu0 %v2967_v22  ;;  %v2568_v22 = vld [vmem:[%s3180_s1 + $0xe8] sm:$0xff]  }
  0x69   : > { %2354 = vmatpush3.bf16.msra.mxu0 %v2559_v5  ;;  %2259 = vmatprep.subr.bf16.mxu1 %v2560_v39 }
  0x6a   : > { %2355 = vmatprep.subr.bf16.mxu0 %v2561_v40  ;;  %2253 = vmatprep.mubr.bf16.mxu1 %v3062_v43 }
  0x6b   : > { %2349 = vmatprep.mubr.bf16.mxu0 %v2995_v16 }
  0x6c   : > { %2260 = vmatpush3.bf16.msra.mxu1 %v2560_v39 }
  0x6d   : > { %2356 = vmatpush3.bf16.msra.mxu0 %v2561_v40  ;;  %2261 = vmatprep.subr.bf16.mxu1 %v2562_v51 }
  0x6e   : > { %2357 = vmatprep.subr.bf16.mxu0 %v2563_v41 }
  0x6f   : > { %2254 = vmatmul.mubr.bf16.gmra.mrb[4].mxu1 %v3076_v42 }
  0x70   : > { %2262 = vmatpush3.bf16.msra.mxu1 %v2562_v51  ;;  %2350 = vmatmul.mubr.bf16.gmra.mrb[4].mxu0 %v1976_v13 }
  0x71   : > { %2358 = vmatpush3.bf16.msra.mxu0 %v2563_v41  ;;  %2263 = vmatprep.subr.bf16.mxu1 %v2564_v10 }
  0x72   : > { %2359 = vmatprep.subr.bf16.mxu0 %v2565_v47  ;;  %2273 = vmatprep.mubr.bf16.mxu1 %v1900_v37  ;;  %v2573_v37 = vld [vmem:[%s3180_s1 + $0xf8] sm:$0xff]  }
  0x73   : > { %2369 = vmatprep.mubr.bf16.mxu0 %v2785_v57  ;;  %v2574_v57 = vld [vmem:[%s3180_s1 + $0x1f8] sm:$0xff]  }
  0x74   : > { %2264 = vmatpush3.bf16.msra.mxu1 %v2564_v10 }
  0x75   : > { %2360 = vmatpush3.bf16.msra.mxu0 %v2565_v47  ;;  %2265 = vmatprep.subr.bf16.mxu1 %v2566_v21 }
  0x76   : > { %2361 = vmatprep.subr.bf16.mxu0 %v2567_v48 }
  0x78   : > { %2266 = vmatpush3.bf16.msra.mxu1 %v2566_v21 }
  0x79   : > { %2362 = vmatpush3.bf16.msra.mxu0 %v2567_v48  ;;  %2267 = vmatprep.subr.bf16.mxu1 %v2568_v22 }
  0x7a   : > { %2363 = vmatprep.subr.bf16.mxu0 %v2569_v19 }
  0x7c   : > { %2268 = vmatpush3.bf16.msra.mxu1 %v2568_v22 }
  0x7d   : > { %2364 = vmatpush3.bf16.msra.mxu0 %v2569_v19  ;;  %2269 = vmatprep.subr.bf16.mxu1 %v2570_v14 }
  0x7e   : > { %2365 = vmatprep.subr.bf16.mxu0 %v2572_v20 }
  0x80   : > { %2270 = vmatpush3.bf16.msra.mxu1 %v2570_v14 }
  0x81   : > { %2366 = vmatpush3.bf16.msra.mxu0 %v2572_v20  ;;  %2271 = vmatprep.subr.bf16.mxu1 %v2573_v37 }
  0x82   : > { %2367 = vmatprep.subr.bf16.mxu0 %v2574_v57 }
  0x84   : > { %2272 = vmatpush3.bf16.msra.mxu1 %v2573_v37 }
  0x85   : > { %2368 = vmatpush3.bf16.msra.mxu0 %v2574_v57  ;;  %2401 = vmatprep.subr.bf16.mxu1 %v2577_v32 }
  0x86   : > { %2377 = vmatprep.subr.bf16.mxu0 %v2577_v32 }
  0x87   : > { %2274 = vmatmul.mubr.bf16.vlgmr.msra.gmra.mrb[0].mxu1 %v1901_v46  ;;  %v2584_v46 = vld [vmem:[%s3180_s1 + $0x228] sm:$0xff]  }
  0x88   : > { %2370 = vmatmul.mubr.bf16.vlgmr.msra.gmra.mrb[0].mxu0 %v2850_v38  ;;  %2409 = vmatpush3.bf16.msra.mxu1 %v2577_v32 }
  0x89   : > { %2378 = vmatpush3.bf16.msra.mxu0 %v2577_v32  ;;  %2402 = vmatprep.subr.bf16.mxu1 %v2578_v33 }
  0x8a   : > { %2379 = vmatprep.subr.bf16.mxu0 %v2578_v33  ;;  %2277 = vmatprep.mubr.bf16.mxu1 %v1902_v6 }
  0x8b   : > { %2373 = vmatprep.mubr.bf16.mxu0 %v2878_v54 }
  0x8c   : > { %2410 = vmatpush3.bf16.msra.mxu1 %v2578_v33 }
  0x8d   : > { %2380 = vmatpush3.bf16.msra.mxu0 %v2578_v33  ;;  %2403 = vmatprep.subr.bf16.mxu1 %v2581_v35 }
  0x8e   : > { %2381 = vmatprep.subr.bf16.mxu0 %v2581_v35 }
  0x8f   : > { %2278 = vmatmul.mubr.bf16.gmra.mrb[4].mxu1 %v1903_v44 }
  0x90   : > { %2374 = vmatmul.mubr.bf16.gmra.mrb[4].mxu0 %v1376_v31  ;;  %2411 = vmatpush3.bf16.msra.mxu1 %v2581_v35 }
  0x91   : > { %2382 = vmatpush3.bf16.msra.mxu0 %v2581_v35  ;;  %2404 = vmatprep.subr.bf16.mxu1 %v2582_v25 }
  0x92   : > { %2383 = vmatprep.subr.bf16.mxu0 %v2582_v25  ;;  %2393 = vmatprep.mubr.bf16.mxu0 %v3052_v4 }
  0x93   : > { %2397 = vmatprep.mubr.bf16.mxu1 %v3076_v42 }
  0x94   : > { %2412 = vmatpush3.bf16.msra.mxu1 %v2582_v25 }
  0x95   : > { %2384 = vmatpush3.bf16.msra.mxu0 %v2582_v25  ;;  %2405 = vmatprep.subr.bf16.mxu1 %v2583_v36 }
  0x96   : > { %2385 = vmatprep.subr.bf16.mxu0 %v2583_v36 }
  0x98   : > { %2413 = vmatpush3.bf16.msra.mxu1 %v2583_v36 }
  0x99   : > { %2386 = vmatpush3.bf16.msra.mxu0 %v2583_v36  ;;  %2406 = vmatprep.subr.bf16.mxu1 %v2584_v46 }
  0x9a   : > { %2387 = vmatprep.subr.bf16.mxu0 %v2584_v46 }
  0x9c   : > { %2414 = vmatpush3.bf16.msra.mxu1 %v2584_v46 }
  0x9d   : > { %2388 = vmatpush3.bf16.msra.mxu0 %v2584_v46  ;;  %2407 = vmatprep.subr.bf16.mxu1 %v2585_v61 }
  0x9e   : > { %2389 = vmatprep.subr.bf16.mxu0 %v2585_v61 }
  0xa0   : > { %2415 = vmatpush3.bf16.msra.mxu1 %v2585_v61 }
  0xa1   : > { %2390 = vmatpush3.bf16.msra.mxu0 %v2585_v61  ;;  %2408 = vmatprep.subr.bf16.mxu1 %v2586_v1 }
  0xa2   : > { %2391 = vmatprep.subr.bf16.mxu0 %v2586_v1 }
  0xa4   : > { %2416 = vmatpush3.bf16.msra.mxu1 %v2586_v1 }
  0xa5   : > { %2392 = vmatpush3.bf16.msra.mxu0 %v2586_v1 }
  0xa7   : > { %2398 = vmatmul.mubr.bf16.vlgmr.msra.gmra.mrb[8].mxu1 %v1519_v29 }
  0xa8   : > { %2394 = vmatmul.mubr.bf16.vlgmr.msra.gmra.mrb[0].mxu0 %v3062_v43 }
 0x15a   : > { %v2275_v6 = vpop.f32.mrb[0].mxu1 }
 0x15b   : > { %v898_v11 = vpop.f32.mrb[1].mxu1 }
 0x15c   : > { %v2276_v23 = vpop.f32.mrb[2].mxu1 }
 0x15d   : > { %v901_v38 = vpop.f32.mrb[3].mxu1 }
 0x162   : > { %v2279_v44 = vpop.f32.mrb[4].mxu1 }
 0x163   : > { %v2375_v54 = vpop.f32.mrb[4].mxu0  ;;  %v914_v55 = vpop.f32.mrb[5].mxu1 }
 0x164   : > { %v2421_v30 = vadd.f32 %v2375_v54, %v2279_v44  ;;  %v1492_v52 = vpop.f32.mrb[5].mxu0  ;;  %v2280_v12 = vpop.f32.mrb[6].mxu1 }
 0x165   : > { %v2423_v13 = vadd.f32 %v1492_v52, %v914_v55  ;;  %v2376_v16 = vpop.f32.mrb[6].mxu0  ;;  %v917_v17 = vpop.f32.mrb[7].mxu1 }
 0x166   : > { %v2425_v53 = vadd.f32 %v2376_v16, %v2280_v12  ;;  %v1495_v56 = vpop.f32.mrb[7].mxu0 }
 0x167   : > { %v2427_v58 = vadd.f32 %v1495_v56, %v917_v17 }
 0x17a   : > { %v2399_v59 = vpop.f32.mrb[8].mxu1 }
 0x17b   : > { %v2395_v60 = vpop.f32.mrb[0].mxu0  ;;  %v2422_v2 = vadd.f32 %v2421_v30, %v2399_v59  ;;  %v1635_v3 = vpop.f32.mrb[9].mxu1 }
 0x17c   : > { %v2417_v7 = vadd.f32 %v2395_v60, %v2275_v6  ;;  %v1619_v9 = vpop.f32.mrb[1].mxu0  ;;  %v2424_v15 = vadd.f32 %v2423_v13, %v1635_v3  ;;  %v2400_v50 = vpop.f32.mrb[10].mxu1 }
 0x17d   : > { %v1671_v18 = vmul.f32 %v2422_v2, %v2049_v49  ;;  %v2418_v24 = vadd.f32 %v1619_v9, %v898_v11  ;;  %v2396_v27 = vpop.f32.mrb[2].mxu0  ;;  %v2426_v26 = vadd.f32 %v2425_v53, %v2400_v50  ;;  %v1638_v31 = vpop.f32.mrb[11].mxu1 }
 0x17e   : > { %v1667_v29 = vmul.f32 %v2417_v7, %v2049_v49  ;;  %v1669_v34 = vmul.f32 %v2424_v15, %v2049_v49  ;;  %v2419_v45 = vadd.f32 %v2396_v27, %v2276_v23  ;;  %v1622_v28 = vpop.f32.mrb[3].mxu0  ;;  %v2428_v62 = vadd.f32 %v2427_v58, %v1638_v31 }
 0x17f   : > { %v1686_v63 = vadd.f32 %v2050_v8, %v1671_v18  ;;  %v1665_v0 = vmul.f32 %v2418_v24, %v2049_v49  ;;  %v1672_v5 = vmul.f32 %v2426_v26, %v2049_v49  ;;  %v2420_v4 = vadd.f32 %v1622_v28, %v901_v38 }
 0x180   : > { %v1682_v39 = vadd.f32 %v2050_v8, %v1667_v29  ;;  %v1684_v40 = vadd.f32 %v2050_v8, %v1669_v34  ;;  %v1668_v43 = vmul.f32 %v2419_v45, %v2049_v49  ;;  %v1670_v51 = vmul.f32 %v2428_v62, %v2049_v49 }
 0x181   : > { %v1680_v41 = vadd.f32 %v2050_v8, %v1665_v0  ;;  %v1687_v42 = vadd.f32 %v2050_v8, %v1672_v5  ;;  %v1666_v10 = vmul.f32 %v2420_v4, %v2049_v49  ;;  %v1694_v48 = vmax.f32 %v1686_v63, 0.0 }
 0x182   : > { %v1683_v47 = vadd.f32 %v2050_v8, %v1668_v43  ;;  %v1685_v21 = vadd.f32 %v2050_v8, %v1670_v51  ;;  %v1690_v14 = vmax.f32 %v1682_v39, 0.0  ;;  %v1692_v20 = vmax.f32 %v1684_v40, 0.0 }
 0x183   : > { %v1695_v22 = vmax.f32 %v1687_v42, 0.0  ;;  %v1681_v19 = vadd.f32 %v2050_v8, %v1666_v10  ;;  %v1688_v32 = vmax.f32 %v1680_v41, 0.0 }
 0x184   : > { %v1691_v37 = vmax.f32 %v1683_v47, 0.0  ;;  %v1693_v57 = vmax.f32 %v1685_v21, 0.0 }
 0x185   : > { %v2072_v33 = vpack.c.bf16 %v1695_v22, %v1694_v48  ;;  %v1689_v35 = vmax.f32 %v1681_v19, 0.0 }
 0x186   : > { %v2062_v25 = vpack.c.bf16 %v1691_v37, %v1690_v14  ;;  %v2067_v36 = vpack.c.bf16 %v1693_v57, %v1692_v20 }
 0x187   : > { %2076 = vst [vmem:[%s262_s22 + $0x18] sm:$0xff] %v2072_v33   ;;  %v2057_v46 = vpack.c.bf16 %v1689_v35, %v1688_v32 }
 0x188   : > { %2074 = vst [vmem:[%s262_s22 + $0x8] sm:$0xff] %v2062_v25   ;;  %2075 = vst [vmem:[%s262_s22 + $0x10] sm:$0xff] %v2067_v36  }
 0x189   : > { %2058 = vst [vmem:[%s262_s22] sm:$0xff] %v2057_v46  }
 0x18a PF: > { %s14_s17 = sadd.s32 1, %s2609_s17   ;;  %s3184_s15 = smov %s2605_s16 }
 0x18b   : > { %p11_p5 = scmp.ge.s32.totalorder %s14_s17, 4   ;;  %s3185_s16 = smov %s3187_s18 }
 0x18d   :  { %13 = sbr.rel (!%p11_p5) target bundleno = 2 (0x2), region = 83 }

// kernel: resnet18_forward.26
= control target key start
LH: loop header
LB: loop body
LE: loop exit
PB: predicated region body
PF: predicated region fallthrough
CT: control target
= control target key end

     0   :  { %s2763_s18 = smov 0   ;;  %s2765_s19 = smov 0   ;;  %s3313_s0 = inlined_call_operand.vmem [shape: bf16[2,10,10,128], index: 0, kind: input, shape index: {}]   ;;  %s3314_s1 = inlined_call_operand.vmem [shape: bf16[9,128,128], index: 1, kind: input, shape index: {}]   ;;  %s3315_s2 = inlined_call_operand.vmem [shape: f32[1,128], index: 2, kind: input, shape index: {}]   ;;  %s3316_s3 = inlined_call_operand.vmem [shape: f32[1,128], index: 3, kind: input, shape index: {}]   ;;  %s3317_s4 = inlined_call_operand.vmem [shape: bf16[2,8,8,128], index: 4, kind: input, shape index: {}]   ;;  %s3318_s5 = inlined_call_operand.vmem [shape: bf16[2,8,8,128], index: 5, kind: output, shape index: {}]  }
   0x1   :  { %s2767_s20 = smov 0  }
   0x2 LB: > { %s27_s21 = sadd.s32 1, %s2727_s19  ;;  %p1936_p0 = scmp.ge.s32.totalorder %s2731_s20, 1  ;;  %s2731_s20 = sphi %s2767_s20, %s15_s20   ;;  %s2727_s19 = sphi %s2765_s19, %s3320_s19   ;;  %s2723_s18 = sphi %s2763_s18, %s3319_s18  }
   0x3   : > { %p29_p1 = scmp.ge.s32.totalorder %s27_s21, 2  ;;  %p241_p2 = scmp.lt.s32.totalorder %s2731_s20, 3 }
   0x5   : > { %s3322_s21 = smov (%p29_p1, %s27_s21), 0  ;;  %p242_p3 = pnand %p1936_p0, %p241_p2 }
   0x6   : > { %v2628_v0 = vld [vmem:[%s3314_s1 + $0x40] sm:$0xff] (!%p242_p3)   ;;  %p290_p4 = scmp.lt.s32.totalorder (!%p242_p3), %s2723_s18, 1  ;;  %v2630_v2 = vld [vmem:[%s3314_s1 + $0x48] sm:$0xff] (!%p242_p3)   ;;  %v2632_v4 = vld [vmem:[%s3314_s1 + $0x50] sm:$0xff] (!%p242_p3)   ;;  %vm398_vm0 = vcmask (!%p242_p3), 1046528   ;;  %vm678_vm1 = vcmask (!%p242_p3), 1045504  }
   0x7   : > { %245 = sbr.rel (%p242_p3) target bundleno = 396 (0x18c), region = 40  ;;  %v2629_v1 = vld [vmem:[%s3314_s1 + $0x100] sm:$0xff] (!%p242_p3)   ;;  %2307 = vmatprep.subr.bf16.mxu1 (!%p242_p3), %v2628_v0  ;;  %v2631_v3 = vld [vmem:[%s3314_s1 + $0x108] sm:$0xff] (!%p242_p3)   ;;  %v2633_v5 = vld [vmem:[%s3314_s1 + $0x110] sm:$0xff] (!%p242_p3)  }
   0x8   : > { %2403 = vmatprep.subr.bf16.mxu0 (!%p242_p3), %v2629_v1  ;;  %2308 = vmatpush3.bf16.msra.mxu1 (!%p242_p3), %v2628_v0  ;;  %v2634_v6 = vld [vmem:[%s3314_s1 + $0x58] sm:$0xff] (!%p242_p3)   ;;  %v2636_v8 = vld [vmem:[%s3314_s1 + $0x60] sm:$0xff] (!%p242_p3)   ;;  %v2638_v10 = vld [vmem:[%s3314_s1 + $0x68] sm:$0xff] (!%p242_p3)  }
   0x9   : > { %2404 = vmatpush3.bf16.msra.mxu0 (!%p242_p3), %v2629_v1  ;;  %2309 = vmatprep.subr.bf16.mxu1 (!%p242_p3), %v2630_v2  ;;  %v2635_v7 = vld [vmem:[%s3314_s1 + $0x118] sm:$0xff] (!%p242_p3)   ;;  %v2637_v9 = vld [vmem:[%s3314_s1 + $0x120] sm:$0xff] (!%p242_p3)   ;;  %v2639_v11 = vld [vmem:[%s3314_s1 + $0x128] sm:$0xff] (!%p242_p3)  }
   0xa   : > { %2405 = vmatprep.subr.bf16.mxu0 (!%p242_p3), %v2631_v3  ;;  %v2640_v27 = vld [vmem:[%s3314_s1 + $0x70] sm:$0xff] (!%p242_p3)   ;;  %v2642_v47 = vld [vmem:[%s3314_s1 + $0x78] sm:$0xff] (!%p242_p3)   ;;  %v2644_v54 = vld [vmem:[%s3314_s1] sm:$0xff] (!%p242_p3)  }
   0xb   : > { %v2641_v32 = vld [vmem:[%s3314_s1 + $0x130] sm:$0xff] (!%p242_p3)   ;;  %v2643_v50 = vld [vmem:[%s3314_s1 + $0x138] sm:$0xff] (!%p242_p3)   ;;  %v2645_v56 = vld [vmem:[%s3314_s1 + $0x140] sm:$0xff] (!%p242_p3)  }
   0xc   : > { %2310 = vmatpush3.bf16.msra.mxu1 (!%p242_p3), %v2630_v2  ;;  %v2646_v58 = vld [vmem:[%s3314_s1 + $0x8] sm:$0xff] (!%p242_p3)  }
   0xd   : > { %2406 = vmatpush3.bf16.msra.mxu0 (!%p242_p3), %v2631_v3  ;;  %2311 = vmatprep.subr.bf16.mxu1 (!%p242_p3), %v2632_v4  ;;  %v2647_v60 = vld [vmem:[%s3314_s1 + $0x148] sm:$0xff] (!%p242_p3)  }
   0xe   : > { %s3324_s18 = smov (!%p290_p4, %s2723_s18), 1  ;;  %2407 = vmatprep.subr.bf16.mxu0 %v2633_v5 }
   0xf   : > { %s2603_s13 = smul.u32 80, %s3324_s18  ;;  %s2155_s26 = sshll.u32 %s3324_s18, 5 }
  0x10   : > { %2312 = vmatpush3.bf16.msra.mxu1 %v2632_v4  ;;  %s320_s10 = scalar_lea.vmem %s3318_s5, %s2155_s26 }
  0x11   : > { %2408 = vmatpush3.bf16.msra.mxu0 %v2633_v5  ;;  %2313 = vmatprep.subr.bf16.mxu1 %v2634_v6  ;;  %s2817_s24 = scalar_lea.vmem %s3313_s0, %s2603_s13 }
  0x12   : > { %2409 = vmatprep.subr.bf16.mxu0 %v2635_v7  ;;  %v2826_v12 = vld [vmem:[%s2817_s24] sm:$0xf]  ;;  %v2829_v13 = vld [vmem:[%s2817_s24 + $0x4] sm:$0x1]  ;;  %v2832_v14 = vld [vmem:[%s2817_s24 + $0x8] sm:$0xf] }
  0x13   : > { %v2835_v15 = vld [vmem:[%s2817_s24 + $0xc] sm:$0x1]  ;;  %v342_v16 = vunpack.c.l.bf16 %v2826_v12  ;;  %v343_v17 = vunpack.c.l.bf16 %v2829_v13  ;;  %v344_v18 = vunpack.c.l.bf16 %v2832_v14  ;;  %v2842_v20 = vld [vmem:[%s2817_s24 + $0x10] sm:$0xf]  ;;  %v2845_v21 = vld [vmem:[%s2817_s24 + $0x14] sm:$0x1] }
  0x14   : > { %2314 = vmatpush3.bf16.msra.mxu1 %v2634_v6  ;;  %v345_v19 = vunpack.c.l.bf16 %v2835_v15  ;;  %v2854_v25 = vld [vmem:[%s2817_s24 + $0x18] sm:$0xf]  ;;  %v346_v26 = vunpack.c.l.bf16 %v2842_v20  ;;  %v2863_v29 = vld [vmem:[%s2817_s24 + $0x1c] sm:$0x1]  ;;  %v347_v30 = vunpack.c.l.bf16 %v2845_v21  ;;  %v2875_v36 = vld [vmem:[%s2817_s24 + $0x20] sm:$0xf]  ;;  %v2002_v37 = vcombine.low %v2832_v14, %v2842_v20 }
  0x15   : > { %2410 = vmatpush3.bf16.msra.mxu0 %v2635_v7  ;;  %2315 = vmatprep.subr.bf16.mxu1 %v2636_v8  ;;  %v399_v22 = vrot.slane %v342_v16, 1  ;;  %v400_v23 = vrot.slane %v343_v17, 1  ;;  %v402_v24 = vrot.slane %v344_v18, 1  ;;  %v348_v31 = vunpack.c.l.bf16 %v2854_v25  ;;  %v2885_v41 = vld [vmem:[%s2817_s24 + $0x24] sm:$0x1]  ;;  %v2648_v7 = vld [vmem:[%s3314_s1 + $0x10] sm:$0xff]  }
  0x16   : > { %2411 = vmatprep.subr.bf16.mxu0 %v2637_v9  ;;  %v403_v28 = vrot.slane %v345_v19, 1  ;;  %v349_v34 = vunpack.c.l.bf16 %v2863_v29  ;;  %v405_v35 = vrot.slane %v346_v26, 1  ;;  %v406_v39 = vrot.slane %v347_v30, 1  ;;  %v2921_v61 = vld [vmem:[%s2817_s24 + $0x28] sm:$0xf] }
  0x17   : > { %v401_v33 = vsel %vm398_vm0, %v399_v22, %v400_v23  ;;  %v408_v40 = vrot.slane %v348_v31, 1  ;;  %v350_v42 = vunpack.c.l.bf16 %v2875_v36  ;;  %v351_v45 = vunpack.c.l.bf16 %v2885_v41  ;;  %v2924_v62 = vld [vmem:[%s2817_s24 + $0x2c] sm:$0x1]  ;;  %v2929_v1 = vld [vmem:[%s2817_s24 + $0x30] sm:$0xf] }
  0x18   : > { %2316 = vmatpush3.bf16.msra.mxu1 %v2636_v8  ;;  %v404_v38 = vsel %vm398_vm0, %v402_v24, %v403_v28  ;;  %v409_v44 = vrot.slane %v349_v34, 1  ;;  %v2003_v46 = vcombine.low %v2854_v25, %v2875_v36  ;;  %v407_v48 = vsel %vm398_vm0, %v405_v35, %v406_v39  ;;  %v2937_v4 = vld [vmem:[%s2817_s24 + $0x34] sm:$0x1]  ;;  %v2962_v23 = vld [vmem:[%s2817_s24 + $0x40] sm:$0xf] }
  0x19   : > { %2412 = vmatpush3.bf16.msra.mxu0 %v2637_v9  ;;  %2317 = vmatprep.subr.bf16.mxu1 %v2638_v10  ;;  %v431_v43 = vpack.c.bf16 %v404_v38, %v401_v33  ;;  %v411_v49 = vrot.slane %v350_v42, 1  ;;  %v1001_v51 = vpack.c.bf16 %v407_v48, %v404_v38  ;;  %v412_v52 = vrot.slane %v351_v45, 1  ;;  %v2974_v33 = vld [vmem:[%s2817_s24 + $0x44] sm:$0x1] }
  0x1a   : > { %2413 = vmatprep.subr.bf16.mxu0 %v2639_v11  ;;  %v410_v53 = vsel %vm398_vm0, %v408_v40, %v409_v44  ;;  %v352_v63 = vunpack.c.l.bf16 %v2921_v61  ;;  %v353_v0 = vunpack.c.l.bf16 %v2924_v62  ;;  %v682_v2 = vrot.slane %v344_v18, 2  ;;  %v2661_v62 = vld [vmem:[%s3314_s1 + $0x80] sm:$0xff]  }
  0x1b   : > { %2323 = vmatprep.mubr.bf16.mxu1 %v431_v43  ;;  %2419 = vmatprep.mubr.bf16.mxu0 %v1001_v51  ;;  %v413_v55 = vsel %vm398_vm0, %v411_v49, %v412_v52  ;;  %v2912_v57 = vpack.c.bf16 %v410_v53, %v407_v48  ;;  %v683_v3 = vrot.slane %v345_v19, 2  ;;  %v354_v5 = vunpack.c.l.bf16 %v2929_v1  ;;  %v2958_v19 = vld [vmem:[%s2817_s24 + $0x3c] sm:$0x1] }
  0x1c   : > { %2318 = vmatpush3.bf16.msra.mxu1 %v2638_v10  ;;  %v1002_v59 = vpack.c.bf16 %v413_v55, %v410_v53  ;;  %v2004_v6 = vcombine.low %v2921_v61, %v2929_v1  ;;  %v414_v8 = vrot.slane %v352_v63, 1  ;;  %v415_v9 = vrot.slane %v353_v0, 1  ;;  %v2651_v52 = vld [vmem:[%s3314_s1 + $0x158] sm:$0xff]  }
  0x1d   : > { %2414 = vmatpush3.bf16.msra.mxu0 %v2639_v11  ;;  %2319 = vmatprep.subr.bf16.mxu1 %v2640_v27  ;;  %v355_v10 = vunpack.c.l.bf16 %v2937_v4  ;;  %v2951_v11 = vld [vmem:[%s2817_s24 + $0x38] sm:$0xf]  ;;  %v685_v15 = vrot.slane %v346_v26, 2  ;;  %v417_v18 = vrot.slane %v354_v5, 1  ;;  %v686_v24 = vrot.slane %v347_v30, 2  ;;  %v2664_v4 = vld [vmem:[%s3314_s1 + $0x88] sm:$0xff]  }
  0x1e   : > { %2415 = vmatprep.subr.bf16.mxu0 %v2641_v32  ;;  %v356_v22 = vunpack.c.l.bf16 %v2951_v11  ;;  %v416_v26 = vsel %vm398_vm0, %v414_v8, %v415_v9  ;;  %v358_v35 = vunpack.c.l.bf16 %v2962_v23  ;;  %v359_v30 = vunpack.c.l.bf16 %v2974_v33  ;;  %v2656_v8 = vld [vmem:[%s3314_s1 + $0x30] sm:$0xff]  }
  0x1f   : > { %v418_v28 = vrot.slane %v355_v10, 1  ;;  %v2977_v38 = vpack.c.bf16 %v416_v26, %v413_v55  ;;  %v2005_v44 = vcombine.low %v2951_v11, %v2962_v23  ;;  %v2998_v51 = vsel %vm678_vm1, %v685_v15, %v686_v24  ;;  %v2657_v9 = vld [vmem:[%s3314_s1 + $0x170] sm:$0xff]  }
  0x20   : > { %2320 = vmatpush3.bf16.msra.mxu1 %v2640_v27  ;;  %v2649_v27 = vld [vmem:[%s3314_s1 + $0x150] sm:$0xff]   ;;  %v420_v21 = vrot.slane %v356_v22, 1  ;;  %v997_v43 = vrot.slane %v358_v35, 1  ;;  %v998_v49 = vrot.slane %v359_v30, 1  ;;  %v688_v15 = vrot.slane %v348_v31, 2  ;;  %v2659_v31 = vld [vmem:[%s3314_s1 + $0x178] sm:$0xff]  }
  0x21   : > { %2416 = vmatpush3.bf16.msra.mxu0 %v2641_v32  ;;  %2321 = vmatprep.subr.bf16.mxu1 %v2642_v47  ;;  %v357_v32 = vunpack.c.l.bf16 %v2958_v19  ;;  %v419_v39 = vsel %vm398_vm0, %v417_v18, %v418_v28  ;;  %v689_v18 = vrot.slane %v349_v34, 2  ;;  %v691_v24 = vrot.slane %v350_v42, 2 }
  0x22   : > { %2417 = vmatprep.subr.bf16.mxu0 %v2643_v50  ;;  %v1003_v48 = vpack.c.bf16 %v419_v39, %v416_v26  ;;  %v3008_v55 = vsel %vm398_vm0, %v997_v43, %v998_v49  ;;  %v2658_v26 = vld [vmem:[%s3314_s1 + $0x38] sm:$0xff]   ;;  %v694_v29 = vrot.slane %v352_v63, 2  ;;  %v695_v34 = vrot.slane %v353_v0, 2  ;;  %v2662_v63 = vld [vmem:[%s3314_s1 + $0x180] sm:$0xff]  }
  0x23   : > { %v421_v40 = vrot.slane %v357_v32, 1  ;;  %v3053_v41 = vsel %vm678_vm1, %v688_v15, %v689_v18  ;;  %v698_v28 = vrot.slane %v355_v10, 2  ;;  %v1143_v43 = vrot.slane %v358_v35, 2  ;;  %v2666_v35 = vld [vmem:[%s3314_s1 + $0x90] sm:$0xff]   ;;  %v2671_v15 = vld [vmem:[%s3314_s1 + $0x1a0] sm:$0xff]  }
  0x24   : > { %2322 = vmatpush3.bf16.msra.mxu1 %v2642_v47  ;;  %v2650_v47 = vld [vmem:[%s3314_s1 + $0x18] sm:$0xff]   ;;  %v3076_v10 = vsel %vm678_vm1, %v694_v29, %v695_v34  ;;  %v680_v33 = vrot.slane %v343_v17, 2  ;;  %v2673_v34 = vld [vmem:[%s3314_s1 + $0x1a8] sm:$0xff]  }
  0x25   : > { %2418 = vmatpush3.bf16.msra.mxu0 %v2643_v50  ;;  %2331 = vmatprep.subr.bf16.mxu1 %v2644_v54  ;;  %v2995_v50 = vsel %vm678_vm1, %v682_v2, %v683_v3  ;;  %v422_v53 = vsel %vm398_vm0, %v420_v21, %v421_v40  ;;  %v2653_v2 = vld [vmem:[%s3314_s1 + $0x160] sm:$0xff]   ;;  %v2654_v3 = vld [vmem:[%s3314_s1 + $0x28] sm:$0xff]   ;;  %v701_v40 = vrot.slane %v357_v32, 2  ;;  %v679_v32 = vrot.slane %v342_v16, 2 }
  0x26   : > { %2427 = vmatprep.subr.bf16.mxu0 %v2645_v56  ;;  %v3122_v16 = vcombine.low %v2929_v1, %v2951_v11  ;;  %v2708_v1 = vld [vmem:[%s3314_s1 + $0x238] sm:$0xff]  }
  0x27   : > { %2324 = vmatmul.mubr.bf16.vlgmr.msra.gmra.mrb[0].mxu1 %v2912_v57  ;;  %v681_v17 = vsel %vm678_vm1, %v679_v32, %v680_v33  ;;  %v2699_v32 = vld [vmem:[%s3314_s1 + $0x200] sm:$0xff]   ;;  %v2700_v33 = vld [vmem:[%s3314_s1 + $0x208] sm:$0xff]  }
  0x28   : > { %2332 = vmatpush3.bf16.msra.mxu1 %v2644_v54  ;;  %2420 = vmatmul.mubr.bf16.vlgmr.msra.gmra.mrb[0].mxu0 %v1002_v59  ;;  %v3005_v54 = vpack.c.bf16 %v422_v53, %v419_v39  ;;  %v1147_v59 = vpack.c.bf16 %v2998_v51, %v2995_v50  ;;  %v700_v39 = vrot.slane %v356_v22, 2  ;;  %v3094_v22 = vcombine.low %v2875_v36, %v2921_v61  ;;  %v2705_v36 = vld [vmem:[%s3314_s1 + $0x220] sm:$0xff]   ;;  %v2707_v61 = vld [vmem:[%s3314_s1 + $0x230] sm:$0xff]  }
  0x29   : > { %2428 = vmatpush3.bf16.msra.mxu0 %v2645_v56  ;;  %2333 = vmatprep.subr.bf16.mxu1 %v2646_v58  ;;  %v1942_v56 = vcombine.low %v2826_v12, %v2832_v14  ;;  %v2667_v12 = vld [vmem:[%s3314_s1 + $0x190] sm:$0xff]  }
  0x2a   : > { %2429 = vmatprep.subr.bf16.mxu0 %v2647_v60  ;;  %2327 = vmatprep.mubr.bf16.mxu1 %v2977_v38  ;;  %v2692_v14 = vld [vmem:[%s3314_s1 + $0xf0] sm:$0xff]  }
  0x2b   : > { %2423 = vmatprep.mubr.bf16.mxu0 %v1003_v48  ;;  %v2665_v48 = vld [vmem:[%s3314_s1 + $0x188] sm:$0xff]  }
  0x2c   : > { %2334 = vmatpush3.bf16.msra.mxu1 %v2646_v58  ;;  %v1004_v58 = vpack.c.bf16 %v3008_v55, %v422_v53 }
  0x2d   : > { %2430 = vmatpush3.bf16.msra.mxu0 %v2647_v60  ;;  %2335 = vmatprep.subr.bf16.mxu1 %v2648_v7  ;;  %v2652_v60 = vld [vmem:[%s3314_s1 + $0x20] sm:$0xff]  }
  0x2e   : > { %2431 = vmatprep.subr.bf16.mxu0 %v2649_v27 }
  0x2f   : > { %2328 = vmatmul.mubr.bf16.gmra.mrb[4].mxu1 %v3005_v54 }
  0x30   : > { %2336 = vmatpush3.bf16.msra.mxu1 %v2648_v7  ;;  %2424 = vmatmul.mubr.bf16.gmra.mrb[4].mxu0 %v1004_v58  ;;  %v2655_v7 = vld [vmem:[%s3314_s1 + $0x168] sm:$0xff]   ;;  %v2668_v58 = vld [vmem:[%s3314_s1 + $0x98] sm:$0xff]  }
  0x31   : > { %2432 = vmatpush3.bf16.msra.mxu0 %v2649_v27  ;;  %2337 = vmatprep.subr.bf16.mxu1 %v2650_v47  ;;  %v692_v27 = vrot.slane %v351_v45, 2  ;;  %v697_v45 = vrot.slane %v354_v5, 2  ;;  %v1943_v5 = vcombine.low %v2842_v20, %v2854_v25  ;;  %v2694_v20 = vld [vmem:[%s3314_s1 + $0x1f0] sm:$0xff]   ;;  %v2704_v25 = vld [vmem:[%s3314_s1 + $0x218] sm:$0xff]  }
  0x32   : > { %2433 = vmatprep.subr.bf16.mxu0 %v2651_v52  ;;  %2347 = vmatprep.mubr.bf16.mxu1 %v1942_v56 }
  0x33   : > { %2443 = vmatprep.mubr.bf16.mxu0 %v1147_v59  ;;  %v3056_v42 = vsel %vm678_vm1, %v691_v24, %v692_v27  ;;  %v3079_v21 = vsel %vm678_vm1, %v697_v45, %v698_v28  ;;  %v2669_v59 = vld [vmem:[%s3314_s1 + $0x198] sm:$0xff]   ;;  %v2675_v45 = vld [vmem:[%s3314_s1 + $0xb0] sm:$0xff]  }
  0x34   : > { %2338 = vmatpush3.bf16.msra.mxu1 %v2650_v47  ;;  %v1148_v0 = vpack.c.bf16 %v3056_v42, %v3053_v41  ;;  %v1144_v47 = vrot.slane %v359_v30, 2  ;;  %v1149_v19 = vpack.c.bf16 %v3079_v21, %v3076_v10  ;;  %v3106_v30 = vsel %vm678_vm1, %v700_v39, %v701_v40  ;;  %v2676_v28 = vld [vmem:[%s3314_s1 + $0x1b0] sm:$0xff]   ;;  %v2682_v39 = vld [vmem:[%s3314_s1 + $0xc8] sm:$0xff]  }
  0x35   : > { %2434 = vmatpush3.bf16.msra.mxu0 %v2651_v52  ;;  %2339 = vmatprep.subr.bf16.mxu1 %v2652_v60  ;;  %v3112_v52 = vld [vmem:[%s2817_s24 + $0x48] sm:$0xf] }
  0x36   : > { %2435 = vmatprep.subr.bf16.mxu0 %v2653_v2  ;;  %v3109_v49 = vsel %vm678_vm1, %v1143_v43, %v1144_v47  ;;  %v2078_v13 = vcombine.low %v2962_v23, %v3112_v52  ;;  %v360_v56 = vunpack.c.l.bf16 %v3112_v52  ;;  %v2683_v40 = vld [vmem:[%s3314_s1 + $0x1c8] sm:$0xff]   ;;  %v3189_v43 = vpack.c.bf16 %v3076_v10, %v3056_v42  ;;  %v2686_v10 = vld [vmem:[%s3314_s1 + $0xd8] sm:$0xff]  }
  0x37   : > { %v1150_v53 = vpack.c.bf16 %v3109_v49, %v3106_v30  ;;  %v3203_v42 = vpack.c.bf16 %v3106_v30, %v3079_v21  ;;  %v2687_v47 = vld [vmem:[%s3314_s1 + $0x1d8] sm:$0xff]   ;;  %v2688_v21 = vld [vmem:[%s3314_s1 + $0xe0] sm:$0xff]  }
  0x38   : > { %2340 = vmatpush3.bf16.msra.mxu1 %v2652_v60  ;;  %v711_v60 = vpack.c.bf16 %v2995_v50, %v681_v17 }
  0x39   : > { %2436 = vmatpush3.bf16.msra.mxu0 %v2653_v2  ;;  %2341 = vmatprep.subr.bf16.mxu1 %v2654_v3  ;;  %v341_v2 = vld [vmem:[%s2817_s24 + $0x4c] sm:$0x1]  ;;  %s312_s24 = scalar_lea.vmem %s3317_s4, %s2155_s26 }
  0x3a   : > { %2437 = vmatprep.subr.bf16.mxu0 %v2655_v7 }
  0x3c   : > { %2342 = vmatpush3.bf16.msra.mxu1 %v2654_v3  ;;  %v1430_v3 = vrot.slane %v360_v56, 1 }
  0x3d   : > { %2438 = vmatpush3.bf16.msra.mxu0 %v2655_v7  ;;  %2343 = vmatprep.subr.bf16.mxu1 %v2656_v8  ;;  %v1573_v7 = vrot.slane %v360_v56, 2 }
  0x3e   : > { %2439 = vmatprep.subr.bf16.mxu0 %v2657_v9 }
  0x40   : > { %2344 = vmatpush3.bf16.msra.mxu1 %v2656_v8  ;;  %v361_v8 = vunpack.c.l.bf16 %v341_v2  ;;  %v2194_v2 = vld [vmem:[%s312_s24 + $0x10] sm:$0xff]  }
  0x41   : > { %2440 = vmatpush3.bf16.msra.mxu0 %v2657_v9  ;;  %2345 = vmatprep.subr.bf16.mxu1 %v2658_v26  ;;  %v2670_v9 = vld [vmem:[%s3314_s1 + $0xa0] sm:$0xff]  }
  0x42   : > { %2441 = vmatprep.subr.bf16.mxu0 %v2659_v31  ;;  %v1431_v50 = vrot.slane %v361_v8, 1  ;;  %v1574_v18 = vrot.slane %v361_v8, 2 }
  0x44   : > { %2346 = vmatpush3.bf16.msra.mxu1 %v2658_v26  ;;  %v3144_v24 = vsel %vm398_vm0, %v1430_v3, %v1431_v50  ;;  %v3147_v27 = vsel %vm678_vm1, %v1573_v7, %v1574_v18  ;;  %v2672_v26 = vld [vmem:[%s3314_s1 + $0xa8] sm:$0xff]   ;;  %v2151_v3 = vld [vmem:[%s3315_s2] ss:$0 sm:$0xff] }
  0x45   : > { %2442 = vmatpush3.bf16.msra.mxu0 %v2659_v31  ;;  %2355 = vmatprep.subr.bf16.mxu1 %v2661_v62  ;;  %v1434_v31 = vpack.c.bf16 %v3144_v24, %v3008_v55  ;;  %v1577_v29 = vpack.c.bf16 %v3147_v27, %v3109_v49  ;;  %v2167_v27 = vunpack.c.l.bf16 %v2194_v2 }
  0x46   : > { %2451 = vmatprep.subr.bf16.mxu0 %v2662_v63 }
  0x47   : > { %2348 = vmatmul.mubr.bf16.vlgmr.msra.gmra.mrb[0].mxu1 %v1943_v5 }
  0x48   : > { %2356 = vmatpush3.bf16.msra.mxu1 %v2661_v62  ;;  %2444 = vmatmul.mubr.bf16.vlgmr.msra.gmra.mrb[0].mxu0 %v1148_v0  ;;  %v2678_v62 = vld [vmem:[%s3314_s1 + $0xb8] sm:$0xff]   ;;  %v2680_v0 = vld [vmem:[%s3314_s1 + $0xc0] sm:$0xff]  }
  0x49   : > { %2452 = vmatpush3.bf16.msra.mxu0 %v2662_v63  ;;  %2357 = vmatprep.subr.bf16.mxu1 %v2664_v4  ;;  %v2679_v63 = vld [vmem:[%s3314_s1 + $0x1b8] sm:$0xff]  }
  0x4a   : > { %2453 = vmatprep.subr.bf16.mxu0 %v2665_v48  ;;  %2351 = vmatprep.mubr.bf16.mxu1 %v3094_v22 }
  0x4b   : > { %2447 = vmatprep.mubr.bf16.mxu0 %v1149_v19  ;;  %v2691_v19 = vld [vmem:[%s3314_s1 + $0x1e8] sm:$0xff]  }
  0x4c   : > { %2358 = vmatpush3.bf16.msra.mxu1 %v2664_v4  ;;  %v3179_v4 = vpack.c.bf16 %v3053_v41, %v2998_v51  ;;  %v2684_v51 = vld [vmem:[%s3314_s1 + $0xd0] sm:$0xff]  }
  0x4d   : > { %2454 = vmatpush3.bf16.msra.mxu0 %v2665_v48  ;;  %2359 = vmatprep.subr.bf16.mxu1 %v2666_v35  ;;  %v2685_v41 = vld [vmem:[%s3314_s1 + $0x1d0] sm:$0xff]   ;;  %v2689_v48 = vld [vmem:[%s3314_s1 + $0x1e0] sm:$0xff]  }
  0x4e   : > { %2455 = vmatprep.subr.bf16.mxu0 %v2667_v12 }
  0x4f   : > { %2352 = vmatmul.mubr.bf16.gmra.mrb[4].mxu1 %v3122_v16 }
  0x50   : > { %2360 = vmatpush3.bf16.msra.mxu1 %v2666_v35  ;;  %2448 = vmatmul.mubr.bf16.gmra.mrb[4].mxu0 %v1150_v53  ;;  %v2703_v35 = vld [vmem:[%s3314_s1 + $0x210] sm:$0xff]  }
  0x51   : > { %2456 = vmatpush3.bf16.msra.mxu0 %v2667_v12  ;;  %2361 = vmatprep.subr.bf16.mxu1 %v2668_v58 }
  0x52   : > { %2457 = vmatprep.subr.bf16.mxu0 %v2669_v59  ;;  %2371 = vmatprep.mubr.bf16.mxu1 %v711_v60  ;;  %v2158_v60 = vld [vmem:[%s312_s24] sm:$0xff]  }
  0x53   : > { %2467 = vmatprep.mubr.bf16.mxu0 %v1943_v5  ;;  %v2681_v5 = vld [vmem:[%s3314_s1 + $0x1c0] sm:$0xff]   ;;  %v2159_v18 = vunpack.c.l.bf16 %v2158_v60 }
  0x54   : > { %2362 = vmatpush3.bf16.msra.mxu1 %v2668_v58  ;;  %v2193_v58 = vld [vmem:[%s312_s24 + $0x8] sm:$0xff]  }
  0x55   : > { %2458 = vmatpush3.bf16.msra.mxu0 %v2669_v59  ;;  %2363 = vmatprep.subr.bf16.mxu1 %v2670_v9  ;;  %v2195_v59 = vld [vmem:[%s312_s24 + $0x18] sm:$0xff]   ;;  %v2163_v7 = vunpack.c.l.bf16 %v2193_v58 }
  0x56   : > { %2459 = vmatprep.subr.bf16.mxu0 %v2671_v15 }
  0x58   : > { %2364 = vmatpush3.bf16.msra.mxu1 %v2670_v9  ;;  %v2171_v9 = vunpack.c.l.bf16 %v2195_v59 }
  0x59   : > { %2460 = vmatpush3.bf16.msra.mxu0 %v2671_v15  ;;  %2365 = vmatprep.subr.bf16.mxu1 %v2672_v26 }
  0x5a   : > { %2461 = vmatprep.subr.bf16.mxu0 %v2673_v34 }
  0x5c   : > { %2366 = vmatpush3.bf16.msra.mxu1 %v2672_v26  ;;  %v2164_v26 = vunpack.c.h.bf16 %v2193_v58 }
  0x5d   : > { %2462 = vmatpush3.bf16.msra.mxu0 %v2673_v34  ;;  %2367 = vmatprep.subr.bf16.mxu1 %v2675_v45 }
  0x5e   : > { %2463 = vmatprep.subr.bf16.mxu0 %v2676_v28 }
  0x60   : > { %2368 = vmatpush3.bf16.msra.mxu1 %v2675_v45 }
  0x61   : > { %2464 = vmatpush3.bf16.msra.mxu0 %v2676_v28  ;;  %2369 = vmatprep.subr.bf16.mxu1 %v2678_v62 }
  0x62   : > { %2465 = vmatprep.subr.bf16.mxu0 %v2679_v63 }
  0x64   : > { %2370 = vmatpush3.bf16.msra.mxu1 %v2678_v62  ;;  %v2172_v62 = vunpack.c.h.bf16 %v2195_v59 }
  0x65   : > { %2466 = vmatpush3.bf16.msra.mxu0 %v2679_v63  ;;  %2379 = vmatprep.subr.bf16.mxu1 %v2680_v0  ;;  %v2160_v63 = vunpack.c.h.bf16 %v2158_v60 }
  0x66   : > { %2475 = vmatprep.subr.bf16.mxu0 %v2681_v5 }
  0x67   : > { %2372 = vmatmul.mubr.bf16.vlgmr.msra.gmra.mrb[0].mxu1 %v3179_v4 }
  0x68   : > { %2380 = vmatpush3.bf16.msra.mxu1 %v2680_v0  ;;  %2468 = vmatmul.mubr.bf16.vlgmr.msra.gmra.mrb[0].mxu0 %v3094_v22  ;;  %v2690_v22 = vld [vmem:[%s3314_s1 + $0xe8] sm:$0xff]  }
  0x69   : > { %2476 = vmatpush3.bf16.msra.mxu0 %v2681_v5  ;;  %2381 = vmatprep.subr.bf16.mxu1 %v2682_v39 }
  0x6a   : > { %2477 = vmatprep.subr.bf16.mxu0 %v2683_v40  ;;  %2375 = vmatprep.mubr.bf16.mxu1 %v3189_v43 }
  0x6b   : > { %2471 = vmatprep.mubr.bf16.mxu0 %v3122_v16 }
  0x6c   : > { %2382 = vmatpush3.bf16.msra.mxu1 %v2682_v39 }
  0x6d   : > { %2478 = vmatpush3.bf16.msra.mxu0 %v2683_v40  ;;  %2383 = vmatprep.subr.bf16.mxu1 %v2684_v51 }
  0x6e   : > { %2479 = vmatprep.subr.bf16.mxu0 %v2685_v41 }
  0x6f   : > { %2376 = vmatmul.mubr.bf16.gmra.mrb[4].mxu1 %v3203_v42 }
  0x70   : > { %2384 = vmatpush3.bf16.msra.mxu1 %v2684_v51  ;;  %2472 = vmatmul.mubr.bf16.gmra.mrb[4].mxu0 %v2078_v13 }
  0x71   : > { %2480 = vmatpush3.bf16.msra.mxu0 %v2685_v41  ;;  %2385 = vmatprep.subr.bf16.mxu1 %v2686_v10 }
  0x72   : > { %2481 = vmatprep.subr.bf16.mxu0 %v2687_v47  ;;  %2395 = vmatprep.mubr.bf16.mxu1 %v2002_v37  ;;  %v2695_v37 = vld [vmem:[%s3314_s1 + $0xf8] sm:$0xff]  }
  0x73   : > { %2491 = vmatprep.mubr.bf16.mxu0 %v2912_v57  ;;  %v2696_v57 = vld [vmem:[%s3314_s1 + $0x1f8] sm:$0xff]  }
  0x74   : > { %2386 = vmatpush3.bf16.msra.mxu1 %v2686_v10 }
  0x75   : > { %2482 = vmatpush3.bf16.msra.mxu0 %v2687_v47  ;;  %2387 = vmatprep.subr.bf16.mxu1 %v2688_v21 }
  0x76   : > { %2483 = vmatprep.subr.bf16.mxu0 %v2689_v48 }
  0x78   : > { %2388 = vmatpush3.bf16.msra.mxu1 %v2688_v21 }
  0x79   : > { %2484 = vmatpush3.bf16.msra.mxu0 %v2689_v48  ;;  %2389 = vmatprep.subr.bf16.mxu1 %v2690_v22 }
  0x7a   : > { %2485 = vmatprep.subr.bf16.mxu0 %v2691_v19 }
  0x7c   : > { %2390 = vmatpush3.bf16.msra.mxu1 %v2690_v22 }
  0x7d   : > { %2486 = vmatpush3.bf16.msra.mxu0 %v2691_v19  ;;  %2391 = vmatprep.subr.bf16.mxu1 %v2692_v14 }
  0x7e   : > { %2487 = vmatprep.subr.bf16.mxu0 %v2694_v20 }
  0x80   : > { %2392 = vmatpush3.bf16.msra.mxu1 %v2692_v14 }
  0x81   : > { %2488 = vmatpush3.bf16.msra.mxu0 %v2694_v20  ;;  %2393 = vmatprep.subr.bf16.mxu1 %v2695_v37 }
  0x82   : > { %2489 = vmatprep.subr.bf16.mxu0 %v2696_v57 }
  0x84   : > { %2394 = vmatpush3.bf16.msra.mxu1 %v2695_v37 }
  0x85   : > { %2490 = vmatpush3.bf16.msra.mxu0 %v2696_v57  ;;  %2523 = vmatprep.subr.bf16.mxu1 %v2699_v32 }
  0x86   : > { %2499 = vmatprep.subr.bf16.mxu0 %v2699_v32 }
  0x87   : > { %2396 = vmatmul.mubr.bf16.vlgmr.msra.gmra.mrb[0].mxu1 %v2003_v46  ;;  %v2706_v46 = vld [vmem:[%s3314_s1 + $0x228] sm:$0xff]  }
  0x88   : > { %2492 = vmatmul.mubr.bf16.vlgmr.msra.gmra.mrb[0].mxu0 %v2977_v38  ;;  %2531 = vmatpush3.bf16.msra.mxu1 %v2699_v32 }
  0x89   : > { %2500 = vmatpush3.bf16.msra.mxu0 %v2699_v32  ;;  %2524 = vmatprep.subr.bf16.mxu1 %v2700_v33 }
  0x8a   : > { %2501 = vmatprep.subr.bf16.mxu0 %v2700_v33  ;;  %2399 = vmatprep.mubr.bf16.mxu1 %v2004_v6 }
  0x8b   : > { %2495 = vmatprep.mubr.bf16.mxu0 %v3005_v54 }
  0x8c   : > { %2532 = vmatpush3.bf16.msra.mxu1 %v2700_v33 }
  0x8d   : > { %2502 = vmatpush3.bf16.msra.mxu0 %v2700_v33  ;;  %2525 = vmatprep.subr.bf16.mxu1 %v2703_v35 }
  0x8e   : > { %2503 = vmatprep.subr.bf16.mxu0 %v2703_v35 }
  0x8f   : > { %2400 = vmatmul.mubr.bf16.gmra.mrb[4].mxu1 %v2005_v44 }
  0x90   : > { %2496 = vmatmul.mubr.bf16.gmra.mrb[4].mxu0 %v1434_v31  ;;  %2533 = vmatpush3.bf16.msra.mxu1 %v2703_v35 }
  0x91   : > { %2504 = vmatpush3.bf16.msra.mxu0 %v2703_v35  ;;  %2526 = vmatprep.subr.bf16.mxu1 %v2704_v25 }
  0x92   : > { %2505 = vmatprep.subr.bf16.mxu0 %v2704_v25  ;;  %2515 = vmatprep.mubr.bf16.mxu0 %v3179_v4 }
  0x93   : > { %2519 = vmatprep.mubr.bf16.mxu1 %v3203_v42 }
  0x94   : > { %2534 = vmatpush3.bf16.msra.mxu1 %v2704_v25 }
  0x95   : > { %2506 = vmatpush3.bf16.msra.mxu0 %v2704_v25  ;;  %2527 = vmatprep.subr.bf16.mxu1 %v2705_v36 }
  0x96   : > { %2507 = vmatprep.subr.bf16.mxu0 %v2705_v36 }
  0x98   : > { %2535 = vmatpush3.bf16.msra.mxu1 %v2705_v36 }
  0x99   : > { %2508 = vmatpush3.bf16.msra.mxu0 %v2705_v36  ;;  %2528 = vmatprep.subr.bf16.mxu1 %v2706_v46 }
  0x9a   : > { %2509 = vmatprep.subr.bf16.mxu0 %v2706_v46 }
  0x9c   : > { %2536 = vmatpush3.bf16.msra.mxu1 %v2706_v46 }
  0x9d   : > { %2510 = vmatpush3.bf16.msra.mxu0 %v2706_v46  ;;  %2529 = vmatprep.subr.bf16.mxu1 %v2707_v61 }
  0x9e   : > { %2511 = vmatprep.subr.bf16.mxu0 %v2707_v61 }
  0xa0   : > { %2537 = vmatpush3.bf16.msra.mxu1 %v2707_v61 }
  0xa1   : > { %2512 = vmatpush3.bf16.msra.mxu0 %v2707_v61  ;;  %2530 = vmatprep.subr.bf16.mxu1 %v2708_v1 }
  0xa2   : > { %2513 = vmatprep.subr.bf16.mxu0 %v2708_v1 }
  0xa4   : > { %2538 = vmatpush3.bf16.msra.mxu1 %v2708_v1 }
  0xa5   : > { %2514 = vmatpush3.bf16.msra.mxu0 %v2708_v1 }
  0xa7   : > { %2520 = vmatmul.mubr.bf16.vlgmr.msra.gmra.mrb[8].mxu1 %v1577_v29  ;;  %v2152_v29 = vld [vmem:[%s3316_s3] ss:$0 sm:$0xff] }
  0xa8   : > { %2516 = vmatmul.mubr.bf16.vlgmr.msra.gmra.mrb[0].mxu0 %v3189_v43  ;;  %v2168_v43 = vunpack.c.h.bf16 %v2194_v2 }
 0x15a   : > { %v2397_v6 = vpop.f32.mrb[0].mxu1 }
 0x15b   : > { %v956_v11 = vpop.f32.mrb[1].mxu1 }
 0x15c   : > { %v2398_v23 = vpop.f32.mrb[2].mxu1 }
 0x15d   : > { %v959_v38 = vpop.f32.mrb[3].mxu1 }
 0x162   : > { %v2401_v44 = vpop.f32.mrb[4].mxu1 }
 0x163   : > { %v2497_v54 = vpop.f32.mrb[4].mxu0  ;;  %v972_v55 = vpop.f32.mrb[5].mxu1 }
 0x164   : > { %v2543_v30 = vadd.f32 %v2497_v54, %v2401_v44  ;;  %v1550_v52 = vpop.f32.mrb[5].mxu0  ;;  %v2402_v12 = vpop.f32.mrb[6].mxu1 }
 0x165   : > { %v2545_v13 = vadd.f32 %v1550_v52, %v972_v55  ;;  %v2498_v16 = vpop.f32.mrb[6].mxu0  ;;  %v975_v17 = vpop.f32.mrb[7].mxu1 }
 0x166   : > { %v2547_v53 = vadd.f32 %v2498_v16, %v2402_v12  ;;  %v1553_v49 = vpop.f32.mrb[7].mxu0 }
 0x167   : > { %v2549_v56 = vadd.f32 %v1553_v49, %v975_v17 }
 0x17a   : > { %v2521_v8 = vpop.f32.mrb[8].mxu1 }
 0x17b   : > { %v2517_v15 = vpop.f32.mrb[0].mxu0  ;;  %v2544_v50 = vadd.f32 %v2543_v30, %v2521_v8  ;;  %v1693_v24 = vpop.f32.mrb[9].mxu1 }
 0x17c   : > { %v2539_v31 = vadd.f32 %v2517_v15, %v2397_v6  ;;  %v1677_v34 = vpop.f32.mrb[1].mxu0  ;;  %v2546_v45 = vadd.f32 %v2545_v13, %v1693_v24  ;;  %v2522_v28 = vpop.f32.mrb[10].mxu1 }
 0x17d   : > { %v1729_v0 = vmul.f32 %v2544_v50, %v2151_v3  ;;  %v2540_v5 = vadd.f32 %v1677_v34, %v956_v11  ;;  %v2518_v4 = vpop.f32.mrb[2].mxu0  ;;  %v2548_v39 = vadd.f32 %v2547_v53, %v2522_v28  ;;  %v1696_v40 = vpop.f32.mrb[11].mxu1 }
 0x17e   : > { %v1725_v51 = vmul.f32 %v2539_v31, %v2151_v3  ;;  %v1727_v41 = vmul.f32 %v2546_v45, %v2151_v3  ;;  %v2541_v42 = vadd.f32 %v2518_v4, %v2398_v23  ;;  %v1680_v10 = vpop.f32.mrb[3].mxu0  ;;  %v2550_v47 = vadd.f32 %v2549_v56, %v1696_v40 }
 0x17f   : > { %v1744_v21 = vadd.f32 %v2152_v29, %v1729_v0  ;;  %v1723_v48 = vmul.f32 %v2540_v5, %v2151_v3  ;;  %v1730_v22 = vmul.f32 %v2548_v39, %v2151_v3  ;;  %v2542_v19 = vadd.f32 %v1680_v10, %v959_v38 }
 0x180   : > { %v1740_v14 = vadd.f32 %v2152_v29, %v1725_v51  ;;  %v1742_v20 = vadd.f32 %v2152_v29, %v1727_v41  ;;  %v1726_v37 = vmul.f32 %v2541_v42, %v2151_v3  ;;  %v1728_v57 = vmul.f32 %v2550_v47, %v2151_v3 }
 0x181   : > { %v1768_v32 = vadd.f32 %v2171_v9, %v1744_v21  ;;  %v1738_v33 = vadd.f32 %v2152_v29, %v1723_v48  ;;  %v1745_v35 = vadd.f32 %v2152_v29, %v1730_v22  ;;  %v1724_v25 = vmul.f32 %v2542_v19, %v2151_v3 }
 0x182   : > { %v1764_v36 = vadd.f32 %v2163_v7, %v1740_v14  ;;  %v1766_v46 = vadd.f32 %v2167_v27, %v1742_v20  ;;  %v1741_v61 = vadd.f32 %v2152_v29, %v1726_v37  ;;  %v1743_v1 = vadd.f32 %v2152_v29, %v1728_v57 }
 0x183   : > { %v1762_v6 = vadd.f32 %v2159_v18, %v1738_v33  ;;  %v1769_v11 = vadd.f32 %v2172_v62, %v1745_v35  ;;  %v1739_v23 = vadd.f32 %v2152_v29, %v1724_v25  ;;  %v1776_v55 = vmax.f32 %v1768_v32, 0.0 }
 0x184   : > { %v1765_v44 = vadd.f32 %v2164_v26, %v1741_v61  ;;  %v1767_v54 = vadd.f32 %v2168_v43, %v1743_v1  ;;  %v1772_v52 = vmax.f32 %v1764_v36, 0.0  ;;  %v1774_v12 = vmax.f32 %v1766_v46, 0.0 }
 0x185   : > { %v1777_v38 = vmax.f32 %v1769_v11, 0.0  ;;  %v1763_v30 = vadd.f32 %v2160_v63, %v1739_v23  ;;  %v1770_v17 = vmax.f32 %v1762_v6, 0.0 }
 0x186   : > { %v1773_v13 = vmax.f32 %v1765_v44, 0.0  ;;  %v1775_v16 = vmax.f32 %v1767_v54, 0.0 }
 0x187   : > { %v2191_v53 = vpack.c.bf16 %v1777_v38, %v1776_v55  ;;  %v1771_v49 = vmax.f32 %v1763_v30, 0.0 }
 0x188   : > { %v2181_v56 = vpack.c.bf16 %v1773_v13, %v1772_v52  ;;  %v2186_v58 = vpack.c.bf16 %v1775_v16, %v1774_v12 }
 0x189   : > { %2198 = vst [vmem:[%s320_s10 + $0x18] sm:$0xff] %v2191_v53   ;;  %v2176_v59 = vpack.c.bf16 %v1771_v49, %v1770_v17 }
 0x18a   : > { %2196 = vst [vmem:[%s320_s10 + $0x8] sm:$0xff] %v2181_v56   ;;  %2197 = vst [vmem:[%s320_s10 + $0x10] sm:$0xff] %v2186_v58  }
 0x18b   : > { %2177 = vst [vmem:[%s320_s10] sm:$0xff] %v2176_v59  }
 0x18c PF: > { %s15_s20 = sadd.s32 1, %s2731_s20   ;;  %s3319_s18 = smov %s2727_s19 }
 0x18d   : > { %p12_p5 = scmp.ge.s32.totalorder %s15_s20, 4   ;;  %s3320_s19 = smov %s3322_s21 }
 0x18f   :  { %14 = sbr.rel (!%p12_p5) target bundleno = 2 (0x2), region = 90 }

// kernel: resnet18_forward.29
= control target key start
LH: loop header
LB: loop body
LE: loop exit
PB: predicated region body
PF: predicated region fallthrough
CT: control target
= control target key end

     0   :  { %s1215_s15 = smov 0   ;;  %s1217_s16 = smov 0   ;;  %s1338_s0 = inlined_call_operand.vmem [shape: bf16[32,1536], index: 0, kind: input, shape index: {}]   ;;  %s1339_s1 = inlined_call_operand.vmem [shape: bf16[1536,128], index: 1, kind: input, shape index: {}]   ;;  %s1340_s2 = inlined_call_operand.vmem [shape: f32[1,128], index: 2, kind: input, shape index: {}]   ;;  %s1341_s3 = inlined_call_operand.vmem [shape: f32[1,128], index: 3, kind: input, shape index: {}]   ;;  %s1342_s4 = inlined_call_operand.vmem [shape: bf16[32,128], index: 4, kind: output, shape index: {}]  }
   0x1   :  { %s1219_s17 = smov 0   ;;  %s1221_s18 = smov 0  }
   0x2   :  { %s1223_s19 = smov 0  }
   0x3 LB: > { %s26_s20 = sadd.s32 1, %s1183_s18  ;;  %p49_p1 = scmp.ne.s32.totalorder %s1175_s16, %s1171_s15  ;;  %s1187_s19 = sphi %s1223_s19, %s14_s19   ;;  %s1183_s18 = sphi %s1221_s18, %s1346_s18   ;;  %s1179_s17 = sphi %s1219_s17, %s1345_s17   ;;  %s1175_s16 = sphi %s1217_s16, %s1344_s16   ;;  %s1171_s15 = sphi %s1215_s15, %s1343_s15  }
   0x4   : > { %p27_p0 = scmp.ge.s32.totalorder %s26_s20, 3  ;;  %p50_p2 = scmp.eq.s32.totalorder %s1187_s19, 0 }
   0x5   : > { %s42_s22 = sadd.s32 1, %s1175_s16  ;;  %p932_p5 = scmp.ge.s32.totalorder %s1187_s19, 3 }
   0x6   : > { %s1348_s20 = smov (%p27_p0, %s26_s20), 0  ;;  %p51_p3 = por %p50_p2, %p49_p1 }
   0x7   : > { %s38_s21 = ssub.s32 %s1183_s18, %s1348_s20  ;;  %195 = sbr.rel (%p932_p5) target bundleno = 22 (0x16), region = 24 }
   0x8   : > { %p40_p4 = scmp.eq.s32.totalorder %s38_s21, 0 }
   0xa   : > { %s1250_s23 = scalar_select %p40_p4, %s1175_s16, %s42_s22  }
   0xe   : > { %198 = sbr.rel (!%p51_p3) target bundleno = 22 (0x16), region = 28  ;;  %s200_s24 = sand.u32 (%p51_p3), 1, %s1175_s16  }
   0xf   : > { %s992_s25 = sshll.u32 (%p51_p3), %s1183_s18, 4  ;;  %s933_s26 = sshll.u32 (%p51_p3), %s200_s24, 6 }
  0x10   : > { %s208_s29 = scalar_lea.vmem (%p51_p3), %s1338_s0, %s992_s25  ;;  %s202_s30 = scalar_lea.vmem (%p51_p3), [#allocation3], %s933_s26 }
  0x11   : > { %v221_v0 = vld [vmem:[%s208_s29] sm:$0xff] (%p51_p3)  ;;  %v223_v1 = vld [vmem:[%s208_s29 + $0x8] sm:$0xff] (%p51_p3)  ;;  %v225_v2 = vld [vmem:[%s208_s29 + $0x30] sm:$0xff] (%p51_p3) }
  0x12   : > { %222 = vst [vmem:[%s202_s30] sm:$0xff] (%p51_p3), %v221_v0  ;;  %224 = vst [vmem:[%s202_s30 + $0x8] sm:$0xff] (%p51_p3), %v223_v1  ;;  %v227_v3 = vld [vmem:[%s208_s29 + $0x38] sm:$0xff] (%p51_p3)  ;;  %v229_v4 = vld [vmem:[%s208_s29 + $0x60] sm:$0xff] (%p51_p3) }
  0x13   : > { %226 = vst [vmem:[%s202_s30 + $0x10] sm:$0xff] (%p51_p3), %v225_v2  ;;  %v231_v5 = vld [vmem:[%s208_s29 + $0x68] sm:$0xff] (%p51_p3)  ;;  %228 = vst [vmem:[%s202_s30 + $0x18] sm:$0xff] (%p51_p3), %v227_v3  ;;  %v233_v6 = vld [vmem:[%s208_s29 + $0x90] sm:$0xff] (%p51_p3) }
  0x14   : > { %230 = vst [vmem:[%s202_s30 + $0x20] sm:$0xff] (%p51_p3), %v229_v4  ;;  %232 = vst [vmem:[%s202_s30 + $0x28] sm:$0xff] (%p51_p3), %v231_v5  ;;  %v235_v7 = vld [vmem:[%s208_s29 + $0x98] sm:$0xff] (%p51_p3) }
  0x15   : > { %234 = vst [vmem:[%s202_s30 + $0x30] sm:$0xff] %v233_v6  ;;  %236 = vst [vmem:[%s202_s30 + $0x38] sm:$0xff] %v235_v7 }
  0x16 PF: > { %p936_p6 = scmp.ge.s32.totalorder %s1187_s19, 1  ;;  %p253_p7 = scmp.lt.s32.totalorder %s1187_s19, 4 }
  0x18   : > { %p254_p8 = pnand %p936_p6, %p253_p7 }
  0x19   : > { %s260_s5 = sand.u32 (!%p254_p8), 1, %s1171_s15   ;;  %s938_s6 = sshll.u32 (!%p254_p8), %s1179_s17, 6 }
  0x1a   : > { %257 = sbr.rel (%p254_p8) target bundleno = 321 (0x141), region = 55  ;;  %s937_s7 = sshll.u32 (!%p254_p8), %s260_s5, 6 }
  0x1b   : > { %p305_p9 = scmp.lt.s32.totalorder (!%p254_p8), %s938_s6, 191  ;;  %s1267_s12 = scalar_lea.vmem (!%p254_p8), [#allocation3], %s937_s7 }
  0x1c   : > { %p940_p10 = scmp.ne.s32.totalorder (!%p254_p8), %s1179_s17, 0 }
  0x21   : > { %s1350_s6 = smov (!%p305_p9, %s938_s6), 191  ;;  %332 = sbr.rel (%p940_p10) target bundleno = 40 (0x28), region = 63 }
  0x22   : > { %s939_s8 = sshll.u32 %s1350_s6, 2  ;;  %v1189_v8 = vmov (!%p940_p10), 0.0  }
  0x23   : > { %s1265_s11 = scalar_lea.vmem %s1339_s1, %s939_s8  ;;  %333 = vst [vmem:[#allocation2] sm:$0xff] (!%p940_p10), %v1189_v8  ;;  %334 = vst [vmem:[#allocation2 + $0x8] sm:$0xff] (!%p940_p10), %v1189_v8 }
  0x24   : > { %335 = vst [vmem:[#allocation2 + $0x10] sm:$0xff] (!%p940_p10), %v1189_v8  ;;  %336 = vst [vmem:[#allocation2 + $0x18] sm:$0xff] (!%p940_p10), %v1189_v8 }
  0x28 PF: > { %v1105_v9 = vld [vmem:[%s1265_s11 + $0x40] sm:$0xff]   ;;  %v1109_v13 = vld [vmem:[%s1265_s11 + $0x48] sm:$0xff]   ;;  %v1113_v17 = vld [vmem:[%s1265_s11 + $0x50] sm:$0xff]   ;;  %p981_p11 = scmp.ne.s32.totalorder %s1179_s17, 2 }
  0x29   : > { %v1106_v10 = vld [vmem:[%s1265_s11 + $0xc0] sm:$0xff]   ;;  %1008 = vmatprep.subr.bf16.mxu0 %v1105_v9  ;;  %v1110_v14 = vld [vmem:[%s1265_s11 + $0xc8] sm:$0xff]   ;;  %v1114_v18 = vld [vmem:[%s1265_s11 + $0xd0] sm:$0xff]  }
  0x2a   : > { %v1107_v11 = vld [vmem:[%s1265_s11] sm:$0xff]   ;;  %1036 = vmatprep.subr.bf16.mxu1 %v1106_v10  ;;  %v1111_v15 = vld [vmem:[%s1265_s11 + $0x8] sm:$0xff]   ;;  %v1115_v19 = vld [vmem:[%s1265_s11 + $0x10] sm:$0xff]  }
  0x2b   : > { %v1108_v12 = vld [vmem:[%s1265_s11 + $0x80] sm:$0xff]   ;;  %1009 = vmatpush3.bf16.msra.mxu0 %v1107_v11  ;;  %v1112_v16 = vld [vmem:[%s1265_s11 + $0x88] sm:$0xff]   ;;  %v1116_v20 = vld [vmem:[%s1265_s11 + $0x90] sm:$0xff]  }
  0x2c   : > { %1037 = vmatpush3.bf16.msra.mxu1 %v1108_v12  ;;  %1010 = vmatprep.subr.bf16.mxu0 %v1109_v13  ;;  %v1117_v21 = vld [vmem:[%s1265_s11 + $0x58] sm:$0xff]   ;;  %v1121_v25 = vld [vmem:[%s1265_s11 + $0x60] sm:$0xff]   ;;  %v1125_v29 = vld [vmem:[%s1265_s11 + $0x68] sm:$0xff]  }
  0x2d   : > { %1038 = vmatprep.subr.bf16.mxu1 %v1110_v14  ;;  %v1118_v22 = vld [vmem:[%s1265_s11 + $0xd8] sm:$0xff]   ;;  %v1122_v26 = vld [vmem:[%s1265_s11 + $0xe0] sm:$0xff]   ;;  %v1126_v30 = vld [vmem:[%s1265_s11 + $0xe8] sm:$0xff]  }
  0x2e   : > { %v1119_v23 = vld [vmem:[%s1265_s11 + $0x18] sm:$0xff]   ;;  %v1123_v27 = vld [vmem:[%s1265_s11 + $0x20] sm:$0xff]   ;;  %v1127_v31 = vld [vmem:[%s1265_s11 + $0x28] sm:$0xff]  }
  0x2f   : > { %1011 = vmatpush3.bf16.msra.mxu0 %v1111_v15  ;;  %v1120_v24 = vld [vmem:[%s1265_s11 + $0x98] sm:$0xff]   ;;  %v1124_v28 = vld [vmem:[%s1265_s11 + $0xa0] sm:$0xff]   ;;  %v1128_v32 = vld [vmem:[%s1265_s11 + $0xa8] sm:$0xff]  }
  0x30   : > { %1039 = vmatpush3.bf16.msra.mxu1 %v1112_v16  ;;  %1012 = vmatprep.subr.bf16.mxu0 %v1113_v17  ;;  %v1129_v33 = vld [vmem:[%s1265_s11 + $0x70] sm:$0xff]   ;;  %v1133_v37 = vld [vmem:[%s1265_s11 + $0x78] sm:$0xff]   ;;  %v337_v58 = vld [vmem:[#allocation2] sm:$0xff] }
  0x31   : > { %1040 = vmatprep.subr.bf16.mxu1 %v1114_v18  ;;  %v1130_v34 = vld [vmem:[%s1265_s11 + $0xf0] sm:$0xff]   ;;  %v1134_v38 = vld [vmem:[%s1265_s11 + $0xf8] sm:$0xff]   ;;  %v338_v63 = vld [vmem:[#allocation2 + $0x8] sm:$0xff] }
  0x32   : > { %v1131_v35 = vld [vmem:[%s1265_s11 + $0x30] sm:$0xff]   ;;  %v1135_v39 = vld [vmem:[%s1265_s11 + $0x38] sm:$0xff]  }
  0x33   : > { %1013 = vmatpush3.bf16.msra.mxu0 %v1115_v19  ;;  %v1132_v36 = vld [vmem:[%s1265_s11 + $0xb0] sm:$0xff]   ;;  %v1136_v40 = vld [vmem:[%s1265_s11 + $0xb8] sm:$0xff]  }
  0x34   : > { %1041 = vmatpush3.bf16.msra.mxu1 %v1116_v20  ;;  %1014 = vmatprep.subr.bf16.mxu0 %v1117_v21  ;;  %v1137_v41 = vld [vmem:[%s1267_s12] ss:$16 sps:$4 sm:$0xff]   ;;  %v1139_v42 = vld [vmem:[%s1267_s12 + $0x4] ss:$16 sps:$4 sm:$0xff]   ;;  %v1140_v43 = vld [vmem:[%s1267_s12 + $0x8] ss:$16 sps:$4 sm:$0xff]  }
  0x35   : > { %1042 = vmatprep.subr.bf16.mxu1 %v1118_v22  ;;  %v1142_v44 = vld [vmem:[%s1267_s12 + $0xc] ss:$16 sps:$4 sm:$0xff]   ;;  %677 = vmatprep.mubr.bf16.mxu0 %v1139_v42  ;;  %v1143_v45 = vld [vmem:[%s1267_s12 + $0x24] ss:$16 sps:$4 sm:$0xff]   ;;  %v1147_v47 = vld [vmem:[%s1267_s12 + $0x20] ss:$16 sps:$4 sm:$0xff]  }
  0x36   : > { %726 = vmatprep.mubr.bf16.mxu1 %v1142_v44  ;;  %v1145_v46 = vld [vmem:[%s1267_s12 + $0x2c] ss:$16 sps:$4 sm:$0xff]   ;;  %v1148_v48 = vld [vmem:[%s1267_s12 + $0x28] ss:$16 sps:$4 sm:$0xff]   ;;  %v339_v12 = vld [vmem:[#allocation2 + $0x10] sm:$0xff] }
  0x37   : > { %1015 = vmatpush3.bf16.msra.mxu0 %v1119_v23  ;;  %v340_v17 = vld [vmem:[#allocation2 + $0x18] sm:$0xff]  ;;  %v982_v23 = vld [vmem:[%s1340_s2] ss:$0 sm:$0xff] (!%p981_p11) }
  0x38   : > { %1043 = vmatpush3.bf16.msra.mxu1 %v1120_v24  ;;  %1016 = vmatprep.subr.bf16.mxu0 %v1121_v25 }
  0x39   : > { %1044 = vmatprep.subr.bf16.mxu1 %v1122_v26  ;;  %v983_v26 = vld [vmem:[%s1341_s3] ss:$0 sm:$0xff] (!%p981_p11) }
  0x3b   : > { %1017 = vmatpush3.bf16.msra.mxu0 %v1123_v27 }
  0x3c   : > { %1045 = vmatpush3.bf16.msra.mxu1 %v1124_v28  ;;  %1018 = vmatprep.subr.bf16.mxu0 %v1125_v29 }
  0x3d   : > { %1046 = vmatprep.subr.bf16.mxu1 %v1126_v30 }
  0x3f   : > { %1019 = vmatpush3.bf16.msra.mxu0 %v1127_v31 }
  0x40   : > { %1047 = vmatpush3.bf16.msra.mxu1 %v1128_v32  ;;  %1020 = vmatprep.subr.bf16.mxu0 %v1129_v33 }
  0x41   : > { %1048 = vmatprep.subr.bf16.mxu1 %v1130_v34 }
  0x43   : > { %1021 = vmatpush3.bf16.msra.mxu0 %v1131_v35 }
  0x44   : > { %1049 = vmatpush3.bf16.msra.mxu1 %v1132_v36  ;;  %1022 = vmatprep.subr.bf16.mxu0 %v1133_v37 }
  0x45   : > { %1050 = vmatprep.subr.bf16.mxu1 %v1134_v38 }
  0x47   : > { %1023 = vmatpush3.bf16.msra.mxu0 %v1135_v39 }
  0x48   : > { %1051 = vmatpush3.bf16.msra.mxu1 %v1136_v40 }
  0x4a   : > { %678 = vmatmul.mubr.bf16.vlgmr.msra.gmra.mrb[0].mxu0 %v1137_v41 }
  0x4b   : > { %727 = vmatmul.mubr.bf16.vlgmr.msra.gmra.mrb[0].mxu1 %v1140_v43  ;;  %685 = vmatprep.mubr.bf16.mxu0 %v1143_v45 }
  0x4c   : > { %734 = vmatprep.mubr.bf16.mxu1 %v1145_v46 }
  0x52   : > { %686 = vmatmul.mubr.bf16.gmra.mrb[4].mxu0 %v1147_v47 }
  0x53   : > { %735 = vmatmul.mubr.bf16.gmra.mrb[4].mxu1 %v1148_v48 }
 0x11d   : > { %v1024_v49 = vpop.f32.mrb[0].mxu0 }
 0x11e   : > { %v1052_v50 = vpop.f32.mrb[0].mxu1  ;;  %v1025_v51 = vpop.f32.mrb[1].mxu0 }
 0x11f   : > { %v1026_v52 = vadd.f32 %v1025_v51, %v1024_v49  ;;  %v1053_v53 = vpop.f32.mrb[1].mxu1  ;;  %v1027_v54 = vpop.f32.mrb[2].mxu0 }
 0x120   : > { %v1054_v55 = vadd.f32 %v1053_v53, %v1052_v50  ;;  %v1055_v56 = vpop.f32.mrb[2].mxu1  ;;  %v1028_v57 = vpop.f32.mrb[3].mxu0 }
 0x121   : > { %v1029_v59 = vadd.f32 %v1028_v57, %v1027_v54  ;;  %v1056_v60 = vpop.f32.mrb[3].mxu1 }
 0x122   : > { %v729_v61 = vadd.f32 %v1054_v55, %v1026_v52  ;;  %v1057_v62 = vadd.f32 %v1056_v60, %v1055_v56 }
 0x124   : > { %v743_v0 = vadd.f32 %v729_v61, %v337_v58  ;;  %v732_v1 = vadd.f32 %v1057_v62, %v1029_v59 }
 0x125   : > { %v1030_v2 = vpop.f32.mrb[4].mxu0 }
 0x126   : > { %747 = vst [vmem:[#allocation2] sm:$0xff] %v743_v0  ;;  %v744_v3 = vadd.f32 %v732_v1, %v338_v63  ;;  %v1058_v4 = vpop.f32.mrb[4].mxu1  ;;  %v1031_v5 = vpop.f32.mrb[5].mxu0 }
 0x127   : > { %v1032_v6 = vadd.f32 %v1031_v5, %v1030_v2  ;;  %v1059_v7 = vpop.f32.mrb[5].mxu1  ;;  %v1033_v8 = vpop.f32.mrb[6].mxu0 }
 0x128   : > { %748 = vst [vmem:[#allocation2 + $0x8] sm:$0xff] %v744_v3  ;;  %v1060_v9 = vadd.f32 %v1059_v7, %v1058_v4  ;;  %v1061_v10 = vpop.f32.mrb[6].mxu1  ;;  %v1034_v11 = vpop.f32.mrb[7].mxu0 }
 0x129   : > { %v1035_v13 = vadd.f32 %v1034_v11, %v1033_v8  ;;  %v1062_v14 = vpop.f32.mrb[7].mxu1 }
 0x12a   : > { %v737_v15 = vadd.f32 %v1060_v9, %v1032_v6  ;;  %v1063_v16 = vadd.f32 %v1062_v14, %v1061_v10  ;;  %754 = sbr.rel (%p981_p11) target bundleno = 321 (0x141), region = 67 }
 0x12c   : > { %v745_v18 = vadd.f32 %v737_v15, %v339_v12  ;;  %v740_v19 = vadd.f32 %v1063_v16, %v1035_v13 }
 0x12d   : > { %v755_v21 = vld [vmem:[#allocation2] sm:$0xff] (!%p981_p11) }
 0x12e   : > { %749 = vst [vmem:[#allocation2 + $0x10] sm:$0xff] %v745_v18  ;;  %v746_v20 = vadd.f32 %v740_v19, %v340_v17  ;;  %v766_v24 = vmul.f32 (!%p981_p11), %v982_v23, %v755_v21 }
 0x12f   : > { %v756_v22 = vld [vmem:[#allocation2 + $0x8] sm:$0xff] (!%p981_p11) }
 0x130   : > { %750 = vst [vmem:[#allocation2 + $0x18] sm:$0xff] %v746_v20  ;;  %v767_v25 = vmul.f32 (!%p981_p11), %v982_v23, %v756_v22  ;;  %v777_v31 = vadd.f32 (!%p981_p11), %v983_v26, %v766_v24 }
 0x132   : > { %v778_v32 = vadd.f32 %v983_v26, %v767_v25  ;;  %v781_v35 = vmax.f32 %v777_v31, 0.0 }
 0x134   : > { %v782_v36 = vmax.f32 %v778_v32, 0.0 }
 0x135   : > { %v757_v27 = vld [vmem:[#allocation2 + $0x10] sm:$0xff] }
 0x136   : > { %v768_v29 = vmul.f32 %v982_v23, %v757_v27  ;;  %v1000_v39 = vpack.c.bf16 %v782_v36, %v781_v35 }
 0x137   : > { %v758_v28 = vld [vmem:[#allocation2 + $0x18] sm:$0xff] }
 0x138   : > { %v769_v30 = vmul.f32 %v982_v23, %v758_v28  ;;  %v779_v33 = vadd.f32 %v983_v26, %v768_v29  ;;  %1001 = vst [vmem:[%s1342_s4] sm:$0xff] %v1000_v39  }
 0x13a   : > { %v780_v34 = vadd.f32 %v983_v26, %v769_v30  ;;  %v783_v37 = vmax.f32 %v779_v33, 0.0 }
 0x13c   : > { %v784_v38 = vmax.f32 %v780_v34, 0.0 }
 0x13e   : > { %v1005_v40 = vpack.c.bf16 %v784_v38, %v783_v37 }
 0x140   : > { %1007 = vst [vmem:[%s1342_s4 + $0x8] sm:$0xff] %v1005_v40  }
 0x141 PF: > { %s14_s19 = sadd.s32 1, %s1187_s19   ;;  %s1343_s15 = smov %s1175_s16 }
 0x142   : > { %p11_p12 = scmp.ge.s32.totalorder %s14_s19, 5   ;;  %s1344_s16 = smov %s1250_s23 }
 0x143   : > { %s1345_s17 = smov %s1183_s18  ;;  %s1346_s18 = smov %s1348_s20 }
 0x144   :  { %13 = sbr.rel (!%p11_p12) target bundleno = 3 (0x3), region = 111 }

// kernel: resnet18_forward.30
= control target key start
LH: loop header
LB: loop body
LE: loop exit
PB: predicated region body
PF: predicated region fallthrough
CT: control target
= control target key end

     0   :  { %s358_s1 = inlined_call_operand.vmem [shape: bf16[128,128], index: 1, kind: input, shape index: {}]   ;;  %s359_s0 = inlined_call_operand.vmem [shape: bf16[32,128], index: 0, kind: input, shape index: {}]   ;;  %s360_s2 = inlined_call_operand.vmem [shape: f32[1,128], index: 2, kind: input, shape index: {}]   ;;  %s361_s3 = inlined_call_operand.vmem [shape: f32[1,128], index: 3, kind: input, shape index: {}]   ;;  %s362_s4 = inlined_call_operand.vmem [shape: bf16[32,128], index: 4, kind: output, shape index: {}]  }
   0x1   :  { %v281_v0 = vld [vmem:[%s358_s1] sm:$0xff]   ;;  %v282_v1 = vld [vmem:[%s358_s1 + $0x8] sm:$0xff]   ;;  %v283_v2 = vld [vmem:[%s358_s1 + $0x10] sm:$0xff]  }
   0x2   :  { %261 = vmatprep.subr.bf16.mxu0 %v281_v0  ;;  %v284_v3 = vld [vmem:[%s358_s1 + $0x18] sm:$0xff]   ;;  %v289_v4 = vld [vmem:[%s359_s0] sm:$0xff]   ;;  %v286_v6 = vld [vmem:[%s358_s1 + $0x28] sm:$0xff]  }
   0x3   :  { %262 = vmatpush3.bf16.msra.mxu0 %v281_v0  ;;  %277 = vmatprep.mubr.bf16.mxu0 %v289_v4  ;;  %v285_v5 = vld [vmem:[%s358_s1 + $0x20] sm:$0xff]   ;;  %v287_v7 = vld [vmem:[%s358_s1 + $0x30] sm:$0xff]   ;;  %v288_v8 = vld [vmem:[%s358_s1 + $0x38] sm:$0xff]  }
   0x4   :  { %263 = vmatprep.subr.bf16.mxu0 %v282_v1  ;;  %v290_v9 = vld [vmem:[%s359_s0 + $0x8] sm:$0xff]   ;;  %v230_v10 = vld [vmem:[%s360_s2] ss:$0 sm:$0xff] }
   0x5   :  { %v231_v14 = vld [vmem:[%s361_s3] ss:$0 sm:$0xff] }
   0x7   :  { %264 = vmatpush3.bf16.msra.mxu0 %v282_v1 }
   0x8   :  { %265 = vmatprep.subr.bf16.mxu0 %v283_v2 }
   0xb   :  { %266 = vmatpush3.bf16.msra.mxu0 %v283_v2 }
   0xc   :  { %267 = vmatprep.subr.bf16.mxu0 %v284_v3 }
   0xf   :  { %268 = vmatpush3.bf16.msra.mxu0 %v284_v3 }
  0x10   :  { %269 = vmatprep.subr.bf16.mxu0 %v285_v5 }
  0x13   :  { %270 = vmatpush3.bf16.msra.mxu0 %v285_v5 }
  0x14   :  { %271 = vmatprep.subr.bf16.mxu0 %v286_v6 }
  0x17   :  { %272 = vmatpush3.bf16.msra.mxu0 %v286_v6 }
  0x18   :  { %273 = vmatprep.subr.bf16.mxu0 %v287_v7 }
  0x1b   :  { %274 = vmatpush3.bf16.msra.mxu0 %v287_v7 }
  0x1c   :  { %275 = vmatprep.subr.bf16.mxu0 %v288_v8 }
  0x1f   :  { %276 = vmatpush3.bf16.msra.mxu0 %v288_v8 }
  0x22   :  { %278 = vmatmul.mubr.bf16.vlgmr.msra.gmra.mrb[0].mxu0 %v290_v9 }
  0xf5   :  { %v279_v11 = vpop.f32.mrb[0].mxu0 }
  0xf6   :  { %v183_v12 = vmul.f32 %v279_v11, %v230_v10  ;;  %v144_v13 = vpop.f32.mrb[1].mxu0 }
  0xf7   :  { %v181_v15 = vmul.f32 %v230_v10, %v144_v13  ;;  %v280_v16 = vpop.f32.mrb[2].mxu0 }
  0xf8   :  { %v184_v17 = vmul.f32 %v280_v16, %v230_v10  ;;  %v147_v18 = vpop.f32.mrb[3].mxu0  ;;  %v194_v20 = vadd.f32 %v231_v14, %v183_v12 }
  0xf9   :  { %v182_v19 = vmul.f32 %v230_v10, %v147_v18  ;;  %v192_v22 = vadd.f32 %v231_v14, %v181_v15 }
  0xfa   :  { %v195_v21 = vadd.f32 %v231_v14, %v184_v17 }
  0xfb   :  { %v193_v23 = vadd.f32 %v231_v14, %v182_v19 }
  0xfc   :  { %v248_v24 = vpack.c.bf16 %v195_v21, %v194_v20 }
  0xfd   :  { %v243_v25 = vpack.c.bf16 %v193_v23, %v192_v22 }
  0xfe   :  { %250 = vst [vmem:[%s362_s4 + $0x8] sm:$0xff] %v248_v24  }
  0xff   :  { %244 = vst [vmem:[%s362_s4] sm:$0xff] %v243_v25  }

// kernel: resnet18_forward.31
= control target key start
LH: loop header
LB: loop body
LE: loop exit
PB: predicated region body
PF: predicated region fallthrough
CT: control target
= control target key end

     0   :  { %s1320_s18 = smov 0   ;;  %s1322_s19 = smov 0   ;;  %s1449_s0 = inlined_call_operand.vmem [shape: bf16[32,1536], index: 0, kind: input, shape index: {}]   ;;  %s1450_s1 = inlined_call_operand.vmem [shape: bf16[1536,128], index: 1, kind: input, shape index: {}]   ;;  %s1451_s2 = inlined_call_operand.vmem [shape: f32[1,128], index: 2, kind: input, shape index: {}]   ;;  %s1452_s3 = inlined_call_operand.vmem [shape: f32[1,128], index: 3, kind: input, shape index: {}]   ;;  %s1453_s4 = inlined_call_operand.vmem [shape: bf16[32,128], index: 4, kind: input, shape index: {}]   ;;  %s1454_s5 = inlined_call_operand.vmem [shape: bf16[32,128], index: 5, kind: output, shape index: {}]  }
   0x1   :  { %s1324_s20 = smov 0   ;;  %s1326_s21 = smov 0  }
   0x2   :  { %s1328_s22 = smov 0  }
   0x3 LB: > { %s27_s23 = sadd.s32 1, %s1283_s21  ;;  %p50_p1 = scmp.ne.s32.totalorder %s1275_s19, %s1271_s18  ;;  %s1287_s22 = sphi %s1328_s22, %s15_s22   ;;  %s1283_s21 = sphi %s1326_s21, %s1458_s21   ;;  %s1279_s20 = sphi %s1324_s20, %s1457_s20   ;;  %s1275_s19 = sphi %s1322_s19, %s1456_s19   ;;  %s1271_s18 = sphi %s1320_s18, %s1455_s18  }
   0x4   : > { %p28_p0 = scmp.ge.s32.totalorder %s27_s23, 3  ;;  %p51_p2 = scmp.eq.s32.totalorder %s1287_s22, 0 }
   0x5   : > { %s43_s25 = sadd.s32 1, %s1275_s19  ;;  %p1023_p5 = scmp.ge.s32.totalorder %s1287_s22, 3 }
   0x6   : > { %s1460_s23 = smov (%p28_p0, %s27_s23), 0  ;;  %p52_p3 = por %p51_p2, %p50_p1 }
   0x7   : > { %s39_s24 = ssub.s32 %s1283_s21, %s1460_s23  ;;  %236 = sbr.rel (%p1023_p5) target bundleno = 22 (0x16), region = 28 }
   0x8   : > { %p41_p4 = scmp.eq.s32.totalorder %s39_s24, 0 }
   0xa   : > { %s1355_s26 = scalar_select %p41_p4, %s1275_s19, %s43_s25  }
   0xe   : > { %239 = sbr.rel (!%p52_p3) target bundleno = 22 (0x16), region = 32  ;;  %s241_s27 = sand.u32 (%p52_p3), 1, %s1275_s19  }
   0xf   : > { %s1083_s28 = sshll.u32 (%p52_p3), %s1283_s21, 4  ;;  %s1024_s29 = sshll.u32 (%p52_p3), %s241_s27, 6 }
  0x10   : > { %s249_s7 = scalar_lea.vmem (%p52_p3), %s1449_s0, %s1083_s28  ;;  %s243_s8 = scalar_lea.vmem (%p52_p3), [#allocation3], %s1024_s29 }
  0x11   : > { %v262_v0 = vld [vmem:[%s249_s7] sm:$0xff] (%p52_p3)  ;;  %v264_v1 = vld [vmem:[%s249_s7 + $0x8] sm:$0xff] (%p52_p3)  ;;  %v266_v2 = vld [vmem:[%s249_s7 + $0x30] sm:$0xff] (%p52_p3) }
  0x12   : > { %263 = vst [vmem:[%s243_s8] sm:$0xff] (%p52_p3), %v262_v0  ;;  %265 = vst [vmem:[%s243_s8 + $0x8] sm:$0xff] (%p52_p3), %v264_v1  ;;  %v268_v3 = vld [vmem:[%s249_s7 + $0x38] sm:$0xff] (%p52_p3)  ;;  %v270_v4 = vld [vmem:[%s249_s7 + $0x60] sm:$0xff] (%p52_p3) }
  0x13   : > { %267 = vst [vmem:[%s243_s8 + $0x10] sm:$0xff] (%p52_p3), %v266_v2  ;;  %v272_v5 = vld [vmem:[%s249_s7 + $0x68] sm:$0xff] (%p52_p3)  ;;  %269 = vst [vmem:[%s243_s8 + $0x18] sm:$0xff] (%p52_p3), %v268_v3  ;;  %v274_v6 = vld [vmem:[%s249_s7 + $0x90] sm:$0xff] (%p52_p3) }
  0x14   : > { %271 = vst [vmem:[%s243_s8 + $0x20] sm:$0xff] (%p52_p3), %v270_v4  ;;  %273 = vst [vmem:[%s243_s8 + $0x28] sm:$0xff] (%p52_p3), %v272_v5  ;;  %v276_v7 = vld [vmem:[%s249_s7 + $0x98] sm:$0xff] (%p52_p3) }
  0x15   : > { %275 = vst [vmem:[%s243_s8 + $0x30] sm:$0xff] %v274_v6  ;;  %277 = vst [vmem:[%s243_s8 + $0x38] sm:$0xff] %v276_v7 }
  0x16 PF: > { %p1027_p6 = scmp.ge.s32.totalorder %s1287_s22, 1  ;;  %p294_p7 = scmp.lt.s32.totalorder %s1287_s22, 4 }
  0x18   : > { %p295_p8 = pnand %p1027_p6, %p294_p7 }
  0x19   : > { %s301_s9 = sand.u32 (!%p295_p8), 1, %s1271_s18   ;;  %s1029_s10 = sshll.u32 (!%p295_p8), %s1279_s20, 6 }
  0x1a   : > { %298 = sbr.rel (%p295_p8) target bundleno = 323 (0x143), region = 59  ;;  %s1028_s11 = sshll.u32 (!%p295_p8), %s301_s9, 6 }
  0x1b   : > { %p356_p9 = scmp.lt.s32.totalorder (!%p295_p8), %s1029_s10, 191  ;;  %s1372_s16 = scalar_lea.vmem (!%p295_p8), [#allocation3], %s1028_s11 }
  0x1c   : > { %p1031_p10 = scmp.ne.s32.totalorder (!%p295_p8), %s1279_s20, 0 }
  0x21   : > { %s1462_s10 = smov (!%p356_p9, %s1029_s10), 191  ;;  %392 = sbr.rel (%p1031_p10) target bundleno = 40 (0x28), region = 67 }
  0x22   : > { %s1030_s12 = sshll.u32 %s1462_s10, 2  ;;  %v1289_v8 = vmov (!%p1031_p10), 0.0  }
  0x23   : > { %s1370_s15 = scalar_lea.vmem %s1450_s1, %s1030_s12  ;;  %393 = vst [vmem:[#allocation2] sm:$0xff] (!%p1031_p10), %v1289_v8  ;;  %394 = vst [vmem:[#allocation2 + $0x8] sm:$0xff] (!%p1031_p10), %v1289_v8 }
  0x24   : > { %395 = vst [vmem:[#allocation2 + $0x10] sm:$0xff] (!%p1031_p10), %v1289_v8  ;;  %396 = vst [vmem:[#allocation2 + $0x18] sm:$0xff] (!%p1031_p10), %v1289_v8 }
  0x28 PF: > { %v1205_v9 = vld [vmem:[%s1370_s15 + $0x40] sm:$0xff]   ;;  %v1209_v13 = vld [vmem:[%s1370_s15 + $0x48] sm:$0xff]   ;;  %v1213_v17 = vld [vmem:[%s1370_s15 + $0x50] sm:$0xff]   ;;  %p1072_p11 = scmp.ne.s32.totalorder %s1279_s20, 2 }
  0x29   : > { %v1206_v10 = vld [vmem:[%s1370_s15 + $0xc0] sm:$0xff]   ;;  %1108 = vmatprep.subr.bf16.mxu0 %v1205_v9  ;;  %v1210_v14 = vld [vmem:[%s1370_s15 + $0xc8] sm:$0xff]   ;;  %v1214_v18 = vld [vmem:[%s1370_s15 + $0xd0] sm:$0xff]  }
  0x2a   : > { %v1207_v11 = vld [vmem:[%s1370_s15] sm:$0xff]   ;;  %1136 = vmatprep.subr.bf16.mxu1 %v1206_v10  ;;  %v1211_v15 = vld [vmem:[%s1370_s15 + $0x8] sm:$0xff]   ;;  %v1215_v19 = vld [vmem:[%s1370_s15 + $0x10] sm:$0xff]  }
  0x2b   : > { %v1208_v12 = vld [vmem:[%s1370_s15 + $0x80] sm:$0xff]   ;;  %1109 = vmatpush3.bf16.msra.mxu0 %v1207_v11  ;;  %v1212_v16 = vld [vmem:[%s1370_s15 + $0x88] sm:$0xff]   ;;  %v1216_v20 = vld [vmem:[%s1370_s15 + $0x90] sm:$0xff]  }
  0x2c   : > { %1137 = vmatpush3.bf16.msra.mxu1 %v1208_v12  ;;  %1110 = vmatprep.subr.bf16.mxu0 %v1209_v13  ;;  %v1217_v21 = vld [vmem:[%s1370_s15 + $0x58] sm:$0xff]   ;;  %v1221_v25 = vld [vmem:[%s1370_s15 + $0x60] sm:$0xff]   ;;  %v1225_v29 = vld [vmem:[%s1370_s15 + $0x68] sm:$0xff]  }
  0x2d   : > { %1138 = vmatprep.subr.bf16.mxu1 %v1210_v14  ;;  %v1218_v22 = vld [vmem:[%s1370_s15 + $0xd8] sm:$0xff]   ;;  %v1222_v26 = vld [vmem:[%s1370_s15 + $0xe0] sm:$0xff]   ;;  %v1226_v30 = vld [vmem:[%s1370_s15 + $0xe8] sm:$0xff]  }
  0x2e   : > { %v1219_v23 = vld [vmem:[%s1370_s15 + $0x18] sm:$0xff]   ;;  %v1223_v27 = vld [vmem:[%s1370_s15 + $0x20] sm:$0xff]   ;;  %v1227_v31 = vld [vmem:[%s1370_s15 + $0x28] sm:$0xff]  }
  0x2f   : > { %1111 = vmatpush3.bf16.msra.mxu0 %v1211_v15  ;;  %v1220_v24 = vld [vmem:[%s1370_s15 + $0x98] sm:$0xff]   ;;  %v1224_v28 = vld [vmem:[%s1370_s15 + $0xa0] sm:$0xff]   ;;  %v1228_v32 = vld [vmem:[%s1370_s15 + $0xa8] sm:$0xff]  }
  0x30   : > { %1139 = vmatpush3.bf16.msra.mxu1 %v1212_v16  ;;  %1112 = vmatprep.subr.bf16.mxu0 %v1213_v17  ;;  %v1229_v33 = vld [vmem:[%s1370_s15 + $0x70] sm:$0xff]   ;;  %v1233_v37 = vld [vmem:[%s1370_s15 + $0x78] sm:$0xff]   ;;  %v397_v58 = vld [vmem:[#allocation2] sm:$0xff] }
  0x31   : > { %1140 = vmatprep.subr.bf16.mxu1 %v1214_v18  ;;  %v1230_v34 = vld [vmem:[%s1370_s15 + $0xf0] sm:$0xff]   ;;  %v1234_v38 = vld [vmem:[%s1370_s15 + $0xf8] sm:$0xff]   ;;  %v398_v63 = vld [vmem:[#allocation2 + $0x8] sm:$0xff] }
  0x32   : > { %v1231_v35 = vld [vmem:[%s1370_s15 + $0x30] sm:$0xff]   ;;  %v1235_v39 = vld [vmem:[%s1370_s15 + $0x38] sm:$0xff]  }
  0x33   : > { %1113 = vmatpush3.bf16.msra.mxu0 %v1215_v19  ;;  %v1232_v36 = vld [vmem:[%s1370_s15 + $0xb0] sm:$0xff]   ;;  %v1236_v40 = vld [vmem:[%s1370_s15 + $0xb8] sm:$0xff]  }
  0x34   : > { %1141 = vmatpush3.bf16.msra.mxu1 %v1216_v20  ;;  %1114 = vmatprep.subr.bf16.mxu0 %v1217_v21  ;;  %v1237_v41 = vld [vmem:[%s1372_s16] ss:$16 sps:$4 sm:$0xff]   ;;  %v1239_v42 = vld [vmem:[%s1372_s16 + $0x4] ss:$16 sps:$4 sm:$0xff]   ;;  %v1240_v43 = vld [vmem:[%s1372_s16 + $0x8] ss:$16 sps:$4 sm:$0xff]  }
  0x35   : > { %1142 = vmatprep.subr.bf16.mxu1 %v1218_v22  ;;  %v1242_v44 = vld [vmem:[%s1372_s16 + $0xc] ss:$16 sps:$4 sm:$0xff]   ;;  %737 = vmatprep.mubr.bf16.mxu0 %v1239_v42  ;;  %v1243_v45 = vld [vmem:[%s1372_s16 + $0x24] ss:$16 sps:$4 sm:$0xff]   ;;  %v1247_v47 = vld [vmem:[%s1372_s16 + $0x20] ss:$16 sps:$4 sm:$0xff]  }
  0x36   : > { %786 = vmatprep.mubr.bf16.mxu1 %v1242_v44  ;;  %v1245_v46 = vld [vmem:[%s1372_s16 + $0x2c] ss:$16 sps:$4 sm:$0xff]   ;;  %v1248_v48 = vld [vmem:[%s1372_s16 + $0x28] ss:$16 sps:$4 sm:$0xff]   ;;  %v399_v12 = vld [vmem:[#allocation2 + $0x10] sm:$0xff] }
  0x37   : > { %1115 = vmatpush3.bf16.msra.mxu0 %v1219_v23  ;;  %v400_v17 = vld [vmem:[#allocation2 + $0x18] sm:$0xff]  ;;  %v1073_v23 = vld [vmem:[%s1451_s2] ss:$0 sm:$0xff] (!%p1072_p11) }
  0x38   : > { %1143 = vmatpush3.bf16.msra.mxu1 %v1220_v24  ;;  %1116 = vmatprep.subr.bf16.mxu0 %v1221_v25 }
  0x39   : > { %1144 = vmatprep.subr.bf16.mxu1 %v1222_v26  ;;  %v1074_v26 = vld [vmem:[%s1452_s3] ss:$0 sm:$0xff] (!%p1072_p11) }
  0x3b   : > { %1117 = vmatpush3.bf16.msra.mxu0 %v1223_v27  ;;  %v1089_v27 = vld [vmem:[%s1453_s4] sm:$0xff] (!%p1072_p11)  }
  0x3c   : > { %1145 = vmatpush3.bf16.msra.mxu1 %v1224_v28  ;;  %1118 = vmatprep.subr.bf16.mxu0 %v1225_v29  ;;  %v1090_v29 = vunpack.c.l.bf16 (!%p1072_p11), %v1089_v27 }
  0x3d   : > { %1146 = vmatprep.subr.bf16.mxu1 %v1226_v30  ;;  %v1091_v30 = vunpack.c.h.bf16 (!%p1072_p11), %v1089_v27 }
  0x3f   : > { %1119 = vmatpush3.bf16.msra.mxu0 %v1227_v31 }
  0x40   : > { %1147 = vmatpush3.bf16.msra.mxu1 %v1228_v32  ;;  %1120 = vmatprep.subr.bf16.mxu0 %v1229_v33  ;;  %v1106_v33 = vld [vmem:[%s1453_s4 + $0x8] sm:$0xff] (!%p1072_p11)  }
  0x41   : > { %1148 = vmatprep.subr.bf16.mxu1 %v1230_v34 }
  0x43   : > { %1121 = vmatpush3.bf16.msra.mxu0 %v1231_v35 }
  0x44   : > { %1149 = vmatpush3.bf16.msra.mxu1 %v1232_v36  ;;  %1122 = vmatprep.subr.bf16.mxu0 %v1233_v37  ;;  %v1094_v37 = vunpack.c.l.bf16 (!%p1072_p11), %v1106_v33 }
  0x45   : > { %1150 = vmatprep.subr.bf16.mxu1 %v1234_v38 }
  0x47   : > { %1123 = vmatpush3.bf16.msra.mxu0 %v1235_v39  ;;  %v1095_v39 = vunpack.c.h.bf16 (!%p1072_p11), %v1106_v33 }
  0x48   : > { %1151 = vmatpush3.bf16.msra.mxu1 %v1236_v40 }
  0x4a   : > { %738 = vmatmul.mubr.bf16.vlgmr.msra.gmra.mrb[0].mxu0 %v1237_v41 }
  0x4b   : > { %787 = vmatmul.mubr.bf16.vlgmr.msra.gmra.mrb[0].mxu1 %v1240_v43  ;;  %745 = vmatprep.mubr.bf16.mxu0 %v1243_v45 }
  0x4c   : > { %794 = vmatprep.mubr.bf16.mxu1 %v1245_v46 }
  0x52   : > { %746 = vmatmul.mubr.bf16.gmra.mrb[4].mxu0 %v1247_v47 }
  0x53   : > { %795 = vmatmul.mubr.bf16.gmra.mrb[4].mxu1 %v1248_v48 }
 0x11d   : > { %v1124_v49 = vpop.f32.mrb[0].mxu0 }
 0x11e   : > { %v1152_v50 = vpop.f32.mrb[0].mxu1  ;;  %v1125_v51 = vpop.f32.mrb[1].mxu0 }
 0x11f   : > { %v1126_v52 = vadd.f32 %v1125_v51, %v1124_v49  ;;  %v1153_v53 = vpop.f32.mrb[1].mxu1  ;;  %v1127_v54 = vpop.f32.mrb[2].mxu0 }
 0x120   : > { %v1154_v55 = vadd.f32 %v1153_v53, %v1152_v50  ;;  %v1155_v56 = vpop.f32.mrb[2].mxu1  ;;  %v1128_v57 = vpop.f32.mrb[3].mxu0 }
 0x121   : > { %v1129_v59 = vadd.f32 %v1128_v57, %v1127_v54  ;;  %v1156_v60 = vpop.f32.mrb[3].mxu1 }
 0x122   : > { %v789_v61 = vadd.f32 %v1154_v55, %v1126_v52  ;;  %v1157_v62 = vadd.f32 %v1156_v60, %v1155_v56 }
 0x124   : > { %v803_v0 = vadd.f32 %v789_v61, %v397_v58  ;;  %v792_v1 = vadd.f32 %v1157_v62, %v1129_v59 }
 0x125   : > { %v1130_v2 = vpop.f32.mrb[4].mxu0 }
 0x126   : > { %807 = vst [vmem:[#allocation2] sm:$0xff] %v803_v0  ;;  %v804_v3 = vadd.f32 %v792_v1, %v398_v63  ;;  %v1158_v4 = vpop.f32.mrb[4].mxu1  ;;  %v1131_v5 = vpop.f32.mrb[5].mxu0 }
 0x127   : > { %v1132_v6 = vadd.f32 %v1131_v5, %v1130_v2  ;;  %v1159_v7 = vpop.f32.mrb[5].mxu1  ;;  %v1133_v8 = vpop.f32.mrb[6].mxu0 }
 0x128   : > { %808 = vst [vmem:[#allocation2 + $0x8] sm:$0xff] %v804_v3  ;;  %v1160_v9 = vadd.f32 %v1159_v7, %v1158_v4  ;;  %v1161_v10 = vpop.f32.mrb[6].mxu1  ;;  %v1134_v11 = vpop.f32.mrb[7].mxu0 }
 0x129   : > { %v1135_v13 = vadd.f32 %v1134_v11, %v1133_v8  ;;  %v1162_v14 = vpop.f32.mrb[7].mxu1 }
 0x12a   : > { %v797_v15 = vadd.f32 %v1160_v9, %v1132_v6  ;;  %v1163_v16 = vadd.f32 %v1162_v14, %v1161_v10  ;;  %814 = sbr.rel (%p1072_p11) target bundleno = 323 (0x143), region = 71 }
 0x12c   : > { %v805_v18 = vadd.f32 %v797_v15, %v399_v12  ;;  %v800_v19 = vadd.f32 %v1163_v16, %v1135_v13 }
 0x12d   : > { %v815_v21 = vld [vmem:[#allocation2] sm:$0xff] (!%p1072_p11) }
 0x12e   : > { %809 = vst [vmem:[#allocation2 + $0x10] sm:$0xff] %v805_v18  ;;  %v806_v20 = vadd.f32 %v800_v19, %v400_v17  ;;  %v826_v24 = vmul.f32 (!%p1072_p11), %v1073_v23, %v815_v21 }
 0x12f   : > { %v816_v22 = vld [vmem:[#allocation2 + $0x8] sm:$0xff] (!%p1072_p11) }
 0x130   : > { %810 = vst [vmem:[#allocation2 + $0x18] sm:$0xff] %v806_v20  ;;  %v827_v25 = vmul.f32 (!%p1072_p11), %v1073_v23, %v816_v22  ;;  %v837_v34 = vadd.f32 (!%p1072_p11), %v1074_v26, %v826_v24 }
 0x132   : > { %v838_v35 = vadd.f32 %v1074_v26, %v827_v25  ;;  %v849_v40 = vadd.f32 %v1090_v29, %v837_v34 }
 0x134   : > { %v850_v41 = vadd.f32 %v1091_v30, %v838_v35  ;;  %v853_v44 = vmax.f32 %v849_v40, 0.0 }
 0x135   : > { %v817_v28 = vld [vmem:[#allocation2 + $0x10] sm:$0xff] }
 0x136   : > { %v828_v32 = vmul.f32 %v1073_v23, %v817_v28  ;;  %v854_v45 = vmax.f32 %v850_v41, 0.0 }
 0x137   : > { %v818_v31 = vld [vmem:[#allocation2 + $0x18] sm:$0xff] }
 0x138   : > { %v829_v36 = vmul.f32 %v1073_v23, %v818_v31  ;;  %v839_v38 = vadd.f32 %v1074_v26, %v828_v32  ;;  %v1099_v48 = vpack.c.bf16 %v854_v45, %v853_v44 }
 0x13a   : > { %v840_v42 = vadd.f32 %v1074_v26, %v829_v36  ;;  %v851_v43 = vadd.f32 %v1094_v37, %v839_v38  ;;  %1100 = vst [vmem:[%s1454_s5] sm:$0xff] %v1099_v48  }
 0x13c   : > { %v852_v46 = vadd.f32 %v1095_v39, %v840_v42  ;;  %v855_v47 = vmax.f32 %v851_v43, 0.0 }
 0x13e   : > { %v856_v49 = vmax.f32 %v852_v46, 0.0 }
 0x140   : > { %v1104_v50 = vpack.c.bf16 %v856_v49, %v855_v47 }
 0x142   : > { %1107 = vst [vmem:[%s1454_s5 + $0x8] sm:$0xff] %v1104_v50  }
 0x143 PF: > { %s15_s22 = sadd.s32 1, %s1287_s22   ;;  %s1455_s18 = smov %s1275_s19 }
 0x144   : > { %p12_p12 = scmp.ge.s32.totalorder %s15_s22, 5   ;;  %s1456_s19 = smov %s1355_s26 }
 0x145   : > { %s1457_s20 = smov %s1283_s21  ;;  %s1458_s21 = smov %s1460_s23 }
 0x146   :  { %14 = sbr.rel (!%p12_p12) target bundleno = 3 (0x3), region = 118 }

// kernel: resnet18_forward.34
= control target key start
LH: loop header
LB: loop body
LE: loop exit
PB: predicated region body
PF: predicated region fallthrough
CT: control target
= control target key end

     0   :  { %s1254_s15 = smov 0   ;;  %s1256_s16 = smov 0   ;;  %s1372_s0 = inlined_call_operand.vmem [shape: bf16[8,1536], index: 0, kind: input, shape index: {}]   ;;  %s1373_s1 = inlined_call_operand.vmem [shape: bf16[1536,256], index: 1, kind: input, shape index: {}]   ;;  %s1374_s2 = inlined_call_operand.vmem [shape: f32[1,256], index: 2, kind: input, shape index: {}]   ;;  %s1375_s3 = inlined_call_operand.vmem [shape: f32[1,256], index: 3, kind: input, shape index: {}]   ;;  %s1376_s4 = inlined_call_operand.vmem [shape: bf16[8,256], index: 4, kind: output, shape index: {}]  }
   0x1   :  { %s1258_s17 = smov 0  }
   0x2 LB: > { %s26_s18 = sadd.s32 1, %s1222_s16  ;;  %p996_p0 = scmp.ge.s32.totalorder %s1226_s17, 1  ;;  %s1226_s17 = sphi %s1258_s17, %s14_s17   ;;  %s1222_s16 = sphi %s1256_s16, %s1378_s16   ;;  %s1218_s15 = sphi %s1254_s15, %s1377_s15  }
   0x3   : > { %p27_p1 = scmp.ge.s32.totalorder %s26_s18, 3  ;;  %p229_p2 = scmp.lt.s32.totalorder %s1226_s17, 4 }
   0x5   : > { %s1380_s18 = smov (%p27_p1, %s26_s18), 0  ;;  %p230_p3 = pnand %p996_p0, %p229_p2 }
   0x6   : > { %s997_s19 = sshll.u32 (!%p230_p3), %s1218_s15, 2  ;;  %s999_s20 = sshll.u32 (!%p230_p3), %s1218_s15, 6 }
   0x7   : > { %233 = sbr.rel (%p230_p3) target bundleno = 324 (0x144), region = 36  ;;  %p284_p4 = scmp.lt.s32.totalorder (!%p230_p3), %s997_s19, 11 }
   0x8   : > { %p293_p5 = scmp.lt.s32.totalorder (!%p230_p3), %s999_s20, 191  ;;  %p1002_p6 = scmp.ne.s32.totalorder (!%p230_p3), %s1218_s15, 0 }
   0xe   : > { %s1382_s19 = smov (!%p284_p4, %s997_s19), 11  ;;  %s1384_s20 = smov (!%p293_p5, %s999_s20), 191 }
   0xf   : > { %s998_s21 = sshll.u32 %s1382_s19, 2  ;;  %s1077_s25 = sshll.u32 %s1384_s20, 3  ;;  %v1228_v0 = vmov (!%p1002_p6), 0.0  }
  0x10   : > { %s1279_s24 = scalar_lea.vmem %s1372_s0, %s998_s21  ;;  %s1284_s28 = scalar_lea.vmem %s1373_s1, %s1077_s25  ;;  %327 = vst [vmem:[#allocation2] sm:$0xff] (!%p1002_p6), %v1228_v0  ;;  %328 = vst [vmem:[#allocation2 + $0x8] sm:$0xff] (!%p1002_p6), %v1228_v0 }
  0x11   : > { %326 = sbr.rel (%p1002_p6) target bundleno = 24 (0x18), region = 40 }
  0x18 PF: > { %v1104_v1 = vld [vmem:[%s1284_s28 + $0x4] ss:$8 sps:$4 sm:$0xff]   ;;  %v1108_v3 = vld [vmem:[%s1284_s28] ss:$8 sps:$4 sm:$0xff]   ;;  %v1110_v5 = vld [vmem:[%s1284_s28 + $0x14] ss:$8 sps:$4 sm:$0xff]  }
  0x19   : > { %v1106_v2 = vld [vmem:[%s1284_s28 + $0x104] ss:$8 sps:$4 sm:$0xff]   ;;  %731 = vmatprep.subr.bf16.mxu0 %v1104_v1  ;;  %v1109_v4 = vld [vmem:[%s1284_s28 + $0x100] ss:$8 sps:$4 sm:$0xff]   ;;  %v1112_v6 = vld [vmem:[%s1284_s28 + $0x114] ss:$8 sps:$4 sm:$0xff]  }
  0x1a   : > { %772 = vmatprep.subr.bf16.mxu1 %v1106_v2  ;;  %732 = vmatpush1.bf16.msra.mxu0 %v1108_v3  ;;  %v1114_v7 = vld [vmem:[%s1284_s28 + $0x10] ss:$8 sps:$4 sm:$0xff]   ;;  %v1116_v9 = vld [vmem:[%s1284_s28 + $0x24] ss:$8 sps:$4 sm:$0xff]   ;;  %v1120_v11 = vld [vmem:[%s1284_s28 + $0x20] ss:$8 sps:$4 sm:$0xff]  }
  0x1b   : > { %773 = vmatpush1.bf16.msra.mxu1 %v1109_v4  ;;  %733 = vmatprep.subr.bf16.mxu0 %v1110_v5  ;;  %v1115_v8 = vld [vmem:[%s1284_s28 + $0x110] ss:$8 sps:$4 sm:$0xff]   ;;  %v1118_v10 = vld [vmem:[%s1284_s28 + $0x124] ss:$8 sps:$4 sm:$0xff]   ;;  %v1121_v12 = vld [vmem:[%s1284_s28 + $0x120] ss:$8 sps:$4 sm:$0xff]  }
  0x1c   : > { %774 = vmatprep.subr.bf16.mxu1 %v1112_v6  ;;  %v1122_v13 = vld [vmem:[%s1284_s28 + $0x34] ss:$8 sps:$4 sm:$0xff]   ;;  %v1126_v15 = vld [vmem:[%s1284_s28 + $0x30] ss:$8 sps:$4 sm:$0xff]   ;;  %v1128_v17 = vld [vmem:[%s1284_s28 + $0x44] ss:$8 sps:$4 sm:$0xff]  }
  0x1d   : > { %v1124_v14 = vld [vmem:[%s1284_s28 + $0x134] ss:$8 sps:$4 sm:$0xff]   ;;  %v1127_v16 = vld [vmem:[%s1284_s28 + $0x130] ss:$8 sps:$4 sm:$0xff]   ;;  %v1130_v18 = vld [vmem:[%s1284_s28 + $0x144] ss:$8 sps:$4 sm:$0xff]  }
  0x1e   : > { %734 = vmatpush1.bf16.msra.mxu0 %v1114_v7  ;;  %v1132_v19 = vld [vmem:[%s1284_s28 + $0x40] ss:$8 sps:$4 sm:$0xff]   ;;  %v1134_v21 = vld [vmem:[%s1284_s28 + $0x54] ss:$8 sps:$4 sm:$0xff]   ;;  %v1138_v23 = vld [vmem:[%s1284_s28 + $0x50] ss:$8 sps:$4 sm:$0xff]  }
  0x1f   : > { %775 = vmatpush1.bf16.msra.mxu1 %v1115_v8  ;;  %735 = vmatprep.subr.bf16.mxu0 %v1116_v9  ;;  %v1133_v20 = vld [vmem:[%s1284_s28 + $0x140] ss:$8 sps:$4 sm:$0xff]   ;;  %v1136_v22 = vld [vmem:[%s1284_s28 + $0x154] ss:$8 sps:$4 sm:$0xff]   ;;  %v1139_v24 = vld [vmem:[%s1284_s28 + $0x150] ss:$8 sps:$4 sm:$0xff]  }
  0x20   : > { %776 = vmatprep.subr.bf16.mxu1 %v1118_v10  ;;  %v1140_v25 = vld [vmem:[%s1284_s28 + $0x64] ss:$8 sps:$4 sm:$0xff]   ;;  %v1144_v27 = vld [vmem:[%s1284_s28 + $0x60] ss:$8 sps:$4 sm:$0xff]   ;;  %v1146_v29 = vld [vmem:[%s1284_s28 + $0x74] ss:$8 sps:$4 sm:$0xff]  }
  0x21   : > { %v1142_v26 = vld [vmem:[%s1284_s28 + $0x164] ss:$8 sps:$4 sm:$0xff]   ;;  %v1145_v28 = vld [vmem:[%s1284_s28 + $0x160] ss:$8 sps:$4 sm:$0xff]   ;;  %v1148_v30 = vld [vmem:[%s1284_s28 + $0x174] ss:$8 sps:$4 sm:$0xff]  }
  0x22   : > { %736 = vmatpush1.bf16.msra.mxu0 %v1120_v11  ;;  %v1150_v31 = vld [vmem:[%s1284_s28 + $0x70] ss:$8 sps:$4 sm:$0xff]   ;;  %v1152_v33 = vld [vmem:[%s1284_s28 + $0x84] ss:$8 sps:$4 sm:$0xff]   ;;  %v1156_v35 = vld [vmem:[%s1284_s28 + $0x80] ss:$8 sps:$4 sm:$0xff]  }
  0x23   : > { %777 = vmatpush1.bf16.msra.mxu1 %v1121_v12  ;;  %737 = vmatprep.subr.bf16.mxu0 %v1122_v13  ;;  %v1151_v32 = vld [vmem:[%s1284_s28 + $0x170] ss:$8 sps:$4 sm:$0xff]   ;;  %v1154_v34 = vld [vmem:[%s1284_s28 + $0x184] ss:$8 sps:$4 sm:$0xff]   ;;  %v1157_v36 = vld [vmem:[%s1284_s28 + $0x180] ss:$8 sps:$4 sm:$0xff]  }
  0x24   : > { %778 = vmatprep.subr.bf16.mxu1 %v1124_v14  ;;  %v1158_v37 = vld [vmem:[%s1284_s28 + $0x94] ss:$8 sps:$4 sm:$0xff]   ;;  %v1162_v39 = vld [vmem:[%s1284_s28 + $0x90] ss:$8 sps:$4 sm:$0xff]   ;;  %v1164_v41 = vld [vmem:[%s1284_s28 + $0xa4] ss:$8 sps:$4 sm:$0xff]  }
  0x25   : > { %v1160_v38 = vld [vmem:[%s1284_s28 + $0x194] ss:$8 sps:$4 sm:$0xff]   ;;  %v1163_v40 = vld [vmem:[%s1284_s28 + $0x190] ss:$8 sps:$4 sm:$0xff]   ;;  %v1166_v42 = vld [vmem:[%s1284_s28 + $0x1a4] ss:$8 sps:$4 sm:$0xff]  }
  0x26   : > { %738 = vmatpush1.bf16.msra.mxu0 %v1126_v15  ;;  %v1168_v43 = vld [vmem:[%s1284_s28 + $0xa0] ss:$8 sps:$4 sm:$0xff]   ;;  %v1170_v45 = vld [vmem:[%s1284_s28 + $0xb4] ss:$8 sps:$4 sm:$0xff]   ;;  %v1174_v50 = vld [vmem:[%s1284_s28 + $0xb0] ss:$8 sps:$4 sm:$0xff]  }
  0x27   : > { %779 = vmatpush1.bf16.msra.mxu1 %v1127_v16  ;;  %739 = vmatprep.subr.bf16.mxu0 %v1128_v17  ;;  %v1169_v44 = vld [vmem:[%s1284_s28 + $0x1a0] ss:$8 sps:$4 sm:$0xff]   ;;  %v1172_v46 = vld [vmem:[%s1284_s28 + $0x1b4] ss:$8 sps:$4 sm:$0xff]   ;;  %v1175_v51 = vld [vmem:[%s1284_s28 + $0x1b0] ss:$8 sps:$4 sm:$0xff]  }
  0x28   : > { %780 = vmatprep.subr.bf16.mxu1 %v1130_v18  ;;  %v331_v47 = vld [vmem:[%s1279_s24] sm:$0xff]  ;;  %v332_v49 = vld [vmem:[%s1279_s24 + $0x8] sm:$0xff]  ;;  %v1182_v57 = vld [vmem:[%s1284_s28 + $0xd4] ss:$8 sps:$4 sm:$0xff]   ;;  %p1071_p7 = scmp.ne.s32.totalorder %s1218_s15, 2 }
  0x29   : > { %v1004_v48 = vcombine.high %v331_v47, %v331_v47  ;;  %v1006_v52 = vcombine.high %v332_v49, %v332_v49  ;;  %v1176_v53 = vld [vmem:[%s1284_s28 + $0xc4] ss:$8 sps:$4 sm:$0xff]   ;;  %v1180_v55 = vld [vmem:[%s1284_s28 + $0xc0] ss:$8 sps:$4 sm:$0xff]   ;;  %v1184_v58 = vld [vmem:[%s1284_s28 + $0x1d4] ss:$8 sps:$4 sm:$0xff]   ;;  %v1003_v5 = vcombine.low %v331_v47, %v331_v47  ;;  %v1005_v6 = vcombine.low %v332_v49, %v332_v49 }
  0x2a   : > { %740 = vmatpush1.bf16.msra.mxu0 %v1132_v19  ;;  %v1178_v54 = vld [vmem:[%s1284_s28 + $0x1c4] ss:$8 sps:$4 sm:$0xff]   ;;  %v1181_v56 = vld [vmem:[%s1284_s28 + $0x1c0] ss:$8 sps:$4 sm:$0xff]   ;;  %v1186_v59 = vld [vmem:[%s1284_s28 + $0xd0] ss:$8 sps:$4 sm:$0xff]  }
  0x2b   : > { %781 = vmatpush1.bf16.msra.mxu1 %v1133_v20  ;;  %741 = vmatprep.subr.bf16.mxu0 %v1134_v21  ;;  %v1187_v60 = vld [vmem:[%s1284_s28 + $0x1d0] ss:$8 sps:$4 sm:$0xff]   ;;  %v1188_v61 = vld [vmem:[%s1284_s28 + $0xe4] ss:$8 sps:$4 sm:$0xff]   ;;  %v1192_v63 = vld [vmem:[%s1284_s28 + $0xe0] ss:$8 sps:$4 sm:$0xff]   ;;  %v825_v21 = vlaneseq (!%p1071_p7) }
  0x2c   : > { %782 = vmatprep.subr.bf16.mxu1 %v1136_v22  ;;  %763 = vmatprep.mubr.bf16.mxu0 %v1004_v48  ;;  %v1190_v62 = vld [vmem:[%s1284_s28 + $0x1e4] ss:$8 sps:$4 sm:$0xff]   ;;  %v1193_v0 = vld [vmem:[%s1284_s28 + $0x1e0] ss:$8 sps:$4 sm:$0xff]   ;;  %v1194_v1 = vld [vmem:[%s1284_s28 + $0xf4] ss:$8 sps:$4 sm:$0xff]  }
  0x2d   : > { %804 = vmatprep.mubr.bf16.mxu1 %v1006_v52  ;;  %v1196_v2 = vld [vmem:[%s1284_s28 + $0x1f4] ss:$8 sps:$4 sm:$0xff]   ;;  %v1198_v3 = vld [vmem:[%s1284_s28 + $0xf0] ss:$8 sps:$4 sm:$0xff]   ;;  %v329_v8 = vld [vmem:[#allocation2] sm:$0xff]  ;;  %v826_v22 = vshrl.u32 (!%p1071_p7), %v825_v21, 7 }
  0x2e   : > { %742 = vmatpush1.bf16.msra.mxu0 %v1138_v23  ;;  %v1199_v4 = vld [vmem:[%s1284_s28 + $0x1f0] ss:$8 sps:$4 sm:$0xff]   ;;  %v330_v12 = vld [vmem:[#allocation2 + $0x8] sm:$0xff]  ;;  %v823_v23 = vld [vmem:[%s1374_s2] sm:$0x3] (!%p1071_p7) }
  0x2f   : > { %783 = vmatpush1.bf16.msra.mxu1 %v1139_v24  ;;  %743 = vmatprep.subr.bf16.mxu0 %v1140_v25  ;;  %v837_v24 = vld [vmem:[%s1375_s3] sm:$0x3] (!%p1071_p7)  ;;  %v827_v25 = vsub.s32 (!%p1071_p7), 0, %v826_v22 }
  0x30   : > { %784 = vmatprep.subr.bf16.mxu1 %v1142_v26  ;;  %v831_v26 = vsub.s32 (!%p1071_p7), 1, %v826_v22 }
  0x32   : > { %744 = vmatpush1.bf16.msra.mxu0 %v1144_v27 }
  0x33   : > { %785 = vmatpush1.bf16.msra.mxu1 %v1145_v28  ;;  %745 = vmatprep.subr.bf16.mxu0 %v1146_v29  ;;  %v828_v29 = vrot.slane (!%p1071_p7), %v823_v23, %v827_v25 }
  0x34   : > { %786 = vmatprep.subr.bf16.mxu1 %v1148_v30  ;;  %v832_v30 = vrot.slane (!%p1071_p7), %v823_v23, %v831_v26 }
  0x36   : > { %746 = vmatpush1.bf16.msra.mxu0 %v1150_v31  ;;  %v842_v31 = vrot.slane (!%p1071_p7), %v837_v24, %v827_v25 }
  0x37   : > { %787 = vmatpush1.bf16.msra.mxu1 %v1151_v32  ;;  %747 = vmatprep.subr.bf16.mxu0 %v1152_v33  ;;  %v846_v32 = vrot.slane (!%p1071_p7), %v837_v24, %v831_v26 }
  0x38   : > { %788 = vmatprep.subr.bf16.mxu1 %v1154_v34 }
  0x3a   : > { %748 = vmatpush1.bf16.msra.mxu0 %v1156_v35 }
  0x3b   : > { %789 = vmatpush1.bf16.msra.mxu1 %v1157_v36  ;;  %749 = vmatprep.subr.bf16.mxu0 %v1158_v37 }
  0x3c   : > { %790 = vmatprep.subr.bf16.mxu1 %v1160_v38 }
  0x3e   : > { %750 = vmatpush1.bf16.msra.mxu0 %v1162_v39 }
  0x3f   : > { %791 = vmatpush1.bf16.msra.mxu1 %v1163_v40  ;;  %751 = vmatprep.subr.bf16.mxu0 %v1164_v41 }
  0x40   : > { %792 = vmatprep.subr.bf16.mxu1 %v1166_v42 }
  0x42   : > { %752 = vmatpush1.bf16.msra.mxu0 %v1168_v43 }
  0x43   : > { %793 = vmatpush1.bf16.msra.mxu1 %v1169_v44  ;;  %753 = vmatprep.subr.bf16.mxu0 %v1170_v45 }
  0x44   : > { %794 = vmatprep.subr.bf16.mxu1 %v1172_v46 }
  0x46   : > { %754 = vmatpush1.bf16.msra.mxu0 %v1174_v50 }
  0x47   : > { %795 = vmatpush1.bf16.msra.mxu1 %v1175_v51  ;;  %755 = vmatprep.subr.bf16.mxu0 %v1176_v53 }
  0x48   : > { %796 = vmatprep.subr.bf16.mxu1 %v1178_v54 }
  0x4a   : > { %756 = vmatpush1.bf16.msra.mxu0 %v1180_v55 }
  0x4b   : > { %797 = vmatpush1.bf16.msra.mxu1 %v1181_v56  ;;  %757 = vmatprep.subr.bf16.mxu0 %v1182_v57 }
  0x4c   : > { %798 = vmatprep.subr.bf16.mxu1 %v1184_v58 }
  0x4e   : > { %758 = vmatpush1.bf16.msra.mxu0 %v1186_v59 }
  0x4f   : > { %799 = vmatpush1.bf16.msra.mxu1 %v1187_v60  ;;  %759 = vmatprep.subr.bf16.mxu0 %v1188_v61 }
  0x50   : > { %800 = vmatprep.subr.bf16.mxu1 %v1190_v62 }
  0x52   : > { %760 = vmatpush1.bf16.msra.mxu0 %v1192_v63 }
  0x53   : > { %801 = vmatpush1.bf16.msra.mxu1 %v1193_v0  ;;  %761 = vmatprep.subr.bf16.mxu0 %v1194_v1 }
  0x54   : > { %802 = vmatprep.subr.bf16.mxu1 %v1196_v2 }
  0x56   : > { %762 = vmatpush1.bf16.msra.mxu0 %v1198_v3 }
  0x57   : > { %803 = vmatpush1.bf16.msra.mxu1 %v1199_v4 }
  0x59   : > { %764 = vmatmul.mubr.bf16.vlgmr.msra.gmra.mrb[0].mxu0 %v1003_v5 }
  0x5a   : > { %805 = vmatmul.mubr.bf16.vlgmr.msra.gmra.mrb[0].mxu1 %v1005_v6 }
 0x12c   : > { %v765_v7 = vpop.f32.mrb[0].mxu0 }
 0x12d   : > { %v806_v9 = vpop.f32.mrb[0].mxu1  ;;  %v767_v11 = vpop.f32.mrb[1].mxu0  ;;  %820 = sbr.rel (%p1071_p7) target bundleno = 324 (0x144), region = 44 }
 0x12e   : > { %v807_v10 = vadd.f32 %v806_v9, %v765_v7  ;;  %v808_v13 = vpop.f32.mrb[1].mxu1  ;;  %v769_v15 = vpop.f32.mrb[2].mxu0 }
 0x12f   : > { %v809_v14 = vadd.f32 %v808_v13, %v767_v11  ;;  %v810_v16 = vpop.f32.mrb[2].mxu1  ;;  %v770_v18 = vpop.f32.mrb[3].mxu0 }
 0x130   : > { %v813_v17 = vadd.f32 %v807_v10, %v329_v8  ;;  %v811_v19 = vpop.f32.mrb[3].mxu1 }
 0x131   : > { %v814_v20 = vadd.f32 %v809_v14, %v330_v12 }
 0x132   : > { %815 = vst [vmem:[#allocation2] sm:$0xff] %v813_v17 }
 0x133   : > { %816 = vst [vmem:[#allocation2 + $0x8] sm:$0xff] %v814_v20 }
 0x139   : > { %v821_v27 = vld [vmem:[#allocation2] sm:$0xff] }
 0x13a   : > { %v822_v28 = vld [vmem:[#allocation2 + $0x8] sm:$0xff]  ;;  %v835_v33 = vmul.f32 %v828_v29, %v821_v27 }
 0x13b   : > { %v836_v34 = vmul.f32 %v832_v30, %v822_v28 }
 0x13c   : > { %v849_v35 = vadd.f32 %v842_v31, %v835_v33 }
 0x13d   : > { %v850_v36 = vadd.f32 %v846_v32, %v836_v34 }
 0x13e   : > { %v851_v37 = vmax.f32 %v849_v35, 0.0 }
 0x13f   : > { %v852_v38 = vmax.f32 %v850_v36, 0.0 }
 0x141   : > { %v1078_v39 = vpack.c.bf16 %v852_v38, %v851_v37 }
 0x143   : > { %861 = vst [vmem:[%s1376_s4] sm:$0xff] %v1078_v39 }
 0x144 PF: > { %s14_s17 = sadd.s32 1, %s1226_s17   ;;  %s1377_s15 = smov %s1222_s16 }
 0x145   : > { %p11_p8 = scmp.ge.s32.totalorder %s14_s17, 5   ;;  %s1378_s16 = smov %s1380_s18 }
 0x147   :  { %13 = sbr.rel (!%p11_p8) target bundleno = 2 (0x2), region = 83 }

// kernel: resnet18_forward.35
= control target key start
LH: loop header
LB: loop body
LE: loop exit
PB: predicated region body
PF: predicated region fallthrough
CT: control target
= control target key end

     0   :  { %v257_v1 = vmov 0   ;;  %v175_v18 = vlaneseq  ;;  %s343_s1 = inlined_call_operand.vmem [shape: bf16[128,256], index: 1, kind: input, shape index: {}]   ;;  %s344_s0 = inlined_call_operand.vmem [shape: bf16[8,128], index: 0, kind: input, shape index: {}]   ;;  %s345_s2 = inlined_call_operand.vmem [shape: f32[1,256], index: 2, kind: input, shape index: {}]   ;;  %s346_s3 = inlined_call_operand.vmem [shape: f32[1,256], index: 3, kind: input, shape index: {}]   ;;  %s347_s4 = inlined_call_operand.vmem [shape: bf16[8,256], index: 4, kind: output, shape index: {}]  }
   0x1   :  { %v233_v0 = vld [vmem:[%s343_s1 + $0x4] ss:$8 sps:$4 sm:$0xff]   ;;  %155 = vmatprep.mubr.bf16.mxu0 %v257_v1  ;;  %v235_v2 = vld [vmem:[%s343_s1] ss:$8 sps:$4 sm:$0xff]   ;;  %v236_v3 = vld [vmem:[%s343_s1 + $0x14] ss:$8 sps:$4 sm:$0xff]  }
   0x2   :  { %123 = vmatprep.subr.bf16.mxu0 %v233_v0  ;;  %v238_v4 = vld [vmem:[%s343_s1 + $0x10] ss:$8 sps:$4 sm:$0xff]   ;;  %v239_v5 = vld [vmem:[%s343_s1 + $0x24] ss:$8 sps:$4 sm:$0xff]   ;;  %v241_v6 = vld [vmem:[%s343_s1 + $0x20] ss:$8 sps:$4 sm:$0xff]  }
   0x3   :  { %124 = vmatpush1.bf16.msra.mxu0 %v235_v2  ;;  %v242_v7 = vld [vmem:[%s343_s1 + $0x34] ss:$8 sps:$4 sm:$0xff]   ;;  %v244_v8 = vld [vmem:[%s343_s1 + $0x30] ss:$8 sps:$4 sm:$0xff]   ;;  %v245_v9 = vld [vmem:[%s343_s1 + $0x44] ss:$8 sps:$4 sm:$0xff]  }
   0x4   :  { %125 = vmatprep.subr.bf16.mxu0 %v236_v3  ;;  %v247_v10 = vld [vmem:[%s343_s1 + $0x40] ss:$8 sps:$4 sm:$0xff]   ;;  %v248_v11 = vld [vmem:[%s343_s1 + $0x54] ss:$8 sps:$4 sm:$0xff]   ;;  %v250_v12 = vld [vmem:[%s343_s1 + $0x50] ss:$8 sps:$4 sm:$0xff]  }
   0x5   :  { %v251_v13 = vld [vmem:[%s343_s1 + $0x64] ss:$8 sps:$4 sm:$0xff]   ;;  %v253_v14 = vld [vmem:[%s343_s1 + $0x60] ss:$8 sps:$4 sm:$0xff]   ;;  %v254_v15 = vld [vmem:[%s343_s1 + $0x74] ss:$8 sps:$4 sm:$0xff]  }
   0x6   :  { %v256_v16 = vld [vmem:[%s343_s1 + $0x70] ss:$8 sps:$4 sm:$0xff]   ;;  %v26_v17 = vld [vmem:[%s344_s0] sm:$0xf]  ;;  %v176_v19 = vshrl.u32 %v175_v18, 7 }
   0x7   :  { %126 = vmatpush1.bf16.msra.mxu0 %v238_v4  ;;  %v173_v21 = vld [vmem:[%s345_s2] sm:$0x3] }
   0x8   :  { %127 = vmatprep.subr.bf16.mxu0 %v239_v5  ;;  %v177_v20 = vsub.s32 0, %v176_v19  ;;  %v181_v22 = vsub.s32 1, %v176_v19  ;;  %v187_v23 = vld [vmem:[%s346_s3] sm:$0x3] }
   0xa   :  { %v178_v24 = vrot.slane %v173_v21, %v177_v20  ;;  %v182_v25 = vrot.slane %v173_v21, %v181_v22  ;;  %v192_v26 = vrot.slane %v187_v23, %v177_v20  ;;  %v196_v28 = vrot.slane %v187_v23, %v181_v22 }
   0xb   :  { %128 = vmatpush1.bf16.msra.mxu0 %v241_v6 }
   0xc   :  { %129 = vmatprep.subr.bf16.mxu0 %v242_v7 }
   0xf   :  { %130 = vmatpush1.bf16.msra.mxu0 %v244_v8 }
  0x10   :  { %131 = vmatprep.subr.bf16.mxu0 %v245_v9 }
  0x13   :  { %132 = vmatpush1.bf16.msra.mxu0 %v247_v10 }
  0x14   :  { %133 = vmatprep.subr.bf16.mxu0 %v248_v11 }
  0x17   :  { %134 = vmatpush1.bf16.msra.mxu0 %v250_v12 }
  0x18   :  { %135 = vmatprep.subr.bf16.mxu0 %v251_v13 }
  0x1b   :  { %136 = vmatpush1.bf16.msra.mxu0 %v253_v14 }
  0x1c   :  { %137 = vmatprep.subr.bf16.mxu0 %v254_v15 }
  0x1f   :  { %138 = vmatpush1.bf16.msra.mxu0 %v256_v16 }
  0x22   :  { %156 = vmatmul.mubr.bf16.vlgmr.msra.gmra.mrb[0].mxu0 %v26_v17 }
  0xf5   :  { %v157_v27 = vpop.f32.mrb[0].mxu0 }
  0xf6   :  { %v185_v29 = vmul.f32 %v178_v24, %v157_v27  ;;  %v159_v30 = vpop.f32.mrb[1].mxu0 }
  0xf7   :  { %v186_v31 = vmul.f32 %v182_v25, %v159_v30  ;;  %v161_v32 = vpop.f32.mrb[2].mxu0 }
  0xf8   :  { %v199_v33 = vadd.f32 %v192_v26, %v185_v29  ;;  %v162_v34 = vpop.f32.mrb[3].mxu0 }
  0xf9   :  { %v200_v35 = vadd.f32 %v196_v28, %v186_v31 }
  0xfb   :  { %v231_v36 = vpack.c.bf16 %v200_v35, %v199_v33 }
  0xfd   :  { %209 = vst [vmem:[%s347_s4] sm:$0xff] %v231_v36 }

// kernel: resnet18_forward.36
= control target key start
LH: loop header
LB: loop body
LE: loop exit
PB: predicated region body
PF: predicated region fallthrough
CT: control target
= control target key end

     0   :  { %s1349_s18 = smov 0   ;;  %s1351_s19 = smov 0   ;;  %s1470_s0 = inlined_call_operand.vmem [shape: bf16[8,2560], index: 0, kind: input, shape index: {}]   ;;  %s1471_s1 = inlined_call_operand.vmem [shape: bf16[2560,256], index: 1, kind: input, shape index: {}]   ;;  %s1472_s2 = inlined_call_operand.vmem [shape: f32[1,256], index: 2, kind: input, shape index: {}]   ;;  %s1473_s3 = inlined_call_operand.vmem [shape: f32[1,256], index: 3, kind: input, shape index: {}]   ;;  %s1474_s4 = inlined_call_operand.vmem [shape: bf16[8,256], index: 4, kind: input, shape index: {}]   ;;  %s1475_s5 = inlined_call_operand.vmem [shape: bf16[8,256], index: 5, kind: output, shape index: {}]  }
   0x1   :  { %s1353_s20 = smov 0  }
   0x2 LB: > { %s27_s21 = sadd.s32 1, %s1312_s19  ;;  %p1086_p0 = scmp.ge.s32.totalorder %s1316_s20, 1  ;;  %s1316_s20 = sphi %s1353_s20, %s15_s20   ;;  %s1312_s19 = sphi %s1351_s19, %s1477_s19   ;;  %s1308_s18 = sphi %s1349_s18, %s1476_s18  }
   0x3   : > { %p28_p1 = scmp.ge.s32.totalorder %s27_s21, 5  ;;  %p271_p2 = scmp.lt.s32.totalorder %s1316_s20, 6 }
   0x5   : > { %s1479_s21 = smov (%p28_p1, %s27_s21), 0  ;;  %p272_p3 = pnand %p1086_p0, %p271_p2 }
   0x6   : > { %s1087_s22 = sshll.u32 (!%p272_p3), %s1308_s18, 2  ;;  %s1089_s23 = sshll.u32 (!%p272_p3), %s1308_s18, 6 }
   0x7   : > { %275 = sbr.rel (%p272_p3) target bundleno = 326 (0x146), region = 40  ;;  %p337_p4 = scmp.lt.s32.totalorder (!%p272_p3), %s1087_s22, 19 }
   0x8   : > { %p346_p5 = scmp.lt.s32.totalorder (!%p272_p3), %s1089_s23, 319  ;;  %p1092_p6 = scmp.ne.s32.totalorder (!%p272_p3), %s1308_s18, 0 }
   0xe   : > { %s1481_s22 = smov (!%p337_p4, %s1087_s22), 19  ;;  %s1483_s23 = smov (!%p346_p5, %s1089_s23), 319 }
   0xf   : > { %s1088_s24 = sshll.u32 %s1481_s22, 2  ;;  %s1167_s28 = sshll.u32 %s1483_s23, 3  ;;  %v1318_v0 = vmov (!%p1092_p6), 0.0  }
  0x10   : > { %s1374_s27 = scalar_lea.vmem %s1470_s0, %s1088_s24  ;;  %s1379_s6 = scalar_lea.vmem %s1471_s1, %s1167_s28  ;;  %390 = vst [vmem:[#allocation2] sm:$0xff] (!%p1092_p6), %v1318_v0  ;;  %391 = vst [vmem:[#allocation2 + $0x8] sm:$0xff] (!%p1092_p6), %v1318_v0 }
  0x11   : > { %389 = sbr.rel (%p1092_p6) target bundleno = 24 (0x18), region = 44 }
  0x18 PF: > { %v1194_v1 = vld [vmem:[%s1379_s6 + $0x4] ss:$8 sps:$4 sm:$0xff]   ;;  %v1198_v3 = vld [vmem:[%s1379_s6] ss:$8 sps:$4 sm:$0xff]   ;;  %v1200_v5 = vld [vmem:[%s1379_s6 + $0x14] ss:$8 sps:$4 sm:$0xff]  }
  0x19   : > { %v1196_v2 = vld [vmem:[%s1379_s6 + $0x104] ss:$8 sps:$4 sm:$0xff]   ;;  %794 = vmatprep.subr.bf16.mxu0 %v1194_v1  ;;  %v1199_v4 = vld [vmem:[%s1379_s6 + $0x100] ss:$8 sps:$4 sm:$0xff]   ;;  %v1202_v6 = vld [vmem:[%s1379_s6 + $0x114] ss:$8 sps:$4 sm:$0xff]  }
  0x1a   : > { %835 = vmatprep.subr.bf16.mxu1 %v1196_v2  ;;  %795 = vmatpush1.bf16.msra.mxu0 %v1198_v3  ;;  %v1204_v7 = vld [vmem:[%s1379_s6 + $0x10] ss:$8 sps:$4 sm:$0xff]   ;;  %v1206_v9 = vld [vmem:[%s1379_s6 + $0x24] ss:$8 sps:$4 sm:$0xff]   ;;  %v1210_v11 = vld [vmem:[%s1379_s6 + $0x20] ss:$8 sps:$4 sm:$0xff]  }
  0x1b   : > { %836 = vmatpush1.bf16.msra.mxu1 %v1199_v4  ;;  %796 = vmatprep.subr.bf16.mxu0 %v1200_v5  ;;  %v1205_v8 = vld [vmem:[%s1379_s6 + $0x110] ss:$8 sps:$4 sm:$0xff]   ;;  %v1208_v10 = vld [vmem:[%s1379_s6 + $0x124] ss:$8 sps:$4 sm:$0xff]   ;;  %v1211_v12 = vld [vmem:[%s1379_s6 + $0x120] ss:$8 sps:$4 sm:$0xff]  }
  0x1c   : > { %837 = vmatprep.subr.bf16.mxu1 %v1202_v6  ;;  %v1212_v13 = vld [vmem:[%s1379_s6 + $0x34] ss:$8 sps:$4 sm:$0xff]   ;;  %v1216_v15 = vld [vmem:[%s1379_s6 + $0x30] ss:$8 sps:$4 sm:$0xff]   ;;  %v1218_v17 = vld [vmem:[%s1379_s6 + $0x44] ss:$8 sps:$4 sm:$0xff]  }
  0x1d   : > { %v1214_v14 = vld [vmem:[%s1379_s6 + $0x134] ss:$8 sps:$4 sm:$0xff]   ;;  %v1217_v16 = vld [vmem:[%s1379_s6 + $0x130] ss:$8 sps:$4 sm:$0xff]   ;;  %v1220_v18 = vld [vmem:[%s1379_s6 + $0x144] ss:$8 sps:$4 sm:$0xff]  }
  0x1e   : > { %797 = vmatpush1.bf16.msra.mxu0 %v1204_v7  ;;  %v1222_v19 = vld [vmem:[%s1379_s6 + $0x40] ss:$8 sps:$4 sm:$0xff]   ;;  %v1224_v21 = vld [vmem:[%s1379_s6 + $0x54] ss:$8 sps:$4 sm:$0xff]   ;;  %v1228_v23 = vld [vmem:[%s1379_s6 + $0x50] ss:$8 sps:$4 sm:$0xff]  }
  0x1f   : > { %838 = vmatpush1.bf16.msra.mxu1 %v1205_v8  ;;  %798 = vmatprep.subr.bf16.mxu0 %v1206_v9  ;;  %v1223_v20 = vld [vmem:[%s1379_s6 + $0x140] ss:$8 sps:$4 sm:$0xff]   ;;  %v1226_v22 = vld [vmem:[%s1379_s6 + $0x154] ss:$8 sps:$4 sm:$0xff]   ;;  %v1229_v24 = vld [vmem:[%s1379_s6 + $0x150] ss:$8 sps:$4 sm:$0xff]  }
  0x20   : > { %839 = vmatprep.subr.bf16.mxu1 %v1208_v10  ;;  %v1230_v25 = vld [vmem:[%s1379_s6 + $0x64] ss:$8 sps:$4 sm:$0xff]   ;;  %v1234_v27 = vld [vmem:[%s1379_s6 + $0x60] ss:$8 sps:$4 sm:$0xff]   ;;  %v1236_v29 = vld [vmem:[%s1379_s6 + $0x74] ss:$8 sps:$4 sm:$0xff]  }
  0x21   : > { %v1232_v26 = vld [vmem:[%s1379_s6 + $0x164] ss:$8 sps:$4 sm:$0xff]   ;;  %v1235_v28 = vld [vmem:[%s1379_s6 + $0x160] ss:$8 sps:$4 sm:$0xff]   ;;  %v1238_v30 = vld [vmem:[%s1379_s6 + $0x174] ss:$8 sps:$4 sm:$0xff]  }
  0x22   : > { %799 = vmatpush1.bf16.msra.mxu0 %v1210_v11  ;;  %v1240_v31 = vld [vmem:[%s1379_s6 + $0x70] ss:$8 sps:$4 sm:$0xff]   ;;  %v1242_v33 = vld [vmem:[%s1379_s6 + $0x84] ss:$8 sps:$4 sm:$0xff]   ;;  %v1246_v35 = vld [vmem:[%s1379_s6 + $0x80] ss:$8 sps:$4 sm:$0xff]  }
  0x23   : > { %840 = vmatpush1.bf16.msra.mxu1 %v1211_v12  ;;  %800 = vmatprep.subr.bf16.mxu0 %v1212_v13  ;;  %v1241_v32 = vld [vmem:[%s1379_s6 + $0x170] ss:$8 sps:$4 sm:$0xff]   ;;  %v1244_v34 = vld [vmem:[%s1379_s6 + $0x184] ss:$8 sps:$4 sm:$0xff]   ;;  %v1247_v36 = vld [vmem:[%s1379_s6 + $0x180] ss:$8 sps:$4 sm:$0xff]  }
  0x24   : > { %841 = vmatprep.subr.bf16.mxu1 %v1214_v14  ;;  %v1248_v37 = vld [vmem:[%s1379_s6 + $0x94] ss:$8 sps:$4 sm:$0xff]   ;;  %v1252_v39 = vld [vmem:[%s1379_s6 + $0x90] ss:$8 sps:$4 sm:$0xff]   ;;  %v1254_v41 = vld [vmem:[%s1379_s6 + $0xa4] ss:$8 sps:$4 sm:$0xff]  }
  0x25   : > { %v1250_v38 = vld [vmem:[%s1379_s6 + $0x194] ss:$8 sps:$4 sm:$0xff]   ;;  %v1253_v40 = vld [vmem:[%s1379_s6 + $0x190] ss:$8 sps:$4 sm:$0xff]   ;;  %v1256_v42 = vld [vmem:[%s1379_s6 + $0x1a4] ss:$8 sps:$4 sm:$0xff]  }
  0x26   : > { %801 = vmatpush1.bf16.msra.mxu0 %v1216_v15  ;;  %v1258_v43 = vld [vmem:[%s1379_s6 + $0xa0] ss:$8 sps:$4 sm:$0xff]   ;;  %v1260_v45 = vld [vmem:[%s1379_s6 + $0xb4] ss:$8 sps:$4 sm:$0xff]   ;;  %v1264_v50 = vld [vmem:[%s1379_s6 + $0xb0] ss:$8 sps:$4 sm:$0xff]  }
  0x27   : > { %842 = vmatpush1.bf16.msra.mxu1 %v1217_v16  ;;  %802 = vmatprep.subr.bf16.mxu0 %v1218_v17  ;;  %v1259_v44 = vld [vmem:[%s1379_s6 + $0x1a0] ss:$8 sps:$4 sm:$0xff]   ;;  %v1262_v46 = vld [vmem:[%s1379_s6 + $0x1b4] ss:$8 sps:$4 sm:$0xff]   ;;  %v1265_v51 = vld [vmem:[%s1379_s6 + $0x1b0] ss:$8 sps:$4 sm:$0xff]  }
  0x28   : > { %843 = vmatprep.subr.bf16.mxu1 %v1220_v18  ;;  %v394_v47 = vld [vmem:[%s1374_s27] sm:$0xff]  ;;  %v395_v49 = vld [vmem:[%s1374_s27 + $0x8] sm:$0xff]  ;;  %v1272_v57 = vld [vmem:[%s1379_s6 + $0xd4] ss:$8 sps:$4 sm:$0xff]   ;;  %p1161_p7 = scmp.ne.s32.totalorder %s1308_s18, 4 }
  0x29   : > { %v1094_v48 = vcombine.high %v394_v47, %v394_v47  ;;  %v1096_v52 = vcombine.high %v395_v49, %v395_v49  ;;  %v1266_v53 = vld [vmem:[%s1379_s6 + $0xc4] ss:$8 sps:$4 sm:$0xff]   ;;  %v1270_v55 = vld [vmem:[%s1379_s6 + $0xc0] ss:$8 sps:$4 sm:$0xff]   ;;  %v1274_v58 = vld [vmem:[%s1379_s6 + $0x1d4] ss:$8 sps:$4 sm:$0xff]   ;;  %v1093_v5 = vcombine.low %v394_v47, %v394_v47  ;;  %v1095_v6 = vcombine.low %v395_v49, %v395_v49 }
  0x2a   : > { %803 = vmatpush1.bf16.msra.mxu0 %v1222_v19  ;;  %v1268_v54 = vld [vmem:[%s1379_s6 + $0x1c4] ss:$8 sps:$4 sm:$0xff]   ;;  %v1271_v56 = vld [vmem:[%s1379_s6 + $0x1c0] ss:$8 sps:$4 sm:$0xff]   ;;  %v1276_v59 = vld [vmem:[%s1379_s6 + $0xd0] ss:$8 sps:$4 sm:$0xff]  }
  0x2b   : > { %844 = vmatpush1.bf16.msra.mxu1 %v1223_v20  ;;  %804 = vmatprep.subr.bf16.mxu0 %v1224_v21  ;;  %v1277_v60 = vld [vmem:[%s1379_s6 + $0x1d0] ss:$8 sps:$4 sm:$0xff]   ;;  %v1278_v61 = vld [vmem:[%s1379_s6 + $0xe4] ss:$8 sps:$4 sm:$0xff]   ;;  %v1282_v63 = vld [vmem:[%s1379_s6 + $0xe0] ss:$8 sps:$4 sm:$0xff]   ;;  %v888_v21 = vlaneseq (!%p1161_p7) }
  0x2c   : > { %845 = vmatprep.subr.bf16.mxu1 %v1226_v22  ;;  %826 = vmatprep.mubr.bf16.mxu0 %v1094_v48  ;;  %v1280_v62 = vld [vmem:[%s1379_s6 + $0x1e4] ss:$8 sps:$4 sm:$0xff]   ;;  %v1283_v0 = vld [vmem:[%s1379_s6 + $0x1e0] ss:$8 sps:$4 sm:$0xff]   ;;  %v1284_v1 = vld [vmem:[%s1379_s6 + $0xf4] ss:$8 sps:$4 sm:$0xff]  }
  0x2d   : > { %867 = vmatprep.mubr.bf16.mxu1 %v1096_v52  ;;  %v1286_v2 = vld [vmem:[%s1379_s6 + $0x1f4] ss:$8 sps:$4 sm:$0xff]   ;;  %v1288_v3 = vld [vmem:[%s1379_s6 + $0xf0] ss:$8 sps:$4 sm:$0xff]   ;;  %v392_v8 = vld [vmem:[#allocation2] sm:$0xff]  ;;  %v889_v22 = vshrl.u32 (!%p1161_p7), %v888_v21, 7 }
  0x2e   : > { %805 = vmatpush1.bf16.msra.mxu0 %v1228_v23  ;;  %v1289_v4 = vld [vmem:[%s1379_s6 + $0x1f0] ss:$8 sps:$4 sm:$0xff]   ;;  %v393_v12 = vld [vmem:[#allocation2 + $0x8] sm:$0xff]  ;;  %v886_v23 = vld [vmem:[%s1472_s2] sm:$0x3] (!%p1161_p7) }
  0x2f   : > { %846 = vmatpush1.bf16.msra.mxu1 %v1229_v24  ;;  %806 = vmatprep.subr.bf16.mxu0 %v1230_v25  ;;  %v900_v24 = vld [vmem:[%s1473_s3] sm:$0x3] (!%p1161_p7)  ;;  %v890_v25 = vsub.s32 (!%p1161_p7), 0, %v889_v22 }
  0x30   : > { %847 = vmatprep.subr.bf16.mxu1 %v1232_v26  ;;  %v894_v26 = vsub.s32 (!%p1161_p7), 1, %v889_v22 }
  0x32   : > { %807 = vmatpush1.bf16.msra.mxu0 %v1234_v27 }
  0x33   : > { %848 = vmatpush1.bf16.msra.mxu1 %v1235_v28  ;;  %808 = vmatprep.subr.bf16.mxu0 %v1236_v29  ;;  %v914_v29 = vld [vmem:[%s1474_s4] sm:$0xff] (!%p1161_p7) }
  0x34   : > { %849 = vmatprep.subr.bf16.mxu1 %v1238_v30  ;;  %v891_v30 = vrot.slane (!%p1161_p7), %v886_v23, %v890_v25 }
  0x36   : > { %809 = vmatpush1.bf16.msra.mxu0 %v1240_v31  ;;  %v895_v31 = vrot.slane (!%p1161_p7), %v886_v23, %v894_v26 }
  0x37   : > { %850 = vmatpush1.bf16.msra.mxu1 %v1241_v32  ;;  %810 = vmatprep.subr.bf16.mxu0 %v1242_v33  ;;  %v905_v32 = vrot.slane (!%p1161_p7), %v900_v24, %v890_v25  ;;  %v909_v33 = vrot.slane (!%p1161_p7), %v900_v24, %v894_v26 }
  0x38   : > { %851 = vmatprep.subr.bf16.mxu1 %v1244_v34 }
  0x3a   : > { %811 = vmatpush1.bf16.msra.mxu0 %v1246_v35 }
  0x3b   : > { %852 = vmatpush1.bf16.msra.mxu1 %v1247_v36  ;;  %812 = vmatprep.subr.bf16.mxu0 %v1248_v37  ;;  %v915_v36 = vunpack.c.l.bf16 (!%p1161_p7), %v914_v29  ;;  %v916_v37 = vunpack.c.h.bf16 (!%p1161_p7), %v914_v29 }
  0x3c   : > { %853 = vmatprep.subr.bf16.mxu1 %v1250_v38 }
  0x3e   : > { %813 = vmatpush1.bf16.msra.mxu0 %v1252_v39 }
  0x3f   : > { %854 = vmatpush1.bf16.msra.mxu1 %v1253_v40  ;;  %814 = vmatprep.subr.bf16.mxu0 %v1254_v41 }
  0x40   : > { %855 = vmatprep.subr.bf16.mxu1 %v1256_v42 }
  0x42   : > { %815 = vmatpush1.bf16.msra.mxu0 %v1258_v43 }
  0x43   : > { %856 = vmatpush1.bf16.msra.mxu1 %v1259_v44  ;;  %816 = vmatprep.subr.bf16.mxu0 %v1260_v45 }
  0x44   : > { %857 = vmatprep.subr.bf16.mxu1 %v1262_v46 }
  0x46   : > { %817 = vmatpush1.bf16.msra.mxu0 %v1264_v50 }
  0x47   : > { %858 = vmatpush1.bf16.msra.mxu1 %v1265_v51  ;;  %818 = vmatprep.subr.bf16.mxu0 %v1266_v53 }
  0x48   : > { %859 = vmatprep.subr.bf16.mxu1 %v1268_v54 }
  0x4a   : > { %819 = vmatpush1.bf16.msra.mxu0 %v1270_v55 }
  0x4b   : > { %860 = vmatpush1.bf16.msra.mxu1 %v1271_v56  ;;  %820 = vmatprep.subr.bf16.mxu0 %v1272_v57 }
  0x4c   : > { %861 = vmatprep.subr.bf16.mxu1 %v1274_v58 }
  0x4e   : > { %821 = vmatpush1.bf16.msra.mxu0 %v1276_v59 }
  0x4f   : > { %862 = vmatpush1.bf16.msra.mxu1 %v1277_v60  ;;  %822 = vmatprep.subr.bf16.mxu0 %v1278_v61 }
  0x50   : > { %863 = vmatprep.subr.bf16.mxu1 %v1280_v62 }
  0x52   : > { %823 = vmatpush1.bf16.msra.mxu0 %v1282_v63 }
  0x53   : > { %864 = vmatpush1.bf16.msra.mxu1 %v1283_v0  ;;  %824 = vmatprep.subr.bf16.mxu0 %v1284_v1 }
  0x54   : > { %865 = vmatprep.subr.bf16.mxu1 %v1286_v2 }
  0x56   : > { %825 = vmatpush1.bf16.msra.mxu0 %v1288_v3 }
  0x57   : > { %866 = vmatpush1.bf16.msra.mxu1 %v1289_v4 }
  0x59   : > { %827 = vmatmul.mubr.bf16.vlgmr.msra.gmra.mrb[0].mxu0 %v1093_v5 }
  0x5a   : > { %868 = vmatmul.mubr.bf16.vlgmr.msra.gmra.mrb[0].mxu1 %v1095_v6 }
 0x12c   : > { %v828_v7 = vpop.f32.mrb[0].mxu0 }
 0x12d   : > { %v869_v9 = vpop.f32.mrb[0].mxu1  ;;  %v830_v11 = vpop.f32.mrb[1].mxu0  ;;  %883 = sbr.rel (%p1161_p7) target bundleno = 326 (0x146), region = 48 }
 0x12e   : > { %v870_v10 = vadd.f32 %v869_v9, %v828_v7  ;;  %v871_v13 = vpop.f32.mrb[1].mxu1  ;;  %v832_v15 = vpop.f32.mrb[2].mxu0 }
 0x12f   : > { %v872_v14 = vadd.f32 %v871_v13, %v830_v11  ;;  %v873_v16 = vpop.f32.mrb[2].mxu1  ;;  %v833_v18 = vpop.f32.mrb[3].mxu0 }
 0x130   : > { %v876_v17 = vadd.f32 %v870_v10, %v392_v8  ;;  %v874_v19 = vpop.f32.mrb[3].mxu1 }
 0x131   : > { %v877_v20 = vadd.f32 %v872_v14, %v393_v12 }
 0x132   : > { %878 = vst [vmem:[#allocation2] sm:$0xff] %v876_v17 }
 0x133   : > { %879 = vst [vmem:[#allocation2 + $0x8] sm:$0xff] %v877_v20 }
 0x139   : > { %v884_v27 = vld [vmem:[#allocation2] sm:$0xff] }
 0x13a   : > { %v885_v28 = vld [vmem:[#allocation2 + $0x8] sm:$0xff]  ;;  %v898_v34 = vmul.f32 %v891_v30, %v884_v27 }
 0x13b   : > { %v899_v35 = vmul.f32 %v895_v31, %v885_v28 }
 0x13c   : > { %v912_v38 = vadd.f32 %v905_v32, %v898_v34 }
 0x13d   : > { %v913_v39 = vadd.f32 %v909_v33, %v899_v35 }
 0x13e   : > { %v917_v40 = vadd.f32 %v915_v36, %v912_v38 }
 0x13f   : > { %v918_v41 = vadd.f32 %v916_v37, %v913_v39 }
 0x140   : > { %v919_v42 = vmax.f32 %v917_v40, 0.0 }
 0x141   : > { %v920_v43 = vmax.f32 %v918_v41, 0.0 }
 0x143   : > { %v1168_v44 = vpack.c.bf16 %v920_v43, %v919_v42 }
 0x145   : > { %929 = vst [vmem:[%s1475_s5] sm:$0xff] %v1168_v44 }
 0x146 PF: > { %s15_s20 = sadd.s32 1, %s1316_s20   ;;  %s1476_s18 = smov %s1312_s19 }
 0x147   : > { %p12_p8 = scmp.ge.s32.totalorder %s15_s20, 7   ;;  %s1477_s19 = smov %s1479_s21 }
 0x149   :  { %14 = sbr.rel (!%p12_p8) target bundleno = 2 (0x2), region = 90 }

// kernel: resnet18_forward.37
= control target key start
LH: loop header
LB: loop body
LE: loop exit
PB: predicated region body
PF: predicated region fallthrough
CT: control target
= control target key end

     0   :  { %s1254_s15 = smov 0   ;;  %s1256_s16 = smov 0   ;;  %s1372_s0 = inlined_call_operand.vmem [shape: bf16[8,2560], index: 0, kind: input, shape index: {}]   ;;  %s1373_s1 = inlined_call_operand.vmem [shape: bf16[2560,256], index: 1, kind: input, shape index: {}]   ;;  %s1374_s2 = inlined_call_operand.vmem [shape: f32[1,256], index: 2, kind: input, shape index: {}]   ;;  %s1375_s3 = inlined_call_operand.vmem [shape: f32[1,256], index: 3, kind: input, shape index: {}]   ;;  %s1376_s4 = inlined_call_operand.vmem [shape: bf16[8,256], index: 4, kind: output, shape index: {}]  }
   0x1   :  { %s1258_s17 = smov 0  }
   0x2 LB: > { %s26_s18 = sadd.s32 1, %s1222_s16  ;;  %p996_p0 = scmp.ge.s32.totalorder %s1226_s17, 1  ;;  %s1226_s17 = sphi %s1258_s17, %s14_s17   ;;  %s1222_s16 = sphi %s1256_s16, %s1378_s16   ;;  %s1218_s15 = sphi %s1254_s15, %s1377_s15  }
   0x3   : > { %p27_p1 = scmp.ge.s32.totalorder %s26_s18, 5  ;;  %p229_p2 = scmp.lt.s32.totalorder %s1226_s17, 6 }
   0x5   : > { %s1380_s18 = smov (%p27_p1, %s26_s18), 0  ;;  %p230_p3 = pnand %p996_p0, %p229_p2 }
   0x6   : > { %s997_s19 = sshll.u32 (!%p230_p3), %s1218_s15, 2  ;;  %s999_s20 = sshll.u32 (!%p230_p3), %s1218_s15, 6 }
   0x7   : > { %233 = sbr.rel (%p230_p3) target bundleno = 324 (0x144), region = 36  ;;  %p284_p4 = scmp.lt.s32.totalorder (!%p230_p3), %s997_s19, 19 }
   0x8   : > { %p293_p5 = scmp.lt.s32.totalorder (!%p230_p3), %s999_s20, 319  ;;  %p1002_p6 = scmp.ne.s32.totalorder (!%p230_p3), %s1218_s15, 0 }
   0xe   : > { %s1382_s19 = smov (!%p284_p4, %s997_s19), 19  ;;  %s1384_s20 = smov (!%p293_p5, %s999_s20), 319 }
   0xf   : > { %s998_s21 = sshll.u32 %s1382_s19, 2  ;;  %s1077_s25 = sshll.u32 %s1384_s20, 3  ;;  %v1228_v0 = vmov (!%p1002_p6), 0.0  }
  0x10   : > { %s1279_s24 = scalar_lea.vmem %s1372_s0, %s998_s21  ;;  %s1284_s28 = scalar_lea.vmem %s1373_s1, %s1077_s25  ;;  %327 = vst [vmem:[#allocation2] sm:$0xff] (!%p1002_p6), %v1228_v0  ;;  %328 = vst [vmem:[#allocation2 + $0x8] sm:$0xff] (!%p1002_p6), %v1228_v0 }
  0x11   : > { %326 = sbr.rel (%p1002_p6) target bundleno = 24 (0x18), region = 40 }
  0x18 PF: > { %v1104_v1 = vld [vmem:[%s1284_s28 + $0x4] ss:$8 sps:$4 sm:$0xff]   ;;  %v1108_v3 = vld [vmem:[%s1284_s28] ss:$8 sps:$4 sm:$0xff]   ;;  %v1110_v5 = vld [vmem:[%s1284_s28 + $0x14] ss:$8 sps:$4 sm:$0xff]  }
  0x19   : > { %v1106_v2 = vld [vmem:[%s1284_s28 + $0x104] ss:$8 sps:$4 sm:$0xff]   ;;  %731 = vmatprep.subr.bf16.mxu0 %v1104_v1  ;;  %v1109_v4 = vld [vmem:[%s1284_s28 + $0x100] ss:$8 sps:$4 sm:$0xff]   ;;  %v1112_v6 = vld [vmem:[%s1284_s28 + $0x114] ss:$8 sps:$4 sm:$0xff]  }
  0x1a   : > { %772 = vmatprep.subr.bf16.mxu1 %v1106_v2  ;;  %732 = vmatpush1.bf16.msra.mxu0 %v1108_v3  ;;  %v1114_v7 = vld [vmem:[%s1284_s28 + $0x10] ss:$8 sps:$4 sm:$0xff]   ;;  %v1116_v9 = vld [vmem:[%s1284_s28 + $0x24] ss:$8 sps:$4 sm:$0xff]   ;;  %v1120_v11 = vld [vmem:[%s1284_s28 + $0x20] ss:$8 sps:$4 sm:$0xff]  }
  0x1b   : > { %773 = vmatpush1.bf16.msra.mxu1 %v1109_v4  ;;  %733 = vmatprep.subr.bf16.mxu0 %v1110_v5  ;;  %v1115_v8 = vld [vmem:[%s1284_s28 + $0x110] ss:$8 sps:$4 sm:$0xff]   ;;  %v1118_v10 = vld [vmem:[%s1284_s28 + $0x124] ss:$8 sps:$4 sm:$0xff]   ;;  %v1121_v12 = vld [vmem:[%s1284_s28 + $0x120] ss:$8 sps:$4 sm:$0xff]  }
  0x1c   : > { %774 = vmatprep.subr.bf16.mxu1 %v1112_v6  ;;  %v1122_v13 = vld [vmem:[%s1284_s28 + $0x34] ss:$8 sps:$4 sm:$0xff]   ;;  %v1126_v15 = vld [vmem:[%s1284_s28 + $0x30] ss:$8 sps:$4 sm:$0xff]   ;;  %v1128_v17 = vld [vmem:[%s1284_s28 + $0x44] ss:$8 sps:$4 sm:$0xff]  }
  0x1d   : > { %v1124_v14 = vld [vmem:[%s1284_s28 + $0x134] ss:$8 sps:$4 sm:$0xff]   ;;  %v1127_v16 = vld [vmem:[%s1284_s28 + $0x130] ss:$8 sps:$4 sm:$0xff]   ;;  %v1130_v18 = vld [vmem:[%s1284_s28 + $0x144] ss:$8 sps:$4 sm:$0xff]  }
  0x1e   : > { %734 = vmatpush1.bf16.msra.mxu0 %v1114_v7  ;;  %v1132_v19 = vld [vmem:[%s1284_s28 + $0x40] ss:$8 sps:$4 sm:$0xff]   ;;  %v1134_v21 = vld [vmem:[%s1284_s28 + $0x54] ss:$8 sps:$4 sm:$0xff]   ;;  %v1138_v23 = vld [vmem:[%s1284_s28 + $0x50] ss:$8 sps:$4 sm:$0xff]  }
  0x1f   : > { %775 = vmatpush1.bf16.msra.mxu1 %v1115_v8  ;;  %735 = vmatprep.subr.bf16.mxu0 %v1116_v9  ;;  %v1133_v20 = vld [vmem:[%s1284_s28 + $0x140] ss:$8 sps:$4 sm:$0xff]   ;;  %v1136_v22 = vld [vmem:[%s1284_s28 + $0x154] ss:$8 sps:$4 sm:$0xff]   ;;  %v1139_v24 = vld [vmem:[%s1284_s28 + $0x150] ss:$8 sps:$4 sm:$0xff]  }
  0x20   : > { %776 = vmatprep.subr.bf16.mxu1 %v1118_v10  ;;  %v1140_v25 = vld [vmem:[%s1284_s28 + $0x64] ss:$8 sps:$4 sm:$0xff]   ;;  %v1144_v27 = vld [vmem:[%s1284_s28 + $0x60] ss:$8 sps:$4 sm:$0xff]   ;;  %v1146_v29 = vld [vmem:[%s1284_s28 + $0x74] ss:$8 sps:$4 sm:$0xff]  }
  0x21   : > { %v1142_v26 = vld [vmem:[%s1284_s28 + $0x164] ss:$8 sps:$4 sm:$0xff]   ;;  %v1145_v28 = vld [vmem:[%s1284_s28 + $0x160] ss:$8 sps:$4 sm:$0xff]   ;;  %v1148_v30 = vld [vmem:[%s1284_s28 + $0x174] ss:$8 sps:$4 sm:$0xff]  }
  0x22   : > { %736 = vmatpush1.bf16.msra.mxu0 %v1120_v11  ;;  %v1150_v31 = vld [vmem:[%s1284_s28 + $0x70] ss:$8 sps:$4 sm:$0xff]   ;;  %v1152_v33 = vld [vmem:[%s1284_s28 + $0x84] ss:$8 sps:$4 sm:$0xff]   ;;  %v1156_v35 = vld [vmem:[%s1284_s28 + $0x80] ss:$8 sps:$4 sm:$0xff]  }
  0x23   : > { %777 = vmatpush1.bf16.msra.mxu1 %v1121_v12  ;;  %737 = vmatprep.subr.bf16.mxu0 %v1122_v13  ;;  %v1151_v32 = vld [vmem:[%s1284_s28 + $0x170] ss:$8 sps:$4 sm:$0xff]   ;;  %v1154_v34 = vld [vmem:[%s1284_s28 + $0x184] ss:$8 sps:$4 sm:$0xff]   ;;  %v1157_v36 = vld [vmem:[%s1284_s28 + $0x180] ss:$8 sps:$4 sm:$0xff]  }
  0x24   : > { %778 = vmatprep.subr.bf16.mxu1 %v1124_v14  ;;  %v1158_v37 = vld [vmem:[%s1284_s28 + $0x94] ss:$8 sps:$4 sm:$0xff]   ;;  %v1162_v39 = vld [vmem:[%s1284_s28 + $0x90] ss:$8 sps:$4 sm:$0xff]   ;;  %v1164_v41 = vld [vmem:[%s1284_s28 + $0xa4] ss:$8 sps:$4 sm:$0xff]  }
  0x25   : > { %v1160_v38 = vld [vmem:[%s1284_s28 + $0x194] ss:$8 sps:$4 sm:$0xff]   ;;  %v1163_v40 = vld [vmem:[%s1284_s28 + $0x190] ss:$8 sps:$4 sm:$0xff]   ;;  %v1166_v42 = vld [vmem:[%s1284_s28 + $0x1a4] ss:$8 sps:$4 sm:$0xff]  }
  0x26   : > { %738 = vmatpush1.bf16.msra.mxu0 %v1126_v15  ;;  %v1168_v43 = vld [vmem:[%s1284_s28 + $0xa0] ss:$8 sps:$4 sm:$0xff]   ;;  %v1170_v45 = vld [vmem:[%s1284_s28 + $0xb4] ss:$8 sps:$4 sm:$0xff]   ;;  %v1174_v50 = vld [vmem:[%s1284_s28 + $0xb0] ss:$8 sps:$4 sm:$0xff]  }
  0x27   : > { %779 = vmatpush1.bf16.msra.mxu1 %v1127_v16  ;;  %739 = vmatprep.subr.bf16.mxu0 %v1128_v17  ;;  %v1169_v44 = vld [vmem:[%s1284_s28 + $0x1a0] ss:$8 sps:$4 sm:$0xff]   ;;  %v1172_v46 = vld [vmem:[%s1284_s28 + $0x1b4] ss:$8 sps:$4 sm:$0xff]   ;;  %v1175_v51 = vld [vmem:[%s1284_s28 + $0x1b0] ss:$8 sps:$4 sm:$0xff]  }
  0x28   : > { %780 = vmatprep.subr.bf16.mxu1 %v1130_v18  ;;  %v331_v47 = vld [vmem:[%s1279_s24] sm:$0xff]  ;;  %v332_v49 = vld [vmem:[%s1279_s24 + $0x8] sm:$0xff]  ;;  %v1182_v57 = vld [vmem:[%s1284_s28 + $0xd4] ss:$8 sps:$4 sm:$0xff]   ;;  %p1071_p7 = scmp.ne.s32.totalorder %s1218_s15, 4 }
  0x29   : > { %v1004_v48 = vcombine.high %v331_v47, %v331_v47  ;;  %v1006_v52 = vcombine.high %v332_v49, %v332_v49  ;;  %v1176_v53 = vld [vmem:[%s1284_s28 + $0xc4] ss:$8 sps:$4 sm:$0xff]   ;;  %v1180_v55 = vld [vmem:[%s1284_s28 + $0xc0] ss:$8 sps:$4 sm:$0xff]   ;;  %v1184_v58 = vld [vmem:[%s1284_s28 + $0x1d4] ss:$8 sps:$4 sm:$0xff]   ;;  %v1003_v5 = vcombine.low %v331_v47, %v331_v47  ;;  %v1005_v6 = vcombine.low %v332_v49, %v332_v49 }
  0x2a   : > { %740 = vmatpush1.bf16.msra.mxu0 %v1132_v19  ;;  %v1178_v54 = vld [vmem:[%s1284_s28 + $0x1c4] ss:$8 sps:$4 sm:$0xff]   ;;  %v1181_v56 = vld [vmem:[%s1284_s28 + $0x1c0] ss:$8 sps:$4 sm:$0xff]   ;;  %v1186_v59 = vld [vmem:[%s1284_s28 + $0xd0] ss:$8 sps:$4 sm:$0xff]  }
  0x2b   : > { %781 = vmatpush1.bf16.msra.mxu1 %v1133_v20  ;;  %741 = vmatprep.subr.bf16.mxu0 %v1134_v21  ;;  %v1187_v60 = vld [vmem:[%s1284_s28 + $0x1d0] ss:$8 sps:$4 sm:$0xff]   ;;  %v1188_v61 = vld [vmem:[%s1284_s28 + $0xe4] ss:$8 sps:$4 sm:$0xff]   ;;  %v1192_v63 = vld [vmem:[%s1284_s28 + $0xe0] ss:$8 sps:$4 sm:$0xff]   ;;  %v825_v21 = vlaneseq (!%p1071_p7) }
  0x2c   : > { %782 = vmatprep.subr.bf16.mxu1 %v1136_v22  ;;  %763 = vmatprep.mubr.bf16.mxu0 %v1004_v48  ;;  %v1190_v62 = vld [vmem:[%s1284_s28 + $0x1e4] ss:$8 sps:$4 sm:$0xff]   ;;  %v1193_v0 = vld [vmem:[%s1284_s28 + $0x1e0] ss:$8 sps:$4 sm:$0xff]   ;;  %v1194_v1 = vld [vmem:[%s1284_s28 + $0xf4] ss:$8 sps:$4 sm:$0xff]  }
  0x2d   : > { %804 = vmatprep.mubr.bf16.mxu1 %v1006_v52  ;;  %v1196_v2 = vld [vmem:[%s1284_s28 + $0x1f4] ss:$8 sps:$4 sm:$0xff]   ;;  %v1198_v3 = vld [vmem:[%s1284_s28 + $0xf0] ss:$8 sps:$4 sm:$0xff]   ;;  %v329_v8 = vld [vmem:[#allocation2] sm:$0xff]  ;;  %v826_v22 = vshrl.u32 (!%p1071_p7), %v825_v21, 7 }
  0x2e   : > { %742 = vmatpush1.bf16.msra.mxu0 %v1138_v23  ;;  %v1199_v4 = vld [vmem:[%s1284_s28 + $0x1f0] ss:$8 sps:$4 sm:$0xff]   ;;  %v330_v12 = vld [vmem:[#allocation2 + $0x8] sm:$0xff]  ;;  %v823_v23 = vld [vmem:[%s1374_s2] sm:$0x3] (!%p1071_p7) }
  0x2f   : > { %783 = vmatpush1.bf16.msra.mxu1 %v1139_v24  ;;  %743 = vmatprep.subr.bf16.mxu0 %v1140_v25  ;;  %v837_v24 = vld [vmem:[%s1375_s3] sm:$0x3] (!%p1071_p7)  ;;  %v827_v25 = vsub.s32 (!%p1071_p7), 0, %v826_v22 }
  0x30   : > { %784 = vmatprep.subr.bf16.mxu1 %v1142_v26  ;;  %v831_v26 = vsub.s32 (!%p1071_p7), 1, %v826_v22 }
  0x32   : > { %744 = vmatpush1.bf16.msra.mxu0 %v1144_v27 }
  0x33   : > { %785 = vmatpush1.bf16.msra.mxu1 %v1145_v28  ;;  %745 = vmatprep.subr.bf16.mxu0 %v1146_v29  ;;  %v828_v29 = vrot.slane (!%p1071_p7), %v823_v23, %v827_v25 }
  0x34   : > { %786 = vmatprep.subr.bf16.mxu1 %v1148_v30  ;;  %v832_v30 = vrot.slane (!%p1071_p7), %v823_v23, %v831_v26 }
  0x36   : > { %746 = vmatpush1.bf16.msra.mxu0 %v1150_v31  ;;  %v842_v31 = vrot.slane (!%p1071_p7), %v837_v24, %v827_v25 }
  0x37   : > { %787 = vmatpush1.bf16.msra.mxu1 %v1151_v32  ;;  %747 = vmatprep.subr.bf16.mxu0 %v1152_v33  ;;  %v846_v32 = vrot.slane (!%p1071_p7), %v837_v24, %v831_v26 }
  0x38   : > { %788 = vmatprep.subr.bf16.mxu1 %v1154_v34 }
  0x3a   : > { %748 = vmatpush1.bf16.msra.mxu0 %v1156_v35 }
  0x3b   : > { %789 = vmatpush1.bf16.msra.mxu1 %v1157_v36  ;;  %749 = vmatprep.subr.bf16.mxu0 %v1158_v37 }
  0x3c   : > { %790 = vmatprep.subr.bf16.mxu1 %v1160_v38 }
  0x3e   : > { %750 = vmatpush1.bf16.msra.mxu0 %v1162_v39 }
  0x3f   : > { %791 = vmatpush1.bf16.msra.mxu1 %v1163_v40  ;;  %751 = vmatprep.subr.bf16.mxu0 %v1164_v41 }
  0x40   : > { %792 = vmatprep.subr.bf16.mxu1 %v1166_v42 }
  0x42   : > { %752 = vmatpush1.bf16.msra.mxu0 %v1168_v43 }
  0x43   : > { %793 = vmatpush1.bf16.msra.mxu1 %v1169_v44  ;;  %753 = vmatprep.subr.bf16.mxu0 %v1170_v45 }
  0x44   : > { %794 = vmatprep.subr.bf16.mxu1 %v1172_v46 }
  0x46   : > { %754 = vmatpush1.bf16.msra.mxu0 %v1174_v50 }
  0x47   : > { %795 = vmatpush1.bf16.msra.mxu1 %v1175_v51  ;;  %755 = vmatprep.subr.bf16.mxu0 %v1176_v53 }
  0x48   : > { %796 = vmatprep.subr.bf16.mxu1 %v1178_v54 }
  0x4a   : > { %756 = vmatpush1.bf16.msra.mxu0 %v1180_v55 }
  0x4b   : > { %797 = vmatpush1.bf16.msra.mxu1 %v1181_v56  ;;  %757 = vmatprep.subr.bf16.mxu0 %v1182_v57 }
  0x4c   : > { %798 = vmatprep.subr.bf16.mxu1 %v1184_v58 }
  0x4e   : > { %758 = vmatpush1.bf16.msra.mxu0 %v1186_v59 }
  0x4f   : > { %799 = vmatpush1.bf16.msra.mxu1 %v1187_v60  ;;  %759 = vmatprep.subr.bf16.mxu0 %v1188_v61 }
  0x50   : > { %800 = vmatprep.subr.bf16.mxu1 %v1190_v62 }
  0x52   : > { %760 = vmatpush1.bf16.msra.mxu0 %v1192_v63 }
  0x53   : > { %801 = vmatpush1.bf16.msra.mxu1 %v1193_v0  ;;  %761 = vmatprep.subr.bf16.mxu0 %v1194_v1 }
  0x54   : > { %802 = vmatprep.subr.bf16.mxu1 %v1196_v2 }
  0x56   : > { %762 = vmatpush1.bf16.msra.mxu0 %v1198_v3 }
  0x57   : > { %803 = vmatpush1.bf16.msra.mxu1 %v1199_v4 }
  0x59   : > { %764 = vmatmul.mubr.bf16.vlgmr.msra.gmra.mrb[0].mxu0 %v1003_v5 }
  0x5a   : > { %805 = vmatmul.mubr.bf16.vlgmr.msra.gmra.mrb[0].mxu1 %v1005_v6 }
 0x12c   : > { %v765_v7 = vpop.f32.mrb[0].mxu0 }
 0x12d   : > { %v806_v9 = vpop.f32.mrb[0].mxu1  ;;  %v767_v11 = vpop.f32.mrb[1].mxu0  ;;  %820 = sbr.rel (%p1071_p7) target bundleno = 324 (0x144), region = 44 }
 0x12e   : > { %v807_v10 = vadd.f32 %v806_v9, %v765_v7  ;;  %v808_v13 = vpop.f32.mrb[1].mxu1  ;;  %v769_v15 = vpop.f32.mrb[2].mxu0 }
 0x12f   : > { %v809_v14 = vadd.f32 %v808_v13, %v767_v11  ;;  %v810_v16 = vpop.f32.mrb[2].mxu1  ;;  %v770_v18 = vpop.f32.mrb[3].mxu0 }
 0x130   : > { %v813_v17 = vadd.f32 %v807_v10, %v329_v8  ;;  %v811_v19 = vpop.f32.mrb[3].mxu1 }
 0x131   : > { %v814_v20 = vadd.f32 %v809_v14, %v330_v12 }
 0x132   : > { %815 = vst [vmem:[#allocation2] sm:$0xff] %v813_v17 }
 0x133   : > { %816 = vst [vmem:[#allocation2 + $0x8] sm:$0xff] %v814_v20 }
 0x139   : > { %v821_v27 = vld [vmem:[#allocation2] sm:$0xff] }
 0x13a   : > { %v822_v28 = vld [vmem:[#allocation2 + $0x8] sm:$0xff]  ;;  %v835_v33 = vmul.f32 %v828_v29, %v821_v27 }
 0x13b   : > { %v836_v34 = vmul.f32 %v832_v30, %v822_v28 }
 0x13c   : > { %v849_v35 = vadd.f32 %v842_v31, %v835_v33 }
 0x13d   : > { %v850_v36 = vadd.f32 %v846_v32, %v836_v34 }
 0x13e   : > { %v851_v37 = vmax.f32 %v849_v35, 0.0 }
 0x13f   : > { %v852_v38 = vmax.f32 %v850_v36, 0.0 }
 0x141   : > { %v1078_v39 = vpack.c.bf16 %v852_v38, %v851_v37 }
 0x143   : > { %861 = vst [vmem:[%s1376_s4] sm:$0xff] %v1078_v39 }
 0x144 PF: > { %s14_s17 = sadd.s32 1, %s1226_s17   ;;  %s1377_s15 = smov %s1222_s16 }
 0x145   : > { %p11_p8 = scmp.ge.s32.totalorder %s14_s17, 7   ;;  %s1378_s16 = smov %s1380_s18 }
 0x147   :  { %13 = sbr.rel (!%p11_p8) target bundleno = 2 (0x2), region = 83 }

// kernel: resnet18_forward.39
= control target key start
LH: loop header
LB: loop body
LE: loop exit
PB: predicated region body
PF: predicated region fallthrough
CT: control target
= control target key end

     0   :  { %s1598_s15 = smov 0   ;;  %s1600_s16 = smov 0   ;;  %s1918_s0 = inlined_call_operand.vmem [shape: bf16[8,2560], index: 0, kind: input, shape index: {}]   ;;  %s1919_s1 = inlined_call_operand.vmem [shape: bf16[2560,512], index: 1, kind: input, shape index: {}]   ;;  %s1920_s2 = inlined_call_operand.vmem [shape: f32[1,512], index: 2, kind: input, shape index: {}]   ;;  %s1921_s3 = inlined_call_operand.vmem [shape: f32[1,512], index: 3, kind: input, shape index: {}]   ;;  %s1922_s4 = inlined_call_operand.vmem [shape: bf16[8,512], index: 4, kind: output, shape index: {}]  }
   0x1   :  { %s1602_s17 = smov 0   ;;  %s1604_s18 = smov 0  }
   0x2   :  { %s1606_s19 = smov 0   ;;  %s1608_s20 = smov 0  }
   0x3   :  { %s1610_s21 = smov 0  }
   0x4 LB: > { %s26_s22 = sadd.s32 1, %s1562_s19  ;;  %s29_s23 = sadd.s32 1, %s1566_s20  ;;  %s1570_s21 = sphi %s1610_s21, %s14_s21   ;;  %s1566_s20 = sphi %s1608_s20, %s1928_s20   ;;  %s1562_s19 = sphi %s1606_s19, %s1927_s19   ;;  %s1558_s18 = sphi %s1604_s18, %s1926_s18   ;;  %s1554_s17 = sphi %s1602_s17, %s1925_s17   ;;  %s1550_s16 = sphi %s1600_s16, %s1924_s16   ;;  %s1546_s15 = sphi %s1598_s15, %s1923_s15  }
   0x5   : > { %p27_p0 = scmp.ge.s32.totalorder %s26_s22, 5  ;;  %p77_p1 = scmp.ne.s32.totalorder %s1550_s16, %s1546_s15 }
   0x6   : > { %p78_p2 = scmp.eq.s32.totalorder %s1570_s21, 0  ;;  %s70_s27 = sadd.s32 1, %s1550_s16 }
   0x7   : > { %s1930_s22 = smov (%p27_p0, %s26_s22), 0  ;;  %s1932_s23 = smov (!%p27_p0, %s29_s23), %s1566_s20 }
   0x8   : > { %p79_p3 = por %p78_p2, %p77_p1  ;;  %p31_p4 = scmp.ge.s32.totalorder %s1932_s23, 2 }
   0x9   : > { %s65_s24 = ssub.s32 %s1562_s19, %s1930_s22  ;;  %p1270_p6 = scmp.ge.s32.totalorder %s1570_s21, 10 }
   0xa   : > { %s1934_s23 = smov (%p31_p4, %s1932_s23), 0 }
   0xb   : > { %s66_s25 = ssub.s32 %s1566_s20, %s1934_s23  ;;  %183 = sbr.rel (%p1270_p6) target bundleno = 57 (0x39), region = 16 }
   0xc   : > { %s67_s26 = sor.u32 %s66_s25, %s65_s24 }
   0xd   : > { %p68_p5 = scmp.eq.s32.totalorder %s67_s26, 0 }
   0xf   : > { %s1649_s28 = scalar_select %p68_p5, %s1550_s16, %s70_s27  }
  0x12   : > { %199 = sbr.rel (!%p79_p3) target bundleno = 57 (0x39), region = 24  ;;  %s201_s29 = sand.u32 (%p79_p3), 1, %s1550_s16  }
  0x13   : > { %s1273_s30 = sshll.u32 (%p79_p3), %s1566_s20, 1  ;;  %s1271_s5 = sshll.u32 (%p79_p3), %s201_s29, 9 }
  0x14   : > { %s1357_s6 = sshll.u32 (%p79_p3), %s1562_s19, 8  ;;  %s1663_s12 = scalar_lea.vmem (%p79_p3), [#allocation3], %s1271_s5 }
  0x15   : > { %s207_s7 = sadd.s32 (%p79_p3), %s1357_s6, %s1273_s30 }
  0x16   : > { %s1275_s8 = sshll.u32 (%p79_p3), %s207_s7, 2 }
  0x17   : > { %s1658_s11 = scalar_lea.vmem (%p79_p3), %s1919_s1, %s1275_s8 }
  0x18   : > { %v363_v0 = vld [vmem:[%s1658_s11] sm:$0xff] (%p79_p3)  ;;  %v365_v1 = vld [vmem:[%s1658_s11 + $0x10] sm:$0xff] (%p79_p3) }
  0x19   : > { %v367_v2 = vld [vmem:[%s1658_s11 + $0x20] sm:$0xff]  ;;  %364 = vst [vmem:[%s1663_s12] sm:$0xff] %v363_v0  ;;  %366 = vst [vmem:[%s1663_s12 + $0x8] sm:$0xff] %v365_v1  ;;  %v369_v3 = vld [vmem:[%s1658_s11 + $0x30] sm:$0xff] }
  0x1a   : > { %368 = vst [vmem:[%s1663_s12 + $0x10] sm:$0xff] %v367_v2  ;;  %v371_v4 = vld [vmem:[%s1658_s11 + $0x40] sm:$0xff]  ;;  %v373_v5 = vld [vmem:[%s1658_s11 + $0x50] sm:$0xff]  ;;  %370 = vst [vmem:[%s1663_s12 + $0x18] sm:$0xff] %v369_v3 }
  0x1b   : > { %372 = vst [vmem:[%s1663_s12 + $0x20] sm:$0xff] %v371_v4  ;;  %374 = vst [vmem:[%s1663_s12 + $0x28] sm:$0xff] %v373_v5  ;;  %v375_v6 = vld [vmem:[%s1658_s11 + $0x60] sm:$0xff]  ;;  %v377_v7 = vld [vmem:[%s1658_s11 + $0x70] sm:$0xff] }
  0x1c   : > { %v379_v8 = vld [vmem:[%s1658_s11 + $0x80] sm:$0xff]  ;;  %376 = vst [vmem:[%s1663_s12 + $0x30] sm:$0xff] %v375_v6  ;;  %378 = vst [vmem:[%s1663_s12 + $0x38] sm:$0xff] %v377_v7  ;;  %v381_v9 = vld [vmem:[%s1658_s11 + $0x90] sm:$0xff] }
  0x1d   : > { %380 = vst [vmem:[%s1663_s12 + $0x40] sm:$0xff] %v379_v8  ;;  %v383_v10 = vld [vmem:[%s1658_s11 + $0xa0] sm:$0xff]  ;;  %v385_v11 = vld [vmem:[%s1658_s11 + $0xb0] sm:$0xff]  ;;  %382 = vst [vmem:[%s1663_s12 + $0x48] sm:$0xff] %v381_v9 }
  0x1e   : > { %384 = vst [vmem:[%s1663_s12 + $0x50] sm:$0xff] %v383_v10  ;;  %386 = vst [vmem:[%s1663_s12 + $0x58] sm:$0xff] %v385_v11  ;;  %v387_v12 = vld [vmem:[%s1658_s11 + $0xc0] sm:$0xff]  ;;  %v389_v13 = vld [vmem:[%s1658_s11 + $0xd0] sm:$0xff] }
  0x1f   : > { %v391_v14 = vld [vmem:[%s1658_s11 + $0xe0] sm:$0xff]  ;;  %388 = vst [vmem:[%s1663_s12 + $0x60] sm:$0xff] %v387_v12  ;;  %390 = vst [vmem:[%s1663_s12 + $0x68] sm:$0xff] %v389_v13  ;;  %v393_v15 = vld [vmem:[%s1658_s11 + $0xf0] sm:$0xff] }
  0x20   : > { %392 = vst [vmem:[%s1663_s12 + $0x70] sm:$0xff] %v391_v14  ;;  %v395_v16 = vld [vmem:[%s1658_s11 + $0x100] sm:$0xff]  ;;  %v397_v17 = vld [vmem:[%s1658_s11 + $0x110] sm:$0xff]  ;;  %394 = vst [vmem:[%s1663_s12 + $0x78] sm:$0xff] %v393_v15 }
  0x21   : > { %396 = vst [vmem:[%s1663_s12 + $0x80] sm:$0xff] %v395_v16  ;;  %398 = vst [vmem:[%s1663_s12 + $0x88] sm:$0xff] %v397_v17  ;;  %v399_v18 = vld [vmem:[%s1658_s11 + $0x120] sm:$0xff]  ;;  %v401_v19 = vld [vmem:[%s1658_s11 + $0x130] sm:$0xff] }
  0x22   : > { %v403_v20 = vld [vmem:[%s1658_s11 + $0x140] sm:$0xff]  ;;  %400 = vst [vmem:[%s1663_s12 + $0x90] sm:$0xff] %v399_v18  ;;  %402 = vst [vmem:[%s1663_s12 + $0x98] sm:$0xff] %v401_v19  ;;  %v405_v21 = vld [vmem:[%s1658_s11 + $0x150] sm:$0xff] }
  0x23   : > { %404 = vst [vmem:[%s1663_s12 + $0xa0] sm:$0xff] %v403_v20  ;;  %v407_v22 = vld [vmem:[%s1658_s11 + $0x160] sm:$0xff]  ;;  %v409_v23 = vld [vmem:[%s1658_s11 + $0x170] sm:$0xff]  ;;  %406 = vst [vmem:[%s1663_s12 + $0xa8] sm:$0xff] %v405_v21 }
  0x24   : > { %408 = vst [vmem:[%s1663_s12 + $0xb0] sm:$0xff] %v407_v22  ;;  %410 = vst [vmem:[%s1663_s12 + $0xb8] sm:$0xff] %v409_v23  ;;  %v411_v24 = vld [vmem:[%s1658_s11 + $0x180] sm:$0xff]  ;;  %v413_v25 = vld [vmem:[%s1658_s11 + $0x190] sm:$0xff] }
  0x25   : > { %v415_v26 = vld [vmem:[%s1658_s11 + $0x1a0] sm:$0xff]  ;;  %412 = vst [vmem:[%s1663_s12 + $0xc0] sm:$0xff] %v411_v24  ;;  %414 = vst [vmem:[%s1663_s12 + $0xc8] sm:$0xff] %v413_v25  ;;  %v417_v27 = vld [vmem:[%s1658_s11 + $0x1b0] sm:$0xff] }
  0x26   : > { %416 = vst [vmem:[%s1663_s12 + $0xd0] sm:$0xff] %v415_v26  ;;  %v419_v28 = vld [vmem:[%s1658_s11 + $0x1c0] sm:$0xff]  ;;  %v421_v29 = vld [vmem:[%s1658_s11 + $0x1d0] sm:$0xff]  ;;  %418 = vst [vmem:[%s1663_s12 + $0xd8] sm:$0xff] %v417_v27 }
  0x27   : > { %420 = vst [vmem:[%s1663_s12 + $0xe0] sm:$0xff] %v419_v28  ;;  %422 = vst [vmem:[%s1663_s12 + $0xe8] sm:$0xff] %v421_v29  ;;  %v423_v30 = vld [vmem:[%s1658_s11 + $0x1e0] sm:$0xff]  ;;  %v425_v31 = vld [vmem:[%s1658_s11 + $0x1f0] sm:$0xff] }
  0x28   : > { %v427_v32 = vld [vmem:[%s1658_s11 + $0x200] sm:$0xff]  ;;  %424 = vst [vmem:[%s1663_s12 + $0xf0] sm:$0xff] %v423_v30  ;;  %426 = vst [vmem:[%s1663_s12 + $0xf8] sm:$0xff] %v425_v31  ;;  %v429_v33 = vld [vmem:[%s1658_s11 + $0x210] sm:$0xff] }
  0x29   : > { %428 = vst [vmem:[%s1663_s12 + $0x100] sm:$0xff] %v427_v32  ;;  %v431_v34 = vld [vmem:[%s1658_s11 + $0x220] sm:$0xff]  ;;  %v433_v35 = vld [vmem:[%s1658_s11 + $0x230] sm:$0xff]  ;;  %430 = vst [vmem:[%s1663_s12 + $0x108] sm:$0xff] %v429_v33 }
  0x2a   : > { %432 = vst [vmem:[%s1663_s12 + $0x110] sm:$0xff] %v431_v34  ;;  %434 = vst [vmem:[%s1663_s12 + $0x118] sm:$0xff] %v433_v35  ;;  %v435_v36 = vld [vmem:[%s1658_s11 + $0x240] sm:$0xff]  ;;  %v437_v37 = vld [vmem:[%s1658_s11 + $0x250] sm:$0xff] }
  0x2b   : > { %v439_v38 = vld [vmem:[%s1658_s11 + $0x260] sm:$0xff]  ;;  %436 = vst [vmem:[%s1663_s12 + $0x120] sm:$0xff] %v435_v36  ;;  %438 = vst [vmem:[%s1663_s12 + $0x128] sm:$0xff] %v437_v37  ;;  %v441_v39 = vld [vmem:[%s1658_s11 + $0x270] sm:$0xff] }
  0x2c   : > { %440 = vst [vmem:[%s1663_s12 + $0x130] sm:$0xff] %v439_v38  ;;  %v443_v40 = vld [vmem:[%s1658_s11 + $0x280] sm:$0xff]  ;;  %v445_v41 = vld [vmem:[%s1658_s11 + $0x290] sm:$0xff]  ;;  %442 = vst [vmem:[%s1663_s12 + $0x138] sm:$0xff] %v441_v39 }
  0x2d   : > { %444 = vst [vmem:[%s1663_s12 + $0x140] sm:$0xff] %v443_v40  ;;  %446 = vst [vmem:[%s1663_s12 + $0x148] sm:$0xff] %v445_v41  ;;  %v447_v42 = vld [vmem:[%s1658_s11 + $0x2a0] sm:$0xff]  ;;  %v449_v43 = vld [vmem:[%s1658_s11 + $0x2b0] sm:$0xff] }
  0x2e   : > { %v451_v44 = vld [vmem:[%s1658_s11 + $0x2c0] sm:$0xff]  ;;  %448 = vst [vmem:[%s1663_s12 + $0x150] sm:$0xff] %v447_v42  ;;  %450 = vst [vmem:[%s1663_s12 + $0x158] sm:$0xff] %v449_v43  ;;  %v453_v45 = vld [vmem:[%s1658_s11 + $0x2d0] sm:$0xff] }
  0x2f   : > { %452 = vst [vmem:[%s1663_s12 + $0x160] sm:$0xff] %v451_v44  ;;  %v455_v46 = vld [vmem:[%s1658_s11 + $0x2e0] sm:$0xff]  ;;  %v457_v47 = vld [vmem:[%s1658_s11 + $0x2f0] sm:$0xff]  ;;  %454 = vst [vmem:[%s1663_s12 + $0x168] sm:$0xff] %v453_v45 }
  0x30   : > { %456 = vst [vmem:[%s1663_s12 + $0x170] sm:$0xff] %v455_v46  ;;  %458 = vst [vmem:[%s1663_s12 + $0x178] sm:$0xff] %v457_v47  ;;  %v459_v48 = vld [vmem:[%s1658_s11 + $0x300] sm:$0xff]  ;;  %v461_v49 = vld [vmem:[%s1658_s11 + $0x310] sm:$0xff] }
  0x31   : > { %v463_v50 = vld [vmem:[%s1658_s11 + $0x320] sm:$0xff]  ;;  %460 = vst [vmem:[%s1663_s12 + $0x180] sm:$0xff] %v459_v48  ;;  %462 = vst [vmem:[%s1663_s12 + $0x188] sm:$0xff] %v461_v49  ;;  %v465_v51 = vld [vmem:[%s1658_s11 + $0x330] sm:$0xff] }
  0x32   : > { %464 = vst [vmem:[%s1663_s12 + $0x190] sm:$0xff] %v463_v50  ;;  %v467_v52 = vld [vmem:[%s1658_s11 + $0x340] sm:$0xff]  ;;  %v469_v53 = vld [vmem:[%s1658_s11 + $0x350] sm:$0xff]  ;;  %466 = vst [vmem:[%s1663_s12 + $0x198] sm:$0xff] %v465_v51 }
  0x33   : > { %468 = vst [vmem:[%s1663_s12 + $0x1a0] sm:$0xff] %v467_v52  ;;  %470 = vst [vmem:[%s1663_s12 + $0x1a8] sm:$0xff] %v469_v53  ;;  %v471_v54 = vld [vmem:[%s1658_s11 + $0x360] sm:$0xff]  ;;  %v473_v55 = vld [vmem:[%s1658_s11 + $0x370] sm:$0xff] }
  0x34   : > { %v475_v56 = vld [vmem:[%s1658_s11 + $0x380] sm:$0xff]  ;;  %472 = vst [vmem:[%s1663_s12 + $0x1b0] sm:$0xff] %v471_v54  ;;  %474 = vst [vmem:[%s1663_s12 + $0x1b8] sm:$0xff] %v473_v55  ;;  %v477_v57 = vld [vmem:[%s1658_s11 + $0x390] sm:$0xff] }
  0x35   : > { %476 = vst [vmem:[%s1663_s12 + $0x1c0] sm:$0xff] %v475_v56  ;;  %v479_v58 = vld [vmem:[%s1658_s11 + $0x3a0] sm:$0xff]  ;;  %v481_v59 = vld [vmem:[%s1658_s11 + $0x3b0] sm:$0xff]  ;;  %478 = vst [vmem:[%s1663_s12 + $0x1c8] sm:$0xff] %v477_v57 }
  0x36   : > { %480 = vst [vmem:[%s1663_s12 + $0x1d0] sm:$0xff] %v479_v58  ;;  %482 = vst [vmem:[%s1663_s12 + $0x1d8] sm:$0xff] %v481_v59  ;;  %v483_v60 = vld [vmem:[%s1658_s11 + $0x3c0] sm:$0xff]  ;;  %v485_v61 = vld [vmem:[%s1658_s11 + $0x3d0] sm:$0xff] }
  0x37   : > { %v487_v62 = vld [vmem:[%s1658_s11 + $0x3e0] sm:$0xff]  ;;  %484 = vst [vmem:[%s1663_s12 + $0x1e0] sm:$0xff] %v483_v60  ;;  %486 = vst [vmem:[%s1663_s12 + $0x1e8] sm:$0xff] %v485_v61  ;;  %v489_v63 = vld [vmem:[%s1658_s11 + $0x3f0] sm:$0xff] }
  0x38   : > { %488 = vst [vmem:[%s1663_s12 + $0x1f0] sm:$0xff] %v487_v62  ;;  %490 = vst [vmem:[%s1663_s12 + $0x1f8] sm:$0xff] %v489_v63 }
  0x39 PF: > { %p1276_p7 = scmp.ge.s32.totalorder %s1570_s21, 1  ;;  %p511_p8 = scmp.lt.s32.totalorder %s1570_s21, 11 }
  0x3b   : > { %p512_p9 = pnand %p1276_p7, %p511_p8 }
  0x3c   : > { %s518_s13 = sand.u32 (!%p512_p9), 1, %s1546_s15   ;;  %s1278_s14 = sshll.u32 (!%p512_p9), %s1554_s17, 2 }
  0x3d   : > { %515 = sbr.rel (%p512_p9) target bundleno = 378 (0x17a), region = 70  ;;  %s1277_s24 = sshll.u32 (!%p512_p9), %s518_s13, 9 }
  0x3e   : > { %p567_p10 = scmp.lt.s32.totalorder (!%p512_p9), %s1278_s14, 19  ;;  %s1280_s25 = sshll.u32 (!%p512_p9), %s1558_s18, 1 }
  0x3f   : > { %p577_p11 = scmp.lt.s32.totalorder (!%p512_p9), %s1280_s25, 3  ;;  %s1816_s13 = scalar_lea.vmem (!%p512_p9), [#allocation3], %s1277_s24 }
  0x40   : > { %p1284_p12 = scmp.ne.s32.totalorder (!%p512_p9), %s1554_s17, 0 }
  0x44   : > { %s1936_s14 = smov (!%p567_p10, %s1278_s14), 19  ;;  %s1938_s25 = smov (!%p577_p11, %s1280_s25), 3 }
  0x45   : > { %s1279_s26 = sshll.u32 %s1936_s14, 2  ;;  %s579_s15 = scalar_lea.vmem %s1920_s2, %s1938_s25  ;;  %v1572_v0 = vmov (!%p1284_p12), 0.0  }
  0x46   : > { %s1798_s30 = scalar_lea.vmem %s1918_s0, %s1279_s26  ;;  %s584_s18 = scalar_lea.vmem %s1921_s3, %s1938_s25  ;;  %600 = vst [vmem:[#allocation2] sm:$0xff] (!%p1284_p12), %v1572_v0  ;;  %601 = vst [vmem:[#allocation2 + $0x8] sm:$0xff] (!%p1284_p12), %v1572_v0 }
  0x47   : > { %s1283_s9 = sshll.u32 %s1938_s25, 2  ;;  %599 = sbr.rel (%p1284_p12) target bundleno = 78 (0x4e), region = 78 }
  0x48   : > { %s1814_s12 = scalar_lea.vmem %s1922_s4, %s1283_s9 }
  0x4e PF: > { %v1416_v1 = vld [vmem:[%s1816_s13 + $0x4] ss:$8 sps:$4 sm:$0xff]   ;;  %v1420_v3 = vld [vmem:[%s1816_s13] ss:$8 sps:$4 sm:$0xff]   ;;  %v1422_v5 = vld [vmem:[%s1816_s13 + $0x14] ss:$8 sps:$4 sm:$0xff]  }
  0x4f   : > { %v1418_v2 = vld [vmem:[%s1816_s13 + $0x104] ss:$8 sps:$4 sm:$0xff]   ;;  %1004 = vmatprep.subr.bf16.mxu0 %v1416_v1  ;;  %v1421_v4 = vld [vmem:[%s1816_s13 + $0x100] ss:$8 sps:$4 sm:$0xff]   ;;  %v1424_v6 = vld [vmem:[%s1816_s13 + $0x114] ss:$8 sps:$4 sm:$0xff]  }
  0x50   : > { %1045 = vmatprep.subr.bf16.mxu1 %v1418_v2  ;;  %1005 = vmatpush1.bf16.msra.mxu0 %v1420_v3  ;;  %v1426_v7 = vld [vmem:[%s1816_s13 + $0x10] ss:$8 sps:$4 sm:$0xff]   ;;  %v1428_v9 = vld [vmem:[%s1816_s13 + $0x24] ss:$8 sps:$4 sm:$0xff]   ;;  %v1432_v11 = vld [vmem:[%s1816_s13 + $0x20] ss:$8 sps:$4 sm:$0xff]  }
  0x51   : > { %1046 = vmatpush1.bf16.msra.mxu1 %v1421_v4  ;;  %1006 = vmatprep.subr.bf16.mxu0 %v1422_v5  ;;  %v1427_v8 = vld [vmem:[%s1816_s13 + $0x110] ss:$8 sps:$4 sm:$0xff]   ;;  %v1430_v10 = vld [vmem:[%s1816_s13 + $0x124] ss:$8 sps:$4 sm:$0xff]   ;;  %v1433_v12 = vld [vmem:[%s1816_s13 + $0x120] ss:$8 sps:$4 sm:$0xff]  }
  0x52   : > { %1047 = vmatprep.subr.bf16.mxu1 %v1424_v6  ;;  %v1434_v13 = vld [vmem:[%s1816_s13 + $0x34] ss:$8 sps:$4 sm:$0xff]   ;;  %v1438_v15 = vld [vmem:[%s1816_s13 + $0x30] ss:$8 sps:$4 sm:$0xff]   ;;  %v1440_v17 = vld [vmem:[%s1816_s13 + $0x44] ss:$8 sps:$4 sm:$0xff]  }
  0x53   : > { %v1436_v14 = vld [vmem:[%s1816_s13 + $0x134] ss:$8 sps:$4 sm:$0xff]   ;;  %v1439_v16 = vld [vmem:[%s1816_s13 + $0x130] ss:$8 sps:$4 sm:$0xff]   ;;  %v1442_v18 = vld [vmem:[%s1816_s13 + $0x144] ss:$8 sps:$4 sm:$0xff]  }
  0x54   : > { %1007 = vmatpush1.bf16.msra.mxu0 %v1426_v7  ;;  %v1444_v19 = vld [vmem:[%s1816_s13 + $0x40] ss:$8 sps:$4 sm:$0xff]   ;;  %v1446_v21 = vld [vmem:[%s1816_s13 + $0x54] ss:$8 sps:$4 sm:$0xff]   ;;  %v1450_v23 = vld [vmem:[%s1816_s13 + $0x50] ss:$8 sps:$4 sm:$0xff]  }
  0x55   : > { %1048 = vmatpush1.bf16.msra.mxu1 %v1427_v8  ;;  %1008 = vmatprep.subr.bf16.mxu0 %v1428_v9  ;;  %v1445_v20 = vld [vmem:[%s1816_s13 + $0x140] ss:$8 sps:$4 sm:$0xff]   ;;  %v1448_v22 = vld [vmem:[%s1816_s13 + $0x154] ss:$8 sps:$4 sm:$0xff]   ;;  %v1451_v24 = vld [vmem:[%s1816_s13 + $0x150] ss:$8 sps:$4 sm:$0xff]  }
  0x56   : > { %1049 = vmatprep.subr.bf16.mxu1 %v1430_v10  ;;  %v1452_v25 = vld [vmem:[%s1816_s13 + $0x64] ss:$8 sps:$4 sm:$0xff]   ;;  %v1456_v27 = vld [vmem:[%s1816_s13 + $0x60] ss:$8 sps:$4 sm:$0xff]   ;;  %v1458_v29 = vld [vmem:[%s1816_s13 + $0x74] ss:$8 sps:$4 sm:$0xff]  }
  0x57   : > { %v1454_v26 = vld [vmem:[%s1816_s13 + $0x164] ss:$8 sps:$4 sm:$0xff]   ;;  %v1457_v28 = vld [vmem:[%s1816_s13 + $0x160] ss:$8 sps:$4 sm:$0xff]   ;;  %v1460_v30 = vld [vmem:[%s1816_s13 + $0x174] ss:$8 sps:$4 sm:$0xff]  }
  0x58   : > { %1009 = vmatpush1.bf16.msra.mxu0 %v1432_v11  ;;  %v1462_v31 = vld [vmem:[%s1816_s13 + $0x70] ss:$8 sps:$4 sm:$0xff]   ;;  %v1464_v33 = vld [vmem:[%s1816_s13 + $0x84] ss:$8 sps:$4 sm:$0xff]   ;;  %v1468_v35 = vld [vmem:[%s1816_s13 + $0x80] ss:$8 sps:$4 sm:$0xff]  }
  0x59   : > { %1050 = vmatpush1.bf16.msra.mxu1 %v1433_v12  ;;  %1010 = vmatprep.subr.bf16.mxu0 %v1434_v13  ;;  %v1463_v32 = vld [vmem:[%s1816_s13 + $0x170] ss:$8 sps:$4 sm:$0xff]   ;;  %v1466_v34 = vld [vmem:[%s1816_s13 + $0x184] ss:$8 sps:$4 sm:$0xff]   ;;  %v1469_v36 = vld [vmem:[%s1816_s13 + $0x180] ss:$8 sps:$4 sm:$0xff]  }
  0x5a   : > { %1051 = vmatprep.subr.bf16.mxu1 %v1436_v14  ;;  %v1470_v37 = vld [vmem:[%s1816_s13 + $0x94] ss:$8 sps:$4 sm:$0xff]   ;;  %v1474_v39 = vld [vmem:[%s1816_s13 + $0x90] ss:$8 sps:$4 sm:$0xff]   ;;  %v1476_v41 = vld [vmem:[%s1816_s13 + $0xa4] ss:$8 sps:$4 sm:$0xff]  }
  0x5b   : > { %v1472_v38 = vld [vmem:[%s1816_s13 + $0x194] ss:$8 sps:$4 sm:$0xff]   ;;  %v1475_v40 = vld [vmem:[%s1816_s13 + $0x190] ss:$8 sps:$4 sm:$0xff]   ;;  %v1478_v42 = vld [vmem:[%s1816_s13 + $0x1a4] ss:$8 sps:$4 sm:$0xff]  }
  0x5c   : > { %1011 = vmatpush1.bf16.msra.mxu0 %v1438_v15  ;;  %v1480_v43 = vld [vmem:[%s1816_s13 + $0xa0] ss:$8 sps:$4 sm:$0xff]   ;;  %v1482_v45 = vld [vmem:[%s1816_s13 + $0xb4] ss:$8 sps:$4 sm:$0xff]   ;;  %v1486_v50 = vld [vmem:[%s1816_s13 + $0xb0] ss:$8 sps:$4 sm:$0xff]  }
  0x5d   : > { %1052 = vmatpush1.bf16.msra.mxu1 %v1439_v16  ;;  %1012 = vmatprep.subr.bf16.mxu0 %v1440_v17  ;;  %v1481_v44 = vld [vmem:[%s1816_s13 + $0x1a0] ss:$8 sps:$4 sm:$0xff]   ;;  %v1484_v46 = vld [vmem:[%s1816_s13 + $0x1b4] ss:$8 sps:$4 sm:$0xff]   ;;  %v1487_v51 = vld [vmem:[%s1816_s13 + $0x1b0] ss:$8 sps:$4 sm:$0xff]  }
  0x5e   : > { %1053 = vmatprep.subr.bf16.mxu1 %v1442_v18  ;;  %v604_v47 = vld [vmem:[%s1798_s30] sm:$0xff]  ;;  %v605_v49 = vld [vmem:[%s1798_s30 + $0x8] sm:$0xff]  ;;  %v1488_v53 = vld [vmem:[%s1816_s13 + $0xc4] ss:$8 sps:$4 sm:$0xff]   ;;  %p1353_p13 = scmp.ne.s32.totalorder %s1554_s17, 4 }
  0x5f   : > { %v1286_v48 = vcombine.high %v604_v47, %v604_v47  ;;  %v1288_v52 = vcombine.high %v605_v49, %v605_v49  ;;  %v1490_v54 = vld [vmem:[%s1816_s13 + $0x1c4] ss:$8 sps:$4 sm:$0xff]   ;;  %v1492_v55 = vld [vmem:[%s1816_s13 + $0xc0] ss:$8 sps:$4 sm:$0xff]   ;;  %v1494_v57 = vld [vmem:[%s1816_s13 + $0xd4] ss:$8 sps:$4 sm:$0xff]   ;;  %v1285_v5 = vcombine.low %v604_v47, %v604_v47  ;;  %v1287_v6 = vcombine.low %v605_v49, %v605_v49 }
  0x60   : > { %1013 = vmatpush1.bf16.msra.mxu0 %v1444_v19  ;;  %v1493_v56 = vld [vmem:[%s1816_s13 + $0x1c0] ss:$8 sps:$4 sm:$0xff]   ;;  %v1496_v58 = vld [vmem:[%s1816_s13 + $0x1d4] ss:$8 sps:$4 sm:$0xff]   ;;  %v1498_v59 = vld [vmem:[%s1816_s13 + $0xd0] ss:$8 sps:$4 sm:$0xff]  }
  0x61   : > { %1054 = vmatpush1.bf16.msra.mxu1 %v1445_v20  ;;  %1014 = vmatprep.subr.bf16.mxu0 %v1446_v21  ;;  %v1499_v60 = vld [vmem:[%s1816_s13 + $0x1d0] ss:$8 sps:$4 sm:$0xff]   ;;  %v1500_v61 = vld [vmem:[%s1816_s13 + $0xe4] ss:$8 sps:$4 sm:$0xff]   ;;  %v1504_v63 = vld [vmem:[%s1816_s13 + $0xe0] ss:$8 sps:$4 sm:$0xff]   ;;  %v1098_v21 = vlaneseq (!%p1353_p13) }
  0x62   : > { %1055 = vmatprep.subr.bf16.mxu1 %v1448_v22  ;;  %1036 = vmatprep.mubr.bf16.mxu0 %v1286_v48  ;;  %v1502_v62 = vld [vmem:[%s1816_s13 + $0x1e4] ss:$8 sps:$4 sm:$0xff]   ;;  %v1505_v0 = vld [vmem:[%s1816_s13 + $0x1e0] ss:$8 sps:$4 sm:$0xff]   ;;  %v1506_v1 = vld [vmem:[%s1816_s13 + $0xf4] ss:$8 sps:$4 sm:$0xff]  }
  0x63   : > { %1077 = vmatprep.mubr.bf16.mxu1 %v1288_v52  ;;  %v1508_v2 = vld [vmem:[%s1816_s13 + $0x1f4] ss:$8 sps:$4 sm:$0xff]   ;;  %v1510_v3 = vld [vmem:[%s1816_s13 + $0xf0] ss:$8 sps:$4 sm:$0xff]   ;;  %v1099_v22 = vshrl.u32 (!%p1353_p13), %v1098_v21, 7 }
  0x64   : > { %1015 = vmatpush1.bf16.msra.mxu0 %v1450_v23  ;;  %v1511_v4 = vld [vmem:[%s1816_s13 + $0x1f0] ss:$8 sps:$4 sm:$0xff]  }
  0x65   : > { %1056 = vmatpush1.bf16.msra.mxu1 %v1451_v24  ;;  %1016 = vmatprep.subr.bf16.mxu0 %v1452_v25  ;;  %v602_v8 = vld [vmem:[#allocation2] sm:$0xff]  ;;  %v603_v12 = vld [vmem:[#allocation2 + $0x8] sm:$0xff]  ;;  %v1100_v25 = vsub.s32 (!%p1353_p13), 0, %v1099_v22 }
  0x66   : > { %1057 = vmatprep.subr.bf16.mxu1 %v1454_v26  ;;  %v1096_v23 = vld [vmem:[%s579_s15] sm:$0x3] (!%p1353_p13)  ;;  %v1104_v26 = vsub.s32 (!%p1353_p13), 1, %v1099_v22 }
  0x67   : > { %v1110_v24 = vld [vmem:[%s584_s18] sm:$0x3] (!%p1353_p13) }
  0x68   : > { %1017 = vmatpush1.bf16.msra.mxu0 %v1456_v27 }
  0x69   : > { %1058 = vmatpush1.bf16.msra.mxu1 %v1457_v28  ;;  %1018 = vmatprep.subr.bf16.mxu0 %v1458_v29  ;;  %v1101_v29 = vrot.slane (!%p1353_p13), %v1096_v23, %v1100_v25 }
  0x6a   : > { %1059 = vmatprep.subr.bf16.mxu1 %v1460_v30  ;;  %v1105_v30 = vrot.slane (!%p1353_p13), %v1096_v23, %v1104_v26 }
  0x6c   : > { %1019 = vmatpush1.bf16.msra.mxu0 %v1462_v31  ;;  %v1115_v31 = vrot.slane (!%p1353_p13), %v1110_v24, %v1100_v25 }
  0x6d   : > { %1060 = vmatpush1.bf16.msra.mxu1 %v1463_v32  ;;  %1020 = vmatprep.subr.bf16.mxu0 %v1464_v33  ;;  %v1119_v32 = vrot.slane (!%p1353_p13), %v1110_v24, %v1104_v26 }
  0x6e   : > { %1061 = vmatprep.subr.bf16.mxu1 %v1466_v34 }
  0x70   : > { %1021 = vmatpush1.bf16.msra.mxu0 %v1468_v35 }
  0x71   : > { %1062 = vmatpush1.bf16.msra.mxu1 %v1469_v36  ;;  %1022 = vmatprep.subr.bf16.mxu0 %v1470_v37 }
  0x72   : > { %1063 = vmatprep.subr.bf16.mxu1 %v1472_v38 }
  0x74   : > { %1023 = vmatpush1.bf16.msra.mxu0 %v1474_v39 }
  0x75   : > { %1064 = vmatpush1.bf16.msra.mxu1 %v1475_v40  ;;  %1024 = vmatprep.subr.bf16.mxu0 %v1476_v41 }
  0x76   : > { %1065 = vmatprep.subr.bf16.mxu1 %v1478_v42 }
  0x78   : > { %1025 = vmatpush1.bf16.msra.mxu0 %v1480_v43 }
  0x79   : > { %1066 = vmatpush1.bf16.msra.mxu1 %v1481_v44  ;;  %1026 = vmatprep.subr.bf16.mxu0 %v1482_v45 }
  0x7a   : > { %1067 = vmatprep.subr.bf16.mxu1 %v1484_v46 }
  0x7c   : > { %1027 = vmatpush1.bf16.msra.mxu0 %v1486_v50 }
  0x7d   : > { %1068 = vmatpush1.bf16.msra.mxu1 %v1487_v51  ;;  %1028 = vmatprep.subr.bf16.mxu0 %v1488_v53 }
  0x7e   : > { %1069 = vmatprep.subr.bf16.mxu1 %v1490_v54 }
  0x80   : > { %1029 = vmatpush1.bf16.msra.mxu0 %v1492_v55 }
  0x81   : > { %1070 = vmatpush1.bf16.msra.mxu1 %v1493_v56  ;;  %1030 = vmatprep.subr.bf16.mxu0 %v1494_v57 }
  0x82   : > { %1071 = vmatprep.subr.bf16.mxu1 %v1496_v58 }
  0x84   : > { %1031 = vmatpush1.bf16.msra.mxu0 %v1498_v59 }
  0x85   : > { %1072 = vmatpush1.bf16.msra.mxu1 %v1499_v60  ;;  %1032 = vmatprep.subr.bf16.mxu0 %v1500_v61 }
  0x86   : > { %1073 = vmatprep.subr.bf16.mxu1 %v1502_v62 }
  0x88   : > { %1033 = vmatpush1.bf16.msra.mxu0 %v1504_v63 }
  0x89   : > { %1074 = vmatpush1.bf16.msra.mxu1 %v1505_v0  ;;  %1034 = vmatprep.subr.bf16.mxu0 %v1506_v1 }
  0x8a   : > { %1075 = vmatprep.subr.bf16.mxu1 %v1508_v2 }
  0x8c   : > { %1035 = vmatpush1.bf16.msra.mxu0 %v1510_v3 }
  0x8d   : > { %1076 = vmatpush1.bf16.msra.mxu1 %v1511_v4 }
  0x8f   : > { %1037 = vmatmul.mubr.bf16.vlgmr.msra.gmra.mrb[0].mxu0 %v1285_v5 }
  0x90   : > { %1078 = vmatmul.mubr.bf16.vlgmr.msra.gmra.mrb[0].mxu1 %v1287_v6 }
 0x162   : > { %v1038_v7 = vpop.f32.mrb[0].mxu0 }
 0x163   : > { %v1079_v9 = vpop.f32.mrb[0].mxu1  ;;  %v1040_v11 = vpop.f32.mrb[1].mxu0  ;;  %1093 = sbr.rel (%p1353_p13) target bundleno = 378 (0x17a), region = 82 }
 0x164   : > { %v1080_v10 = vadd.f32 %v1079_v9, %v1038_v7  ;;  %v1081_v13 = vpop.f32.mrb[1].mxu1  ;;  %v1042_v15 = vpop.f32.mrb[2].mxu0 }
 0x165   : > { %v1082_v14 = vadd.f32 %v1081_v13, %v1040_v11  ;;  %v1083_v16 = vpop.f32.mrb[2].mxu1  ;;  %v1043_v18 = vpop.f32.mrb[3].mxu0 }
 0x166   : > { %v1086_v17 = vadd.f32 %v1080_v10, %v602_v8  ;;  %v1084_v19 = vpop.f32.mrb[3].mxu1 }
 0x167   : > { %v1087_v20 = vadd.f32 %v1082_v14, %v603_v12 }
 0x168   : > { %1088 = vst [vmem:[#allocation2] sm:$0xff] %v1086_v17 }
 0x169   : > { %1089 = vst [vmem:[#allocation2 + $0x8] sm:$0xff] %v1087_v20 }
 0x16f   : > { %v1094_v27 = vld [vmem:[#allocation2] sm:$0xff] }
 0x170   : > { %v1095_v28 = vld [vmem:[#allocation2 + $0x8] sm:$0xff]  ;;  %v1108_v33 = vmul.f32 %v1101_v29, %v1094_v27 }
 0x171   : > { %v1109_v34 = vmul.f32 %v1105_v30, %v1095_v28 }
 0x172   : > { %v1122_v35 = vadd.f32 %v1115_v31, %v1108_v33 }
 0x173   : > { %v1123_v36 = vadd.f32 %v1119_v32, %v1109_v34 }
 0x174   : > { %v1124_v37 = vmax.f32 %v1122_v35, 0.0 }
 0x175   : > { %v1125_v38 = vmax.f32 %v1123_v36, 0.0 }
 0x177   : > { %v1358_v39 = vpack.c.bf16 %v1125_v38, %v1124_v37 }
 0x179   : > { %1134 = vst [vmem:[%s1814_s12] sm:$0xff] %v1358_v39 }
 0x17a PF: > { %s14_s21 = sadd.s32 1, %s1570_s21   ;;  %s1923_s15 = smov %s1550_s16 }
 0x17b   : > { %p11_p0 = scmp.ge.s32.totalorder %s14_s21, 12   ;;  %s1924_s16 = smov %s1649_s28 }
 0x17c   : > { %s1925_s17 = smov %s1562_s19  ;;  %s1926_s18 = smov %s1566_s20 }
 0x17d   : > { %s1927_s19 = smov %s1930_s22  ;;  %s1928_s20 = smov %s1934_s23 }
 0x17e   :  { %13 = sbr.rel (!%p11_p0) target bundleno = 4 (0x4), region = 126 }

// kernel: resnet18_forward.40
= control target key start
LH: loop header
LB: loop body
LE: loop exit
PB: predicated region body
PF: predicated region fallthrough
CT: control target
= control target key end

     0   :  { %s1103_s15 = smov 0   ;;  %s1105_s16 = smov 0   ;;  %s1285_s0 = inlined_call_operand.vmem [shape: bf16[8,256], index: 0, kind: input, shape index: {}]   ;;  %s1286_s1 = inlined_call_operand.vmem [shape: bf16[256,512], index: 1, kind: input, shape index: {}]   ;;  %s1287_s2 = inlined_call_operand.vmem [shape: f32[1,512], index: 2, kind: input, shape index: {}]   ;;  %s1288_s3 = inlined_call_operand.vmem [shape: f32[1,512], index: 3, kind: input, shape index: {}]   ;;  %s1289_s4 = inlined_call_operand.vmem [shape: bf16[8,512], index: 4, kind: output, shape index: {}]  }
   0x1   :  { %s1107_s17 = smov 0   ;;  %s1109_s18 = smov 0  }
   0x2   :  { %s1111_s19 = smov 0  }
   0x3 LB: > { %s29_s20 = sadd.s32 1, %s1072_s18  ;;  %p77_p1 = scmp.ne.s32.totalorder %s1064_s16, %s1060_s15  ;;  %s1076_s19 = sphi %s1111_s19, %s14_s19   ;;  %s1072_s18 = sphi %s1109_s18, %s1293_s18   ;;  %s1068_s17 = sphi %s1107_s17, %s1292_s17   ;;  %s1064_s16 = sphi %s1105_s16, %s1291_s16   ;;  %s1060_s15 = sphi %s1103_s15, %s1290_s15  }
   0x4   : > { %p31_p0 = scmp.ge.s32.totalorder %s29_s20, 2  ;;  %p78_p2 = scmp.eq.s32.totalorder %s1076_s19, 0 }
   0x5   : > { %s70_s22 = sadd.s32 1, %s1064_s16  ;;  %p899_p5 = scmp.ge.s32.totalorder %s1076_s19, 2 }
   0x6   : > { %s1295_s20 = smov (%p31_p0, %s29_s20), 0  ;;  %p79_p3 = por %p78_p2, %p77_p1 }
   0x7   : > { %s66_s21 = ssub.s32 %s1072_s18, %s1295_s20  ;;  %196 = sbr.rel (%p899_p5) target bundleno = 34 (0x22), region = 20 }
   0x8   : > { %p68_p4 = scmp.eq.s32.totalorder %s66_s21, 0 }
   0xa   : > { %s1138_s23 = scalar_select %p68_p4, %s1064_s16, %s70_s22  }
   0xe   : > { %199 = sbr.rel (!%p79_p3) target bundleno = 34 (0x22), region = 24  ;;  %s201_s24 = sand.u32 (%p79_p3), 1, %s1064_s16  }
   0xf   : > { %s946_s25 = sshll.u32 (%p79_p3), %s1072_s18, 3  ;;  %s900_s26 = sshll.u32 (%p79_p3), %s201_s24, 8 }
  0x10   : > { %s1146_s29 = scalar_lea.vmem (%p79_p3), %s1286_s1, %s946_s25  ;;  %s1151_s30 = scalar_lea.vmem (%p79_p3), [#allocation3], %s900_s26 }
  0x11   : > { %v299_v0 = vld [vmem:[%s1146_s29] sm:$0xff] (%p79_p3)  ;;  %v301_v1 = vld [vmem:[%s1146_s29 + $0x10] sm:$0xff] (%p79_p3) }
  0x12   : > { %v303_v2 = vld [vmem:[%s1146_s29 + $0x20] sm:$0xff] (%p79_p3)  ;;  %300 = vst [vmem:[%s1151_s30] sm:$0xff] (%p79_p3), %v299_v0  ;;  %302 = vst [vmem:[%s1151_s30 + $0x8] sm:$0xff] (%p79_p3), %v301_v1  ;;  %v305_v3 = vld [vmem:[%s1146_s29 + $0x30] sm:$0xff] (%p79_p3) }
  0x13   : > { %304 = vst [vmem:[%s1151_s30 + $0x10] sm:$0xff] (%p79_p3), %v303_v2  ;;  %v307_v4 = vld [vmem:[%s1146_s29 + $0x40] sm:$0xff] (%p79_p3)  ;;  %v309_v5 = vld [vmem:[%s1146_s29 + $0x50] sm:$0xff] (%p79_p3)  ;;  %306 = vst [vmem:[%s1151_s30 + $0x18] sm:$0xff] (%p79_p3), %v305_v3 }
  0x14   : > { %308 = vst [vmem:[%s1151_s30 + $0x20] sm:$0xff] (%p79_p3), %v307_v4  ;;  %310 = vst [vmem:[%s1151_s30 + $0x28] sm:$0xff] (%p79_p3), %v309_v5  ;;  %v311_v6 = vld [vmem:[%s1146_s29 + $0x60] sm:$0xff] (%p79_p3)  ;;  %v313_v7 = vld [vmem:[%s1146_s29 + $0x70] sm:$0xff] (%p79_p3) }
  0x15   : > { %v315_v8 = vld [vmem:[%s1146_s29 + $0x80] sm:$0xff]  ;;  %312 = vst [vmem:[%s1151_s30 + $0x30] sm:$0xff] %v311_v6  ;;  %314 = vst [vmem:[%s1151_s30 + $0x38] sm:$0xff] %v313_v7  ;;  %v317_v9 = vld [vmem:[%s1146_s29 + $0x90] sm:$0xff] }
  0x16   : > { %316 = vst [vmem:[%s1151_s30 + $0x40] sm:$0xff] %v315_v8  ;;  %v319_v10 = vld [vmem:[%s1146_s29 + $0xa0] sm:$0xff]  ;;  %v321_v11 = vld [vmem:[%s1146_s29 + $0xb0] sm:$0xff]  ;;  %318 = vst [vmem:[%s1151_s30 + $0x48] sm:$0xff] %v317_v9 }
  0x17   : > { %320 = vst [vmem:[%s1151_s30 + $0x50] sm:$0xff] %v319_v10  ;;  %322 = vst [vmem:[%s1151_s30 + $0x58] sm:$0xff] %v321_v11  ;;  %v323_v12 = vld [vmem:[%s1146_s29 + $0xc0] sm:$0xff]  ;;  %v325_v13 = vld [vmem:[%s1146_s29 + $0xd0] sm:$0xff] }
  0x18   : > { %v327_v14 = vld [vmem:[%s1146_s29 + $0xe0] sm:$0xff]  ;;  %324 = vst [vmem:[%s1151_s30 + $0x60] sm:$0xff] %v323_v12  ;;  %326 = vst [vmem:[%s1151_s30 + $0x68] sm:$0xff] %v325_v13  ;;  %v329_v15 = vld [vmem:[%s1146_s29 + $0xf0] sm:$0xff] }
  0x19   : > { %328 = vst [vmem:[%s1151_s30 + $0x70] sm:$0xff] %v327_v14  ;;  %v331_v16 = vld [vmem:[%s1146_s29 + $0x100] sm:$0xff]  ;;  %v333_v17 = vld [vmem:[%s1146_s29 + $0x110] sm:$0xff]  ;;  %330 = vst [vmem:[%s1151_s30 + $0x78] sm:$0xff] %v329_v15 }
  0x1a   : > { %332 = vst [vmem:[%s1151_s30 + $0x80] sm:$0xff] %v331_v16  ;;  %334 = vst [vmem:[%s1151_s30 + $0x88] sm:$0xff] %v333_v17  ;;  %v335_v18 = vld [vmem:[%s1146_s29 + $0x120] sm:$0xff]  ;;  %v337_v19 = vld [vmem:[%s1146_s29 + $0x130] sm:$0xff] }
  0x1b   : > { %v339_v20 = vld [vmem:[%s1146_s29 + $0x140] sm:$0xff]  ;;  %336 = vst [vmem:[%s1151_s30 + $0x90] sm:$0xff] %v335_v18  ;;  %338 = vst [vmem:[%s1151_s30 + $0x98] sm:$0xff] %v337_v19  ;;  %v341_v21 = vld [vmem:[%s1146_s29 + $0x150] sm:$0xff] }
  0x1c   : > { %340 = vst [vmem:[%s1151_s30 + $0xa0] sm:$0xff] %v339_v20  ;;  %v343_v22 = vld [vmem:[%s1146_s29 + $0x160] sm:$0xff]  ;;  %v345_v23 = vld [vmem:[%s1146_s29 + $0x170] sm:$0xff]  ;;  %342 = vst [vmem:[%s1151_s30 + $0xa8] sm:$0xff] %v341_v21 }
  0x1d   : > { %344 = vst [vmem:[%s1151_s30 + $0xb0] sm:$0xff] %v343_v22  ;;  %346 = vst [vmem:[%s1151_s30 + $0xb8] sm:$0xff] %v345_v23  ;;  %v347_v24 = vld [vmem:[%s1146_s29 + $0x180] sm:$0xff]  ;;  %v349_v25 = vld [vmem:[%s1146_s29 + $0x190] sm:$0xff] }
  0x1e   : > { %v351_v26 = vld [vmem:[%s1146_s29 + $0x1a0] sm:$0xff]  ;;  %348 = vst [vmem:[%s1151_s30 + $0xc0] sm:$0xff] %v347_v24  ;;  %350 = vst [vmem:[%s1151_s30 + $0xc8] sm:$0xff] %v349_v25  ;;  %v353_v27 = vld [vmem:[%s1146_s29 + $0x1b0] sm:$0xff] }
  0x1f   : > { %352 = vst [vmem:[%s1151_s30 + $0xd0] sm:$0xff] %v351_v26  ;;  %v355_v28 = vld [vmem:[%s1146_s29 + $0x1c0] sm:$0xff]  ;;  %v357_v29 = vld [vmem:[%s1146_s29 + $0x1d0] sm:$0xff]  ;;  %354 = vst [vmem:[%s1151_s30 + $0xd8] sm:$0xff] %v353_v27 }
  0x20   : > { %356 = vst [vmem:[%s1151_s30 + $0xe0] sm:$0xff] %v355_v28  ;;  %358 = vst [vmem:[%s1151_s30 + $0xe8] sm:$0xff] %v357_v29  ;;  %v359_v30 = vld [vmem:[%s1146_s29 + $0x1e0] sm:$0xff]  ;;  %v361_v31 = vld [vmem:[%s1146_s29 + $0x1f0] sm:$0xff] }
  0x21   : > { %360 = vst [vmem:[%s1151_s30 + $0xf0] sm:$0xff] %v359_v30  ;;  %362 = vst [vmem:[%s1151_s30 + $0xf8] sm:$0xff] %v361_v31 }
  0x22 PF: > { %p903_p6 = scmp.ge.s32.totalorder %s1076_s19, 1  ;;  %p383_p7 = scmp.lt.s32.totalorder %s1076_s19, 3 }
  0x24   : > { %p384_p8 = pnand %p903_p6, %p383_p7 }
  0x25   : > { %s390_s5 = sand.u32 (!%p384_p8), 1, %s1060_s15   ;;  %v1220_v32 = vld [vmem:[%s1285_s0] sm:$0xff] (!%p384_p8)  ;;  %s905_s10 = sshll.u32 (!%p384_p8), %s1068_s17, 1  ;;  %v728_v3 = vlaneseq (!%p384_p8) }
  0x26   : > { %387 = sbr.rel (%p384_p8) target bundleno = 325 (0x145), region = 70  ;;  %s904_s8 = sshll.u32 (!%p384_p8), %s390_s5, 8  ;;  %v910_v33 = vcombine.high (!%p384_p8), %v1220_v32, %v1220_v32  ;;  %v909_v2 = vcombine.low (!%p384_p8), %v1220_v32, %v1220_v32 }
  0x27   : > { %s1224_s9 = scalar_lea.vmem (!%p384_p8), [#allocation3], %s904_s8  ;;  %p449_p9 = scmp.lt.s32.totalorder (!%p384_p8), %s905_s10, 3  ;;  %v729_v4 = vshrl.u32 (!%p384_p8), %v728_v3, 7 }
  0x28   : > { %v988_v34 = vld [vmem:[%s1224_s9 + $0x4] ss:$8 sps:$4 sm:$0xff] (!%p384_p8)   ;;  %708 = vmatprep.mubr.bf16.mxu0 (!%p384_p8), %v910_v33  ;;  %v990_v35 = vld [vmem:[%s1224_s9] ss:$8 sps:$4 sm:$0xff] (!%p384_p8)   ;;  %v991_v36 = vld [vmem:[%s1224_s9 + $0x14] ss:$8 sps:$4 sm:$0xff] (!%p384_p8)  }
  0x29   : > { %676 = vmatprep.subr.bf16.mxu0 (!%p384_p8), %v988_v34  ;;  %v993_v37 = vld [vmem:[%s1224_s9 + $0x10] ss:$8 sps:$4 sm:$0xff] (!%p384_p8)   ;;  %v994_v38 = vld [vmem:[%s1224_s9 + $0x24] ss:$8 sps:$4 sm:$0xff] (!%p384_p8)   ;;  %v996_v39 = vld [vmem:[%s1224_s9 + $0x20] ss:$8 sps:$4 sm:$0xff] (!%p384_p8)  }
  0x2a   : > { %677 = vmatpush1.bf16.msra.mxu0 (!%p384_p8), %v990_v35  ;;  %v997_v40 = vld [vmem:[%s1224_s9 + $0x34] ss:$8 sps:$4 sm:$0xff] (!%p384_p8)   ;;  %v999_v41 = vld [vmem:[%s1224_s9 + $0x30] ss:$8 sps:$4 sm:$0xff] (!%p384_p8)   ;;  %v1000_v42 = vld [vmem:[%s1224_s9 + $0x44] ss:$8 sps:$4 sm:$0xff] (!%p384_p8)  }
  0x2b   : > { %678 = vmatprep.subr.bf16.mxu0 (!%p384_p8), %v991_v36  ;;  %v1002_v43 = vld [vmem:[%s1224_s9 + $0x40] ss:$8 sps:$4 sm:$0xff] (!%p384_p8)   ;;  %v1003_v44 = vld [vmem:[%s1224_s9 + $0x54] ss:$8 sps:$4 sm:$0xff] (!%p384_p8)   ;;  %v1005_v45 = vld [vmem:[%s1224_s9 + $0x50] ss:$8 sps:$4 sm:$0xff] (!%p384_p8)  }
  0x2c   : > { %v1006_v46 = vld [vmem:[%s1224_s9 + $0x64] ss:$8 sps:$4 sm:$0xff] (!%p384_p8)   ;;  %v1008_v47 = vld [vmem:[%s1224_s9 + $0x60] ss:$8 sps:$4 sm:$0xff] (!%p384_p8)   ;;  %v1009_v48 = vld [vmem:[%s1224_s9 + $0x74] ss:$8 sps:$4 sm:$0xff] (!%p384_p8)  }
  0x2d   : > { %v1011_v49 = vld [vmem:[%s1224_s9 + $0x70] ss:$8 sps:$4 sm:$0xff]   ;;  %v1012_v50 = vld [vmem:[%s1224_s9 + $0x84] ss:$8 sps:$4 sm:$0xff]   ;;  %v1014_v51 = vld [vmem:[%s1224_s9 + $0x80] ss:$8 sps:$4 sm:$0xff]  }
  0x2e   : > { %679 = vmatpush1.bf16.msra.mxu0 %v993_v37  ;;  %v1015_v52 = vld [vmem:[%s1224_s9 + $0x94] ss:$8 sps:$4 sm:$0xff]   ;;  %v1017_v53 = vld [vmem:[%s1224_s9 + $0x90] ss:$8 sps:$4 sm:$0xff]   ;;  %v1018_v54 = vld [vmem:[%s1224_s9 + $0xa4] ss:$8 sps:$4 sm:$0xff]  }
  0x2f   : > { %680 = vmatprep.subr.bf16.mxu0 %v994_v38  ;;  %v1020_v55 = vld [vmem:[%s1224_s9 + $0xa0] ss:$8 sps:$4 sm:$0xff]   ;;  %v1021_v56 = vld [vmem:[%s1224_s9 + $0xb4] ss:$8 sps:$4 sm:$0xff]   ;;  %v1023_v57 = vld [vmem:[%s1224_s9 + $0xb0] ss:$8 sps:$4 sm:$0xff]  }
  0x30   : > { %v1024_v58 = vld [vmem:[%s1224_s9 + $0xc4] ss:$8 sps:$4 sm:$0xff]   ;;  %v1026_v59 = vld [vmem:[%s1224_s9 + $0xc0] ss:$8 sps:$4 sm:$0xff]   ;;  %v1027_v60 = vld [vmem:[%s1224_s9 + $0xd4] ss:$8 sps:$4 sm:$0xff]  }
  0x31   : > { %v1029_v61 = vld [vmem:[%s1224_s9 + $0xd0] ss:$8 sps:$4 sm:$0xff]   ;;  %v1030_v62 = vld [vmem:[%s1224_s9 + $0xe4] ss:$8 sps:$4 sm:$0xff]   ;;  %v1032_v63 = vld [vmem:[%s1224_s9 + $0xe0] ss:$8 sps:$4 sm:$0xff]  }
  0x32   : > { %681 = vmatpush1.bf16.msra.mxu0 %v996_v39  ;;  %v1033_v0 = vld [vmem:[%s1224_s9 + $0xf4] ss:$8 sps:$4 sm:$0xff]   ;;  %v1035_v1 = vld [vmem:[%s1224_s9 + $0xf0] ss:$8 sps:$4 sm:$0xff]   ;;  %s1297_s10 = smov (!%p449_p9, %s905_s10), 3  ;;  %v730_v5 = vsub.s32 0, %v729_v4 }
  0x33   : > { %682 = vmatprep.subr.bf16.mxu0 %v997_v40  ;;  %s451_s13 = scalar_lea.vmem %s1287_s2, %s1297_s10  ;;  %s456_s21 = scalar_lea.vmem %s1288_s3, %s1297_s10  ;;  %v734_v7 = vsub.s32 1, %v729_v4 }
  0x34   : > { %v726_v6 = vld [vmem:[%s451_s13] sm:$0x3]  ;;  %s908_s17 = sshll.u32 %s1297_s10, 2 }
  0x35   : > { %v740_v8 = vld [vmem:[%s456_s21] sm:$0x3]  ;;  %v731_v9 = vrot.slane %v726_v6, %v730_v5  ;;  %v735_v10 = vrot.slane %v726_v6, %v734_v7  ;;  %s466_s25 = scalar_lea.vmem %s1289_s4, %s908_s17 }
  0x36   : > { %683 = vmatpush1.bf16.msra.mxu0 %v999_v41  ;;  %v745_v11 = vrot.slane %v740_v8, %v730_v5  ;;  %v749_v13 = vrot.slane %v740_v8, %v734_v7 }
  0x37   : > { %684 = vmatprep.subr.bf16.mxu0 %v1000_v42 }
  0x3a   : > { %685 = vmatpush1.bf16.msra.mxu0 %v1002_v43 }
  0x3b   : > { %686 = vmatprep.subr.bf16.mxu0 %v1003_v44 }
  0x3e   : > { %687 = vmatpush1.bf16.msra.mxu0 %v1005_v45 }
  0x3f   : > { %688 = vmatprep.subr.bf16.mxu0 %v1006_v46 }
  0x42   : > { %689 = vmatpush1.bf16.msra.mxu0 %v1008_v47 }
  0x43   : > { %690 = vmatprep.subr.bf16.mxu0 %v1009_v48 }
  0x46   : > { %691 = vmatpush1.bf16.msra.mxu0 %v1011_v49 }
  0x47   : > { %692 = vmatprep.subr.bf16.mxu0 %v1012_v50 }
  0x4a   : > { %693 = vmatpush1.bf16.msra.mxu0 %v1014_v51 }
  0x4b   : > { %694 = vmatprep.subr.bf16.mxu0 %v1015_v52 }
  0x4e   : > { %695 = vmatpush1.bf16.msra.mxu0 %v1017_v53 }
  0x4f   : > { %696 = vmatprep.subr.bf16.mxu0 %v1018_v54 }
  0x52   : > { %697 = vmatpush1.bf16.msra.mxu0 %v1020_v55 }
  0x53   : > { %698 = vmatprep.subr.bf16.mxu0 %v1021_v56 }
  0x56   : > { %699 = vmatpush1.bf16.msra.mxu0 %v1023_v57 }
  0x57   : > { %700 = vmatprep.subr.bf16.mxu0 %v1024_v58 }
  0x5a   : > { %701 = vmatpush1.bf16.msra.mxu0 %v1026_v59 }
  0x5b   : > { %702 = vmatprep.subr.bf16.mxu0 %v1027_v60 }
  0x5e   : > { %703 = vmatpush1.bf16.msra.mxu0 %v1029_v61 }
  0x5f   : > { %704 = vmatprep.subr.bf16.mxu0 %v1030_v62 }
  0x62   : > { %705 = vmatpush1.bf16.msra.mxu0 %v1032_v63 }
  0x63   : > { %706 = vmatprep.subr.bf16.mxu0 %v1033_v0 }
  0x66   : > { %707 = vmatpush1.bf16.msra.mxu0 %v1035_v1 }
  0x69   : > { %709 = vmatmul.mubr.bf16.vlgmr.msra.gmra.mrb[0].mxu0 %v909_v2 }
 0x13c   : > { %v710_v12 = vpop.f32.mrb[0].mxu0 }
 0x13d   : > { %v738_v14 = vmul.f32 %v731_v9, %v710_v12  ;;  %v712_v15 = vpop.f32.mrb[1].mxu0 }
 0x13e   : > { %v739_v16 = vmul.f32 %v735_v10, %v712_v15  ;;  %v714_v17 = vpop.f32.mrb[2].mxu0 }
 0x13f   : > { %v752_v18 = vadd.f32 %v745_v11, %v738_v14  ;;  %v715_v19 = vpop.f32.mrb[3].mxu0 }
 0x140   : > { %v753_v20 = vadd.f32 %v749_v13, %v739_v16 }
 0x142   : > { %v947_v21 = vpack.c.bf16 %v753_v20, %v752_v18 }
 0x144   : > { %762 = vst [vmem:[%s466_s25] sm:$0xff] %v947_v21 }
 0x145 PF: > { %s14_s19 = sadd.s32 1, %s1076_s19   ;;  %s1290_s15 = smov %s1064_s16 }
 0x146   : > { %p11_p10 = scmp.ge.s32.totalorder %s14_s19, 4   ;;  %s1291_s16 = smov %s1138_s23 }
 0x147   : > { %s1292_s17 = smov %s1072_s18  ;;  %s1293_s18 = smov %s1295_s20 }
 0x148   :  { %13 = sbr.rel (!%p11_p10) target bundleno = 3 (0x3), region = 126 }

// kernel: resnet18_forward.41
= control target key start
LH: loop header
LB: loop body
LE: loop exit
PB: predicated region body
PF: predicated region fallthrough
CT: control target
= control target key end

     0   :  { %s1691_s18 = smov 0   ;;  %s1693_s19 = smov 0   ;;  %s2017_s0 = inlined_call_operand.vmem [shape: bf16[8,4608], index: 0, kind: input, shape index: {}]   ;;  %s2018_s1 = inlined_call_operand.vmem [shape: bf16[4608,512], index: 1, kind: input, shape index: {}]   ;;  %s2019_s2 = inlined_call_operand.vmem [shape: f32[1,512], index: 2, kind: input, shape index: {}]   ;;  %s2020_s3 = inlined_call_operand.vmem [shape: f32[1,512], index: 3, kind: input, shape index: {}]   ;;  %s2021_s4 = inlined_call_operand.vmem [shape: bf16[8,512], index: 4, kind: input, shape index: {}]   ;;  %s2022_s5 = inlined_call_operand.vmem [shape: bf16[8,512], index: 5, kind: output, shape index: {}]  }
   0x1   :  { %s1695_s20 = smov 0   ;;  %s1697_s21 = smov 0  }
   0x2   :  { %s1699_s22 = smov 0   ;;  %s1701_s23 = smov 0  }
   0x3   :  { %s1703_s24 = smov 0  }
   0x4 LB: > { %s27_s25 = sadd.s32 1, %s1650_s22  ;;  %s30_s26 = sadd.s32 1, %s1654_s23  ;;  %s1658_s24 = sphi %s1703_s24, %s15_s24   ;;  %s1654_s23 = sphi %s1701_s23, %s2028_s23   ;;  %s1650_s22 = sphi %s1699_s22, %s2027_s22   ;;  %s1646_s21 = sphi %s1697_s21, %s2026_s21   ;;  %s1642_s20 = sphi %s1695_s20, %s2025_s20   ;;  %s1638_s19 = sphi %s1693_s19, %s2024_s19   ;;  %s1634_s18 = sphi %s1691_s18, %s2023_s18  }
   0x5   : > { %p28_p0 = scmp.ge.s32.totalorder %s27_s25, 9  ;;  %p78_p1 = scmp.ne.s32.totalorder %s1638_s19, %s1634_s18 }
   0x6   : > { %p79_p2 = scmp.eq.s32.totalorder %s1658_s24, 0  ;;  %s71_s30 = sadd.s32 1, %s1638_s19 }
   0x7   : > { %s2030_s25 = smov (%p28_p0, %s27_s25), 0  ;;  %s2032_s26 = smov (!%p28_p0, %s30_s26), %s1654_s23 }
   0x8   : > { %p80_p3 = por %p79_p2, %p78_p1  ;;  %p32_p4 = scmp.ge.s32.totalorder %s2032_s26, 2 }
   0x9   : > { %s66_s27 = ssub.s32 %s1650_s22, %s2030_s25  ;;  %p1356_p6 = scmp.ge.s32.totalorder %s1658_s24, 18 }
   0xa   : > { %s2034_s26 = smov (%p32_p4, %s2032_s26), 0 }
   0xb   : > { %s67_s28 = ssub.s32 %s1654_s23, %s2034_s26  ;;  %212 = sbr.rel (%p1356_p6) target bundleno = 57 (0x39), region = 16 }
   0xc   : > { %s68_s29 = sor.u32 %s67_s28, %s66_s27 }
   0xd   : > { %p69_p5 = scmp.eq.s32.totalorder %s68_s29, 0 }
   0xf   : > { %s1742_s6 = scalar_select %p69_p5, %s1638_s19, %s71_s30  }
  0x12   : > { %228 = sbr.rel (!%p80_p3) target bundleno = 57 (0x39), region = 24  ;;  %s230_s7 = sand.u32 (%p80_p3), 1, %s1638_s19  }
  0x13   : > { %s1359_s8 = sshll.u32 (%p80_p3), %s1654_s23, 1  ;;  %s1357_s9 = sshll.u32 (%p80_p3), %s230_s7, 9 }
  0x14   : > { %s1445_s10 = sshll.u32 (%p80_p3), %s1650_s22, 8  ;;  %s1756_s16 = scalar_lea.vmem (%p80_p3), [#allocation3], %s1357_s9 }
  0x15   : > { %s236_s11 = sadd.s32 (%p80_p3), %s1445_s10, %s1359_s8 }
  0x16   : > { %s1361_s12 = sshll.u32 (%p80_p3), %s236_s11, 2 }
  0x17   : > { %s1751_s15 = scalar_lea.vmem (%p80_p3), %s2018_s1, %s1361_s12 }
  0x18   : > { %v392_v0 = vld [vmem:[%s1751_s15] sm:$0xff] (%p80_p3)  ;;  %v394_v1 = vld [vmem:[%s1751_s15 + $0x10] sm:$0xff] (%p80_p3) }
  0x19   : > { %v396_v2 = vld [vmem:[%s1751_s15 + $0x20] sm:$0xff]  ;;  %393 = vst [vmem:[%s1756_s16] sm:$0xff] %v392_v0  ;;  %395 = vst [vmem:[%s1756_s16 + $0x8] sm:$0xff] %v394_v1  ;;  %v398_v3 = vld [vmem:[%s1751_s15 + $0x30] sm:$0xff] }
  0x1a   : > { %397 = vst [vmem:[%s1756_s16 + $0x10] sm:$0xff] %v396_v2  ;;  %v400_v4 = vld [vmem:[%s1751_s15 + $0x40] sm:$0xff]  ;;  %v402_v5 = vld [vmem:[%s1751_s15 + $0x50] sm:$0xff]  ;;  %399 = vst [vmem:[%s1756_s16 + $0x18] sm:$0xff] %v398_v3 }
  0x1b   : > { %401 = vst [vmem:[%s1756_s16 + $0x20] sm:$0xff] %v400_v4  ;;  %403 = vst [vmem:[%s1756_s16 + $0x28] sm:$0xff] %v402_v5  ;;  %v404_v6 = vld [vmem:[%s1751_s15 + $0x60] sm:$0xff]  ;;  %v406_v7 = vld [vmem:[%s1751_s15 + $0x70] sm:$0xff] }
  0x1c   : > { %v408_v8 = vld [vmem:[%s1751_s15 + $0x80] sm:$0xff]  ;;  %405 = vst [vmem:[%s1756_s16 + $0x30] sm:$0xff] %v404_v6  ;;  %407 = vst [vmem:[%s1756_s16 + $0x38] sm:$0xff] %v406_v7  ;;  %v410_v9 = vld [vmem:[%s1751_s15 + $0x90] sm:$0xff] }
  0x1d   : > { %409 = vst [vmem:[%s1756_s16 + $0x40] sm:$0xff] %v408_v8  ;;  %v412_v10 = vld [vmem:[%s1751_s15 + $0xa0] sm:$0xff]  ;;  %v414_v11 = vld [vmem:[%s1751_s15 + $0xb0] sm:$0xff]  ;;  %411 = vst [vmem:[%s1756_s16 + $0x48] sm:$0xff] %v410_v9 }
  0x1e   : > { %413 = vst [vmem:[%s1756_s16 + $0x50] sm:$0xff] %v412_v10  ;;  %415 = vst [vmem:[%s1756_s16 + $0x58] sm:$0xff] %v414_v11  ;;  %v416_v12 = vld [vmem:[%s1751_s15 + $0xc0] sm:$0xff]  ;;  %v418_v13 = vld [vmem:[%s1751_s15 + $0xd0] sm:$0xff] }
  0x1f   : > { %v420_v14 = vld [vmem:[%s1751_s15 + $0xe0] sm:$0xff]  ;;  %417 = vst [vmem:[%s1756_s16 + $0x60] sm:$0xff] %v416_v12  ;;  %419 = vst [vmem:[%s1756_s16 + $0x68] sm:$0xff] %v418_v13  ;;  %v422_v15 = vld [vmem:[%s1751_s15 + $0xf0] sm:$0xff] }
  0x20   : > { %421 = vst [vmem:[%s1756_s16 + $0x70] sm:$0xff] %v420_v14  ;;  %v424_v16 = vld [vmem:[%s1751_s15 + $0x100] sm:$0xff]  ;;  %v426_v17 = vld [vmem:[%s1751_s15 + $0x110] sm:$0xff]  ;;  %423 = vst [vmem:[%s1756_s16 + $0x78] sm:$0xff] %v422_v15 }
  0x21   : > { %425 = vst [vmem:[%s1756_s16 + $0x80] sm:$0xff] %v424_v16  ;;  %427 = vst [vmem:[%s1756_s16 + $0x88] sm:$0xff] %v426_v17  ;;  %v428_v18 = vld [vmem:[%s1751_s15 + $0x120] sm:$0xff]  ;;  %v430_v19 = vld [vmem:[%s1751_s15 + $0x130] sm:$0xff] }
  0x22   : > { %v432_v20 = vld [vmem:[%s1751_s15 + $0x140] sm:$0xff]  ;;  %429 = vst [vmem:[%s1756_s16 + $0x90] sm:$0xff] %v428_v18  ;;  %431 = vst [vmem:[%s1756_s16 + $0x98] sm:$0xff] %v430_v19  ;;  %v434_v21 = vld [vmem:[%s1751_s15 + $0x150] sm:$0xff] }
  0x23   : > { %433 = vst [vmem:[%s1756_s16 + $0xa0] sm:$0xff] %v432_v20  ;;  %v436_v22 = vld [vmem:[%s1751_s15 + $0x160] sm:$0xff]  ;;  %v438_v23 = vld [vmem:[%s1751_s15 + $0x170] sm:$0xff]  ;;  %435 = vst [vmem:[%s1756_s16 + $0xa8] sm:$0xff] %v434_v21 }
  0x24   : > { %437 = vst [vmem:[%s1756_s16 + $0xb0] sm:$0xff] %v436_v22  ;;  %439 = vst [vmem:[%s1756_s16 + $0xb8] sm:$0xff] %v438_v23  ;;  %v440_v24 = vld [vmem:[%s1751_s15 + $0x180] sm:$0xff]  ;;  %v442_v25 = vld [vmem:[%s1751_s15 + $0x190] sm:$0xff] }
  0x25   : > { %v444_v26 = vld [vmem:[%s1751_s15 + $0x1a0] sm:$0xff]  ;;  %441 = vst [vmem:[%s1756_s16 + $0xc0] sm:$0xff] %v440_v24  ;;  %443 = vst [vmem:[%s1756_s16 + $0xc8] sm:$0xff] %v442_v25  ;;  %v446_v27 = vld [vmem:[%s1751_s15 + $0x1b0] sm:$0xff] }
  0x26   : > { %445 = vst [vmem:[%s1756_s16 + $0xd0] sm:$0xff] %v444_v26  ;;  %v448_v28 = vld [vmem:[%s1751_s15 + $0x1c0] sm:$0xff]  ;;  %v450_v29 = vld [vmem:[%s1751_s15 + $0x1d0] sm:$0xff]  ;;  %447 = vst [vmem:[%s1756_s16 + $0xd8] sm:$0xff] %v446_v27 }
  0x27   : > { %449 = vst [vmem:[%s1756_s16 + $0xe0] sm:$0xff] %v448_v28  ;;  %451 = vst [vmem:[%s1756_s16 + $0xe8] sm:$0xff] %v450_v29  ;;  %v452_v30 = vld [vmem:[%s1751_s15 + $0x1e0] sm:$0xff]  ;;  %v454_v31 = vld [vmem:[%s1751_s15 + $0x1f0] sm:$0xff] }
  0x28   : > { %v456_v32 = vld [vmem:[%s1751_s15 + $0x200] sm:$0xff]  ;;  %453 = vst [vmem:[%s1756_s16 + $0xf0] sm:$0xff] %v452_v30  ;;  %455 = vst [vmem:[%s1756_s16 + $0xf8] sm:$0xff] %v454_v31  ;;  %v458_v33 = vld [vmem:[%s1751_s15 + $0x210] sm:$0xff] }
  0x29   : > { %457 = vst [vmem:[%s1756_s16 + $0x100] sm:$0xff] %v456_v32  ;;  %v460_v34 = vld [vmem:[%s1751_s15 + $0x220] sm:$0xff]  ;;  %v462_v35 = vld [vmem:[%s1751_s15 + $0x230] sm:$0xff]  ;;  %459 = vst [vmem:[%s1756_s16 + $0x108] sm:$0xff] %v458_v33 }
  0x2a   : > { %461 = vst [vmem:[%s1756_s16 + $0x110] sm:$0xff] %v460_v34  ;;  %463 = vst [vmem:[%s1756_s16 + $0x118] sm:$0xff] %v462_v35  ;;  %v464_v36 = vld [vmem:[%s1751_s15 + $0x240] sm:$0xff]  ;;  %v466_v37 = vld [vmem:[%s1751_s15 + $0x250] sm:$0xff] }
  0x2b   : > { %v468_v38 = vld [vmem:[%s1751_s15 + $0x260] sm:$0xff]  ;;  %465 = vst [vmem:[%s1756_s16 + $0x120] sm:$0xff] %v464_v36  ;;  %467 = vst [vmem:[%s1756_s16 + $0x128] sm:$0xff] %v466_v37  ;;  %v470_v39 = vld [vmem:[%s1751_s15 + $0x270] sm:$0xff] }
  0x2c   : > { %469 = vst [vmem:[%s1756_s16 + $0x130] sm:$0xff] %v468_v38  ;;  %v472_v40 = vld [vmem:[%s1751_s15 + $0x280] sm:$0xff]  ;;  %v474_v41 = vld [vmem:[%s1751_s15 + $0x290] sm:$0xff]  ;;  %471 = vst [vmem:[%s1756_s16 + $0x138] sm:$0xff] %v470_v39 }
  0x2d   : > { %473 = vst [vmem:[%s1756_s16 + $0x140] sm:$0xff] %v472_v40  ;;  %475 = vst [vmem:[%s1756_s16 + $0x148] sm:$0xff] %v474_v41  ;;  %v476_v42 = vld [vmem:[%s1751_s15 + $0x2a0] sm:$0xff]  ;;  %v478_v43 = vld [vmem:[%s1751_s15 + $0x2b0] sm:$0xff] }
  0x2e   : > { %v480_v44 = vld [vmem:[%s1751_s15 + $0x2c0] sm:$0xff]  ;;  %477 = vst [vmem:[%s1756_s16 + $0x150] sm:$0xff] %v476_v42  ;;  %479 = vst [vmem:[%s1756_s16 + $0x158] sm:$0xff] %v478_v43  ;;  %v482_v45 = vld [vmem:[%s1751_s15 + $0x2d0] sm:$0xff] }
  0x2f   : > { %481 = vst [vmem:[%s1756_s16 + $0x160] sm:$0xff] %v480_v44  ;;  %v484_v46 = vld [vmem:[%s1751_s15 + $0x2e0] sm:$0xff]  ;;  %v486_v47 = vld [vmem:[%s1751_s15 + $0x2f0] sm:$0xff]  ;;  %483 = vst [vmem:[%s1756_s16 + $0x168] sm:$0xff] %v482_v45 }
  0x30   : > { %485 = vst [vmem:[%s1756_s16 + $0x170] sm:$0xff] %v484_v46  ;;  %487 = vst [vmem:[%s1756_s16 + $0x178] sm:$0xff] %v486_v47  ;;  %v488_v48 = vld [vmem:[%s1751_s15 + $0x300] sm:$0xff]  ;;  %v490_v49 = vld [vmem:[%s1751_s15 + $0x310] sm:$0xff] }
  0x31   : > { %v492_v50 = vld [vmem:[%s1751_s15 + $0x320] sm:$0xff]  ;;  %489 = vst [vmem:[%s1756_s16 + $0x180] sm:$0xff] %v488_v48  ;;  %491 = vst [vmem:[%s1756_s16 + $0x188] sm:$0xff] %v490_v49  ;;  %v494_v51 = vld [vmem:[%s1751_s15 + $0x330] sm:$0xff] }
  0x32   : > { %493 = vst [vmem:[%s1756_s16 + $0x190] sm:$0xff] %v492_v50  ;;  %v496_v52 = vld [vmem:[%s1751_s15 + $0x340] sm:$0xff]  ;;  %v498_v53 = vld [vmem:[%s1751_s15 + $0x350] sm:$0xff]  ;;  %495 = vst [vmem:[%s1756_s16 + $0x198] sm:$0xff] %v494_v51 }
  0x33   : > { %497 = vst [vmem:[%s1756_s16 + $0x1a0] sm:$0xff] %v496_v52  ;;  %499 = vst [vmem:[%s1756_s16 + $0x1a8] sm:$0xff] %v498_v53  ;;  %v500_v54 = vld [vmem:[%s1751_s15 + $0x360] sm:$0xff]  ;;  %v502_v55 = vld [vmem:[%s1751_s15 + $0x370] sm:$0xff] }
  0x34   : > { %v504_v56 = vld [vmem:[%s1751_s15 + $0x380] sm:$0xff]  ;;  %501 = vst [vmem:[%s1756_s16 + $0x1b0] sm:$0xff] %v500_v54  ;;  %503 = vst [vmem:[%s1756_s16 + $0x1b8] sm:$0xff] %v502_v55  ;;  %v506_v57 = vld [vmem:[%s1751_s15 + $0x390] sm:$0xff] }
  0x35   : > { %505 = vst [vmem:[%s1756_s16 + $0x1c0] sm:$0xff] %v504_v56  ;;  %v508_v58 = vld [vmem:[%s1751_s15 + $0x3a0] sm:$0xff]  ;;  %v510_v59 = vld [vmem:[%s1751_s15 + $0x3b0] sm:$0xff]  ;;  %507 = vst [vmem:[%s1756_s16 + $0x1c8] sm:$0xff] %v506_v57 }
  0x36   : > { %509 = vst [vmem:[%s1756_s16 + $0x1d0] sm:$0xff] %v508_v58  ;;  %511 = vst [vmem:[%s1756_s16 + $0x1d8] sm:$0xff] %v510_v59  ;;  %v512_v60 = vld [vmem:[%s1751_s15 + $0x3c0] sm:$0xff]  ;;  %v514_v61 = vld [vmem:[%s1751_s15 + $0x3d0] sm:$0xff] }
  0x37   : > { %v516_v62 = vld [vmem:[%s1751_s15 + $0x3e0] sm:$0xff]  ;;  %513 = vst [vmem:[%s1756_s16 + $0x1e0] sm:$0xff] %v512_v60  ;;  %515 = vst [vmem:[%s1756_s16 + $0x1e8] sm:$0xff] %v514_v61  ;;  %v518_v63 = vld [vmem:[%s1751_s15 + $0x3f0] sm:$0xff] }
  0x38   : > { %517 = vst [vmem:[%s1756_s16 + $0x1f0] sm:$0xff] %v516_v62  ;;  %519 = vst [vmem:[%s1756_s16 + $0x1f8] sm:$0xff] %v518_v63 }
  0x39 PF: > { %p1362_p7 = scmp.ge.s32.totalorder %s1658_s24, 1  ;;  %p553_p8 = scmp.lt.s32.totalorder %s1658_s24, 19 }
  0x3b   : > { %p554_p9 = pnand %p1362_p7, %p553_p8 }
  0x3c   : > { %s560_s17 = sand.u32 (!%p554_p9), 1, %s1634_s18   ;;  %s1364_s27 = sshll.u32 (!%p554_p9), %s1642_s20, 2 }
  0x3d   : > { %557 = sbr.rel (%p554_p9) target bundleno = 380 (0x17c), region = 74  ;;  %s1363_s28 = sshll.u32 (!%p554_p9), %s560_s17, 9 }
  0x3e   : > { %p620_p10 = scmp.lt.s32.totalorder (!%p554_p9), %s1364_s27, 35  ;;  %s1366_s29 = sshll.u32 (!%p554_p9), %s1646_s21, 1 }
  0x3f   : > { %p630_p11 = scmp.lt.s32.totalorder (!%p554_p9), %s1366_s29, 3  ;;  %s1914_s8 = scalar_lea.vmem (!%p554_p9), [#allocation3], %s1363_s28 }
  0x40   : > { %p1372_p12 = scmp.ne.s32.totalorder (!%p554_p9), %s1642_s20, 0 }
  0x44   : > { %s2036_s27 = smov (!%p620_p10, %s1364_s27), 35  ;;  %s2038_s29 = smov (!%p630_p11, %s1366_s29), 3 }
  0x45   : > { %s1365_s30 = sshll.u32 %s2036_s27, 2  ;;  %s632_s18 = scalar_lea.vmem %s2019_s2, %s2038_s29  ;;  %v1660_v0 = vmov (!%p1372_p12), 0.0  }
  0x46   : > { %s1891_s9 = scalar_lea.vmem %s2017_s0, %s1365_s30  ;;  %s637_s21 = scalar_lea.vmem %s2020_s3, %s2038_s29  ;;  %663 = vst [vmem:[#allocation2] sm:$0xff] (!%p1372_p12), %v1660_v0  ;;  %664 = vst [vmem:[#allocation2 + $0x8] sm:$0xff] (!%p1372_p12), %v1660_v0 }
  0x47   : > { %s1369_s14 = sshll.u32 %s2038_s29, 2  ;;  %662 = sbr.rel (%p1372_p12) target bundleno = 78 (0x4e), region = 82 }
  0x48   : > { %s1907_s17 = scalar_lea.vmem %s2021_s4, %s1369_s14  ;;  %s1912_s7 = scalar_lea.vmem %s2022_s5, %s1369_s14 }
  0x4e PF: > { %v1504_v1 = vld [vmem:[%s1914_s8 + $0x4] ss:$8 sps:$4 sm:$0xff]   ;;  %v1508_v3 = vld [vmem:[%s1914_s8] ss:$8 sps:$4 sm:$0xff]   ;;  %v1510_v5 = vld [vmem:[%s1914_s8 + $0x14] ss:$8 sps:$4 sm:$0xff]  }
  0x4f   : > { %v1506_v2 = vld [vmem:[%s1914_s8 + $0x104] ss:$8 sps:$4 sm:$0xff]   ;;  %1067 = vmatprep.subr.bf16.mxu0 %v1504_v1  ;;  %v1509_v4 = vld [vmem:[%s1914_s8 + $0x100] ss:$8 sps:$4 sm:$0xff]   ;;  %v1512_v6 = vld [vmem:[%s1914_s8 + $0x114] ss:$8 sps:$4 sm:$0xff]  }
  0x50   : > { %1108 = vmatprep.subr.bf16.mxu1 %v1506_v2  ;;  %1068 = vmatpush1.bf16.msra.mxu0 %v1508_v3  ;;  %v1514_v7 = vld [vmem:[%s1914_s8 + $0x10] ss:$8 sps:$4 sm:$0xff]   ;;  %v1516_v9 = vld [vmem:[%s1914_s8 + $0x24] ss:$8 sps:$4 sm:$0xff]   ;;  %v1520_v11 = vld [vmem:[%s1914_s8 + $0x20] ss:$8 sps:$4 sm:$0xff]  }
  0x51   : > { %1109 = vmatpush1.bf16.msra.mxu1 %v1509_v4  ;;  %1069 = vmatprep.subr.bf16.mxu0 %v1510_v5  ;;  %v1515_v8 = vld [vmem:[%s1914_s8 + $0x110] ss:$8 sps:$4 sm:$0xff]   ;;  %v1518_v10 = vld [vmem:[%s1914_s8 + $0x124] ss:$8 sps:$4 sm:$0xff]   ;;  %v1521_v12 = vld [vmem:[%s1914_s8 + $0x120] ss:$8 sps:$4 sm:$0xff]  }
  0x52   : > { %1110 = vmatprep.subr.bf16.mxu1 %v1512_v6  ;;  %v1522_v13 = vld [vmem:[%s1914_s8 + $0x34] ss:$8 sps:$4 sm:$0xff]   ;;  %v1526_v15 = vld [vmem:[%s1914_s8 + $0x30] ss:$8 sps:$4 sm:$0xff]   ;;  %v1528_v17 = vld [vmem:[%s1914_s8 + $0x44] ss:$8 sps:$4 sm:$0xff]  }
  0x53   : > { %v1524_v14 = vld [vmem:[%s1914_s8 + $0x134] ss:$8 sps:$4 sm:$0xff]   ;;  %v1527_v16 = vld [vmem:[%s1914_s8 + $0x130] ss:$8 sps:$4 sm:$0xff]   ;;  %v1530_v18 = vld [vmem:[%s1914_s8 + $0x144] ss:$8 sps:$4 sm:$0xff]  }
  0x54   : > { %1070 = vmatpush1.bf16.msra.mxu0 %v1514_v7  ;;  %v1532_v19 = vld [vmem:[%s1914_s8 + $0x40] ss:$8 sps:$4 sm:$0xff]   ;;  %v1534_v21 = vld [vmem:[%s1914_s8 + $0x54] ss:$8 sps:$4 sm:$0xff]   ;;  %v1538_v23 = vld [vmem:[%s1914_s8 + $0x50] ss:$8 sps:$4 sm:$0xff]  }
  0x55   : > { %1111 = vmatpush1.bf16.msra.mxu1 %v1515_v8  ;;  %1071 = vmatprep.subr.bf16.mxu0 %v1516_v9  ;;  %v1533_v20 = vld [vmem:[%s1914_s8 + $0x140] ss:$8 sps:$4 sm:$0xff]   ;;  %v1536_v22 = vld [vmem:[%s1914_s8 + $0x154] ss:$8 sps:$4 sm:$0xff]   ;;  %v1539_v24 = vld [vmem:[%s1914_s8 + $0x150] ss:$8 sps:$4 sm:$0xff]  }
  0x56   : > { %1112 = vmatprep.subr.bf16.mxu1 %v1518_v10  ;;  %v1540_v25 = vld [vmem:[%s1914_s8 + $0x64] ss:$8 sps:$4 sm:$0xff]   ;;  %v1544_v27 = vld [vmem:[%s1914_s8 + $0x60] ss:$8 sps:$4 sm:$0xff]   ;;  %v1546_v29 = vld [vmem:[%s1914_s8 + $0x74] ss:$8 sps:$4 sm:$0xff]  }
  0x57   : > { %v1542_v26 = vld [vmem:[%s1914_s8 + $0x164] ss:$8 sps:$4 sm:$0xff]   ;;  %v1545_v28 = vld [vmem:[%s1914_s8 + $0x160] ss:$8 sps:$4 sm:$0xff]   ;;  %v1548_v30 = vld [vmem:[%s1914_s8 + $0x174] ss:$8 sps:$4 sm:$0xff]  }
  0x58   : > { %1072 = vmatpush1.bf16.msra.mxu0 %v1520_v11  ;;  %v1550_v31 = vld [vmem:[%s1914_s8 + $0x70] ss:$8 sps:$4 sm:$0xff]   ;;  %v1552_v33 = vld [vmem:[%s1914_s8 + $0x84] ss:$8 sps:$4 sm:$0xff]   ;;  %v1556_v35 = vld [vmem:[%s1914_s8 + $0x80] ss:$8 sps:$4 sm:$0xff]  }
  0x59   : > { %1113 = vmatpush1.bf16.msra.mxu1 %v1521_v12  ;;  %1073 = vmatprep.subr.bf16.mxu0 %v1522_v13  ;;  %v1551_v32 = vld [vmem:[%s1914_s8 + $0x170] ss:$8 sps:$4 sm:$0xff]   ;;  %v1554_v34 = vld [vmem:[%s1914_s8 + $0x184] ss:$8 sps:$4 sm:$0xff]   ;;  %v1557_v36 = vld [vmem:[%s1914_s8 + $0x180] ss:$8 sps:$4 sm:$0xff]  }
  0x5a   : > { %1114 = vmatprep.subr.bf16.mxu1 %v1524_v14  ;;  %v1558_v37 = vld [vmem:[%s1914_s8 + $0x94] ss:$8 sps:$4 sm:$0xff]   ;;  %v1562_v39 = vld [vmem:[%s1914_s8 + $0x90] ss:$8 sps:$4 sm:$0xff]   ;;  %v1564_v41 = vld [vmem:[%s1914_s8 + $0xa4] ss:$8 sps:$4 sm:$0xff]  }
  0x5b   : > { %v1560_v38 = vld [vmem:[%s1914_s8 + $0x194] ss:$8 sps:$4 sm:$0xff]   ;;  %v1563_v40 = vld [vmem:[%s1914_s8 + $0x190] ss:$8 sps:$4 sm:$0xff]   ;;  %v1566_v42 = vld [vmem:[%s1914_s8 + $0x1a4] ss:$8 sps:$4 sm:$0xff]  }
  0x5c   : > { %1074 = vmatpush1.bf16.msra.mxu0 %v1526_v15  ;;  %v1568_v43 = vld [vmem:[%s1914_s8 + $0xa0] ss:$8 sps:$4 sm:$0xff]   ;;  %v1570_v45 = vld [vmem:[%s1914_s8 + $0xb4] ss:$8 sps:$4 sm:$0xff]   ;;  %v1574_v50 = vld [vmem:[%s1914_s8 + $0xb0] ss:$8 sps:$4 sm:$0xff]  }
  0x5d   : > { %1115 = vmatpush1.bf16.msra.mxu1 %v1527_v16  ;;  %1075 = vmatprep.subr.bf16.mxu0 %v1528_v17  ;;  %v1569_v44 = vld [vmem:[%s1914_s8 + $0x1a0] ss:$8 sps:$4 sm:$0xff]   ;;  %v1572_v46 = vld [vmem:[%s1914_s8 + $0x1b4] ss:$8 sps:$4 sm:$0xff]   ;;  %v1575_v51 = vld [vmem:[%s1914_s8 + $0x1b0] ss:$8 sps:$4 sm:$0xff]  }
  0x5e   : > { %1116 = vmatprep.subr.bf16.mxu1 %v1530_v18  ;;  %v667_v47 = vld [vmem:[%s1891_s9] sm:$0xff]  ;;  %v668_v49 = vld [vmem:[%s1891_s9 + $0x8] sm:$0xff]  ;;  %v1576_v53 = vld [vmem:[%s1914_s8 + $0xc4] ss:$8 sps:$4 sm:$0xff]   ;;  %p1441_p13 = scmp.ne.s32.totalorder %s1642_s20, 8 }
  0x5f   : > { %v1374_v48 = vcombine.high %v667_v47, %v667_v47  ;;  %v1376_v52 = vcombine.high %v668_v49, %v668_v49  ;;  %v1578_v54 = vld [vmem:[%s1914_s8 + $0x1c4] ss:$8 sps:$4 sm:$0xff]   ;;  %v1580_v55 = vld [vmem:[%s1914_s8 + $0xc0] ss:$8 sps:$4 sm:$0xff]   ;;  %v1582_v57 = vld [vmem:[%s1914_s8 + $0xd4] ss:$8 sps:$4 sm:$0xff]   ;;  %v1373_v5 = vcombine.low %v667_v47, %v667_v47  ;;  %v1375_v6 = vcombine.low %v668_v49, %v668_v49 }
  0x60   : > { %1076 = vmatpush1.bf16.msra.mxu0 %v1532_v19  ;;  %v1581_v56 = vld [vmem:[%s1914_s8 + $0x1c0] ss:$8 sps:$4 sm:$0xff]   ;;  %v1584_v58 = vld [vmem:[%s1914_s8 + $0x1d4] ss:$8 sps:$4 sm:$0xff]   ;;  %v1586_v59 = vld [vmem:[%s1914_s8 + $0xd0] ss:$8 sps:$4 sm:$0xff]  }
  0x61   : > { %1117 = vmatpush1.bf16.msra.mxu1 %v1533_v20  ;;  %1077 = vmatprep.subr.bf16.mxu0 %v1534_v21  ;;  %v1587_v60 = vld [vmem:[%s1914_s8 + $0x1d0] ss:$8 sps:$4 sm:$0xff]   ;;  %v1588_v61 = vld [vmem:[%s1914_s8 + $0xe4] ss:$8 sps:$4 sm:$0xff]   ;;  %v1592_v63 = vld [vmem:[%s1914_s8 + $0xe0] ss:$8 sps:$4 sm:$0xff]   ;;  %v1161_v21 = vlaneseq (!%p1441_p13) }
  0x62   : > { %1118 = vmatprep.subr.bf16.mxu1 %v1536_v22  ;;  %1099 = vmatprep.mubr.bf16.mxu0 %v1374_v48  ;;  %v1590_v62 = vld [vmem:[%s1914_s8 + $0x1e4] ss:$8 sps:$4 sm:$0xff]   ;;  %v1593_v0 = vld [vmem:[%s1914_s8 + $0x1e0] ss:$8 sps:$4 sm:$0xff]   ;;  %v1594_v1 = vld [vmem:[%s1914_s8 + $0xf4] ss:$8 sps:$4 sm:$0xff]  }
  0x63   : > { %1140 = vmatprep.mubr.bf16.mxu1 %v1376_v52  ;;  %v1596_v2 = vld [vmem:[%s1914_s8 + $0x1f4] ss:$8 sps:$4 sm:$0xff]   ;;  %v1598_v3 = vld [vmem:[%s1914_s8 + $0xf0] ss:$8 sps:$4 sm:$0xff]   ;;  %v1162_v22 = vshrl.u32 (!%p1441_p13), %v1161_v21, 7 }
  0x64   : > { %1078 = vmatpush1.bf16.msra.mxu0 %v1538_v23  ;;  %v1599_v4 = vld [vmem:[%s1914_s8 + $0x1f0] ss:$8 sps:$4 sm:$0xff]  }
  0x65   : > { %1119 = vmatpush1.bf16.msra.mxu1 %v1539_v24  ;;  %1079 = vmatprep.subr.bf16.mxu0 %v1540_v25  ;;  %v665_v8 = vld [vmem:[#allocation2] sm:$0xff]  ;;  %v666_v12 = vld [vmem:[#allocation2 + $0x8] sm:$0xff]  ;;  %v1163_v25 = vsub.s32 (!%p1441_p13), 0, %v1162_v22 }
  0x66   : > { %1120 = vmatprep.subr.bf16.mxu1 %v1542_v26  ;;  %v1159_v23 = vld [vmem:[%s632_s18] sm:$0x3] (!%p1441_p13)  ;;  %v1167_v26 = vsub.s32 (!%p1441_p13), 1, %v1162_v22 }
  0x67   : > { %v1173_v24 = vld [vmem:[%s637_s21] sm:$0x3] (!%p1441_p13) }
  0x68   : > { %1080 = vmatpush1.bf16.msra.mxu0 %v1544_v27 }
  0x69   : > { %1121 = vmatpush1.bf16.msra.mxu1 %v1545_v28  ;;  %1081 = vmatprep.subr.bf16.mxu0 %v1546_v29  ;;  %v1187_v29 = vld [vmem:[%s1907_s17] sm:$0xff] (!%p1441_p13) }
  0x6a   : > { %1122 = vmatprep.subr.bf16.mxu1 %v1548_v30  ;;  %v1164_v30 = vrot.slane (!%p1441_p13), %v1159_v23, %v1163_v25 }
  0x6c   : > { %1082 = vmatpush1.bf16.msra.mxu0 %v1550_v31  ;;  %v1168_v31 = vrot.slane (!%p1441_p13), %v1159_v23, %v1167_v26 }
  0x6d   : > { %1123 = vmatpush1.bf16.msra.mxu1 %v1551_v32  ;;  %1083 = vmatprep.subr.bf16.mxu0 %v1552_v33  ;;  %v1178_v32 = vrot.slane (!%p1441_p13), %v1173_v24, %v1163_v25  ;;  %v1182_v33 = vrot.slane (!%p1441_p13), %v1173_v24, %v1167_v26 }
  0x6e   : > { %1124 = vmatprep.subr.bf16.mxu1 %v1554_v34 }
  0x70   : > { %1084 = vmatpush1.bf16.msra.mxu0 %v1556_v35 }
  0x71   : > { %1125 = vmatpush1.bf16.msra.mxu1 %v1557_v36  ;;  %1085 = vmatprep.subr.bf16.mxu0 %v1558_v37  ;;  %v1188_v36 = vunpack.c.l.bf16 (!%p1441_p13), %v1187_v29  ;;  %v1189_v37 = vunpack.c.h.bf16 (!%p1441_p13), %v1187_v29 }
  0x72   : > { %1126 = vmatprep.subr.bf16.mxu1 %v1560_v38 }
  0x74   : > { %1086 = vmatpush1.bf16.msra.mxu0 %v1562_v39 }
  0x75   : > { %1127 = vmatpush1.bf16.msra.mxu1 %v1563_v40  ;;  %1087 = vmatprep.subr.bf16.mxu0 %v1564_v41 }
  0x76   : > { %1128 = vmatprep.subr.bf16.mxu1 %v1566_v42 }
  0x78   : > { %1088 = vmatpush1.bf16.msra.mxu0 %v1568_v43 }
  0x79   : > { %1129 = vmatpush1.bf16.msra.mxu1 %v1569_v44  ;;  %1089 = vmatprep.subr.bf16.mxu0 %v1570_v45 }
  0x7a   : > { %1130 = vmatprep.subr.bf16.mxu1 %v1572_v46 }
  0x7c   : > { %1090 = vmatpush1.bf16.msra.mxu0 %v1574_v50 }
  0x7d   : > { %1131 = vmatpush1.bf16.msra.mxu1 %v1575_v51  ;;  %1091 = vmatprep.subr.bf16.mxu0 %v1576_v53 }
  0x7e   : > { %1132 = vmatprep.subr.bf16.mxu1 %v1578_v54 }
  0x80   : > { %1092 = vmatpush1.bf16.msra.mxu0 %v1580_v55 }
  0x81   : > { %1133 = vmatpush1.bf16.msra.mxu1 %v1581_v56  ;;  %1093 = vmatprep.subr.bf16.mxu0 %v1582_v57 }
  0x82   : > { %1134 = vmatprep.subr.bf16.mxu1 %v1584_v58 }
  0x84   : > { %1094 = vmatpush1.bf16.msra.mxu0 %v1586_v59 }
  0x85   : > { %1135 = vmatpush1.bf16.msra.mxu1 %v1587_v60  ;;  %1095 = vmatprep.subr.bf16.mxu0 %v1588_v61 }
  0x86   : > { %1136 = vmatprep.subr.bf16.mxu1 %v1590_v62 }
  0x88   : > { %1096 = vmatpush1.bf16.msra.mxu0 %v1592_v63 }
  0x89   : > { %1137 = vmatpush1.bf16.msra.mxu1 %v1593_v0  ;;  %1097 = vmatprep.subr.bf16.mxu0 %v1594_v1 }
  0x8a   : > { %1138 = vmatprep.subr.bf16.mxu1 %v1596_v2 }
  0x8c   : > { %1098 = vmatpush1.bf16.msra.mxu0 %v1598_v3 }
  0x8d   : > { %1139 = vmatpush1.bf16.msra.mxu1 %v1599_v4 }
  0x8f   : > { %1100 = vmatmul.mubr.bf16.vlgmr.msra.gmra.mrb[0].mxu0 %v1373_v5 }
  0x90   : > { %1141 = vmatmul.mubr.bf16.vlgmr.msra.gmra.mrb[0].mxu1 %v1375_v6 }
 0x162   : > { %v1101_v7 = vpop.f32.mrb[0].mxu0 }
 0x163   : > { %v1142_v9 = vpop.f32.mrb[0].mxu1  ;;  %v1103_v11 = vpop.f32.mrb[1].mxu0  ;;  %1156 = sbr.rel (%p1441_p13) target bundleno = 380 (0x17c), region = 86 }
 0x164   : > { %v1143_v10 = vadd.f32 %v1142_v9, %v1101_v7  ;;  %v1144_v13 = vpop.f32.mrb[1].mxu1  ;;  %v1105_v15 = vpop.f32.mrb[2].mxu0 }
 0x165   : > { %v1145_v14 = vadd.f32 %v1144_v13, %v1103_v11  ;;  %v1146_v16 = vpop.f32.mrb[2].mxu1  ;;  %v1106_v18 = vpop.f32.mrb[3].mxu0 }
 0x166   : > { %v1149_v17 = vadd.f32 %v1143_v10, %v665_v8  ;;  %v1147_v19 = vpop.f32.mrb[3].mxu1 }
 0x167   : > { %v1150_v20 = vadd.f32 %v1145_v14, %v666_v12 }
 0x168   : > { %1151 = vst [vmem:[#allocation2] sm:$0xff] %v1149_v17 }
 0x169   : > { %1152 = vst [vmem:[#allocation2 + $0x8] sm:$0xff] %v1150_v20 }
 0x16f   : > { %v1157_v27 = vld [vmem:[#allocation2] sm:$0xff] }
 0x170   : > { %v1158_v28 = vld [vmem:[#allocation2 + $0x8] sm:$0xff]  ;;  %v1171_v34 = vmul.f32 %v1164_v30, %v1157_v27 }
 0x171   : > { %v1172_v35 = vmul.f32 %v1168_v31, %v1158_v28 }
 0x172   : > { %v1185_v38 = vadd.f32 %v1178_v32, %v1171_v34 }
 0x173   : > { %v1186_v39 = vadd.f32 %v1182_v33, %v1172_v35 }
 0x174   : > { %v1190_v40 = vadd.f32 %v1188_v36, %v1185_v38 }
 0x175   : > { %v1191_v41 = vadd.f32 %v1189_v37, %v1186_v39 }
 0x176   : > { %v1192_v42 = vmax.f32 %v1190_v40, 0.0 }
 0x177   : > { %v1193_v43 = vmax.f32 %v1191_v41, 0.0 }
 0x179   : > { %v1446_v44 = vpack.c.bf16 %v1193_v43, %v1192_v42 }
 0x17b   : > { %1202 = vst [vmem:[%s1912_s7] sm:$0xff] %v1446_v44 }
 0x17c PF: > { %s15_s24 = sadd.s32 1, %s1658_s24   ;;  %s2023_s18 = smov %s1638_s19 }
 0x17d   : > { %p12_p0 = scmp.ge.s32.totalorder %s15_s24, 20   ;;  %s2024_s19 = smov %s1742_s6 }
 0x17e   : > { %s2025_s20 = smov %s1650_s22  ;;  %s2026_s21 = smov %s1654_s23 }
 0x17f   : > { %s2027_s22 = smov %s2030_s25  ;;  %s2028_s23 = smov %s2034_s26 }
 0x180   :  { %14 = sbr.rel (!%p12_p0) target bundleno = 4 (0x4), region = 133 }

// kernel: resnet18_forward.44
= control target key start
LH: loop header
LB: loop body
LE: loop exit
PB: predicated region body
PF: predicated region fallthrough
CT: control target
= control target key end

     0   :  { %s297_s6 = smov 0   ;;  %s299_s7 = smov 0   ;;  %s351_s0 = inlined_call_operand.vmem [shape: bf16[2,1,512], index: 0, kind: input, shape index: {}]   ;;  %s352_s1 = inlined_call_operand.vmem [shape: f32[2,512], index: 1, kind: output, shape index: {}]  }
   0x1   :  { %s301_s8 = smov 0  }
   0x2 LB: > { %s229_s9 = sadd.s32 4294967295, %s285_s8   ;;  %s314_s10 = sadd.s32 1, %s285_s8   ;;  %s285_s8 = sphi %s301_s8, %s355_s8   ;;  %s281_s7 = sphi %s299_s7, %s354_s7   ;;  %s277_s6 = sphi %s297_s6, %s353_s6  }
   0x3   : > { %s15_s11 = ssub.s32 %s285_s8, %s314_s10  ;;  %s18_s12 = sadd.s32 1, %s281_s7 }
   0x4   : > { %p16_p0 = scmp.eq.s32.totalorder %s15_s11, 0  ;;  %p25_p1 = scmp.ne.s32.totalorder %s281_s7, %s277_s6 }
   0x5   : > { %p26_p2 = scmp.eq.s32.totalorder %s285_s8, 0  ;;  %p232_p4 = scmp.ge.s32.totalorder %s285_s8, 4 }
   0x6   : > { %s323_s13 = scalar_select %p16_p0, %s281_s7, %s18_s12  }
   0x7   : > { %p27_p3 = por %p26_p2, %p25_p1  ;;  %77 = sbr.rel (%p232_p4) target bundleno = 21 (0x15), region = 16 }
   0xe   : > { %80 = sbr.rel (!%p27_p3) target bundleno = 21 (0x15), region = 20  ;;  %s82_s14 = sand.u32 (%p27_p3), 1, %s281_s7  }
   0xf   : > { %s85_s17 = scalar_lea.vmem (%p27_p3), %s351_s0, %s285_s8  ;;  %s233_s18 = sshll.u32 (%p27_p3), %s82_s14, 1 }
  0x10   : > { %v101_v0 = vld [vmem:[%s85_s17] sm:$0x1] (%p27_p3)  ;;  %v103_v1 = vld [vmem:[%s85_s17 + $0x4] sm:$0x1] (%p27_p3)  ;;  %s84_s19 = scalar_lea.vmem (%p27_p3), [#allocation2], %s233_s18 }
  0x11   : > { %102 = vst [vmem:[%s84_s19] sm:$0x1] (%p27_p3), %v101_v0  ;;  %104 = vst [vmem:[%s84_s19 + $0x1] sm:$0x1] (%p27_p3), %v103_v1 }
  0x15 PF: > { %p234_p5 = scmp.ge.s32.totalorder %s285_s8, 1  ;;  %p122_p6 = scmp.lt.s32.totalorder %s285_s8, 5 }
  0x17   : > { %p123_p7 = pnand %p234_p5, %p122_p6 }
  0x18   : > { %s129_s20 = sand.u32 (!%p123_p7), 1, %s277_s6   ;;  %p147_p8 = scmp.lt.s32.totalorder (!%p123_p7), %s229_s9, 3  ;;  %v159_v2 = vlaneseq (!%p123_p7)  ;;  %vm167_vm0 = vcmask (!%p123_p7), 1041409  }
  0x19   : > { %126 = sbr.rel (%p123_p7) target bundleno = 36 (0x24), region = 54  ;;  %s235_s21 = sshll.u32 (!%p123_p7), %s129_s20, 1 }
  0x1a   : > { %v160_v3 = vshrl.u32 (!%p123_p7), %v159_v2, 7  ;;  %s131_s22 = scalar_lea.vmem (!%p123_p7), [#allocation2], %s235_s21 }
  0x1b   : > { %v151_v4 = vld [vmem:[%s131_s22] sm:$0x1] (!%p123_p7)  ;;  %v152_v5 = vld [vmem:[%s131_s22 + $0x1] sm:$0x1] (!%p123_p7) }
  0x1c   : > { %v153_v6 = vunpack.c.l.bf16 (!%p123_p7), %v151_v4  ;;  %v154_v7 = vunpack.c.l.bf16 (!%p123_p7), %v152_v5  ;;  %v161_v8 = vsub.s32 (!%p123_p7), 0, %v160_v3 }
  0x1e   : > { %v162_v9 = vrot.slane (!%p123_p7), %v153_v6, %v161_v8  ;;  %v166_v10 = vrot.slane (!%p123_p7), %v154_v7, %v161_v8 }
  0x20   : > { %s357_s9 = smov (!%p147_p8, %s229_s9), 3  ;;  %v168_v11 = vsel %vm167_vm0, %v166_v10, %v162_v9 }
  0x21   : > { %s236_s23 = sshll.u32 %s357_s9, 1 }
  0x22   : > { %s150_s26 = scalar_lea.vmem %s352_s1, %s236_s23 }
  0x23   : > { %170 = vst [vmem:[%s150_s26] sm:$0x3] %v168_v11 }
  0x24 PF: > { %p8_p9 = scmp.ge.s32.totalorder %s314_s10, 6   ;;  %s353_s6 = smov %s281_s7 }
  0x25   : > { %s354_s7 = smov %s323_s13  ;;  %s355_s8 = smov %s314_s10 }
  0x26   :  { %10 = sbr.rel (!%p8_p9) target bundleno = 2 (0x2), region = 93 }

// kernel: resnet18_forward.42
= control target key start
LH: loop header
LB: loop body
LE: loop exit
PB: predicated region body
PF: predicated region fallthrough
CT: control target
= control target key end

     0   :  { %s1598_s15 = smov 0   ;;  %s1600_s16 = smov 0   ;;  %s1918_s0 = inlined_call_operand.vmem [shape: bf16[8,4608], index: 0, kind: input, shape index: {}]   ;;  %s1919_s1 = inlined_call_operand.vmem [shape: bf16[4608,512], index: 1, kind: input, shape index: {}]   ;;  %s1920_s2 = inlined_call_operand.vmem [shape: f32[1,512], index: 2, kind: input, shape index: {}]   ;;  %s1921_s3 = inlined_call_operand.vmem [shape: f32[1,512], index: 3, kind: input, shape index: {}]   ;;  %s1922_s4 = inlined_call_operand.vmem [shape: bf16[8,512], index: 4, kind: output, shape index: {}]  }
   0x1   :  { %s1602_s17 = smov 0   ;;  %s1604_s18 = smov 0  }
   0x2   :  { %s1606_s19 = smov 0   ;;  %s1608_s20 = smov 0  }
   0x3   :  { %s1610_s21 = smov 0  }
   0x4 LB: > { %s26_s22 = sadd.s32 1, %s1562_s19  ;;  %s29_s23 = sadd.s32 1, %s1566_s20  ;;  %s1570_s21 = sphi %s1610_s21, %s14_s21   ;;  %s1566_s20 = sphi %s1608_s20, %s1928_s20   ;;  %s1562_s19 = sphi %s1606_s19, %s1927_s19   ;;  %s1558_s18 = sphi %s1604_s18, %s1926_s18   ;;  %s1554_s17 = sphi %s1602_s17, %s1925_s17   ;;  %s1550_s16 = sphi %s1600_s16, %s1924_s16   ;;  %s1546_s15 = sphi %s1598_s15, %s1923_s15  }
   0x5   : > { %p27_p0 = scmp.ge.s32.totalorder %s26_s22, 9  ;;  %p77_p1 = scmp.ne.s32.totalorder %s1550_s16, %s1546_s15 }
   0x6   : > { %p78_p2 = scmp.eq.s32.totalorder %s1570_s21, 0  ;;  %s70_s27 = sadd.s32 1, %s1550_s16 }
   0x7   : > { %s1930_s22 = smov (%p27_p0, %s26_s22), 0  ;;  %s1932_s23 = smov (!%p27_p0, %s29_s23), %s1566_s20 }
   0x8   : > { %p79_p3 = por %p78_p2, %p77_p1  ;;  %p31_p4 = scmp.ge.s32.totalorder %s1932_s23, 2 }
   0x9   : > { %s65_s24 = ssub.s32 %s1562_s19, %s1930_s22  ;;  %p1270_p6 = scmp.ge.s32.totalorder %s1570_s21, 18 }
   0xa   : > { %s1934_s23 = smov (%p31_p4, %s1932_s23), 0 }
   0xb   : > { %s66_s25 = ssub.s32 %s1566_s20, %s1934_s23  ;;  %183 = sbr.rel (%p1270_p6) target bundleno = 57 (0x39), region = 16 }
   0xc   : > { %s67_s26 = sor.u32 %s66_s25, %s65_s24 }
   0xd   : > { %p68_p5 = scmp.eq.s32.totalorder %s67_s26, 0 }
   0xf   : > { %s1649_s28 = scalar_select %p68_p5, %s1550_s16, %s70_s27  }
  0x12   : > { %199 = sbr.rel (!%p79_p3) target bundleno = 57 (0x39), region = 24  ;;  %s201_s29 = sand.u32 (%p79_p3), 1, %s1550_s16  }
  0x13   : > { %s1273_s30 = sshll.u32 (%p79_p3), %s1566_s20, 1  ;;  %s1271_s5 = sshll.u32 (%p79_p3), %s201_s29, 9 }
  0x14   : > { %s1357_s6 = sshll.u32 (%p79_p3), %s1562_s19, 8  ;;  %s1663_s12 = scalar_lea.vmem (%p79_p3), [#allocation3], %s1271_s5 }
  0x15   : > { %s207_s7 = sadd.s32 (%p79_p3), %s1357_s6, %s1273_s30 }
  0x16   : > { %s1275_s8 = sshll.u32 (%p79_p3), %s207_s7, 2 }
  0x17   : > { %s1658_s11 = scalar_lea.vmem (%p79_p3), %s1919_s1, %s1275_s8 }
  0x18   : > { %v363_v0 = vld [vmem:[%s1658_s11] sm:$0xff] (%p79_p3)  ;;  %v365_v1 = vld [vmem:[%s1658_s11 + $0x10] sm:$0xff] (%p79_p3) }
  0x19   : > { %v367_v2 = vld [vmem:[%s1658_s11 + $0x20] sm:$0xff]  ;;  %364 = vst [vmem:[%s1663_s12] sm:$0xff] %v363_v0  ;;  %366 = vst [vmem:[%s1663_s12 + $0x8] sm:$0xff] %v365_v1  ;;  %v369_v3 = vld [vmem:[%s1658_s11 + $0x30] sm:$0xff] }
  0x1a   : > { %368 = vst [vmem:[%s1663_s12 + $0x10] sm:$0xff] %v367_v2  ;;  %v371_v4 = vld [vmem:[%s1658_s11 + $0x40] sm:$0xff]  ;;  %v373_v5 = vld [vmem:[%s1658_s11 + $0x50] sm:$0xff]  ;;  %370 = vst [vmem:[%s1663_s12 + $0x18] sm:$0xff] %v369_v3 }
  0x1b   : > { %372 = vst [vmem:[%s1663_s12 + $0x20] sm:$0xff] %v371_v4  ;;  %374 = vst [vmem:[%s1663_s12 + $0x28] sm:$0xff] %v373_v5  ;;  %v375_v6 = vld [vmem:[%s1658_s11 + $0x60] sm:$0xff]  ;;  %v377_v7 = vld [vmem:[%s1658_s11 + $0x70] sm:$0xff] }
  0x1c   : > { %v379_v8 = vld [vmem:[%s1658_s11 + $0x80] sm:$0xff]  ;;  %376 = vst [vmem:[%s1663_s12 + $0x30] sm:$0xff] %v375_v6  ;;  %378 = vst [vmem:[%s1663_s12 + $0x38] sm:$0xff] %v377_v7  ;;  %v381_v9 = vld [vmem:[%s1658_s11 + $0x90] sm:$0xff] }
  0x1d   : > { %380 = vst [vmem:[%s1663_s12 + $0x40] sm:$0xff] %v379_v8  ;;  %v383_v10 = vld [vmem:[%s1658_s11 + $0xa0] sm:$0xff]  ;;  %v385_v11 = vld [vmem:[%s1658_s11 + $0xb0] sm:$0xff]  ;;  %382 = vst [vmem:[%s1663_s12 + $0x48] sm:$0xff] %v381_v9 }
  0x1e   : > { %384 = vst [vmem:[%s1663_s12 + $0x50] sm:$0xff] %v383_v10  ;;  %386 = vst [vmem:[%s1663_s12 + $0x58] sm:$0xff] %v385_v11  ;;  %v387_v12 = vld [vmem:[%s1658_s11 + $0xc0] sm:$0xff]  ;;  %v389_v13 = vld [vmem:[%s1658_s11 + $0xd0] sm:$0xff] }
  0x1f   : > { %v391_v14 = vld [vmem:[%s1658_s11 + $0xe0] sm:$0xff]  ;;  %388 = vst [vmem:[%s1663_s12 + $0x60] sm:$0xff] %v387_v12  ;;  %390 = vst [vmem:[%s1663_s12 + $0x68] sm:$0xff] %v389_v13  ;;  %v393_v15 = vld [vmem:[%s1658_s11 + $0xf0] sm:$0xff] }
  0x20   : > { %392 = vst [vmem:[%s1663_s12 + $0x70] sm:$0xff] %v391_v14  ;;  %v395_v16 = vld [vmem:[%s1658_s11 + $0x100] sm:$0xff]  ;;  %v397_v17 = vld [vmem:[%s1658_s11 + $0x110] sm:$0xff]  ;;  %394 = vst [vmem:[%s1663_s12 + $0x78] sm:$0xff] %v393_v15 }
  0x21   : > { %396 = vst [vmem:[%s1663_s12 + $0x80] sm:$0xff] %v395_v16  ;;  %398 = vst [vmem:[%s1663_s12 + $0x88] sm:$0xff] %v397_v17  ;;  %v399_v18 = vld [vmem:[%s1658_s11 + $0x120] sm:$0xff]  ;;  %v401_v19 = vld [vmem:[%s1658_s11 + $0x130] sm:$0xff] }
  0x22   : > { %v403_v20 = vld [vmem:[%s1658_s11 + $0x140] sm:$0xff]  ;;  %400 = vst [vmem:[%s1663_s12 + $0x90] sm:$0xff] %v399_v18  ;;  %402 = vst [vmem:[%s1663_s12 + $0x98] sm:$0xff] %v401_v19  ;;  %v405_v21 = vld [vmem:[%s1658_s11 + $0x150] sm:$0xff] }
  0x23   : > { %404 = vst [vmem:[%s1663_s12 + $0xa0] sm:$0xff] %v403_v20  ;;  %v407_v22 = vld [vmem:[%s1658_s11 + $0x160] sm:$0xff]  ;;  %v409_v23 = vld [vmem:[%s1658_s11 + $0x170] sm:$0xff]  ;;  %406 = vst [vmem:[%s1663_s12 + $0xa8] sm:$0xff] %v405_v21 }
  0x24   : > { %408 = vst [vmem:[%s1663_s12 + $0xb0] sm:$0xff] %v407_v22  ;;  %410 = vst [vmem:[%s1663_s12 + $0xb8] sm:$0xff] %v409_v23  ;;  %v411_v24 = vld [vmem:[%s1658_s11 + $0x180] sm:$0xff]  ;;  %v413_v25 = vld [vmem:[%s1658_s11 + $0x190] sm:$0xff] }
  0x25   : > { %v415_v26 = vld [vmem:[%s1658_s11 + $0x1a0] sm:$0xff]  ;;  %412 = vst [vmem:[%s1663_s12 + $0xc0] sm:$0xff] %v411_v24  ;;  %414 = vst [vmem:[%s1663_s12 + $0xc8] sm:$0xff] %v413_v25  ;;  %v417_v27 = vld [vmem:[%s1658_s11 + $0x1b0] sm:$0xff] }
  0x26   : > { %416 = vst [vmem:[%s1663_s12 + $0xd0] sm:$0xff] %v415_v26  ;;  %v419_v28 = vld [vmem:[%s1658_s11 + $0x1c0] sm:$0xff]  ;;  %v421_v29 = vld [vmem:[%s1658_s11 + $0x1d0] sm:$0xff]  ;;  %418 = vst [vmem:[%s1663_s12 + $0xd8] sm:$0xff] %v417_v27 }
  0x27   : > { %420 = vst [vmem:[%s1663_s12 + $0xe0] sm:$0xff] %v419_v28  ;;  %422 = vst [vmem:[%s1663_s12 + $0xe8] sm:$0xff] %v421_v29  ;;  %v423_v30 = vld [vmem:[%s1658_s11 + $0x1e0] sm:$0xff]  ;;  %v425_v31 = vld [vmem:[%s1658_s11 + $0x1f0] sm:$0xff] }
  0x28   : > { %v427_v32 = vld [vmem:[%s1658_s11 + $0x200] sm:$0xff]  ;;  %424 = vst [vmem:[%s1663_s12 + $0xf0] sm:$0xff] %v423_v30  ;;  %426 = vst [vmem:[%s1663_s12 + $0xf8] sm:$0xff] %v425_v31  ;;  %v429_v33 = vld [vmem:[%s1658_s11 + $0x210] sm:$0xff] }
  0x29   : > { %428 = vst [vmem:[%s1663_s12 + $0x100] sm:$0xff] %v427_v32  ;;  %v431_v34 = vld [vmem:[%s1658_s11 + $0x220] sm:$0xff]  ;;  %v433_v35 = vld [vmem:[%s1658_s11 + $0x230] sm:$0xff]  ;;  %430 = vst [vmem:[%s1663_s12 + $0x108] sm:$0xff] %v429_v33 }
  0x2a   : > { %432 = vst [vmem:[%s1663_s12 + $0x110] sm:$0xff] %v431_v34  ;;  %434 = vst [vmem:[%s1663_s12 + $0x118] sm:$0xff] %v433_v35  ;;  %v435_v36 = vld [vmem:[%s1658_s11 + $0x240] sm:$0xff]  ;;  %v437_v37 = vld [vmem:[%s1658_s11 + $0x250] sm:$0xff] }
  0x2b   : > { %v439_v38 = vld [vmem:[%s1658_s11 + $0x260] sm:$0xff]  ;;  %436 = vst [vmem:[%s1663_s12 + $0x120] sm:$0xff] %v435_v36  ;;  %438 = vst [vmem:[%s1663_s12 + $0x128] sm:$0xff] %v437_v37  ;;  %v441_v39 = vld [vmem:[%s1658_s11 + $0x270] sm:$0xff] }
  0x2c   : > { %440 = vst [vmem:[%s1663_s12 + $0x130] sm:$0xff] %v439_v38  ;;  %v443_v40 = vld [vmem:[%s1658_s11 + $0x280] sm:$0xff]  ;;  %v445_v41 = vld [vmem:[%s1658_s11 + $0x290] sm:$0xff]  ;;  %442 = vst [vmem:[%s1663_s12 + $0x138] sm:$0xff] %v441_v39 }
  0x2d   : > { %444 = vst [vmem:[%s1663_s12 + $0x140] sm:$0xff] %v443_v40  ;;  %446 = vst [vmem:[%s1663_s12 + $0x148] sm:$0xff] %v445_v41  ;;  %v447_v42 = vld [vmem:[%s1658_s11 + $0x2a0] sm:$0xff]  ;;  %v449_v43 = vld [vmem:[%s1658_s11 + $0x2b0] sm:$0xff] }
  0x2e   : > { %v451_v44 = vld [vmem:[%s1658_s11 + $0x2c0] sm:$0xff]  ;;  %448 = vst [vmem:[%s1663_s12 + $0x150] sm:$0xff] %v447_v42  ;;  %450 = vst [vmem:[%s1663_s12 + $0x158] sm:$0xff] %v449_v43  ;;  %v453_v45 = vld [vmem:[%s1658_s11 + $0x2d0] sm:$0xff] }
  0x2f   : > { %452 = vst [vmem:[%s1663_s12 + $0x160] sm:$0xff] %v451_v44  ;;  %v455_v46 = vld [vmem:[%s1658_s11 + $0x2e0] sm:$0xff]  ;;  %v457_v47 = vld [vmem:[%s1658_s11 + $0x2f0] sm:$0xff]  ;;  %454 = vst [vmem:[%s1663_s12 + $0x168] sm:$0xff] %v453_v45 }
  0x30   : > { %456 = vst [vmem:[%s1663_s12 + $0x170] sm:$0xff] %v455_v46  ;;  %458 = vst [vmem:[%s1663_s12 + $0x178] sm:$0xff] %v457_v47  ;;  %v459_v48 = vld [vmem:[%s1658_s11 + $0x300] sm:$0xff]  ;;  %v461_v49 = vld [vmem:[%s1658_s11 + $0x310] sm:$0xff] }
  0x31   : > { %v463_v50 = vld [vmem:[%s1658_s11 + $0x320] sm:$0xff]  ;;  %460 = vst [vmem:[%s1663_s12 + $0x180] sm:$0xff] %v459_v48  ;;  %462 = vst [vmem:[%s1663_s12 + $0x188] sm:$0xff] %v461_v49  ;;  %v465_v51 = vld [vmem:[%s1658_s11 + $0x330] sm:$0xff] }
  0x32   : > { %464 = vst [vmem:[%s1663_s12 + $0x190] sm:$0xff] %v463_v50  ;;  %v467_v52 = vld [vmem:[%s1658_s11 + $0x340] sm:$0xff]  ;;  %v469_v53 = vld [vmem:[%s1658_s11 + $0x350] sm:$0xff]  ;;  %466 = vst [vmem:[%s1663_s12 + $0x198] sm:$0xff] %v465_v51 }
  0x33   : > { %468 = vst [vmem:[%s1663_s12 + $0x1a0] sm:$0xff] %v467_v52  ;;  %470 = vst [vmem:[%s1663_s12 + $0x1a8] sm:$0xff] %v469_v53  ;;  %v471_v54 = vld [vmem:[%s1658_s11 + $0x360] sm:$0xff]  ;;  %v473_v55 = vld [vmem:[%s1658_s11 + $0x370] sm:$0xff] }
  0x34   : > { %v475_v56 = vld [vmem:[%s1658_s11 + $0x380] sm:$0xff]  ;;  %472 = vst [vmem:[%s1663_s12 + $0x1b0] sm:$0xff] %v471_v54  ;;  %474 = vst [vmem:[%s1663_s12 + $0x1b8] sm:$0xff] %v473_v55  ;;  %v477_v57 = vld [vmem:[%s1658_s11 + $0x390] sm:$0xff] }
  0x35   : > { %476 = vst [vmem:[%s1663_s12 + $0x1c0] sm:$0xff] %v475_v56  ;;  %v479_v58 = vld [vmem:[%s1658_s11 + $0x3a0] sm:$0xff]  ;;  %v481_v59 = vld [vmem:[%s1658_s11 + $0x3b0] sm:$0xff]  ;;  %478 = vst [vmem:[%s1663_s12 + $0x1c8] sm:$0xff] %v477_v57 }
  0x36   : > { %480 = vst [vmem:[%s1663_s12 + $0x1d0] sm:$0xff] %v479_v58  ;;  %482 = vst [vmem:[%s1663_s12 + $0x1d8] sm:$0xff] %v481_v59  ;;  %v483_v60 = vld [vmem:[%s1658_s11 + $0x3c0] sm:$0xff]  ;;  %v485_v61 = vld [vmem:[%s1658_s11 + $0x3d0] sm:$0xff] }
  0x37   : > { %v487_v62 = vld [vmem:[%s1658_s11 + $0x3e0] sm:$0xff]  ;;  %484 = vst [vmem:[%s1663_s12 + $0x1e0] sm:$0xff] %v483_v60  ;;  %486 = vst [vmem:[%s1663_s12 + $0x1e8] sm:$0xff] %v485_v61  ;;  %v489_v63 = vld [vmem:[%s1658_s11 + $0x3f0] sm:$0xff] }
  0x38   : > { %488 = vst [vmem:[%s1663_s12 + $0x1f0] sm:$0xff] %v487_v62  ;;  %490 = vst [vmem:[%s1663_s12 + $0x1f8] sm:$0xff] %v489_v63 }
  0x39 PF: > { %p1276_p7 = scmp.ge.s32.totalorder %s1570_s21, 1  ;;  %p511_p8 = scmp.lt.s32.totalorder %s1570_s21, 19 }
  0x3b   : > { %p512_p9 = pnand %p1276_p7, %p511_p8 }
  0x3c   : > { %s518_s13 = sand.u32 (!%p512_p9), 1, %s1546_s15   ;;  %s1278_s14 = sshll.u32 (!%p512_p9), %s1554_s17, 2 }
  0x3d   : > { %515 = sbr.rel (%p512_p9) target bundleno = 378 (0x17a), region = 70  ;;  %s1277_s24 = sshll.u32 (!%p512_p9), %s518_s13, 9 }
  0x3e   : > { %p567_p10 = scmp.lt.s32.totalorder (!%p512_p9), %s1278_s14, 35  ;;  %s1280_s25 = sshll.u32 (!%p512_p9), %s1558_s18, 1 }
  0x3f   : > { %p577_p11 = scmp.lt.s32.totalorder (!%p512_p9), %s1280_s25, 3  ;;  %s1816_s13 = scalar_lea.vmem (!%p512_p9), [#allocation3], %s1277_s24 }
  0x40   : > { %p1284_p12 = scmp.ne.s32.totalorder (!%p512_p9), %s1554_s17, 0 }
  0x44   : > { %s1936_s14 = smov (!%p567_p10, %s1278_s14), 35  ;;  %s1938_s25 = smov (!%p577_p11, %s1280_s25), 3 }
  0x45   : > { %s1279_s26 = sshll.u32 %s1936_s14, 2  ;;  %s579_s15 = scalar_lea.vmem %s1920_s2, %s1938_s25  ;;  %v1572_v0 = vmov (!%p1284_p12), 0.0  }
  0x46   : > { %s1798_s30 = scalar_lea.vmem %s1918_s0, %s1279_s26  ;;  %s584_s18 = scalar_lea.vmem %s1921_s3, %s1938_s25  ;;  %600 = vst [vmem:[#allocation2] sm:$0xff] (!%p1284_p12), %v1572_v0  ;;  %601 = vst [vmem:[#allocation2 + $0x8] sm:$0xff] (!%p1284_p12), %v1572_v0 }
  0x47   : > { %s1283_s9 = sshll.u32 %s1938_s25, 2  ;;  %599 = sbr.rel (%p1284_p12) target bundleno = 78 (0x4e), region = 78 }
  0x48   : > { %s1814_s12 = scalar_lea.vmem %s1922_s4, %s1283_s9 }
  0x4e PF: > { %v1416_v1 = vld [vmem:[%s1816_s13 + $0x4] ss:$8 sps:$4 sm:$0xff]   ;;  %v1420_v3 = vld [vmem:[%s1816_s13] ss:$8 sps:$4 sm:$0xff]   ;;  %v1422_v5 = vld [vmem:[%s1816_s13 + $0x14] ss:$8 sps:$4 sm:$0xff]  }
  0x4f   : > { %v1418_v2 = vld [vmem:[%s1816_s13 + $0x104] ss:$8 sps:$4 sm:$0xff]   ;;  %1004 = vmatprep.subr.bf16.mxu0 %v1416_v1  ;;  %v1421_v4 = vld [vmem:[%s1816_s13 + $0x100] ss:$8 sps:$4 sm:$0xff]   ;;  %v1424_v6 = vld [vmem:[%s1816_s13 + $0x114] ss:$8 sps:$4 sm:$0xff]  }
  0x50   : > { %1045 = vmatprep.subr.bf16.mxu1 %v1418_v2  ;;  %1005 = vmatpush1.bf16.msra.mxu0 %v1420_v3  ;;  %v1426_v7 = vld [vmem:[%s1816_s13 + $0x10] ss:$8 sps:$4 sm:$0xff]   ;;  %v1428_v9 = vld [vmem:[%s1816_s13 + $0x24] ss:$8 sps:$4 sm:$0xff]   ;;  %v1432_v11 = vld [vmem:[%s1816_s13 + $0x20] ss:$8 sps:$4 sm:$0xff]  }
  0x51   : > { %1046 = vmatpush1.bf16.msra.mxu1 %v1421_v4  ;;  %1006 = vmatprep.subr.bf16.mxu0 %v1422_v5  ;;  %v1427_v8 = vld [vmem:[%s1816_s13 + $0x110] ss:$8 sps:$4 sm:$0xff]   ;;  %v1430_v10 = vld [vmem:[%s1816_s13 + $0x124] ss:$8 sps:$4 sm:$0xff]   ;;  %v1433_v12 = vld [vmem:[%s1816_s13 + $0x120] ss:$8 sps:$4 sm:$0xff]  }
  0x52   : > { %1047 = vmatprep.subr.bf16.mxu1 %v1424_v6  ;;  %v1434_v13 = vld [vmem:[%s1816_s13 + $0x34] ss:$8 sps:$4 sm:$0xff]   ;;  %v1438_v15 = vld [vmem:[%s1816_s13 + $0x30] ss:$8 sps:$4 sm:$0xff]   ;;  %v1440_v17 = vld [vmem:[%s1816_s13 + $0x44] ss:$8 sps:$4 sm:$0xff]  }
  0x53   : > { %v1436_v14 = vld [vmem:[%s1816_s13 + $0x134] ss:$8 sps:$4 sm:$0xff]   ;;  %v1439_v16 = vld [vmem:[%s1816_s13 + $0x130] ss:$8 sps:$4 sm:$0xff]   ;;  %v1442_v18 = vld [vmem:[%s1816_s13 + $0x144] ss:$8 sps:$4 sm:$0xff]  }
  0x54   : > { %1007 = vmatpush1.bf16.msra.mxu0 %v1426_v7  ;;  %v1444_v19 = vld [vmem:[%s1816_s13 + $0x40] ss:$8 sps:$4 sm:$0xff]   ;;  %v1446_v21 = vld [vmem:[%s1816_s13 + $0x54] ss:$8 sps:$4 sm:$0xff]   ;;  %v1450_v23 = vld [vmem:[%s1816_s13 + $0x50] ss:$8 sps:$4 sm:$0xff]  }
  0x55   : > { %1048 = vmatpush1.bf16.msra.mxu1 %v1427_v8  ;;  %1008 = vmatprep.subr.bf16.mxu0 %v1428_v9  ;;  %v1445_v20 = vld [vmem:[%s1816_s13 + $0x140] ss:$8 sps:$4 sm:$0xff]   ;;  %v1448_v22 = vld [vmem:[%s1816_s13 + $0x154] ss:$8 sps:$4 sm:$0xff]   ;;  %v1451_v24 = vld [vmem:[%s1816_s13 + $0x150] ss:$8 sps:$4 sm:$0xff]  }
  0x56   : > { %1049 = vmatprep.subr.bf16.mxu1 %v1430_v10  ;;  %v1452_v25 = vld [vmem:[%s1816_s13 + $0x64] ss:$8 sps:$4 sm:$0xff]   ;;  %v1456_v27 = vld [vmem:[%s1816_s13 + $0x60] ss:$8 sps:$4 sm:$0xff]   ;;  %v1458_v29 = vld [vmem:[%s1816_s13 + $0x74] ss:$8 sps:$4 sm:$0xff]  }
  0x57   : > { %v1454_v26 = vld [vmem:[%s1816_s13 + $0x164] ss:$8 sps:$4 sm:$0xff]   ;;  %v1457_v28 = vld [vmem:[%s1816_s13 + $0x160] ss:$8 sps:$4 sm:$0xff]   ;;  %v1460_v30 = vld [vmem:[%s1816_s13 + $0x174] ss:$8 sps:$4 sm:$0xff]  }
  0x58   : > { %1009 = vmatpush1.bf16.msra.mxu0 %v1432_v11  ;;  %v1462_v31 = vld [vmem:[%s1816_s13 + $0x70] ss:$8 sps:$4 sm:$0xff]   ;;  %v1464_v33 = vld [vmem:[%s1816_s13 + $0x84] ss:$8 sps:$4 sm:$0xff]   ;;  %v1468_v35 = vld [vmem:[%s1816_s13 + $0x80] ss:$8 sps:$4 sm:$0xff]  }
  0x59   : > { %1050 = vmatpush1.bf16.msra.mxu1 %v1433_v12  ;;  %1010 = vmatprep.subr.bf16.mxu0 %v1434_v13  ;;  %v1463_v32 = vld [vmem:[%s1816_s13 + $0x170] ss:$8 sps:$4 sm:$0xff]   ;;  %v1466_v34 = vld [vmem:[%s1816_s13 + $0x184] ss:$8 sps:$4 sm:$0xff]   ;;  %v1469_v36 = vld [vmem:[%s1816_s13 + $0x180] ss:$8 sps:$4 sm:$0xff]  }
  0x5a   : > { %1051 = vmatprep.subr.bf16.mxu1 %v1436_v14  ;;  %v1470_v37 = vld [vmem:[%s1816_s13 + $0x94] ss:$8 sps:$4 sm:$0xff]   ;;  %v1474_v39 = vld [vmem:[%s1816_s13 + $0x90] ss:$8 sps:$4 sm:$0xff]   ;;  %v1476_v41 = vld [vmem:[%s1816_s13 + $0xa4] ss:$8 sps:$4 sm:$0xff]  }
  0x5b   : > { %v1472_v38 = vld [vmem:[%s1816_s13 + $0x194] ss:$8 sps:$4 sm:$0xff]   ;;  %v1475_v40 = vld [vmem:[%s1816_s13 + $0x190] ss:$8 sps:$4 sm:$0xff]   ;;  %v1478_v42 = vld [vmem:[%s1816_s13 + $0x1a4] ss:$8 sps:$4 sm:$0xff]  }
  0x5c   : > { %1011 = vmatpush1.bf16.msra.mxu0 %v1438_v15  ;;  %v1480_v43 = vld [vmem:[%s1816_s13 + $0xa0] ss:$8 sps:$4 sm:$0xff]   ;;  %v1482_v45 = vld [vmem:[%s1816_s13 + $0xb4] ss:$8 sps:$4 sm:$0xff]   ;;  %v1486_v50 = vld [vmem:[%s1816_s13 + $0xb0] ss:$8 sps:$4 sm:$0xff]  }
  0x5d   : > { %1052 = vmatpush1.bf16.msra.mxu1 %v1439_v16  ;;  %1012 = vmatprep.subr.bf16.mxu0 %v1440_v17  ;;  %v1481_v44 = vld [vmem:[%s1816_s13 + $0x1a0] ss:$8 sps:$4 sm:$0xff]   ;;  %v1484_v46 = vld [vmem:[%s1816_s13 + $0x1b4] ss:$8 sps:$4 sm:$0xff]   ;;  %v1487_v51 = vld [vmem:[%s1816_s13 + $0x1b0] ss:$8 sps:$4 sm:$0xff]  }
  0x5e   : > { %1053 = vmatprep.subr.bf16.mxu1 %v1442_v18  ;;  %v604_v47 = vld [vmem:[%s1798_s30] sm:$0xff]  ;;  %v605_v49 = vld [vmem:[%s1798_s30 + $0x8] sm:$0xff]  ;;  %v1488_v53 = vld [vmem:[%s1816_s13 + $0xc4] ss:$8 sps:$4 sm:$0xff]   ;;  %p1353_p13 = scmp.ne.s32.totalorder %s1554_s17, 8 }
  0x5f   : > { %v1286_v48 = vcombine.high %v604_v47, %v604_v47  ;;  %v1288_v52 = vcombine.high %v605_v49, %v605_v49  ;;  %v1490_v54 = vld [vmem:[%s1816_s13 + $0x1c4] ss:$8 sps:$4 sm:$0xff]   ;;  %v1492_v55 = vld [vmem:[%s1816_s13 + $0xc0] ss:$8 sps:$4 sm:$0xff]   ;;  %v1494_v57 = vld [vmem:[%s1816_s13 + $0xd4] ss:$8 sps:$4 sm:$0xff]   ;;  %v1285_v5 = vcombine.low %v604_v47, %v604_v47  ;;  %v1287_v6 = vcombine.low %v605_v49, %v605_v49 }
  0x60   : > { %1013 = vmatpush1.bf16.msra.mxu0 %v1444_v19  ;;  %v1493_v56 = vld [vmem:[%s1816_s13 + $0x1c0] ss:$8 sps:$4 sm:$0xff]   ;;  %v1496_v58 = vld [vmem:[%s1816_s13 + $0x1d4] ss:$8 sps:$4 sm:$0xff]   ;;  %v1498_v59 = vld [vmem:[%s1816_s13 + $0xd0] ss:$8 sps:$4 sm:$0xff]  }
  0x61   : > { %1054 = vmatpush1.bf16.msra.mxu1 %v1445_v20  ;;  %1014 = vmatprep.subr.bf16.mxu0 %v1446_v21  ;;  %v1499_v60 = vld [vmem:[%s1816_s13 + $0x1d0] ss:$8 sps:$4 sm:$0xff]   ;;  %v1500_v61 = vld [vmem:[%s1816_s13 + $0xe4] ss:$8 sps:$4 sm:$0xff]   ;;  %v1504_v63 = vld [vmem:[%s1816_s13 + $0xe0] ss:$8 sps:$4 sm:$0xff]   ;;  %v1098_v21 = vlaneseq (!%p1353_p13) }
  0x62   : > { %1055 = vmatprep.subr.bf16.mxu1 %v1448_v22  ;;  %1036 = vmatprep.mubr.bf16.mxu0 %v1286_v48  ;;  %v1502_v62 = vld [vmem:[%s1816_s13 + $0x1e4] ss:$8 sps:$4 sm:$0xff]   ;;  %v1505_v0 = vld [vmem:[%s1816_s13 + $0x1e0] ss:$8 sps:$4 sm:$0xff]   ;;  %v1506_v1 = vld [vmem:[%s1816_s13 + $0xf4] ss:$8 sps:$4 sm:$0xff]  }
  0x63   : > { %1077 = vmatprep.mubr.bf16.mxu1 %v1288_v52  ;;  %v1508_v2 = vld [vmem:[%s1816_s13 + $0x1f4] ss:$8 sps:$4 sm:$0xff]   ;;  %v1510_v3 = vld [vmem:[%s1816_s13 + $0xf0] ss:$8 sps:$4 sm:$0xff]   ;;  %v1099_v22 = vshrl.u32 (!%p1353_p13), %v1098_v21, 7 }
  0x64   : > { %1015 = vmatpush1.bf16.msra.mxu0 %v1450_v23  ;;  %v1511_v4 = vld [vmem:[%s1816_s13 + $0x1f0] ss:$8 sps:$4 sm:$0xff]  }
  0x65   : > { %1056 = vmatpush1.bf16.msra.mxu1 %v1451_v24  ;;  %1016 = vmatprep.subr.bf16.mxu0 %v1452_v25  ;;  %v602_v8 = vld [vmem:[#allocation2] sm:$0xff]  ;;  %v603_v12 = vld [vmem:[#allocation2 + $0x8] sm:$0xff]  ;;  %v1100_v25 = vsub.s32 (!%p1353_p13), 0, %v1099_v22 }
  0x66   : > { %1057 = vmatprep.subr.bf16.mxu1 %v1454_v26  ;;  %v1096_v23 = vld [vmem:[%s579_s15] sm:$0x3] (!%p1353_p13)  ;;  %v1104_v26 = vsub.s32 (!%p1353_p13), 1, %v1099_v22 }
  0x67   : > { %v1110_v24 = vld [vmem:[%s584_s18] sm:$0x3] (!%p1353_p13) }
  0x68   : > { %1017 = vmatpush1.bf16.msra.mxu0 %v1456_v27 }
  0x69   : > { %1058 = vmatpush1.bf16.msra.mxu1 %v1457_v28  ;;  %1018 = vmatprep.subr.bf16.mxu0 %v1458_v29  ;;  %v1101_v29 = vrot.slane (!%p1353_p13), %v1096_v23, %v1100_v25 }
  0x6a   : > { %1059 = vmatprep.subr.bf16.mxu1 %v1460_v30  ;;  %v1105_v30 = vrot.slane (!%p1353_p13), %v1096_v23, %v1104_v26 }
  0x6c   : > { %1019 = vmatpush1.bf16.msra.mxu0 %v1462_v31  ;;  %v1115_v31 = vrot.slane (!%p1353_p13), %v1110_v24, %v1100_v25 }
  0x6d   : > { %1060 = vmatpush1.bf16.msra.mxu1 %v1463_v32  ;;  %1020 = vmatprep.subr.bf16.mxu0 %v1464_v33  ;;  %v1119_v32 = vrot.slane (!%p1353_p13), %v1110_v24, %v1104_v26 }
  0x6e   : > { %1061 = vmatprep.subr.bf16.mxu1 %v1466_v34 }
  0x70   : > { %1021 = vmatpush1.bf16.msra.mxu0 %v1468_v35 }
  0x71   : > { %1062 = vmatpush1.bf16.msra.mxu1 %v1469_v36  ;;  %1022 = vmatprep.subr.bf16.mxu0 %v1470_v37 }
  0x72   : > { %1063 = vmatprep.subr.bf16.mxu1 %v1472_v38 }
  0x74   : > { %1023 = vmatpush1.bf16.msra.mxu0 %v1474_v39 }
  0x75   : > { %1064 = vmatpush1.bf16.msra.mxu1 %v1475_v40  ;;  %1024 = vmatprep.subr.bf16.mxu0 %v1476_v41 }
  0x76   : > { %1065 = vmatprep.subr.bf16.mxu1 %v1478_v42 }
  0x78   : > { %1025 = vmatpush1.bf16.msra.mxu0 %v1480_v43 }
  0x79   : > { %1066 = vmatpush1.bf16.msra.mxu1 %v1481_v44  ;;  %1026 = vmatprep.subr.bf16.mxu0 %v1482_v45 }
  0x7a   : > { %1067 = vmatprep.subr.bf16.mxu1 %v1484_v46 }
  0x7c   : > { %1027 = vmatpush1.bf16.msra.mxu0 %v1486_v50 }
  0x7d   : > { %1068 = vmatpush1.bf16.msra.mxu1 %v1487_v51  ;;  %1028 = vmatprep.subr.bf16.mxu0 %v1488_v53 }
  0x7e   : > { %1069 = vmatprep.subr.bf16.mxu1 %v1490_v54 }
  0x80   : > { %1029 = vmatpush1.bf16.msra.mxu0 %v1492_v55 }
  0x81   : > { %1070 = vmatpush1.bf16.msra.mxu1 %v1493_v56  ;;  %1030 = vmatprep.subr.bf16.mxu0 %v1494_v57 }
  0x82   : > { %1071 = vmatprep.subr.bf16.mxu1 %v1496_v58 }
  0x84   : > { %1031 = vmatpush1.bf16.msra.mxu0 %v1498_v59 }
  0x85   : > { %1072 = vmatpush1.bf16.msra.mxu1 %v1499_v60  ;;  %1032 = vmatprep.subr.bf16.mxu0 %v1500_v61 }
  0x86   : > { %1073 = vmatprep.subr.bf16.mxu1 %v1502_v62 }
  0x88   : > { %1033 = vmatpush1.bf16.msra.mxu0 %v1504_v63 }
  0x89   : > { %1074 = vmatpush1.bf16.msra.mxu1 %v1505_v0  ;;  %1034 = vmatprep.subr.bf16.mxu0 %v1506_v1 }
  0x8a   : > { %1075 = vmatprep.subr.bf16.mxu1 %v1508_v2 }
  0x8c   : > { %1035 = vmatpush1.bf16.msra.mxu0 %v1510_v3 }
  0x8d   : > { %1076 = vmatpush1.bf16.msra.mxu1 %v1511_v4 }
  0x8f   : > { %1037 = vmatmul.mubr.bf16.vlgmr.msra.gmra.mrb[0].mxu0 %v1285_v5 }
  0x90   : > { %1078 = vmatmul.mubr.bf16.vlgmr.msra.gmra.mrb[0].mxu1 %v1287_v6 }
 0x162   : > { %v1038_v7 = vpop.f32.mrb[0].mxu0 }
 0x163   : > { %v1079_v9 = vpop.f32.mrb[0].mxu1  ;;  %v1040_v11 = vpop.f32.mrb[1].mxu0  ;;  %1093 = sbr.rel (%p1353_p13) target bundleno = 378 (0x17a), region = 82 }
 0x164   : > { %v1080_v10 = vadd.f32 %v1079_v9, %v1038_v7  ;;  %v1081_v13 = vpop.f32.mrb[1].mxu1  ;;  %v1042_v15 = vpop.f32.mrb[2].mxu0 }
 0x165   : > { %v1082_v14 = vadd.f32 %v1081_v13, %v1040_v11  ;;  %v1083_v16 = vpop.f32.mrb[2].mxu1  ;;  %v1043_v18 = vpop.f32.mrb[3].mxu0 }
 0x166   : > { %v1086_v17 = vadd.f32 %v1080_v10, %v602_v8  ;;  %v1084_v19 = vpop.f32.mrb[3].mxu1 }
 0x167   : > { %v1087_v20 = vadd.f32 %v1082_v14, %v603_v12 }
 0x168   : > { %1088 = vst [vmem:[#allocation2] sm:$0xff] %v1086_v17 }
 0x169   : > { %1089 = vst [vmem:[#allocation2 + $0x8] sm:$0xff] %v1087_v20 }
 0x16f   : > { %v1094_v27 = vld [vmem:[#allocation2] sm:$0xff] }
 0x170   : > { %v1095_v28 = vld [vmem:[#allocation2 + $0x8] sm:$0xff]  ;;  %v1108_v33 = vmul.f32 %v1101_v29, %v1094_v27 }
 0x171   : > { %v1109_v34 = vmul.f32 %v1105_v30, %v1095_v28 }
 0x172   : > { %v1122_v35 = vadd.f32 %v1115_v31, %v1108_v33 }
 0x173   : > { %v1123_v36 = vadd.f32 %v1119_v32, %v1109_v34 }
 0x174   : > { %v1124_v37 = vmax.f32 %v1122_v35, 0.0 }
 0x175   : > { %v1125_v38 = vmax.f32 %v1123_v36, 0.0 }
 0x177   : > { %v1358_v39 = vpack.c.bf16 %v1125_v38, %v1124_v37 }
 0x179   : > { %1134 = vst [vmem:[%s1814_s12] sm:$0xff] %v1358_v39 }
 0x17a PF: > { %s14_s21 = sadd.s32 1, %s1570_s21   ;;  %s1923_s15 = smov %s1550_s16 }
 0x17b   : > { %p11_p0 = scmp.ge.s32.totalorder %s14_s21, 20   ;;  %s1924_s16 = smov %s1649_s28 }
 0x17c   : > { %s1925_s17 = smov %s1562_s19  ;;  %s1926_s18 = smov %s1566_s20 }
 0x17d   : > { %s1927_s19 = smov %s1930_s22  ;;  %s1928_s20 = smov %s1934_s23 }
 0x17e   :  { %13 = sbr.rel (!%p11_p0) target bundleno = 4 (0x4), region = 126 }

// kernel: resnet18_forward.45
= control target key start
LH: loop header
LB: loop body
LE: loop exit
PB: predicated region body
PF: predicated region fallthrough
CT: control target
= control target key end

     0   :  { %s657_s1 = inlined_call_operand.vmem [shape: bf16[512,128], index: 1, kind: input, shape index: {}]   ;;  %s658_s0 = inlined_call_operand.vmem [shape: bf16[8,512], index: 0, kind: input, shape index: {}]   ;;  %s659_s2 = inlined_call_operand.vmem [shape: f32[1,128], index: 2, kind: input, shape index: {}]   ;;  %s660_s3 = inlined_call_operand.vmem [shape: f32[1,128], index: 3, kind: input, shape index: {}]   ;;  %s661_s4 = inlined_call_operand.vmem [shape: f32[8,128], index: 4, kind: output, shape index: {}]  }
   0x1   :  { %v485_v0 = vld [vmem:[%s657_s1 + $0x40] sm:$0xff]   ;;  %v489_v4 = vld [vmem:[%s657_s1 + $0x48] sm:$0xff]   ;;  %v493_v8 = vld [vmem:[%s657_s1 + $0x50] sm:$0xff]  }
   0x2   :  { %v486_v1 = vld [vmem:[%s657_s1 + $0xc0] sm:$0xff]   ;;  %441 = vmatprep.subr.bf16.mxu0 %v485_v0  ;;  %v490_v5 = vld [vmem:[%s657_s1 + $0xc8] sm:$0xff]   ;;  %v494_v9 = vld [vmem:[%s657_s1 + $0xd0] sm:$0xff]  }
   0x3   :  { %v487_v2 = vld [vmem:[%s657_s1] sm:$0xff]   ;;  %463 = vmatprep.subr.bf16.mxu1 %v486_v1  ;;  %v491_v6 = vld [vmem:[%s657_s1 + $0x8] sm:$0xff]   ;;  %v495_v10 = vld [vmem:[%s657_s1 + $0x10] sm:$0xff]  }
   0x4   :  { %v488_v3 = vld [vmem:[%s657_s1 + $0x80] sm:$0xff]   ;;  %442 = vmatpush3.bf16.msra.mxu0 %v487_v2  ;;  %v492_v7 = vld [vmem:[%s657_s1 + $0x88] sm:$0xff]   ;;  %v496_v11 = vld [vmem:[%s657_s1 + $0x90] sm:$0xff]  }
   0x5   :  { %464 = vmatpush3.bf16.msra.mxu1 %v488_v3  ;;  %443 = vmatprep.subr.bf16.mxu0 %v489_v4  ;;  %v497_v12 = vld [vmem:[%s657_s1 + $0x58] sm:$0xff]   ;;  %v501_v16 = vld [vmem:[%s657_s1 + $0x60] sm:$0xff]   ;;  %v505_v20 = vld [vmem:[%s657_s1 + $0x68] sm:$0xff]  }
   0x6   :  { %465 = vmatprep.subr.bf16.mxu1 %v490_v5  ;;  %v498_v13 = vld [vmem:[%s657_s1 + $0xd8] sm:$0xff]   ;;  %v502_v17 = vld [vmem:[%s657_s1 + $0xe0] sm:$0xff]   ;;  %v506_v21 = vld [vmem:[%s657_s1 + $0xe8] sm:$0xff]  }
   0x7   :  { %v499_v14 = vld [vmem:[%s657_s1 + $0x18] sm:$0xff]   ;;  %v503_v18 = vld [vmem:[%s657_s1 + $0x20] sm:$0xff]   ;;  %v507_v22 = vld [vmem:[%s657_s1 + $0x28] sm:$0xff]  }
   0x8   :  { %444 = vmatpush3.bf16.msra.mxu0 %v491_v6  ;;  %v500_v15 = vld [vmem:[%s657_s1 + $0x98] sm:$0xff]   ;;  %v504_v19 = vld [vmem:[%s657_s1 + $0xa0] sm:$0xff]   ;;  %v508_v23 = vld [vmem:[%s657_s1 + $0xa8] sm:$0xff]  }
   0x9   :  { %466 = vmatpush3.bf16.msra.mxu1 %v492_v7  ;;  %445 = vmatprep.subr.bf16.mxu0 %v493_v8  ;;  %v509_v24 = vld [vmem:[%s657_s1 + $0x70] sm:$0xff]   ;;  %v513_v28 = vld [vmem:[%s657_s1 + $0x78] sm:$0xff]   ;;  %v24_v32 = vld [vmem:[%s658_s0] sm:$0xff] }
   0xa   :  { %467 = vmatprep.subr.bf16.mxu1 %v494_v9  ;;  %v510_v25 = vld [vmem:[%s657_s1 + $0xf0] sm:$0xff]   ;;  %v514_v29 = vld [vmem:[%s657_s1 + $0xf8] sm:$0xff]   ;;  %v25_v33 = vld [vmem:[%s658_s0 + $0x8] sm:$0xff]  ;;  %v403_v34 = vcombine.low %v24_v32, %v24_v32  ;;  %v404_v35 = vcombine.high %v24_v32, %v24_v32 }
   0xb   :  { %v511_v26 = vld [vmem:[%s657_s1 + $0x30] sm:$0xff]   ;;  %v515_v30 = vld [vmem:[%s657_s1 + $0x38] sm:$0xff]   ;;  %v405_v36 = vcombine.low %v25_v33, %v25_v33  ;;  %v406_v37 = vcombine.high %v25_v33, %v25_v33  ;;  %v439_v46 = vld [vmem:[%s659_s2] ss:$0 sm:$0xff] }
   0xc   :  { %446 = vmatpush3.bf16.msra.mxu0 %v495_v10  ;;  %v512_v27 = vld [vmem:[%s657_s1 + $0xb0] sm:$0xff]   ;;  %v516_v31 = vld [vmem:[%s657_s1 + $0xb8] sm:$0xff]   ;;  %328 = vmatprep.mubr.bf16.mxu0 %v404_v35  ;;  %v440_v50 = vld [vmem:[%s660_s3] ss:$0 sm:$0xff] }
   0xd   :  { %468 = vmatpush3.bf16.msra.mxu1 %v496_v11  ;;  %447 = vmatprep.subr.bf16.mxu0 %v497_v12 }
   0xe   :  { %469 = vmatprep.subr.bf16.mxu1 %v498_v13  ;;  %368 = vmatprep.mubr.bf16.mxu1 %v406_v37 }
  0x10   :  { %448 = vmatpush3.bf16.msra.mxu0 %v499_v14 }
  0x11   :  { %470 = vmatpush3.bf16.msra.mxu1 %v500_v15  ;;  %449 = vmatprep.subr.bf16.mxu0 %v501_v16 }
  0x12   :  { %471 = vmatprep.subr.bf16.mxu1 %v502_v17 }
  0x14   :  { %450 = vmatpush3.bf16.msra.mxu0 %v503_v18 }
  0x15   :  { %472 = vmatpush3.bf16.msra.mxu1 %v504_v19  ;;  %451 = vmatprep.subr.bf16.mxu0 %v505_v20 }
  0x16   :  { %473 = vmatprep.subr.bf16.mxu1 %v506_v21 }
  0x18   :  { %452 = vmatpush3.bf16.msra.mxu0 %v507_v22 }
  0x19   :  { %474 = vmatpush3.bf16.msra.mxu1 %v508_v23  ;;  %453 = vmatprep.subr.bf16.mxu0 %v509_v24 }
  0x1a   :  { %475 = vmatprep.subr.bf16.mxu1 %v510_v25 }
  0x1c   :  { %454 = vmatpush3.bf16.msra.mxu0 %v511_v26 }
  0x1d   :  { %476 = vmatpush3.bf16.msra.mxu1 %v512_v27  ;;  %455 = vmatprep.subr.bf16.mxu0 %v513_v28 }
  0x1e   :  { %477 = vmatprep.subr.bf16.mxu1 %v514_v29 }
  0x20   :  { %456 = vmatpush3.bf16.msra.mxu0 %v515_v30 }
  0x21   :  { %478 = vmatpush3.bf16.msra.mxu1 %v516_v31 }
  0x23   :  { %329 = vmatmul.mubr.bf16.vlgmr.msra.gmra.mrb[0].mxu0 %v403_v34 }
  0x24   :  { %369 = vmatmul.mubr.bf16.vlgmr.msra.gmra.mrb[0].mxu1 %v405_v36 }
  0xf6   :  { %v457_v38 = vpop.f32.mrb[0].mxu0 }
  0xf7   :  { %v479_v39 = vpop.f32.mrb[0].mxu1  ;;  %v458_v40 = vpop.f32.mrb[1].mxu0 }
  0xf8   :  { %v480_v41 = vpop.f32.mrb[1].mxu1  ;;  %v459_v42 = vadd.f32 %v458_v40, %v457_v38  ;;  %v460_v44 = vpop.f32.mrb[2].mxu0 }
  0xf9   :  { %v481_v43 = vadd.f32 %v480_v41, %v479_v39  ;;  %v482_v45 = vpop.f32.mrb[2].mxu1  ;;  %v461_v47 = vpop.f32.mrb[3].mxu0 }
  0xfa   :  { %v483_v48 = vpop.f32.mrb[3].mxu1 }
  0xfb   :  { %v371_v49 = vadd.f32 %v481_v43, %v459_v42 }
  0xfd   :  { %v389_v51 = vmul.f32 %v439_v46, %v371_v49 }
  0xff   :  { %v397_v52 = vadd.f32 %v440_v50, %v389_v51 }
 0x101   :  { %398 = vst [vmem:[%s661_s4] sm:$0xff] %v397_v52 }

</bundles_post_ra>
